<compile_context>
chip_gen: v5e
topology: v5e:2x2
jax: 0.10.0
libtpu: 0.0.40
codegen_flags: <defaults>
</compile_context>

<pallas_src>
import functools

import jax
import jax.numpy as jnp
from jax.experimental import pallas as pl
from jax.experimental.pallas import tpu as pltpu


_MID = 32   # hidden channel count of the primal block (fixed by the module)
_L = 8      # interior column offset inside the padded scratch (sublane aligned)


# ----------------------------------------------------------------------------
# Fused kernel: concat + conv1+PReLU + conv2+PReLU + conv3 + residual
# ----------------------------------------------------------------------------
def _primal_fused_kernel(h_ref, f_nhwc_ref, f_res_ref,
                         w1_ref, b1_ref, a1_ref,
                         w2_ref, b2_ref, a2_ref,
                         w3t_ref, b3_ref,
                         o_ref,
                         pad_ref, xw_ref):
    _, H, W, Ch = h_ref.shape
    Cf = f_nhwc_ref.shape[-1]
    Cin1 = Ch + Cf
    HW = H * W
    L = _L
    Cmax = pad_ref.shape[-1]

    # ---- zero ONLY the 1-pixel halo ring of the shared padded buffer -------
    # Interior lanes that are read are fully rewritten for every layer and no
    # store ever touches the ring, so only the ring must hold zeros.  Done every
    # grid step (cheap) so it is safe under megacore "parallel" sharding.
    zrow = jnp.zeros((1, W + 2, Cmax), jnp.bfloat16)
    pad_ref[0:1, L - 1:L + W + 1, :] = zrow                  # top halo row
    pad_ref[H + 1:H + 2, L - 1:L + W + 1, :] = zrow          # bottom halo row
    zcol = jnp.zeros((H + 2, 1, Cmax), jnp.bfloat16)
    pad_ref[:, L - 1:L, :] = zcol                            # left halo column
    pad_ref[:, L + W:L + W + 1, :] = zcol                    # right halo column

    def conv3x3(C, w_ref, out_transposed=False):
        """3x3 'same' conv of the C-channel image in pad_ref's interior.

        Three accumulating row-tap matmuls (K = 3*C each) against the
        column-shift slab -- no (HW, 9*C) im2col buffer is materialised.
        Returns (HW, Cout) f32, or (Cout, HW) f32 if out_transposed.
        """
        # Stage the 3 column shifts side by side on the lane (channel) axis.
        for dw in range(3):
            xw_ref[:, :, dw * C:(dw + 1) * C] = \
                pad_ref[:, L - 1 + dw:L - 1 + dw + W, 0:C]
        acc = None
        for dh in range(3):      # row taps; f32 accumulation (MRB on v7x)
            patch = xw_ref[dh:dh + H, :, 0:3 * C].reshape(HW, 3 * C)
            if out_transposed:
                part = jax.lax.dot_general(
                    w_ref[dh], patch,
                    dimension_numbers=(((1,), (1,)), ((), ())),
                    preferred_element_type=jnp.float32)       # (Cout, HW)
            else:
                part = jnp.dot(patch, w_ref[dh],
                               preferred_element_type=jnp.float32)
            acc = part if acc is None else acc + part
        return acc

    # ---- layer 1: conv3x3(Cin1 -> 32) + PReLU ------------------------------
    pad_ref[1:H + 1, L:L + W, 0:Ch] = h_ref[0]               # channel concat
    pad_ref[1:H + 1, L:L + W, Ch:Cin1] = f_nhwc_ref[0]       # done in VMEM
    y = conv3x3(Cin1, w1_ref) + b1_ref[...]
    y = jnp.where(y >= 0.0, y, a1_ref[...] * y)              # PReLU in f32

    # ---- layer 2: conv3x3(32 -> 32) + PReLU --------------------------------
    pad_ref[1:H + 1, L:L + W, 0:_MID] = \
        y.astype(jnp.bfloat16).reshape(H, W, _MID)
    y = conv3x3(_MID, w2_ref) + b2_ref[...]
    y = jnp.where(y >= 0.0, y, a2_ref[...] * y)

    # ---- layer 3: conv3x3(32 -> Cout), transposed -> lane-dense (Cout, HW) --
    pad_ref[1:H + 1, L:L + W, 0:_MID] = \
        y.astype(jnp.bfloat16).reshape(H, W, _MID)
    y3t = conv3x3(_MID, w3t_ref, out_transposed=True)        # (Cout, HW) f32

    # residual: out = f + primal_layers(u), flattened NCHW layout
    o_ref[0] = f_res_ref[0] + y3t + b3_ref[...]


def _round_up(x, m):
    return ((x + m - 1) // m) * m


def _padded_vmem_bytes(shape, itemsize):
    """Bytes a VMEM buffer really occupies ((8,128) tiling of the minor dims)."""
    lead = 1
    for d in shape[:-2]:
        lead *= d
    return lead * _round_up(shape[-2], 8) * _round_up(shape[-1], 128) * itemsize


@functools.lru_cache(maxsize=None)
def _make_primal_pallas_call(N, H, W, Ch, Cf):
    Cin1 = Ch + Cf
    HW = H * W
    Cmax = max(Cin1, _MID)
    WP = W + 16                      # padded width: interior at sublane offset 8

    # ---- explicit VMEM budget (lane-padding included) with headroom --------
    scratch = (_padded_vmem_bytes((H + 2, WP, Cmax), 2)        # shared padded image
               + _padded_vmem_bytes((H + 2, W, 3 * Cmax), 2))  # column-shift slab
    blocks = 2 * (_padded_vmem_bytes((1, H, W, Ch), 2)         # double-buffered I/O
                  + _padded_vmem_bytes((1, H, W, Cf), 2)
                  + 2 * _padded_vmem_bytes((1, Cf, HW), 4)     # f_flat + output
                  + _padded_vmem_bytes((3, 3 * Cin1, _MID), 2)
                  + _padded_vmem_bytes((3, 3 * _MID, _MID), 2)
                  + _padded_vmem_bytes((3, Cf, 3 * _MID), 2)
                  + 3 * _padded_vmem_bytes((1, _MID), 4)
                  + _padded_vmem_bytes((Cf, 1), 4))
    temps = 3 * _padded_vmem_bytes((HW, _MID), 4)              # f32 accumulators
    need = scratch + blocks + temps
    vmem_limit = int(min(max(2 * need, 32 * 2**20), 96 * 2**20))

    return pl.pallas_call(
        _primal_fused_kernel,
        out_shape=jax.ShapeDtypeStruct((N, Cf, HW), jnp.float32),
        grid=(N,),
        in_specs=[
            pl.BlockSpec((1, H, W, Ch), lambda n: (n, 0, 0, 0)),    # adjoint(h), NHWC bf16
            pl.BlockSpec((1, H, W, Cf), lambda n: (n, 0, 0, 0)),    # f, NHWC bf16 (conv input)
            pl.BlockSpec((1, Cf, HW), lambda n: (n, 0, 0)),         # f, flat NCHW f32 (residual)
            pl.BlockSpec((3, 3 * Cin1, _MID), lambda n: (0, 0, 0)),  # w1, per row tap
            pl.BlockSpec((1, _MID), lambda n: (0, 0)),              # b1
            pl.BlockSpec((1, _MID), lambda n: (0, 0)),              # a1
            pl.BlockSpec((3, 3 * _MID, _MID), lambda n: (0, 0, 0)),  # w2, per row tap
            pl.BlockSpec((1, _MID), lambda n: (0, 0)),              # b2
            pl.BlockSpec((1, _MID), lambda n: (0, 0)),              # a2
            pl.BlockSpec((3, Cf, 3 * _MID), lambda n: (0, 0, 0)),   # w3^T, per row tap
            pl.BlockSpec((Cf, 1), lambda n: (0, 0)),                # b3
        ],
        out_specs=pl.BlockSpec((1, Cf, HW), lambda n: (n, 0, 0)),
        scratch_shapes=[
            pltpu.VMEM((H + 2, WP, Cmax), jnp.bfloat16),     # padded image (shared by 3 layers)
            pltpu.VMEM((H + 2, W, 3 * Cmax), jnp.bfloat16),  # column-shift staging slab
        ],
        compiler_params=pltpu.CompilerParams(
            dimension_semantics=("parallel",),
            vmem_limit_bytes=vmem_limit),
    )


# ----------------------------------------------------------------------------
# Primal_map parameters + forward
# ----------------------------------------------------------------------------
def init_primal_map_params(key, in_channels, out_channels):
    """Deterministic synthetic init matching the module's parameter shapes."""
    k1, k2, k3 = jax.random.split(key, 3)

    def conv_init(k, cin, cout):
        scale = 1.0 / jnp.sqrt(cin * 9.0)
        w = jax.random.normal(k, (3, 3, cin, cout), jnp.float32) * scale  # HWIO
        b = jnp.zeros((cout,), jnp.float32)
        return w, b

    w1, b1 = conv_init(k1, in_channels, _MID)
    w2, b2 = conv_init(k2, _MID, _MID)
    w3, b3 = conv_init(k3, _MID, out_channels)
    return {
        "w1": w1, "b1": b1, "a1": jnp.full((_MID,), 0.25, jnp.float32),
        "w2": w2, "b2": b2, "a2": jnp.full((_MID,), 0.25, jnp.float32),
        "w3": w3, "b3": b3,
    }


def primal_map_forward(h, f, adjoint_operator, params):
    """h, f in NCHW (PyTorch convention). Returns f + primal_layers(cat(A*h, f))."""
    eval_h = adjoint_operator(h)                           # NCHW
    N, Ch, H, W = eval_h.shape
    Cf = f.shape[1]
    HW = H * W
    Cin1 = Ch + Cf

    # Input-side layout prep is tiny (Cin <= 4 channels); all 32-channel
    # activations stay inside the fused kernel's VMEM.
    h_nhwc = jnp.transpose(eval_h, (0, 2, 3, 1)).astype(jnp.bfloat16)
    f_nhwc = jnp.transpose(f, (0, 2, 3, 1)).astype(jnp.bfloat16)
    f_flat = f.reshape(N, Cf, HW).astype(jnp.float32)      # free reshape (residual)

    # Weights split per row tap (kh): (3, 3*Cin, Cout) so the kernel indexes
    # w[dh] without misaligned sublane slicing; K-order inside a tap = (kw, cin).
    w1 = params["w1"].reshape(3, 3 * Cin1, _MID).astype(jnp.bfloat16)
    w2 = params["w2"].reshape(3, 3 * _MID, _MID).astype(jnp.bfloat16)
    w3t = jnp.transpose(params["w3"].reshape(3, 3 * _MID, Cf),
                        (0, 2, 1)).astype(jnp.bfloat16)     # (3, Cout, 96)
    b1 = params["b1"].reshape(1, _MID).astype(jnp.float32)
    a1 = params["a1"].reshape(1, _MID).astype(jnp.float32)
    b2 = params["b2"].reshape(1, _MID).astype(jnp.float32)
    a2 = params["a2"].reshape(1, _MID).astype(jnp.float32)
    b3 = params["b3"].reshape(Cf, 1).astype(jnp.float32)

    call = _make_primal_pallas_call(N, H, W, Ch, Cf)       # cached per shape
    out_flat = call(h_nhwc, f_nhwc, f_flat, w1, b1, a1, w2, b2, a2, w3t, b3)
    return out_flat.reshape(N, Cf, H, W)                   # free reshape -> NCHW


# ----------------------------------------------------------------------------
# Pure-JAX f32 reference (for correctness check)
# ----------------------------------------------------------------------------
def _conv3x3_ref(x_nhwc, w_hwio, bias):
    y = jax.lax.conv_general_dilated(
        x_nhwc, w_hwio, window_strides=(1, 1), padding="SAME",
        dimension_numbers=("NHWC", "HWIO", "NHWC"))
    return y + bias[None, None, None, :]


def primal_map_ref(h, f, adjoint_operator, params):
    eval_h = adjoint_operator(h)
    u = jnp.concatenate([eval_h, f], axis=1)
    u = jnp.transpose(u, (0, 2, 3, 1))
    x = _conv3x3_ref(u, params["w1"], params["b1"])
    x = jnp.where(x >= 0, x, params["a1"][None, None, None, :] * x)
    x = _conv3x3_ref(x, params["w2"], params["b2"])
    x = jnp.where(x >= 0, x, params["a2"][None, None, None, :] * x)
    x = _conv3x3_ref(x, params["w3"], params["b3"])
    return f + jnp.transpose(x, (0, 3, 1, 2))


if __name__ == "__main__":
    key = jax.random.PRNGKey(0)
    kh, kf, kp = jax.random.split(key, 3)

    # Small shapes consistent with the module: f is the primal image,
    # h is the dual variable; adjoint_operator maps h into image space.
    N, C_f, C_h, H, W = 2, 2, 2, 16, 16
    in_channels = C_h + C_f          # channels of cat(adjoint(h), f)
    out_channels = C_f               # residual add onto f

    h = jax.random.normal(kh, (N, C_h, H, W), jnp.float32)   # NCHW
    f = jax.random.normal(kf, (N, C_f, H, W), jnp.float32)   # NCHW

    # TODO(synk): adjoint_operator is an arbitrary external callable in the
    # PyTorch module; here we use identity (shapes already image-space).
    adjoint_operator = lambda z: z

    params = init_primal_map_params(kp, in_channels, out_channels)

    out = primal_map_forward(h, f, adjoint_operator, params)
    out = jax.block_until_ready(out)

    ref = primal_map_ref(h, f, adjoint_operator, params)
    assert out.shape == (N, C_f, H, W)
    max_err = float(jnp.max(jnp.abs(out - ref)))
    # bf16 MXU matmuls with f32 accumulation -> slightly loosened tolerance.
    assert jnp.allclose(out, ref, atol=3e-2, rtol=3e-2), (
        f"mismatch vs reference (max abs err {max_err})")

    print("KERNEL_OK")
</pallas_src>

<mosaic_0001>
module attributes {stable_mosaic.version = 11 : i64} {
  func.func @_primal_fused_kernel(%arg0: i32, %arg1: memref<1x16x16x2xbf16, #tpu.memory_space<vmem>>, %arg2: memref<1x16x16x2xbf16, #tpu.memory_space<vmem>>, %arg3: memref<1x2x256xf32, #tpu.memory_space<vmem>>, %arg4: memref<3x12x32xbf16, #tpu.memory_space<vmem>>, %arg5: memref<1x32xf32, #tpu.memory_space<vmem>>, %arg6: memref<1x32xf32, #tpu.memory_space<vmem>>, %arg7: memref<3x96x32xbf16, #tpu.memory_space<vmem>>, %arg8: memref<1x32xf32, #tpu.memory_space<vmem>>, %arg9: memref<1x32xf32, #tpu.memory_space<vmem>>, %arg10: memref<3x2x96xbf16, #tpu.memory_space<vmem>>, %arg11: memref<2x1xf32, #tpu.memory_space<vmem>>, %arg12: memref<1x2x256xf32, #tpu.memory_space<vmem>>, %arg13: memref<18x32x32xbf16, #tpu.memory_space<vmem>>, %arg14: memref<18x16x96xbf16, #tpu.memory_space<vmem>>) attributes {dimension_semantics = [#tpu.dimension_semantics<parallel>], iteration_bounds = array<i64: 2>, scalar_prefetch = 0 : i64, scratch_operands = 2 : i64, tpu.core_type = #tpu.core_type<tc>, window_params = [{transform_indices = @transform_0, window_bounds = array<i64: 1, 16, 16, 2>}, {transform_indices = @transform_1, window_bounds = array<i64: 1, 16, 16, 2>}, {transform_indices = @transform_2, window_bounds = array<i64: 1, 2, 256>}, {pipeline_mode = #tpu.pipeline_mode<synchronous>, transform_indices = @transform_3, window_bounds = array<i64: 3, 12, 32>}, {pipeline_mode = #tpu.pipeline_mode<synchronous>, transform_indices = @transform_4, window_bounds = array<i64: 1, 32>}, {pipeline_mode = #tpu.pipeline_mode<synchronous>, transform_indices = @transform_5, window_bounds = array<i64: 1, 32>}, {pipeline_mode = #tpu.pipeline_mode<synchronous>, transform_indices = @transform_6, window_bounds = array<i64: 3, 96, 32>}, {pipeline_mode = #tpu.pipeline_mode<synchronous>, transform_indices = @transform_7, window_bounds = array<i64: 1, 32>}, {pipeline_mode = #tpu.pipeline_mode<synchronous>, transform_indices = @transform_8, window_bounds = array<i64: 1, 32>}, {pipeline_mode = #tpu.pipeline_mode<synchronous>, transform_indices = @transform_9, window_bounds = array<i64: 3, 2, 96>}, {pipeline_mode = #tpu.pipeline_mode<synchronous>, transform_indices = @transform_10, window_bounds = array<i64: 2, 1>}, {transform_indices = @transform_11, window_bounds = array<i64: 1, 2, 256>}]} {
    %cst = arith.constant 0.000000e+00 : bf16
    %0 = vector.broadcast %cst : bf16 to vector<1x18x32xbf16>
    %c0 = arith.constant 0 : index
    %c7 = arith.constant 7 : index
    %c0_0 = arith.constant 0 : index
    %1 = vector.load %arg13[%c0, %c7, %c0_0] : memref<18x32x32xbf16, #tpu.memory_space<vmem>>, vector<1x18x32xbf16>
    tpu.vector_store %arg13[%c0, %c7, %c0_0], %0 {strides = array<i32>} : memref<18x32x32xbf16, #tpu.memory_space<vmem>>, vector<1x18x32xbf16>,
    %c17 = arith.constant 17 : index
    %c7_1 = arith.constant 7 : index
    %c0_2 = arith.constant 0 : index
    %2 = vector.load %arg13[%c17, %c7_1, %c0_2] : memref<18x32x32xbf16, #tpu.memory_space<vmem>>, vector<1x18x32xbf16>
    tpu.vector_store %arg13[%c17, %c7_1, %c0_2], %0 {strides = array<i32>} : memref<18x32x32xbf16, #tpu.memory_space<vmem>>, vector<1x18x32xbf16>,
    %cst_3 = arith.constant 0.000000e+00 : bf16
    %3 = vector.broadcast %cst_3 : bf16 to vector<18x1x32xbf16>
    %c0_4 = arith.constant 0 : index
    %c7_5 = arith.constant 7 : index
    %c0_6 = arith.constant 0 : index
    %4 = vector.load %arg13[%c0_4, %c7_5, %c0_6] : memref<18x32x32xbf16, #tpu.memory_space<vmem>>, vector<18x1x32xbf16>
    tpu.vector_store %arg13[%c0_4, %c7_5, %c0_6], %3 {strides = array<i32>} : memref<18x32x32xbf16, #tpu.memory_space<vmem>>, vector<18x1x32xbf16>,
    %c0_7 = arith.constant 0 : index
    %c24 = arith.constant 24 : index
    %c0_8 = arith.constant 0 : index
    %5 = vector.load %arg13[%c0_7, %c24, %c0_8] : memref<18x32x32xbf16, #tpu.memory_space<vmem>>, vector<18x1x32xbf16>
    tpu.vector_store %arg13[%c0_7, %c24, %c0_8], %3 {strides = array<i32>} : memref<18x32x32xbf16, #tpu.memory_space<vmem>>, vector<18x1x32xbf16>,
    %c0_9 = arith.constant 0 : index
    %c0_10 = arith.constant 0 : index
    %c0_11 = arith.constant 0 : index
    %c0_12 = arith.constant 0 : index
    %6 = vector.load %arg1[%c0_9, %c0_10, %c0_11, %c0_12] : memref<1x16x16x2xbf16, #tpu.memory_space<vmem>>, vector<1x16x16x2xbf16>
    %7 = vector.shape_cast %6 : vector<1x16x16x2xbf16> to vector<16x16x2xbf16>
    %c1 = arith.constant 1 : index
    %c8 = arith.constant 8 : index
    %c0_13 = arith.constant 0 : index
    %8 = vector.load %arg13[%c1, %c8, %c0_13] : memref<18x32x32xbf16, #tpu.memory_space<vmem>>, vector<16x16x2xbf16>
    tpu.vector_store %arg13[%c1, %c8, %c0_13], %7 {strides = array<i32>} : memref<18x32x32xbf16, #tpu.memory_space<vmem>>, vector<16x16x2xbf16>,
    %c0_14 = arith.constant 0 : index
    %c0_15 = arith.constant 0 : index
    %c0_16 = arith.constant 0 : index
    %c0_17 = arith.constant 0 : index
    %9 = vector.load %arg2[%c0_14, %c0_15, %c0_16, %c0_17] : memref<1x16x16x2xbf16, #tpu.memory_space<vmem>>, vector<1x16x16x2xbf16>
    %10 = vector.shape_cast %9 : vector<1x16x16x2xbf16> to vector<16x16x2xbf16>
    %c1_18 = arith.constant 1 : index
    %c8_19 = arith.constant 8 : index
    %c2 = arith.constant 2 : index
    %11 = vector.load %arg13[%c1_18, %c8_19, %c2] : memref<18x32x32xbf16, #tpu.memory_space<vmem>>, vector<16x16x2xbf16>
    tpu.vector_store %arg13[%c1_18, %c8_19, %c2], %10 {strides = array<i32>} : memref<18x32x32xbf16, #tpu.memory_space<vmem>>, vector<16x16x2xbf16>,
    %c0_20 = arith.constant 0 : index
    %c7_21 = arith.constant 7 : index
    %c0_22 = arith.constant 0 : index
    %12 = vector.load %arg13[%c0_20, %c7_21, %c0_22] : memref<18x32x32xbf16, #tpu.memory_space<vmem>>, vector<18x16x4xbf16>
    %c0_23 = arith.constant 0 : index
    %c0_24 = arith.constant 0 : index
    %c0_25 = arith.constant 0 : index
    %13 = vector.load %arg14[%c0_23, %c0_24, %c0_25] : memref<18x16x96xbf16, #tpu.memory_space<vmem>>, vector<18x16x4xbf16>
    tpu.vector_store %arg14[%c0_23, %c0_24, %c0_25], %12 {strides = array<i32>} : memref<18x16x96xbf16, #tpu.memory_space<vmem>>, vector<18x16x4xbf16>,
    %c0_26 = arith.constant 0 : index
    %c8_27 = arith.constant 8 : index
    %c0_28 = arith.constant 0 : index
    %14 = vector.load %arg13[%c0_26, %c8_27, %c0_28] : memref<18x32x32xbf16, #tpu.memory_space<vmem>>, vector<18x16x4xbf16>
    %c0_29 = arith.constant 0 : index
    %c0_30 = arith.constant 0 : index
    %c4 = arith.constant 4 : index
    %15 = vector.load %arg14[%c0_29, %c0_30, %c4] : memref<18x16x96xbf16, #tpu.memory_space<vmem>>, vector<18x16x4xbf16>
    tpu.vector_store %arg14[%c0_29, %c0_30, %c4], %14 {strides = array<i32>} : memref<18x16x96xbf16, #tpu.memory_space<vmem>>, vector<18x16x4xbf16>,
    %c0_31 = arith.constant 0 : index
    %c9 = arith.constant 9 : index
    %c0_32 = arith.constant 0 : index
    %16 = vector.load %arg13[%c0_31, %c9, %c0_32] : memref<18x32x32xbf16, #tpu.memory_space<vmem>>, vector<18x16x4xbf16>
    %c0_33 = arith.constant 0 : index
    %c0_34 = arith.constant 0 : index
    %c8_35 = arith.constant 8 : index
    %17 = vector.load %arg14[%c0_33, %c0_34, %c8_35] : memref<18x16x96xbf16, #tpu.memory_space<vmem>>, vector<18x16x4xbf16>
    tpu.vector_store %arg14[%c0_33, %c0_34, %c8_35], %16 {strides = array<i32>} : memref<18x16x96xbf16, #tpu.memory_space<vmem>>, vector<18x16x4xbf16>,
    %c0_36 = arith.constant 0 : index
    %c0_37 = arith.constant 0 : index
    %c0_38 = arith.constant 0 : index
    %18 = vector.load %arg14[%c0_36, %c0_37, %c0_38] : memref<18x16x96xbf16, #tpu.memory_space<vmem>>, vector<16x16x12xbf16>
    %19 = vector.shape_cast %18 : vector<16x16x12xbf16> to vector<256x12xbf16>
    %c0_39 = arith.constant 0 : index
    %c0_40 = arith.constant 0 : index
    %c0_41 = arith.constant 0 : index
    %20 = vector.load %arg4[%c0_39, %c0_40, %c0_41] : memref<3x12x32xbf16, #tpu.memory_space<vmem>>, vector<1x12x32xbf16>
    %21 = vector.shape_cast %20 : vector<1x12x32xbf16> to vector<12x32xbf16>
    %cst_42 = arith.constant dense<0.000000e+00> : vector<256x32xf32>
    %22 = tpu.matmul %19, %21, %cst_42 {dimension_numbers = #tpu.dot_dimension_numbers<[1], [0], [0], [1], [0, 0, 1, 1], [], []>} : vector<256x12xbf16>, vector<12x32xbf16>, vector<256x32xf32> -> vector<256x32xf32>
    %c1_43 = arith.constant 1 : index
    %c0_44 = arith.constant 0 : index
    %c0_45 = arith.constant 0 : index
    %23 = vector.load %arg14[%c1_43, %c0_44, %c0_45] : memref<18x16x96xbf16, #tpu.memory_space<vmem>>, vector<16x16x12xbf16>
    %24 = vector.shape_cast %23 : vector<16x16x12xbf16> to vector<256x12xbf16>
    %c1_46 = arith.constant 1 : index
    %c0_47 = arith.constant 0 : index
    %c0_48 = arith.constant 0 : index
    %25 = vector.load %arg4[%c1_46, %c0_47, %c0_48] : memref<3x12x32xbf16, #tpu.memory_space<vmem>>, vector<1x12x32xbf16>
    %26 = vector.shape_cast %25 : vector<1x12x32xbf16> to vector<12x32xbf16>
    %cst_49 = arith.constant dense<0.000000e+00> : vector<256x32xf32>
    %27 = tpu.matmul %24, %26, %cst_49 {dimension_numbers = #tpu.dot_dimension_numbers<[1], [0], [0], [1], [0, 0, 1, 1], [], []>} : vector<256x12xbf16>, vector<12x32xbf16>, vector<256x32xf32> -> vector<256x32xf32>
    %28 = arith.addf %22, %27 : vector<256x32xf32>
    %c2_50 = arith.constant 2 : index
    %c0_51 = arith.constant 0 : index
    %c0_52 = arith.constant 0 : index
    %29 = vector.load %arg14[%c2_50, %c0_51, %c0_52] : memref<18x16x96xbf16, #tpu.memory_space<vmem>>, vector<16x16x12xbf16>
    %30 = vector.shape_cast %29 : vector<16x16x12xbf16> to vector<256x12xbf16>
    %c2_53 = arith.constant 2 : index
    %c0_54 = arith.constant 0 : index
    %c0_55 = arith.constant 0 : index
    %31 = vector.load %arg4[%c2_53, %c0_54, %c0_55] : memref<3x12x32xbf16, #tpu.memory_space<vmem>>, vector<1x12x32xbf16>
    %32 = vector.shape_cast %31 : vector<1x12x32xbf16> to vector<12x32xbf16>
    %cst_56 = arith.constant dense<0.000000e+00> : vector<256x32xf32>
    %33 = tpu.matmul %30, %32, %cst_56 {dimension_numbers = #tpu.dot_dimension_numbers<[1], [0], [0], [1], [0, 0, 1, 1], [], []>} : vector<256x12xbf16>, vector<12x32xbf16>, vector<256x32xf32> -> vector<256x32xf32>
    %34 = arith.addf %28, %33 : vector<256x32xf32>
    %c0_57 = arith.constant 0 : index
    %c0_58 = arith.constant 0 : index
    %35 = vector.load %arg5[%c0_57, %c0_58] : memref<1x32xf32, #tpu.memory_space<vmem>>, vector<1x32xf32>
    %36 = vector.broadcast %35 : vector<1x32xf32> to vector<256x32xf32>
    %37 = arith.addf %34, %36 : vector<256x32xf32>
    %cst_59 = arith.constant 0.000000e+00 : f32
    %38 = vector.broadcast %cst_59 : f32 to vector<256x32xf32>
    %39 = arith.cmpf oge, %37, %38 : vector<256x32xf32>
    %c0_60 = arith.constant 0 : index
    %c0_61 = arith.constant 0 : index
    %40 = vector.load %arg6[%c0_60, %c0_61] : memref<1x32xf32, #tpu.memory_space<vmem>>, vector<1x32xf32>
    %41 = vector.broadcast %40 : vector<1x32xf32> to vector<256x32xf32>
    %42 = arith.mulf %41, %37 : vector<256x32xf32>
    %43 = arith.select %39, %37, %42 : vector<256x32xi1>, vector<256x32xf32>
    %44 = arith.truncf %43 : vector<256x32xf32> to vector<256x32xbf16>
    %45 = vector.shape_cast %44 : vector<256x32xbf16> to vector<16x16x32xbf16>
    %c1_62 = arith.constant 1 : index
    %c8_63 = arith.constant 8 : index
    %c0_64 = arith.constant 0 : index
    %46 = vector.load %arg13[%c1_62, %c8_63, %c0_64] : memref<18x32x32xbf16, #tpu.memory_space<vmem>>, vector<16x16x32xbf16>
    tpu.vector_store %arg13[%c1_62, %c8_63, %c0_64], %45 {strides = array<i32>} : memref<18x32x32xbf16, #tpu.memory_space<vmem>>, vector<16x16x32xbf16>,
    %c0_65 = arith.constant 0 : index
    %c7_66 = arith.constant 7 : index
    %c0_67 = arith.constant 0 : index
    %47 = vector.load %arg13[%c0_65, %c7_66, %c0_67] : memref<18x32x32xbf16, #tpu.memory_space<vmem>>, vector<18x16x32xbf16>
    %c0_68 = arith.constant 0 : index
    %c0_69 = arith.constant 0 : index
    %c0_70 = arith.constant 0 : index
    %48 = vector.load %arg14[%c0_68, %c0_69, %c0_70] : memref<18x16x96xbf16, #tpu.memory_space<vmem>>, vector<18x16x32xbf16>
    tpu.vector_store %arg14[%c0_68, %c0_69, %c0_70], %47 {strides = array<i32>} : memref<18x16x96xbf16, #tpu.memory_space<vmem>>, vector<18x16x32xbf16>,
    %c0_71 = arith.constant 0 : index
    %c8_72 = arith.constant 8 : index
    %c0_73 = arith.constant 0 : index
    %49 = vector.load %arg13[%c0_71, %c8_72, %c0_73] : memref<18x32x32xbf16, #tpu.memory_space<vmem>>, vector<18x16x32xbf16>
    %c0_74 = arith.constant 0 : index
    %c0_75 = arith.constant 0 : index
    %c32 = arith.constant 32 : index
    %50 = vector.load %arg14[%c0_74, %c0_75, %c32] : memref<18x16x96xbf16, #tpu.memory_space<vmem>>, vector<18x16x32xbf16>
    tpu.vector_store %arg14[%c0_74, %c0_75, %c32], %49 {strides = array<i32>} : memref<18x16x96xbf16, #tpu.memory_space<vmem>>, vector<18x16x32xbf16>,
    %c0_76 = arith.constant 0 : index
    %c9_77 = arith.constant 9 : index
    %c0_78 = arith.constant 0 : index
    %51 = vector.load %arg13[%c0_76, %c9_77, %c0_78] : memref<18x32x32xbf16, #tpu.memory_space<vmem>>, vector<18x16x32xbf16>
    %c0_79 = arith.constant 0 : index
    %c0_80 = arith.constant 0 : index
    %c64 = arith.constant 64 : index
    %52 = vector.load %arg14[%c0_79, %c0_80, %c64] : memref<18x16x96xbf16, #tpu.memory_space<vmem>>, vector<18x16x32xbf16>
    tpu.vector_store %arg14[%c0_79, %c0_80, %c64], %51 {strides = array<i32>} : memref<18x16x96xbf16, #tpu.memory_space<vmem>>, vector<18x16x32xbf16>,
    %c0_81 = arith.constant 0 : index
    %c0_82 = arith.constant 0 : index
    %c0_83 = arith.constant 0 : index
    %53 = vector.load %arg14[%c0_81, %c0_82, %c0_83] : memref<18x16x96xbf16, #tpu.memory_space<vmem>>, vector<16x16x96xbf16>
    %54 = vector.shape_cast %53 : vector<16x16x96xbf16> to vector<256x96xbf16>
    %c0_84 = arith.constant 0 : index
    %c0_85 = arith.constant 0 : index
    %c0_86 = arith.constant 0 : index
    %55 = vector.load %arg7[%c0_84, %c0_85, %c0_86] : memref<3x96x32xbf16, #tpu.memory_space<vmem>>, vector<1x96x32xbf16>
    %56 = vector.shape_cast %55 : vector<1x96x32xbf16> to vector<96x32xbf16>
    %cst_87 = arith.constant dense<0.000000e+00> : vector<256x32xf32>
    %57 = tpu.matmul %54, %56, %cst_87 {dimension_numbers = #tpu.dot_dimension_numbers<[1], [0], [0], [1], [0, 0, 1, 1], [], []>} : vector<256x96xbf16>, vector<96x32xbf16>, vector<256x32xf32> -> vector<256x32xf32>
    %c1_88 = arith.constant 1 : index
    %c0_89 = arith.constant 0 : index
    %c0_90 = arith.constant 0 : index
    %58 = vector.load %arg14[%c1_88, %c0_89, %c0_90] : memref<18x16x96xbf16, #tpu.memory_space<vmem>>, vector<16x16x96xbf16>
    %59 = vector.shape_cast %58 : vector<16x16x96xbf16> to vector<256x96xbf16>
    %c1_91 = arith.constant 1 : index
    %c0_92 = arith.constant 0 : index
    %c0_93 = arith.constant 0 : index
    %60 = vector.load %arg7[%c1_91, %c0_92, %c0_93] : memref<3x96x32xbf16, #tpu.memory_space<vmem>>, vector<1x96x32xbf16>
    %61 = vector.shape_cast %60 : vector<1x96x32xbf16> to vector<96x32xbf16>
    %cst_94 = arith.constant dense<0.000000e+00> : vector<256x32xf32>
    %62 = tpu.matmul %59, %61, %cst_94 {dimension_numbers = #tpu.dot_dimension_numbers<[1], [0], [0], [1], [0, 0, 1, 1], [], []>} : vector<256x96xbf16>, vector<96x32xbf16>, vector<256x32xf32> -> vector<256x32xf32>
    %63 = arith.addf %57, %62 : vector<256x32xf32>
    %c2_95 = arith.constant 2 : index
    %c0_96 = arith.constant 0 : index
    %c0_97 = arith.constant 0 : index
    %64 = vector.load %arg14[%c2_95, %c0_96, %c0_97] : memref<18x16x96xbf16, #tpu.memory_space<vmem>>, vector<16x16x96xbf16>
    %65 = vector.shape_cast %64 : vector<16x16x96xbf16> to vector<256x96xbf16>
    %c2_98 = arith.constant 2 : index
    %c0_99 = arith.constant 0 : index
    %c0_100 = arith.constant 0 : index
    %66 = vector.load %arg7[%c2_98, %c0_99, %c0_100] : memref<3x96x32xbf16, #tpu.memory_space<vmem>>, vector<1x96x32xbf16>
    %67 = vector.shape_cast %66 : vector<1x96x32xbf16> to vector<96x32xbf16>
    %cst_101 = arith.constant dense<0.000000e+00> : vector<256x32xf32>
    %68 = tpu.matmul %65, %67, %cst_101 {dimension_numbers = #tpu.dot_dimension_numbers<[1], [0], [0], [1], [0, 0, 1, 1], [], []>} : vector<256x96xbf16>, vector<96x32xbf16>, vector<256x32xf32> -> vector<256x32xf32>
    %69 = arith.addf %63, %68 : vector<256x32xf32>
    %c0_102 = arith.constant 0 : index
    %c0_103 = arith.constant 0 : index
    %70 = vector.load %arg8[%c0_102, %c0_103] : memref<1x32xf32, #tpu.memory_space<vmem>>, vector<1x32xf32>
    %71 = vector.broadcast %70 : vector<1x32xf32> to vector<256x32xf32>
    %72 = arith.addf %69, %71 : vector<256x32xf32>
    %cst_104 = arith.constant 0.000000e+00 : f32
    %73 = vector.broadcast %cst_104 : f32 to vector<256x32xf32>
    %74 = arith.cmpf oge, %72, %73 : vector<256x32xf32>
    %c0_105 = arith.constant 0 : index
    %c0_106 = arith.constant 0 : index
    %75 = vector.load %arg9[%c0_105, %c0_106] : memref<1x32xf32, #tpu.memory_space<vmem>>, vector<1x32xf32>
    %76 = vector.broadcast %75 : vector<1x32xf32> to vector<256x32xf32>
    %77 = arith.mulf %76, %72 : vector<256x32xf32>
    %78 = arith.select %74, %72, %77 : vector<256x32xi1>, vector<256x32xf32>
    %79 = arith.truncf %78 : vector<256x32xf32> to vector<256x32xbf16>
    %80 = vector.shape_cast %79 : vector<256x32xbf16> to vector<16x16x32xbf16>
    %c1_107 = arith.constant 1 : index
    %c8_108 = arith.constant 8 : index
    %c0_109 = arith.constant 0 : index
    %81 = vector.load %arg13[%c1_107, %c8_108, %c0_109] : memref<18x32x32xbf16, #tpu.memory_space<vmem>>, vector<16x16x32xbf16>
    tpu.vector_store %arg13[%c1_107, %c8_108, %c0_109], %80 {strides = array<i32>} : memref<18x32x32xbf16, #tpu.memory_space<vmem>>, vector<16x16x32xbf16>,
    %c0_110 = arith.constant 0 : index
    %c7_111 = arith.constant 7 : index
    %c0_112 = arith.constant 0 : index
    %82 = vector.load %arg13[%c0_110, %c7_111, %c0_112] : memref<18x32x32xbf16, #tpu.memory_space<vmem>>, vector<18x16x32xbf16>
    %c0_113 = arith.constant 0 : index
    %c0_114 = arith.constant 0 : index
    %c0_115 = arith.constant 0 : index
    %83 = vector.load %arg14[%c0_113, %c0_114, %c0_115] : memref<18x16x96xbf16, #tpu.memory_space<vmem>>, vector<18x16x32xbf16>
    tpu.vector_store %arg14[%c0_113, %c0_114, %c0_115], %82 {strides = array<i32>} : memref<18x16x96xbf16, #tpu.memory_space<vmem>>, vector<18x16x32xbf16>,
    %c0_116 = arith.constant 0 : index
    %c8_117 = arith.constant 8 : index
    %c0_118 = arith.constant 0 : index
    %84 = vector.load %arg13[%c0_116, %c8_117, %c0_118] : memref<18x32x32xbf16, #tpu.memory_space<vmem>>, vector<18x16x32xbf16>
    %c0_119 = arith.constant 0 : index
    %c0_120 = arith.constant 0 : index
    %c32_121 = arith.constant 32 : index
    %85 = vector.load %arg14[%c0_119, %c0_120, %c32_121] : memref<18x16x96xbf16, #tpu.memory_space<vmem>>, vector<18x16x32xbf16>
    tpu.vector_store %arg14[%c0_119, %c0_120, %c32_121], %84 {strides = array<i32>} : memref<18x16x96xbf16, #tpu.memory_space<vmem>>, vector<18x16x32xbf16>,
    %c0_122 = arith.constant 0 : index
    %c9_123 = arith.constant 9 : index
    %c0_124 = arith.constant 0 : index
    %86 = vector.load %arg13[%c0_122, %c9_123, %c0_124] : memref<18x32x32xbf16, #tpu.memory_space<vmem>>, vector<18x16x32xbf16>
    %c0_125 = arith.constant 0 : index
    %c0_126 = arith.constant 0 : index
    %c64_127 = arith.constant 64 : index
    %87 = vector.load %arg14[%c0_125, %c0_126, %c64_127] : memref<18x16x96xbf16, #tpu.memory_space<vmem>>, vector<18x16x32xbf16>
    tpu.vector_store %arg14[%c0_125, %c0_126, %c64_127], %86 {strides = array<i32>} : memref<18x16x96xbf16, #tpu.memory_space<vmem>>, vector<18x16x32xbf16>,
    %c0_128 = arith.constant 0 : index
    %c0_129 = arith.constant 0 : index
    %c0_130 = arith.constant 0 : index
    %88 = vector.load %arg14[%c0_128, %c0_129, %c0_130] : memref<18x16x96xbf16, #tpu.memory_space<vmem>>, vector<16x16x96xbf16>
    %89 = vector.shape_cast %88 : vector<16x16x96xbf16> to vector<256x96xbf16>
    %c0_131 = arith.constant 0 : index
    %c0_132 = arith.constant 0 : index
    %c0_133 = arith.constant 0 : index
    %90 = vector.load %arg10[%c0_131, %c0_132, %c0_133] : memref<3x2x96xbf16, #tpu.memory_space<vmem>>, vector<1x2x96xbf16>
    %91 = vector.shape_cast %90 : vector<1x2x96xbf16> to vector<2x96xbf16>
    %cst_134 = arith.constant dense<0.000000e+00> : vector<2x256xf32>
    %92 = tpu.matmul %91, %89, %cst_134 {dimension_numbers = #tpu.dot_dimension_numbers<[1], [1], [0], [0], [0, 0, 1, 0], [], []>} : vector<2x96xbf16>, vector<256x96xbf16>, vector<2x256xf32> -> vector<2x256xf32>
    %c1_135 = arith.constant 1 : index
    %c0_136 = arith.constant 0 : index
    %c0_137 = arith.constant 0 : index
    %93 = vector.load %arg14[%c1_135, %c0_136, %c0_137] : memref<18x16x96xbf16, #tpu.memory_space<vmem>>, vector<16x16x96xbf16>
    %94 = vector.shape_cast %93 : vector<16x16x96xbf16> to vector<256x96xbf16>
    %c1_138 = arith.constant 1 : index
    %c0_139 = arith.constant 0 : index
    %c0_140 = arith.constant 0 : index
    %95 = vector.load %arg10[%c1_138, %c0_139, %c0_140] : memref<3x2x96xbf16, #tpu.memory_space<vmem>>, vector<1x2x96xbf16>
    %96 = vector.shape_cast %95 : vector<1x2x96xbf16> to vector<2x96xbf16>
    %cst_141 = arith.constant dense<0.000000e+00> : vector<2x256xf32>
    %97 = tpu.matmul %96, %94, %cst_141 {dimension_numbers = #tpu.dot_dimension_numbers<[1], [1], [0], [0], [0, 0, 1, 0], [], []>} : vector<2x96xbf16>, vector<256x96xbf16>, vector<2x256xf32> -> vector<2x256xf32>
    %98 = arith.addf %92, %97 : vector<2x256xf32>
    %c2_142 = arith.constant 2 : index
    %c0_143 = arith.constant 0 : index
    %c0_144 = arith.constant 0 : index
    %99 = vector.load %arg14[%c2_142, %c0_143, %c0_144] : memref<18x16x96xbf16, #tpu.memory_space<vmem>>, vector<16x16x96xbf16>
    %100 = vector.shape_cast %99 : vector<16x16x96xbf16> to vector<256x96xbf16>
    %c2_145 = arith.constant 2 : index
    %c0_146 = arith.constant 0 : index
    %c0_147 = arith.constant 0 : index
    %101 = vector.load %arg10[%c2_145, %c0_146, %c0_147] : memref<3x2x96xbf16, #tpu.memory_space<vmem>>, vector<1x2x96xbf16>
    %102 = vector.shape_cast %101 : vector<1x2x96xbf16> to vector<2x96xbf16>
    %cst_148 = arith.constant dense<0.000000e+00> : vector<2x256xf32>
    %103 = tpu.matmul %102, %100, %cst_148 {dimension_numbers = #tpu.dot_dimension_numbers<[1], [1], [0], [0], [0, 0, 1, 0], [], []>} : vector<2x96xbf16>, vector<256x96xbf16>, vector<2x256xf32> -> vector<2x256xf32>
    %104 = arith.addf %98, %103 : vector<2x256xf32>
    %c0_149 = arith.constant 0 : index
    %c0_150 = arith.constant 0 : index
    %c0_151 = arith.constant 0 : index
    %105 = vector.load %arg3[%c0_149, %c0_150, %c0_151] : memref<1x2x256xf32, #tpu.memory_space<vmem>>, vector<1x2x256xf32>
    %106 = vector.shape_cast %105 : vector<1x2x256xf32> to vector<2x256xf32>
    %107 = arith.addf %106, %104 : vector<2x256xf32>
    %c0_152 = arith.constant 0 : index
    %c0_153 = arith.constant 0 : index
    %108 = vector.load %arg11[%c0_152, %c0_153] : memref<2x1xf32, #tpu.memory_space<vmem>>, vector<2x1xf32>
    %109 = vector.broadcast %108 : vector<2x1xf32> to vector<2x256xf32>
    %110 = arith.addf %107, %109 : vector<2x256xf32>
    %c0_154 = arith.constant 0 : index
    %c0_155 = arith.constant 0 : index
    %c0_156 = arith.constant 0 : index
    %111 = vector.load %arg12[%c0_154, %c0_155, %c0_156] : memref<1x2x256xf32, #tpu.memory_space<vmem>>, vector<1x2x256xf32>
    %112 = vector.shape_cast %111 : vector<1x2x256xf32> to vector<2x256xf32>
    %113 = vector.shape_cast %110 : vector<2x256xf32> to vector<1x2x256xf32>
    tpu.vector_store %arg12[%c0_154, %c0_155, %c0_156], %113 {strides = array<i32>} : memref<1x2x256xf32, #tpu.memory_space<vmem>>, vector<1x2x256xf32>,
    return
  }
  func.func @transform_0(%arg0: i32) -> (i32, i32, i32, i32) {
    %c0_i32 = arith.constant 0 : i32
    %c0_i32_0 = arith.constant 0 : i32
    %c0_i32_1 = arith.constant 0 : i32
    %c0_i32_2 = arith.constant 0 : i32
    return %arg0, %c0_i32, %c0_i32_0, %c0_i32_1 : i32, i32, i32, i32
  }
  func.func @transform_1(%arg0: i32) -> (i32, i32, i32, i32) {
    %c0_i32 = arith.constant 0 : i32
    %c0_i32_0 = arith.constant 0 : i32
    %c0_i32_1 = arith.constant 0 : i32
    %c0_i32_2 = arith.constant 0 : i32
    return %arg0, %c0_i32, %c0_i32_0, %c0_i32_1 : i32, i32, i32, i32
  }
  func.func @transform_2(%arg0: i32) -> (i32, i32, i32) {
    %c0_i32 = arith.constant 0 : i32
    %c0_i32_0 = arith.constant 0 : i32
    %c0_i32_1 = arith.constant 0 : i32
    return %arg0, %c0_i32, %c0_i32_0 : i32, i32, i32
  }
  func.func @transform_3(%arg0: i32) -> (i32, i32, i32) {
    %c0_i32 = arith.constant 0 : i32
    %c0_i32_0 = arith.constant 0 : i32
    %c0_i32_1 = arith.constant 0 : i32
    %c0_i32_2 = arith.constant 0 : i32
    return %c0_i32, %c0_i32_0, %c0_i32_1 : i32, i32, i32
  }
  func.func @transform_4(%arg0: i32) -> (i32, i32) {
    %c0_i32 = arith.constant 0 : i32
    %c0_i32_0 = arith.constant 0 : i32
    %c0_i32_1 = arith.constant 0 : i32
    return %c0_i32, %c0_i32_0 : i32, i32
  }
  func.func @transform_5(%arg0: i32) -> (i32, i32) {
    %c0_i32 = arith.constant 0 : i32
    %c0_i32_0 = arith.constant 0 : i32
    %c0_i32_1 = arith.constant 0 : i32
    return %c0_i32, %c0_i32_0 : i32, i32
  }
  func.func @transform_6(%arg0: i32) -> (i32, i32, i32) {
    %c0_i32 = arith.constant 0 : i32
    %c0_i32_0 = arith.constant 0 : i32
    %c0_i32_1 = arith.constant 0 : i32
    %c0_i32_2 = arith.constant 0 : i32
    return %c0_i32, %c0_i32_0, %c0_i32_1 : i32, i32, i32
  }
  func.func @transform_7(%arg0: i32) -> (i32, i32) {
    %c0_i32 = arith.constant 0 : i32
    %c0_i32_0 = arith.constant 0 : i32
    %c0_i32_1 = arith.constant 0 : i32
    return %c0_i32, %c0_i32_0 : i32, i32
  }
  func.func @transform_8(%arg0: i32) -> (i32, i32) {
    %c0_i32 = arith.constant 0 : i32
    %c0_i32_0 = arith.constant 0 : i32
    %c0_i32_1 = arith.constant 0 : i32
    return %c0_i32, %c0_i32_0 : i32, i32
  }
  func.func @transform_9(%arg0: i32) -> (i32, i32, i32) {
    %c0_i32 = arith.constant 0 : i32
    %c0_i32_0 = arith.constant 0 : i32
    %c0_i32_1 = arith.constant 0 : i32
    %c0_i32_2 = arith.constant 0 : i32
    return %c0_i32, %c0_i32_0, %c0_i32_1 : i32, i32, i32
  }
  func.func @transform_10(%arg0: i32) -> (i32, i32) {
    %c0_i32 = arith.constant 0 : i32
    %c0_i32_0 = arith.constant 0 : i32
    %c0_i32_1 = arith.constant 0 : i32
    return %c0_i32, %c0_i32_0 : i32, i32
  }
  func.func @transform_11(%arg0: i32) -> (i32, i32, i32) {
    %c0_i32 = arith.constant 0 : i32
    %c0_i32_0 = arith.constant 0 : i32
    %c0_i32_1 = arith.constant 0 : i32
    return %arg0, %c0_i32, %c0_i32_0 : i32, i32, i32
  }
}

</mosaic_0001>

<bundles_post_ra>
// kernel: tpu_custom_call.1
= control target key start
LH: loop header
LB: loop body
LE: loop exit
PB: predicated region body
PF: predicated region fallthrough
CT: control target
= control target key end

     0   :  { %s11133_s0 = inlined_call_operand.vmem [shape: bf16[2,16,16,2], index: 0, kind: input, shape index: {}]   ;;  %s11134_s1 = inlined_call_operand.vmem [shape: bf16[2,16,16,2], index: 1, kind: input, shape index: {}]   ;;  %s11135_s2 = inlined_call_operand.vmem [shape: f32[2,2,256], index: 2, kind: input, shape index: {}]   ;;  %s11136_s3 = inlined_call_operand.vmem [shape: bf16[3,12,32], index: 3, kind: input, shape index: {}]   ;;  %s11137_s4 = inlined_call_operand.vmem [shape: f32[1,32], index: 4, kind: input, shape index: {}]   ;;  %s11138_s5 = inlined_call_operand.vmem [shape: f32[1,32], index: 5, kind: input, shape index: {}]   ;;  %s11139_s6 = inlined_call_operand.vmem [shape: bf16[3,96,32], index: 6, kind: input, shape index: {}]   ;;  %s11140_s7 = inlined_call_operand.vmem [shape: f32[1,32], index: 7, kind: input, shape index: {}]   ;;  %s11141_s8 = inlined_call_operand.vmem [shape: f32[1,32], index: 8, kind: input, shape index: {}]   ;;  %s11142_s9 = inlined_call_operand.vmem [shape: bf16[3,2,96], index: 9, kind: input, shape index: {}]   ;;  %s11143_s10 = inlined_call_operand.vmem [shape: f32[2,1], index: 10, kind: input, shape index: {}]   ;;  %s11144_s11 = inlined_call_operand.hbm [shape: f32[2,2,256], index: 11, kind: output, shape index: {}]  }
   0x1   :  { %11145 = sst [smem:[#allocation7_spill]] %s11133_s0 }
   0x2   :  { %11146 = sst [smem:[#allocation8_spill]] %s11134_s1 }
   0x3   :  { %16 = vsyncpa [#allocation5], 0 }
   0x4   :  { %18 = vsyncpa [#allocation5 + $0x1], 0  ;;  %s8990_s17 = smov 0   ;;  %s8992_s18 = smov 0  }
   0x5   :  { %s8994_s19 = smov 0   ;;  %s8996_s20 = smov 0  }
   0x6 LB: > { %s9011_s21 = sadd.s32 4294967295, %s8921_s20   ;;  %s7766_s22 = sadd.s32 4294967294, %s8921_s20   ;;  %s8921_s20 = sphi %s8996_s20, %s11162_s20   ;;  %s8917_s19 = sphi %s8994_s19, %s11161_s19   ;;  %s8913_s18 = sphi %s8992_s18, %s11160_s18   ;;  %s8909_s17 = sphi %s8990_s17, %s11159_s17  }
   0x7   : > { %s9015_s23 = sadd.s32 1, %s8921_s20   ;;  %s277_s24 = sadd.s32 1, %s8917_s19 }
   0x8   : > { %s274_s25 = ssub.s32 %s8921_s20, %s9015_s23  ;;  %p287_p0 = scmp.ne.s32.totalorder %s8917_s19, %s8913_s18 }
   0x9   : > { %p275_p1 = scmp.eq.s32.totalorder %s274_s25, 0  ;;  %p288_p2 = scmp.eq.s32.totalorder %s9011_s21, 1 }
   0xa   : > { %p293_p3 = scmp.ne.s32.totalorder %s8913_s18, %s8909_s17  ;;  %p294_p4 = scmp.eq.s32.totalorder %s7766_s22, 1 }
   0xb   : > { %s9026_s26 = scalar_select %p275_p1, %s8917_s19, %s277_s24  }
   0xc   : > { %p9028_p5 = por %p288_p2, %p287_p0  ;;  %p9032_p6 = por %p294_p4, %p293_p3 }
   0xd   : > { %p7769_p7 = scmp.ge.s32.totalorder %s8921_s20, 1  ;;  %p360_p8 = scmp.lt.s32.totalorder %s8921_s20, 3 }
   0xf   : > { %p361_p9 = pnand %p7769_p7, %p360_p8 }
  0x10   : > { %p410_p10 = scmp.lt.s32.totalorder (!%p361_p9), %s9011_s21, 1  ;;  %s11149_s1 = sld [smem:[#allocation8_spill]] (!%p361_p9) }
  0x11   : > { %364 = sbr.rel (%p361_p9) target bundleno = 1643 (0x66b), region = 64  ;;  %s8923_s15 = smov (!%p361_p9), 2  }
  0x12   : > { %s11150_s0 = sld [smem:[#allocation7_spill]] (!%p361_p9)  ;;  %s8925_s25 = smov (!%p361_p9), 4  }
  0x13   : > { %s8928_s16 = smov (!%p361_p9), 32   ;;  %s407_s13 = sand.u32 (!%p361_p9), 1, %s8913_s18  }
  0x16   : > { %s9040_s29 = scalar_select %p410_p10, %s9011_s21, 1  ;;  %vm591_vm0 = vcmask 11264   ;;  %vm784_vm1 = vcmask 27664   ;;  %vm435_vm2 = vcmask 253952   ;;  %vm436_vm3 = vsmask.f32 256 }
  0x17   : > { %v546_v24 = vld [vmem:[#allocation2 + $0xec] sm:$0x1]  ;;  %vm426_vm4 = vcmask 257027   ;;  %vm9104_vm5 = vmand %vm435_vm2, %vm436_vm3  ;;  %vm427_vm6 = vsmask.f32 7950  ;;  %vm432_vm7 = vcmask 257024  }
  0x18   : > { %s8628_s30 = sshll.u32 %s9040_s29, 7  ;;  %v547_v26 = vsel %vm9104_vm5, 0, %v546_v24  ;;  %vm9110_vm8 = vmand %vm426_vm4, %vm427_vm6  ;;  %v492_v28 = vld [vmem:[#allocation2 + $0xe0] sm:$0x8]  ;;  %v8924_v29 = vmov 0   ;;  %vm1305_vm13 = vcmask 27648  }
  0x19   : > { %s9048_s14 = scalar_lea.vmem %s11149_s1, %s8628_s30  ;;  %s9085_s24 = scalar_lea.vmem %s11150_s0, %s8628_s30  ;;  %548 = vst [vmem:[#allocation2 + $0xec] sm:$0x1] %v547_v26  ;;  %8845 = vset.pattern.permute.xlu2 %v8924_v29  ;;  %8846 = vset.pattern.permute.xlu0 %v8924_v29  ;;  %v493_v30 = vsel %vm9110_vm8, 0, %v492_v28  ;;  %v549_v35 = vld [vmem:[#allocation2 + $0xfc] sm:$0x1]  ;;  %vm1522_vm15 = vcmask 60448  }
  0x1a   : > { %v652_v0 = vld [vmem:[%s9048_s14 + $0x70] sm:$0xf]  ;;  %v650_v1 = vld [vmem:[%s9048_s14 + $0x68] sm:$0xf]  ;;  %v654_v2 = vld [vmem:[%s9048_s14 + $0x78] sm:$0xf] }
  0x1b   : > { %744 = vrot.lane.b32.xlu1 %v652_v0, %s8923_s15  ;;  %740 = vrot.lane.b32.xlu0 %v650_v1, %s8923_s15  ;;  %v653_v3 = vld [vmem:[%s9048_s14 + $0x74] sm:$0xf]  ;;  %v651_v4 = vld [vmem:[%s9048_s14 + $0x6c] sm:$0xf]  ;;  %434 = vst.msk [vmem:[#allocation2 + $0x8] sm:$0xf] %vm432_vm7, %v8924_v29 }
  0x1c   : > { %748 = vrot.lane.b32.xlu2 %v654_v2, %s8923_s15  ;;  %v655_v5 = vld [vmem:[%s9048_s14 + $0x7c] sm:$0xf]  ;;  %v626_v6 = vld [vmem:[%s9048_s14 + $0x8] sm:$0xf]  ;;  %v627_v7 = vld [vmem:[%s9048_s14 + $0xc] sm:$0xf] }
  0x1d   : > { %v624_v8 = vld [vmem:[%s9048_s14] sm:$0xf]  ;;  %v625_v9 = vld [vmem:[%s9048_s14 + $0x4] sm:$0xf]  ;;  %v628_v10 = vld [vmem:[%s9048_s14 + $0x10] sm:$0xf] }
  0x1e   : > { %v629_v11 = vld [vmem:[%s9048_s14 + $0x14] sm:$0xf]  ;;  %v630_v12 = vld [vmem:[%s9048_s14 + $0x18] sm:$0xf]  ;;  %v631_v13 = vld [vmem:[%s9048_s14 + $0x1c] sm:$0xf] }
  0x1f   : > { %v633_v14 = vld [vmem:[%s9048_s14 + $0x24] sm:$0xf]  ;;  %v584_v15 = vld [vmem:[%s9085_s24 + $0x68] sm:$0xf]  ;;  %v586_v16 = vld [vmem:[%s9085_s24 + $0x70] sm:$0xf] }
  0x20   : > { %618 = vst.msk [vmem:[#allocation2 + $0xe4] sm:$0xf] %vm591_vm0, %v584_v15  ;;  %v588_v17 = vld [vmem:[%s9085_s24 + $0x78] sm:$0xf]  ;;  %v587_v18 = vld [vmem:[%s9085_s24 + $0x74] sm:$0xf] }
  0x21   : > { %620 = vst.msk [vmem:[#allocation2 + $0xf4] sm:$0xf] %vm591_vm0, %v586_v16  ;;  %v585_v19 = vld [vmem:[%s9085_s24 + $0x6c] sm:$0xf]  ;;  %v632_v21 = vld [vmem:[%s9048_s14 + $0x20] sm:$0xf] }
  0x22   : > { %622 = vst.msk [vmem:[#allocation2 + $0x104] sm:$0xf] %vm591_vm0, %v588_v17  ;;  %v589_v22 = vld [vmem:[%s9085_s24 + $0x7c] sm:$0xf]  ;;  %v560_v31 = vld [vmem:[%s9085_s24 + $0x8] sm:$0xf] }
  0x23   : > { %746 = vrot.lane.b32.xlu1 %v653_v3, %s8923_s15  ;;  %742 = vrot.lane.b32.xlu0 %v651_v4, %s8923_s15  ;;  %621 = vst.msk [vmem:[#allocation2 + $0xf8] sm:$0xf] %vm591_vm0, %v587_v18  ;;  %v561_v32 = vld [vmem:[%s9085_s24 + $0xc] sm:$0xf]  ;;  %v550_v36 = vsel %vm9104_vm5, 0, %v549_v35  ;;  %s8926_s30 = smov 8  }
  0x24   : > { %750 = vrot.lane.b32.xlu2 %v655_v5, %s8923_s15  ;;  %619 = vst.msk [vmem:[#allocation2 + $0xe8] sm:$0xf] %vm591_vm0, %v585_v19  ;;  %v495_v37 = vld [vmem:[#allocation2 + $0xf0] sm:$0x8]  ;;  %v558_v49 = vld [vmem:[%s9085_s24] sm:$0xf] }
  0x25   : > { %623 = vst.msk [vmem:[#allocation2 + $0x108] sm:$0xf] %vm591_vm0, %v589_v22  ;;  %v496_v38 = vsel %vm9110_vm8, 0, %v495_v37  ;;  %vm1613_vm9 = vsmask.f32 3328  ;;  %vm2397_vm2 = vcmask 1045504  }
  0x26   : > { %433 = vst.msk [vmem:[#allocation2 + $0x4] sm:$0xf] %vm432_vm7, %v8924_v29  ;;  %vm1614_vm10 = vsmask.f32 7440  ;;  %v552_v54 = vld [vmem:[#allocation2 + $0x10c] sm:$0x1] }
  0x27   : > { %445 = vst.msk [vmem:[#allocation2 + $0x114] sm:$0xf] %vm432_vm7, %v8924_v29  ;;  %v1603_v56 = vld [vmem:[#allocation2 + $0xec] sm:$0x1]  ;;  %v559_v62 = vld [vmem:[%s9085_s24 + $0x4] sm:$0xf]  ;;  %vm9147_vm11 = vmor %vm1613_vm9, %vm1614_vm10 }
  0x28   : > { %446 = vst.msk [vmem:[#allocation2 + $0x118] sm:$0xf] %vm432_vm7, %v8924_v29  ;;  %v553_v0 = vsel %vm9104_vm5, 0, %v552_v54  ;;  %vm871_vm12 = vsmask.f32 4368  ;;  %vm2348_vm4 = vcmask 97280  }
  0x29   : > { %594 = vst.msk [vmem:[#allocation2 + $0x24] sm:$0xf] %vm591_vm0, %v560_v31  ;;  %vm9190_vm14 = vmor %vm436_vm3, %vm871_vm12  ;;  %vm2156_vm3 = vcmask 93248   ;;  %v8742_v27 = vld [vmem:[%s11139_s6 + $0x60] sm:$0xff] }
  0x2a   : > { %494 = vst [vmem:[#allocation2 + $0xe0] sm:$0x8] %v493_v30 }
  0x2b   : > { %692 = vrot.lane.b32.xlu0 %v626_v6, %s8923_s15  ;;  %694 = vrot.lane.b32.xlu1 %v627_v7, %s8923_s15  ;;  %595 = vst.msk [vmem:[#allocation2 + $0x28] sm:$0xf] %vm591_vm0, %v561_v32  ;;  %v9159_v32 = vld [vmem:[#allocation2 + $0x8] sm:$0xf] }
  0x2c   : > { %688 = vrot.lane.b32.xlu2 %v624_v8, %s8923_s15  ;;  %551 = vst [vmem:[#allocation2 + $0xfc] sm:$0x1] %v550_v36  ;;  %v1972_v8 = vshll.u32 %v1603_v56, 16 }
  0x2d   : > { %497 = vst [vmem:[#allocation2 + $0xf0] sm:$0x8] %v496_v38  ;;  %v1559_v57 = vld [vmem:[#allocation2 + $0x4] sm:$0xf] }
  0x2e   : > { %592 = vst.msk [vmem:[#allocation2 + $0x14] sm:$0xf] %vm591_vm0, %v558_v49  ;;  %v1617_v5 = vshrl.u32 %v1559_v57, 16  ;;  %v1620_v6 = vshll.u32 %v1559_v57, 16  ;;  %v1974_v29 = vrot.slane %v1972_v8, 5  ;;  %v1630_v57 = vshrl.u32 %v9159_v32, 16 }
  0x2f   : > { %593 = vst.msk [vmem:[#allocation2 + $0x18] sm:$0xf] %vm591_vm0, %v559_v62 }
  0x30   : > { %554 = vst [vmem:[#allocation2 + $0x10c] sm:$0x1] %v553_v0  ;;  %v1619_v19 = vrot.slane %v1617_v5, 4 }
  0x31   : > { %v859_v17 = vld [vmem:[#allocation2 + $0xe0] sm:$0x8] }
  0x32   : > { %v1182_v38 = vshrl.u32 %v859_v17, 16 }
  0x33   : > { %690 = vrot.lane.b32.xlu0 %v625_v9, %s8923_s15 }
  0x34   : > { %696 = vrot.lane.b32.xlu2 %v628_v10, %s8923_s15 }
  0x3b   : > { %698 = vrot.lane.b32.xlu0 %v629_v11, %s8923_s15 }
  0x3c   : > { %700 = vrot.lane.b32.xlu2 %v630_v12, %s8923_s15 }
  0x43   : > { %702 = vrot.lane.b32.xlu0 %v631_v13, %s8923_s15 }
  0x44   : > { %704 = vrot.lane.b32.xlu2 %v632_v21, %s8923_s15  ;;  %v438_v21 = vld [vmem:[#allocation2 + $0xc] sm:$0x1] }
  0x45   : > { %v439_v36 = vsel %vm9104_vm5, 0, %v438_v21 }
  0x46   : > { %440 = vst [vmem:[#allocation2 + $0xc] sm:$0x1] %v439_v36 }
  0x4b   : > { %706 = vrot.lane.b32.xlu0 %v633_v14, %s8923_s15 }
  0x76   : > { %v749_v20 = vpop.permute.xlu2 %748 }
  0x77   : > { %815 = vst.msk [vmem:[#allocation2 + $0x104] sm:$0xf] %vm784_vm1, %v749_v20  ;;  %v1622_v20 = vrot.slane %v1620_v6, 5 }
  0x7e   : > { %v751_v23 = vpop.permute.xlu2 %750  ;;  %v1607_v39 = vld [vmem:[#allocation2 + $0x104] sm:$0xf] }
  0x7f   : > { %816 = vst.msk [vmem:[#allocation2 + $0x108] sm:$0xf] %vm784_vm1, %v751_v23  ;;  %v2001_v47 = vshrl.u32 %v1607_v39, 16  ;;  %v2004_v48 = vshll.u32 %v1607_v39, 16  ;;  %v1374_v23 = vld [vmem:[#allocation2 + $0x104] sm:$0xf] }
  0x81   : > { %v2003_v52 = vrot.slane %v2001_v47, 4  ;;  %v2006_v53 = vrot.slane %v2004_v48, 5 }
  0x83   : > { %v2007_v10 = vor.u32 %v2006_v53, %v2003_v52 }
  0x86   : > { %v689_v46 = vpop.permute.xlu2 %688  ;;  %v9137_v63 = vld [vmem:[#allocation2 + $0x108] sm:$0xf] }
  0x87   : > { %785 = vst.msk [vmem:[#allocation2 + $0x14] sm:$0xf] %vm784_vm1, %v689_v46  ;;  %v2010_v16 = vshll.u32 %v9137_v63, 16  ;;  %v2014_v36 = vshrl.u32 %v9137_v63, 16 }
  0x89   : > { %v9164_v35 = vrot.slane %v2010_v16, 5  ;;  %v9206_v16 = vld [vmem:[#allocation2 + $0x104] sm:$0xf] }
  0x8d   : > { %v745_v33 = vpop.permute.xlu1 %744  ;;  %v741_v34 = vpop.permute.xlu0 %740 }
  0x8e   : > { %813 = vst.msk [vmem:[#allocation2 + $0xf4] sm:$0xf] %vm784_vm1, %v745_v33  ;;  %v697_v17 = vpop.permute.xlu2 %696 }
  0x8f   : > { %811 = vst.msk [vmem:[#allocation2 + $0xe4] sm:$0xf] %vm784_vm1, %v741_v34  ;;  %v9161_v34 = vrot.slane %v2007_v10, 4 }
  0x95   : > { %v747_v40 = vpop.permute.xlu1 %746  ;;  %v743_v41 = vpop.permute.xlu0 %742  ;;  %v1372_v55 = vld [vmem:[#allocation2 + $0xf4] sm:$0xf] }
  0x96   : > { %814 = vst.msk [vmem:[#allocation2 + $0xf8] sm:$0xf] %vm784_vm1, %v747_v40  ;;  %v1370_v42 = vld [vmem:[#allocation2 + $0xe4] sm:$0xf]  ;;  %v1604_v61 = vld [vmem:[#allocation2 + $0xf4] sm:$0xf]  ;;  %v1623_v40 = vor.u32 %v1622_v20, %v1619_v19 }
  0x97   : > { %v1601_v43 = vld [vmem:[#allocation2 + $0xe4] sm:$0xf]  ;;  %812 = vst.msk [vmem:[#allocation2 + $0xe8] sm:$0xf] %vm784_vm1, %v743_v41  ;;  %1470 = vrot.lane.b32.xlu1 %v1370_v42, %s8925_s25  ;;  %v1977_v9 = vshrl.u32 %v1604_v61, 16  ;;  %v1980_v15 = vshll.u32 %v1604_v61, 16 }
  0x98   : > { %v1953_v44 = vshrl.u32 %v1601_v43, 16  ;;  %v1956_v45 = vshll.u32 %v1601_v43, 16  ;;  %v9152_v11 = vld [vmem:[#allocation2 + $0xe4] sm:$0xf]  ;;  %v1606_v41 = vld [vmem:[#allocation2 + $0xfc] sm:$0x1] }
  0x99   : > { %v1187_v28 = vshrl.u32 %v9152_v11, 16  ;;  %v1979_v30 = vrot.slane %v1977_v9, 4  ;;  %v1982_v31 = vrot.slane %v1980_v15, 5  ;;  %v507_v42 = vld [vmem:[#allocation2 + $0x1c] sm:$0x1]  ;;  %v1996_v53 = vshll.u32 %v1606_v41, 16 }
  0x9a   : > { %v1955_v50 = vrot.slane %v1953_v44, 4  ;;  %v1958_v51 = vrot.slane %v1956_v45, 5  ;;  %v1343_v43 = vld [vmem:[#allocation2 + $0x8] sm:$0xf]  ;;  %v1626_v45 = vshll.u32 %v9159_v32, 16  ;;  %v9179_v56 = vrot.slane %v1623_v40, 4 }
  0x9b   : > { %v9171_v46 = vrot.slane %v1187_v28, 7  ;;  %v1983_v48 = vor.u32 %v1982_v31, %v1979_v30  ;;  %v1375_v61 = vld [vmem:[#allocation2 + $0x108] sm:$0xf]  ;;  %v9197_v9 = vrot.slane %v1996_v53, 5  ;;  %v562_v15 = vld [vmem:[%s9085_s24 + $0x10] sm:$0xf] }
  0x9c   : > { %v1959_v58 = vor.u32 %v1958_v51, %v1955_v50  ;;  %v508_v50 = vsel %vm9104_vm5, 0, %v507_v42  ;;  %v9175_v51 = vld [vmem:[#allocation2 + $0xf4] sm:$0xf]  ;;  %v867_v19 = vld [vmem:[#allocation2 + $0x108] sm:$0xf]  ;;  %v1190_v31 = vshll.u32 %v9152_v11, 16 }
  0x9d   : > { %v693_v59 = vpop.permute.xlu0 %692  ;;  %v695_v60 = vpop.permute.xlu1 %694  ;;  %v1373_v24 = vld [vmem:[#allocation2 + $0xf8] sm:$0xf]  ;;  %509 = vst [vmem:[#allocation2 + $0x1c] sm:$0x1] %v508_v50  ;;  %v1194_v0 = vrot.slane %v9171_v46, 4  ;;  %v1209_v6 = vshrl.u32 %v9175_v51, 16 }
  0x9e   : > { %v1371_v1 = vld [vmem:[#allocation2 + $0xe8] sm:$0xf]  ;;  %787 = vst.msk [vmem:[#allocation2 + $0x24] sm:$0xf] %vm784_vm1, %v693_v59  ;;  %v1960_v12 = vrot.slane %v1959_v58, 4  ;;  %v1192_v41 = vor.u32 %v1190_v31, %v9171_v46  ;;  %v1240_v42 = vshrl.u32 %v867_v19, 16  ;;  %v701_v31 = vpop.permute.xlu2 %700 }
  0x9f   : > { %v1602_v2 = vld [vmem:[#allocation2 + $0xe8] sm:$0xf]  ;;  %1474 = vrot.lane.b32.xlu1 %v1372_v55, %s8925_s25  ;;  %1472 = vrot.lane.b32.xlu2 %v1371_v1, %s8925_s25  ;;  %788 = vst.msk [vmem:[#allocation2 + $0x28] sm:$0xf] %vm784_vm1, %v695_v60  ;;  %v1605_v39 = vld [vmem:[#allocation2 + $0xf8] sm:$0xf] }
  0xa0   : > { %v1962_v3 = vshll.u32 %v1602_v2, 16  ;;  %v1966_v4 = vshrl.u32 %v1602_v2, 16  ;;  %v861_v22 = vld [vmem:[#allocation2 + $0xe8] sm:$0xf]  ;;  %v1990_v49 = vshrl.u32 %v1605_v39, 16  ;;  %v1986_v52 = vshll.u32 %v1605_v39, 16 }
  0xa1   : > { %v1196_v37 = vshrl.u32 %v861_v22, 16  ;;  %v1199_v47 = vshll.u32 %v861_v22, 16  ;;  %v9177_v55 = vrot.slane %v1182_v38, 11  ;;  %v510_v58 = vld [vmem:[#allocation2 + $0x2c] sm:$0x1]  ;;  %v1211_v22 = vrot.slane %v1209_v6, 7 }
  0xa2   : > { %v1964_v13 = vrot.slane %v1962_v3, 5  ;;  %v1968_v14 = vrot.slane %v1966_v4, 4  ;;  %v864_v59 = vld [vmem:[#allocation2 + $0xf8] sm:$0xf]  ;;  %v511_v62 = vsel %vm9104_vm5, 0, %v510_v58  ;;  %v1984_v3 = vrot.slane %v1983_v48, 4 }
  0xa3   : > { %v1198_v54 = vrot.slane %v1196_v37, 7  ;;  %v9194_v4 = vrot.slane %v1626_v45, 5  ;;  %v1992_v5 = vrot.slane %v1990_v49, 4  ;;  %v1988_v8 = vrot.slane %v1986_v52, 5  ;;  %512 = vst [vmem:[#allocation2 + $0x2c] sm:$0x1] %v511_v62 }
  0xa4   : > { %v1965_v18 = vsel %vm9147_vm11, %v1960_v12, %v1964_v13  ;;  %v1969_v26 = vor.u32 %v1968_v14, %v1964_v13  ;;  %v1218_v12 = vshrl.u32 %v864_v59, 16  ;;  %v563_v14 = vld [vmem:[%s9085_s24 + $0x14] sm:$0xf]  ;;  %596 = vst.msk [vmem:[#allocation2 + $0x34] sm:$0xf] %vm591_vm0, %v562_v15  ;;  %v1231_v37 = vshrl.u32 %v9206_v16, 16 }
  0xa5   : > { %2104 = vrot.lane.b32.xlu0 %v1965_v18, %s8926_s30  ;;  %v691_v33 = vpop.permute.xlu0 %690  ;;  %v1201_v1 = vor.u32 %v1199_v47, %v1198_v54  ;;  %597 = vst.msk [vmem:[#allocation2 + $0x38] sm:$0xf] %vm591_vm0, %v563_v14  ;;  %v504_v18 = vld [vmem:[#allocation2 + $0xc] sm:$0x1]  ;;  %v1993_v20 = vor.u32 %v1992_v5, %v1988_v8  ;;  %v1989_v28 = vsel %vm9147_vm11, %v1984_v3, %v1988_v8  ;;  %v513_v39 = vld [vmem:[#allocation2 + $0x3c] sm:$0x1] }
  0xa6   : > { %786 = vst.msk [vmem:[#allocation2 + $0x18] sm:$0xf] %vm784_vm1, %v691_v33  ;;  %v1970_v44 = vrot.slane %v1969_v26, 4  ;;  %v505_v21 = vsel %vm9104_vm5, 0, %v504_v18  ;;  %v1565_v26 = vld [vmem:[#allocation2 + $0x24] sm:$0xf]  ;;  %v1193_v46 = vsel %vm9190_vm14, %v9177_v55, %v1192_v41  ;;  %v1629_v50 = vsel %vm9147_vm11, %v9179_v56, %v9194_v4 }
  0xa7   : > { %1478 = vrot.lane.b32.xlu1 %v1374_v23, %s8925_s25  ;;  %1476 = vrot.lane.b32.xlu2 %v1373_v24, %s8925_s25  ;;  %v1202_v10 = vsel %vm9190_vm14, %v1194_v0, %v1201_v1  ;;  %v1221_v23 = vshll.u32 %v864_v59, 16  ;;  %v1346_v24 = vld [vmem:[#allocation2 + $0x24] sm:$0xf]  ;;  %789 = vst.msk [vmem:[#allocation2 + $0x34] sm:$0xf] %vm784_vm1, %v697_v17  ;;  %v1220_v30 = vrot.slane %v1218_v12, 7 }
  0xa8   : > { %v1975_v60 = vsel %vm9147_vm11, %v1970_v44, %v1974_v29  ;;  %1335 = vst.msk [vmem:[#allocation3 + $0x74] sm:$0xf] %vm1305_vm13, %v1202_v10  ;;  %v1216_v29 = vrot.slane %v1211_v22, 4  ;;  %v1347_v33 = vld [vmem:[#allocation2 + $0x28] sm:$0xf]  ;;  %v1994_v38 = vrot.slane %v1993_v20, 4 }
  0xa9   : > { %506 = vst [vmem:[#allocation2 + $0xc] sm:$0x1] %v505_v21  ;;  %v1223_v40 = vor.u32 %v1221_v23, %v1220_v30  ;;  %v1665_v44 = vshrl.u32 %v1565_v26, 16  ;;  %v514_v45 = vsel %vm9104_vm5, 0, %v513_v39  ;;  %v9223_v11 = vld [vmem:[#allocation2 + $0x24] sm:$0xf] }
  0xaa   : > { %v825_v47 = vld [vmem:[#allocation2 + $0x28] sm:$0xf]  ;;  %515 = vst [vmem:[#allocation2 + $0x3c] sm:$0x1] %v514_v45  ;;  %v9232_v48 = vrot.slane %v1231_v37, 7  ;;  %v1242_v49 = vrot.slane %v1240_v42, 7  ;;  %v1999_v56 = vsel %vm9147_vm11, %v1994_v38, %v9197_v9 }
  0xab   : > { %v1224_v63 = vsel %vm9190_vm14, %v1216_v29, %v1223_v40  ;;  %v1562_v52 = vld [vmem:[#allocation2 + $0x14] sm:$0xf]  ;;  %v1243_v53 = vshll.u32 %v867_v19, 16  ;;  %1334 = vst.msk [vmem:[#allocation3 + $0x70] sm:$0xf] %vm1305_vm13, %v1193_v46  ;;  %v1212_v59 = vshll.u32 %v9175_v51, 16 }
  0xac   : > { %1337 = vst.msk [vmem:[#allocation3 + $0x7c] sm:$0xf] %vm1305_vm13, %v1224_v63  ;;  %v1238_v58 = vrot.slane %v9232_v48, 4  ;;  %v923_v55 = vshrl.u32 %v9223_v11, 16  ;;  %v935_v3 = vshll.u32 %v825_v47, 16  ;;  %v9246_v5 = vrot.slane %v2014_v36, 4 }
  0xad   : > { %1416 = vrot.lane.b32.xlu0 %v1343_v43, %s8925_s25  ;;  %v699_v13 = vpop.permute.xlu0 %698  ;;  %v862_v43 = vld [vmem:[#allocation2 + $0xf0] sm:$0x8]  ;;  %v1563_v62 = vld [vmem:[#allocation2 + $0x18] sm:$0xf]  ;;  %v1245_v0 = vor.u32 %v1243_v53, %v1242_v49  ;;  %v1641_v6 = vshrl.u32 %v1562_v52, 16  ;;  %v1214_v8 = vor.u32 %v1212_v59, %v1211_v22  ;;  %v1644_v51 = vshll.u32 %v1562_v52, 16 }
  0xae   : > { %790 = vst.msk [vmem:[#allocation2 + $0x38] sm:$0xf] %vm784_vm1, %v699_v13  ;;  %v1204_v54 = vshrl.u32 %v862_v43, 16  ;;  %v1342_v10 = vld [vmem:[#allocation2 + $0x4] sm:$0xf]  ;;  %v9251_v13 = vrot.slane %v923_v55, 7  ;;  %v2017_v63 = vor.u32 %v9246_v5, %v9164_v35 }
  0xaf   : > { %2106 = vrot.lane.b32.xlu1 %v1975_v60, %s8926_s30  ;;  %1480 = vrot.lane.b32.xlu2 %v1375_v61, %s8925_s25  ;;  %v932_v60 = vshrl.u32 %v825_v47, 16  ;;  %v1668_v61 = vshll.u32 %v1565_v26, 16  ;;  %v1246_v12 = vsel %vm9190_vm14, %v1238_v58, %v1245_v0  ;;  %v9253_v15 = vld [vmem:[#allocation2 + $0x28] sm:$0xf]  ;;  %v1667_v17 = vrot.slane %v1665_v44, 4 }
  0xb0   : > { %v7792_v1 = vrot.slane %v1204_v54, 11  ;;  %v1650_v9 = vshll.u32 %v1563_v62, 16  ;;  %1339 = vst.msk [vmem:[#allocation3 + $0x84] sm:$0xf] %vm1305_vm13, %v1246_v12  ;;  %v1654_v20 = vshrl.u32 %v1563_v62, 16  ;;  %v930_v21 = vrot.slane %v9251_v13, 4 }
  0xb1   : > { %v934_v14 = vrot.slane %v932_v60, 7  ;;  %v1670_v19 = vrot.slane %v1668_v61, 5  ;;  %v564_v26 = vld [vmem:[%s9085_s24 + $0x18] sm:$0xf]  ;;  %v1643_v29 = vrot.slane %v1641_v6, 4  ;;  %v1646_v30 = vrot.slane %v1644_v51, 5 }
  0xb2   : > { %v1215_v18 = vsel %vm9190_vm14, %v7792_v1, %v1214_v8  ;;  %v1674_v36 = vshll.u32 %v9253_v15, 16  ;;  %v1609_v37 = vld [vmem:[#allocation2 + $0x10c] sm:$0x1]  ;;  %v9266_v38 = vrot.slane %v1650_v9, 5  ;;  %v1344_v40 = vld [vmem:[#allocation2 + $0x14] sm:$0xf]  ;;  %v2013_v47 = vsel %vm9147_vm11, %v9161_v34, %v9164_v35 }
  0xb3   : > { %1336 = vst.msk [vmem:[#allocation3 + $0x78] sm:$0xf] %vm1305_vm13, %v1215_v18  ;;  %v937_v22 = vor.u32 %v935_v3, %v934_v14  ;;  %v1345_v41 = vld [vmem:[#allocation2 + $0x18] sm:$0xf]  ;;  %v1671_v42 = vor.u32 %v1670_v19, %v1667_v17  ;;  %v1564_v43 = vld [vmem:[#allocation2 + $0x1c] sm:$0x1]  ;;  %v1647_v52 = vor.u32 %v1646_v30, %v1643_v29 }
  0xb4   : > { %v1656_v44 = vrot.slane %v1654_v20, 4  ;;  %598 = vst.msk [vmem:[#allocation2 + $0x44] sm:$0xf] %vm591_vm0, %v564_v26  ;;  %v453_v49 = vld [vmem:[#allocation2 + $0x10] sm:$0x8]  ;;  %v1632_v54 = vrot.slane %v1630_v57, 4 }
  0xb5   : > { %2108 = vrot.lane.b32.xlu0 %v1989_v28, %s8926_s30  ;;  %v703_v23 = vpop.permute.xlu0 %702  ;;  %v498_v28 = vld [vmem:[#allocation2 + $0x100] sm:$0x8]  ;;  %v938_v39 = vsel %vm9190_vm14, %v930_v21, %v937_v22  ;;  %791 = vst.msk [vmem:[#allocation2 + $0x44] sm:$0xf] %vm784_vm1, %v701_v31  ;;  %v1561_v53 = vld [vmem:[#allocation2 + $0xc] sm:$0x1] }
  0xb6   : > { %v499_v45 = vsel %vm9110_vm8, 0, %v498_v28  ;;  %1311 = vst.msk [vmem:[#allocation3 + $0x14] sm:$0xf] %vm1305_vm13, %v938_v39  ;;  %v9287_v34 = vrot.slane %v1674_v36, 5  ;;  %v516_v58 = vld [vmem:[#allocation2 + $0x4c] sm:$0x1]  ;;  %v1657_v55 = vor.u32 %v1656_v44, %v9266_v38  ;;  %v1633_v3 = vor.u32 %v1632_v54, %v9194_v4 }
  0xb7   : > { %1422 = vrot.lane.b32.xlu1 %v1346_v24, %s8925_s25  ;;  %1424 = vrot.lane.b32.xlu2 %v1347_v33, %s8925_s25  ;;  %v565_v24 = vld [vmem:[%s9085_s24 + $0x1c] sm:$0xf]  ;;  %v456_v33 = vld [vmem:[#allocation2 + $0x20] sm:$0x8]  ;;  %500 = vst [vmem:[#allocation2 + $0x100] sm:$0x8] %v499_v45 }
  0xb8   : > { %599 = vst.msk [vmem:[#allocation2 + $0x48] sm:$0xf] %vm591_vm0, %v565_v24  ;;  %v457_v46 = vsel %vm9110_vm8, 0, %v456_v33  ;;  %v454_v35 = vsel %vm9110_vm8, 0, %v453_v49  ;;  %v1672_v59 = vrot.slane %v1671_v42, 4  ;;  %v517_v61 = vsel %vm9104_vm5, 0, %v516_v58 }
  0xb9   : > { %792 = vst.msk [vmem:[#allocation2 + $0x48] sm:$0xf] %vm784_vm1, %v703_v23  ;;  %v1568_v60 = vld [vmem:[#allocation2 + $0x34] sm:$0xf]  ;;  %v2018_v32 = vrot.slane %v2017_v63, 4  ;;  %v1660_v57 = vshll.u32 %v1564_v43, 16  ;;  %v705_v63 = vpop.permute.xlu2 %704 }
  0xba   : > { %458 = vst [vmem:[#allocation2 + $0x20] sm:$0x8] %v457_v46  ;;  %v1678_v62 = vshrl.u32 %v9253_v15, 16  ;;  %v1648_v1 = vrot.slane %v1647_v52, 4  ;;  %v1689_v5 = vshrl.u32 %v1568_v60, 16  ;;  %v1234_v6 = vshll.u32 %v9206_v16, 16 }
  0xbb   : > { %518 = vst [vmem:[#allocation2 + $0x4c] sm:$0x1] %v517_v61  ;;  %v926_v8 = vshll.u32 %v9223_v11, 16  ;;  %v1658_v51 = vrot.slane %v1657_v55, 4  ;;  %v821_v12 = vld [vmem:[#allocation2 + $0x14] sm:$0xf] }
  0xbc   : > { %455 = vst [vmem:[#allocation2 + $0x10] sm:$0x8] %v454_v35  ;;  %v1662_v14 = vrot.slane %v1660_v57, 5  ;;  %v9303_v15 = vrot.slane %v1678_v62, 4  ;;  %v1692_v17 = vshll.u32 %v1568_v60, 16  ;;  %v901_v9 = vshrl.u32 %v821_v12, 16 }
  0xbd   : > { %2048 = vrot.lane.b32.xlu0 %v1629_v50, %s8926_s30  ;;  %v2020_v50 = vshll.u32 %v1609_v37, 16  ;;  %v1653_v16 = vsel %vm9147_vm11, %v1648_v1, %v9266_v38  ;;  %v1634_v11 = vrot.slane %v1633_v3, 4  ;;  %v822_v20 = vld [vmem:[#allocation2 + $0x18] sm:$0xf]  ;;  %v1691_v21 = vrot.slane %v1689_v5, 4 }
  0xbe   : > { %v865_v19 = vld [vmem:[#allocation2 + $0x100] sm:$0x8]  ;;  %v1236_v23 = vor.u32 %v1234_v6, %v9232_v48  ;;  %v928_v26 = vor.u32 %v926_v8, %v9251_v13  ;;  %v1569_v28 = vld [vmem:[#allocation2 + $0x38] sm:$0xf]  ;;  %v903_v29 = vrot.slane %v901_v9, 7  ;;  %v910_v30 = vshrl.u32 %v822_v20, 16 }
  0xbf   : > { %2110 = vrot.lane.b32.xlu1 %v1999_v56, %s8926_s30  ;;  %1414 = vrot.lane.b32.xlu2 %v1342_v10, %s8925_s25  ;;  %v2022_v0 = vrot.slane %v2020_v50, 5  ;;  %v1636_v56 = vshll.u32 %v1561_v53, 16  ;;  %v1677_v10 = vsel %vm9147_vm11, %v1672_v59, %v9287_v34  ;;  %v1226_v22 = vshrl.u32 %v865_v19, 16  ;;  %v566_v38 = vld [vmem:[%s9085_s24 + $0x20] sm:$0xf] }
  0xc0   : > { %v904_v33 = vshll.u32 %v821_v12, 16  ;;  %v1663_v36 = vsel %vm9147_vm11, %v1658_v51, %v1662_v14  ;;  %v1694_v37 = vrot.slane %v1692_v17, 5  ;;  %600 = vst.msk [vmem:[#allocation2 + $0x54] sm:$0xf] %vm591_vm0, %v566_v38  ;;  %v912_v48 = vrot.slane %v910_v30, 7 }
  0xc1   : > { %v2023_v4 = vsel %vm9147_vm11, %v2018_v32, %v2022_v0  ;;  %v1638_v18 = vrot.slane %v1636_v56, 5  ;;  %v823_v24 = vld [vmem:[#allocation2 + $0x20] sm:$0x8]  ;;  %v7793_v39 = vrot.slane %v1226_v22, 11  ;;  %v913_v13 = vshll.u32 %v822_v20, 16 }
  0xc2   : > { %v918_v31 = vshrl.u32 %v823_v24, 16  ;;  %v1698_v43 = vshll.u32 %v1569_v28, 16  ;;  %v1702_v44 = vshrl.u32 %v1569_v28, 16  ;;  %v906_v52 = vor.u32 %v904_v33, %v903_v29  ;;  %v1567_v54 = vld [vmem:[#allocation2 + $0x2c] sm:$0x1] }
  0xc3   : > { %v1237_v45 = vsel %vm9190_vm14, %v7793_v39, %v1236_v23  ;;  %v915_v46 = vor.u32 %v913_v13, %v912_v48  ;;  %v1639_v53 = vsel %vm9147_vm11, %v1634_v11, %v1638_v18  ;;  %793 = vst.msk [vmem:[#allocation2 + $0x54] sm:$0xf] %vm784_vm1, %v705_v63  ;;  %v635_v58 = vld [vmem:[%s9048_s14 + $0x2c] sm:$0xf]  ;;  %v1695_v35 = vor.u32 %v1694_v37, %v1691_v21  ;;  %v1570_v62 = vld [vmem:[#allocation2 + $0x3c] sm:$0x1] }
  0xc4   : > { %1338 = vst.msk [vmem:[#allocation3 + $0x80] sm:$0xf] %vm1305_vm13, %v1237_v45  ;;  %v1700_v60 = vrot.slane %v1698_v43, 5  ;;  %v1704_v61 = vrot.slane %v1702_v44, 4  ;;  %v1681_v32 = vor.u32 %v9303_v15, %v9287_v34  ;;  %v1684_v57 = vshll.u32 %v1567_v54, 16  ;;  %v707_v34 = vpop.permute.xlu0 %706 }
  0xc5   : > { %2112 = vrot.lane.b32.xlu0 %v2013_v47, %s8926_s30  ;;  %v908_v47 = vrot.slane %v903_v29, 4  ;;  %v1696_v0 = vrot.slane %v1695_v35, 4  ;;  %v1348_v1 = vld [vmem:[#allocation2 + $0x34] sm:$0xf]  ;;  %v1708_v56 = vshll.u32 %v1570_v62, 16 }
  0xc6   : > { %v1705_v3 = vor.u32 %v1704_v61, %v1700_v60  ;;  %v1682_v5 = vrot.slane %v1681_v32, 4  ;;  %v1686_v6 = vrot.slane %v1684_v57, 5  ;;  %v1572_v15 = vld [vmem:[#allocation2 + $0x48] sm:$0xf]  ;;  %v1571_v17 = vld [vmem:[#allocation2 + $0x44] sm:$0xf] }
  0xc7   : > { %1418 = vrot.lane.b32.xlu1 %v1344_v40, %s8925_s25  ;;  %1420 = vrot.lane.b32.xlu2 %v1345_v41, %s8925_s25  ;;  %v820_v40 = vld [vmem:[#allocation2 + $0x10] sm:$0x8]  ;;  %v7779_v41 = vrot.slane %v918_v31, 11  ;;  %v916_v59 = vsel %vm9190_vm14, %v908_v47, %v915_v46  ;;  %v1701_v8 = vsel %vm9147_vm11, %v1696_v0, %v1700_v60  ;;  %v1710_v12 = vrot.slane %v1708_v56, 5  ;;  %v634_v21 = vld [vmem:[%s9048_s14 + $0x28] sm:$0xf] }
  0xc8   : > { %v896_v42 = vshrl.u32 %v820_v40, 16  ;;  %1309 = vst.msk [vmem:[#allocation3 + $0xc] sm:$0xf] %vm1305_vm13, %v916_v59  ;;  %v1706_v51 = vrot.slane %v1705_v3, 4  ;;  %v1687_v14 = vsel %vm9147_vm11, %v1682_v5, %v1686_v6  ;;  %v1713_v9 = vshrl.u32 %v1571_v17, 16 }
  0xc9   : > { %v929_v49 = vsel %vm9190_vm14, %v7779_v41, %v928_v26  ;;  %v1722_v11 = vshll.u32 %v1572_v15, 16  ;;  %v1726_v18 = vshrl.u32 %v1572_v15, 16  ;;  %v637_v22 = vld [vmem:[%s9048_s14 + $0x34] sm:$0xf]  ;;  %v1573_v28 = vld [vmem:[#allocation2 + $0x4c] sm:$0x1] }
  0xca   : > { %v7778_v50 = vrot.slane %v896_v42, 11  ;;  %1310 = vst.msk [vmem:[#allocation3 + $0x10] sm:$0xf] %vm1305_vm13, %v929_v49  ;;  %v1715_v19 = vrot.slane %v1713_v9, 4  ;;  %v1350_v30 = vld [vmem:[#allocation2 + $0x44] sm:$0xf] }
  0xcb   : > { %v1724_v24 = vrot.slane %v1722_v11, 5  ;;  %v1728_v26 = vrot.slane %v1726_v18, 4  ;;  %v1732_v33 = vshll.u32 %v1573_v28, 16  ;;  %v1349_v37 = vld [vmem:[#allocation2 + $0x38] sm:$0xf] }
  0xcc   : > { %v907_v55 = vsel %vm9190_vm14, %v7778_v50, %v906_v52  ;;  %v519_v13 = vld [vmem:[#allocation2 + $0x5c] sm:$0x1]  ;;  %v1574_v42 = vld [vmem:[#allocation2 + $0x54] sm:$0xf]  ;;  %v636_v49 = vld [vmem:[%s9048_s14 + $0x30] sm:$0xf] }
  0xcd   : > { %2056 = vrot.lane.b32.xlu0 %v1677_v10, %s8926_s30  ;;  %1308 = vst.msk [vmem:[#allocation3 + $0x8] sm:$0xf] %vm1305_vm13, %v907_v55  ;;  %v567_v10 = vld [vmem:[%s9085_s24 + $0x24] sm:$0xf]  ;;  %v1729_v31 = vor.u32 %v1728_v26, %v1724_v24  ;;  %v1734_v48 = vrot.slane %v1732_v33, 5  ;;  %v520_v43 = vsel %vm9104_vm5, 0, %v519_v13 }
  0xce   : > { %601 = vst.msk [vmem:[#allocation2 + $0x58] sm:$0xf] %vm591_vm0, %v567_v10  ;;  %v1737_v47 = vshrl.u32 %v1574_v42, 16  ;;  %v1740_v46 = vshll.u32 %v1574_v42, 16  ;;  %v827_v52 = vld [vmem:[#allocation2 + $0x34] sm:$0xf] }
  0xcf   : > { %2114 = vrot.lane.b32.xlu1 %v2023_v4, %s8926_s30  ;;  %2052 = vrot.lane.b32.xlu2 %v1653_v16, %s8926_s30  ;;  %794 = vst.msk [vmem:[#allocation2 + $0x58] sm:$0xf] %vm784_vm1, %v707_v34  ;;  %v1716_v4 = vshll.u32 %v1571_v17, 16  ;;  %v1711_v16 = vsel %vm9147_vm11, %v1706_v51, %v1710_v12  ;;  %v1730_v40 = vrot.slane %v1729_v31, 4  ;;  %v828_v35 = vld [vmem:[#allocation2 + $0x38] sm:$0xf] }
  0xd0   : > { %521 = vst [vmem:[#allocation2 + $0x5c] sm:$0x1] %v520_v43  ;;  %v1739_v50 = vrot.slane %v1737_v47, 4  ;;  %v1742_v54 = vrot.slane %v1740_v46, 5  ;;  %v954_v61 = vshrl.u32 %v828_v35, 16  ;;  %v948_v0 = vshll.u32 %v827_v52, 16 }
  0xd1   : > { %v1718_v20 = vrot.slane %v1716_v4, 5  ;;  %v1735_v63 = vsel %vm9147_vm11, %v1730_v40, %v1734_v48  ;;  %v957_v3 = vshll.u32 %v828_v35, 16  ;;  %v1352_v12 = vld [vmem:[#allocation2 + $0x54] sm:$0xf]  ;;  %v429_v17 = vld [vmem:[#allocation2] sm:$0x8] }
  0xd2   : > { %v1743_v32 = vor.u32 %v1742_v54, %v1739_v50  ;;  %v9374_v9 = vld [vmem:[#allocation2 + $0x4] sm:$0xf]  ;;  %v430_v11 = vsel %vm9110_vm8, 0, %v429_v17  ;;  %v831_v48 = vld [vmem:[#allocation2 + $0x48] sm:$0xf] }
  0xd3   : > { %v1719_v23 = vor.u32 %v1718_v20, %v1715_v19  ;;  %v879_v18 = vshrl.u32 %v9374_v9, 16  ;;  %v819_v19 = vld [vmem:[#allocation2 + $0x8] sm:$0xf]  ;;  %431 = vst [vmem:[#allocation2] sm:$0x8] %v430_v11  ;;  %v976_v42 = vshrl.u32 %v831_v48, 16 }
  0xd4   : > { %v830_v40 = vld [vmem:[#allocation2 + $0x44] sm:$0xf]  ;;  %v638_v43 = vld [vmem:[%s9048_s14 + $0x38] sm:$0xf]  ;;  %v8664_v54 = vld [vmem:[%s11136_s3 + $0x8] sm:$0x30] }
  0xd5   : > { %2054 = vrot.lane.b32.xlu0 %v1663_v36, %s8926_s30  ;;  %v1720_v29 = vrot.slane %v1719_v23, 4  ;;  %v459_v36 = vld [vmem:[#allocation2 + $0x30] sm:$0x8]  ;;  %v462_v23 = vld [vmem:[#allocation2 + $0x40] sm:$0x8]  ;;  %v970_v46 = vshll.u32 %v830_v40, 16 }
  0xd6   : > { %v460_v39 = vsel %vm9110_vm8, 0, %v459_v36  ;;  %v1575_v41 = vld [vmem:[#allocation2 + $0x58] sm:$0xf]  ;;  %v978_v50 = vrot.slane %v976_v42, 7  ;;  %v8423_v2 = vld [vmem:[%s11142_s9 + $0x1] sm:$0x1] }
  0xd7   : > { %2050 = vrot.lane.b32.xlu1 %v1639_v53, %s8926_s30  ;;  %710 = vrot.lane.b32.xlu2 %v635_v58, %s8923_s15  ;;  %v1725_v38 = vsel %vm9147_vm11, %v1720_v29, %v1724_v24  ;;  %461 = vst [vmem:[#allocation2 + $0x30] sm:$0x8] %v460_v39  ;;  %v1746_v44 = vshll.u32 %v1575_v41, 16  ;;  %v1750_v45 = vshrl.u32 %v1575_v41, 16  ;;  %v639_v53 = vld [vmem:[%s9048_s14 + $0x3c] sm:$0xf] }
  0xd8   : > { %v945_v58 = vshrl.u32 %v827_v52, 16  ;;  %v1576_v6 = vld [vmem:[#allocation2 + $0x5c] sm:$0x1]  ;;  %v881_v29 = vrot.slane %v879_v18, 7  ;;  %v967_v41 = vshrl.u32 %v830_v40, 16  ;;  %v979_v52 = vshll.u32 %v831_v48, 16 }
  0xd9   : > { %v1748_v59 = vrot.slane %v1746_v44, 5  ;;  %v1752_v55 = vrot.slane %v1750_v45, 4  ;;  %v1756_v15 = vshll.u32 %v1576_v6, 16  ;;  %v641_v44 = vld [vmem:[%s9048_s14 + $0x44] sm:$0xf] }
  0xda   : > { %v947_v62 = vrot.slane %v945_v58, 7  ;;  %v886_v33 = vrot.slane %v881_v29, 4  ;;  %v450_v13 = vld [vmem:[#allocation2] sm:$0x8]  ;;  %v834_v17 = vld [vmem:[#allocation2 + $0x58] sm:$0xf] }
  0xdb   : > { %v1758_v28 = vrot.slane %v1756_v15, 5  ;;  %v451_v45 = vsel %vm9110_vm8, 0, %v450_v13  ;;  %v833_v15 = vld [vmem:[#allocation2 + $0x54] sm:$0xf]  ;;  %v3209_v48 = vld [vmem:[#allocation2 + $0x4] sm:$0xf] }
  0xdc   : > { %v950_v5 = vor.u32 %v948_v0, %v947_v62  ;;  %v952_v34 = vrot.slane %v947_v62, 4  ;;  %452 = vst [vmem:[#allocation2] sm:$0x8] %v451_v45 }
  0xdd   : > { %1426 = vrot.lane.b32.xlu0 %v1348_v1, %s8925_s25  ;;  %v956_v1 = vrot.slane %v954_v61, 7 }
  0xde   : > { %v826_v60 = vld [vmem:[#allocation2 + $0x30] sm:$0x8] }
  0xdf   : > { %2058 = vrot.lane.b32.xlu1 %v1687_v14, %s8926_s30  ;;  %2060 = vrot.lane.b32.xlu2 %v1701_v8, %s8926_s30  ;;  %v940_v57 = vshrl.u32 %v826_v60, 16  ;;  %v1744_v8 = vrot.slane %v1743_v32, 4  ;;  %v959_v10 = vor.u32 %v957_v3, %v956_v1  ;;  %v1753_v14 = vor.u32 %v1752_v55, %v1748_v59  ;;  %v1353_v3 = vld [vmem:[#allocation2 + $0x58] sm:$0xf] }
  0xe0   : > { %v981_v60 = vor.u32 %v979_v52, %v978_v50 }
  0xe1   : > { %v7780_v56 = vrot.slane %v940_v57, 11  ;;  %v1749_v20 = vsel %vm9147_vm11, %v1744_v8, %v1748_v59  ;;  %v960_v24 = vsel %vm9190_vm14, %v952_v34, %v959_v10  ;;  %v1754_v26 = vrot.slane %v1753_v14, 4  ;;  %v465_v8 = vld [vmem:[#allocation2 + $0x50] sm:$0x8] }
  0xe2   : > { %1313 = vst.msk [vmem:[#allocation3 + $0x1c] sm:$0xf] %vm1305_vm13, %v960_v24  ;;  %v882_v57 = vshll.u32 %v9374_v9, 16  ;;  %v466_v34 = vsel %vm9110_vm8, 0, %v465_v8  ;;  %v989_v9 = vshrl.u32 %v833_v15, 16 }
  0xe3   : > { %v951_v4 = vsel %vm9190_vm14, %v7780_v56, %v950_v5  ;;  %v817_v56 = vld [vmem:[#allocation2] sm:$0x8]  ;;  %467 = vst [vmem:[#allocation2 + $0x50] sm:$0x8] %v466_v34 }
  0xe4   : > { %1312 = vst.msk [vmem:[#allocation3 + $0x18] sm:$0xf] %vm1305_vm13, %v951_v4  ;;  %v874_v5 = vshrl.u32 %v817_v56, 16  ;;  %v884_v6 = vor.u32 %v882_v57, %v881_v29  ;;  %v998_v4 = vshrl.u32 %v834_v17, 16  ;;  %v991_v11 = vrot.slane %v989_v9, 7 }
  0xe5   : > { %2062 = vrot.lane.b32.xlu0 %v1711_v16, %s8926_s30  ;;  %v1351_v16 = vld [vmem:[#allocation2 + $0x48] sm:$0xf]  ;;  %v3208_v45 = vld [vmem:[#allocation2] sm:$0x8]  ;;  %v573_v9 = vld [vmem:[%s9085_s24 + $0x3c] sm:$0xf] }
  0xe6   : > { %v7777_v10 = vrot.slane %v874_v5, 11  ;;  %v1000_v18 = vrot.slane %v998_v4, 7  ;;  %v996_v24 = vrot.slane %v991_v11, 4  ;;  %607 = vst.msk [vmem:[#allocation2 + $0x88] sm:$0xf] %vm591_vm0, %v573_v9 }
  0xe7   : > { %708 = vrot.lane.b32.xlu1 %v634_v21, %s8923_s15  ;;  %714 = vrot.lane.b32.xlu2 %v637_v22, %s8923_s15  ;;  %v888_v21 = vshrl.u32 %v819_v19, 16  ;;  %v891_v22 = vshll.u32 %v819_v19, 16  ;;  %v1001_v19 = vshll.u32 %v834_v17, 16 }
  0xe8   : > { %v885_v14 = vsel %vm9190_vm14, %v7777_v10, %v884_v6 }
  0xe9   : > { %v890_v31 = vrot.slane %v888_v21, 7  ;;  %1306 = vst.msk [vmem:[#allocation3] sm:$0xf] %vm1305_vm13, %v885_v14 }
  0xea   : > { %v832_v21 = vld [vmem:[#allocation2 + $0x50] sm:$0x8] }
  0xeb   : > { %v893_v36 = vor.u32 %v891_v22, %v890_v31  ;;  %v992_v22 = vshll.u32 %v833_v15, 16 }
  0xed   : > { %1430 = vrot.lane.b32.xlu0 %v1350_v30, %s8925_s25  ;;  %v463_v30 = vsel %vm9110_vm8, 0, %v462_v23  ;;  %v894_v39 = vsel %vm9190_vm14, %v886_v33, %v893_v36  ;;  %v984_v23 = vshrl.u32 %v832_v21, 16  ;;  %v994_v29 = vor.u32 %v992_v22, %v991_v11 }
  0xee   : > { %464 = vst [vmem:[#allocation2 + $0x40] sm:$0x8] %v463_v30 }
  0xef   : > { %1428 = vrot.lane.b32.xlu1 %v1349_v37, %s8925_s25  ;;  %2064 = vrot.lane.b32.xlu2 %v1725_v38, %s8926_s30  ;;  %v1759_v38 = vsel %vm9147_vm11, %v1754_v26, %v1758_v28  ;;  %1307 = vst.msk [vmem:[#allocation3 + $0x4] sm:$0xf] %vm1305_vm13, %v894_v39  ;;  %v1003_v26 = vor.u32 %v1001_v19, %v1000_v18  ;;  %v569_v28 = vld [vmem:[%s9085_s24 + $0x2c] sm:$0xf]  ;;  %v7782_v33 = vrot.slane %v984_v23, 11 }
  0xf0   : > { %603 = vst.msk [vmem:[#allocation2 + $0x68] sm:$0xf] %vm591_vm0, %v569_v28  ;;  %v522_v23 = vld [vmem:[#allocation2 + $0x6c] sm:$0x1] }
  0xf1   : > { %v1004_v36 = vsel %vm9190_vm14, %v996_v24, %v1003_v26  ;;  %v523_v28 = vsel %vm9104_vm5, 0, %v522_v23 }
  0xf2   : > { %1317 = vst.msk [vmem:[#allocation3 + $0x2c] sm:$0xf] %vm1305_vm13, %v1004_v36 }
  0xf3   : > { %524 = vst [vmem:[#allocation2 + $0x6c] sm:$0x1] %v523_v28 }
  0xf5   : > { %2066 = vrot.lane.b32.xlu0 %v1735_v63, %s8926_s30  ;;  %v829_v47 = vld [vmem:[#allocation2 + $0x40] sm:$0x8]  ;;  %v969_v63 = vrot.slane %v967_v41, 7  ;;  %v3268_v41 = vshrl.u32 %v3209_v48, 16 }
  0xf7   : > { %712 = vrot.lane.b32.xlu1 %v636_v49, %s8923_s15  ;;  %718 = vrot.lane.b32.xlu2 %v639_v53, %s8923_s15  ;;  %v962_v49 = vshrl.u32 %v829_v47, 16  ;;  %v7863_v53 = vld [vmem:[%s11136_s3 + $0x8] sm:$0xf]  ;;  %v972_v58 = vor.u32 %v970_v46, %v969_v63  ;;  %v974_v35 = vrot.slane %v969_v63, 4  ;;  %v3263_v47 = vshrl.u32 %v3208_v45, 16 }
  0xf8   : > { %v7864_v59 = vor.u32 %v8664_v54, %v7863_v53  ;;  %v9448_v63 = vrot.slane %v3268_v41, 7  ;;  %v3271_v46 = vshll.u32 %v3209_v48, 16  ;;  %v572_v48 = vld [vmem:[%s9085_s24 + $0x38] sm:$0xf] }
  0xf9   : > { %v1473_v51 = vpop.permute.xlu2 %1472  ;;  %v7781_v55 = vrot.slane %v962_v49, 11  ;;  %v982_v1 = vsel %vm9190_vm14, %v974_v35, %v981_v60  ;;  %v8051_v50 = vrot.slane %v3263_v47, 11  ;;  %v8647_v35 = vld [vmem:[%s11136_s3] sm:$0x30]  ;;  %606 = vst.msk [vmem:[#allocation2 + $0x84] sm:$0xf] %vm591_vm0, %v572_v48 }
  0xfa   : > { %1552 = vst.msk [vmem:[#allocation3 + $0x74] sm:$0xf] %vm1522_vm15, %v1473_v51  ;;  %v2399_v62 = vsel %vm2397_vm2, %v7864_v59, 0  ;;  %v3273_v52 = vor.u32 %v3271_v46, %v9448_v63  ;;  %v3275_v24 = vrot.slane %v9448_v63, 4  ;;  %v525_v46 = vld [vmem:[#allocation2 + $0x7c] sm:$0x1] }
  0xfb   : > { %v973_v0 = vsel %vm9190_vm14, %v7781_v55, %v972_v58  ;;  %8797 = vmatpush.bf16.msra.mxu2 %v2399_v62  ;;  %2408 = vmatpush.bf16.msra.mxu0 %v2399_v62  ;;  %1315 = vst.msk [vmem:[#allocation3 + $0x24] sm:$0xf] %vm1305_vm13, %v982_v1  ;;  %v7947_v58 = vld [vmem:[%s11136_s3] sm:$0xf]  ;;  %v571_v55 = vld [vmem:[%s9085_s24 + $0x34] sm:$0xf] }
  0xfc   : > { %1314 = vst.msk [vmem:[#allocation3 + $0x20] sm:$0xf] %vm1305_vm13, %v973_v0  ;;  %v7948_v59 = vor.u32 %v8647_v35, %v7947_v58  ;;  %v3274_v60 = vsel %vm9190_vm14, %v8051_v50, %v3273_v52  ;;  %v8033_v62 = vld [vmem:[%s11136_s3 + $0x10] sm:$0xf]  ;;  %v8681_v0 = vld [vmem:[%s11136_s3 + $0x10] sm:$0x30] }
  0xfd   : > { %1434 = vrot.lane.b32.xlu0 %v1352_v12, %s8925_s25  ;;  %605 = vst.msk [vmem:[#allocation2 + $0x78] sm:$0xf] %vm591_vm0, %v571_v55  ;;  %v8034_v1 = vor.u32 %v8681_v0, %v8033_v62  ;;  %v526_v50 = vsel %vm9104_vm5, 0, %v525_v46  ;;  %v468_v55 = vld [vmem:[#allocation2 + $0x60] sm:$0x8] }
  0xfe   : > { %527 = vst [vmem:[#allocation2 + $0x7c] sm:$0x1] %v526_v50  ;;  %v471_v50 = vld [vmem:[#allocation2 + $0x70] sm:$0x8] }
  0xff   : > { %1432 = vrot.lane.b32.xlu1 %v1351_v16, %s8925_s25  ;;  %2068 = vrot.lane.b32.xlu2 %v1749_v20, %s8926_s30  ;;  %v640_v16 = vld [vmem:[%s9048_s14 + $0x40] sm:$0xf]  ;;  %v2885_v8 = vsel %vm2397_vm2, %v8034_v1, 0 }
 0x100   : > { %2894 = vmatpush.bf16.msrb.mxu2 %v2885_v8 }
 0x101   : > { %v1477_v37 = vpop.permute.xlu2 %1476 }
 0x102   : > { %1554 = vst.msk [vmem:[#allocation3 + $0x7c] sm:$0xf] %vm1522_vm15, %v1477_v37  ;;  %v995_v37 = vsel %vm9190_vm14, %v7782_v33, %v994_v29  ;;  %v644_v33 = vld [vmem:[%s9048_s14 + $0x50] sm:$0xf] }
 0x103   : > { %1316 = vst.msk [vmem:[#allocation3 + $0x28] sm:$0xf] %vm1305_vm13, %v995_v37 }
 0x105   : > { %2070 = vrot.lane.b32.xlu0 %v1759_v38, %s8926_s30  ;;  %v1582_v28 = vld [vmem:[#allocation2 + $0x7c] sm:$0x1] }
 0x107   : > { %716 = vrot.lane.b32.xlu1 %v638_v43, %s8923_s15  ;;  %722 = vrot.lane.b32.xlu2 %v641_v44, %s8923_s15 }
 0x109   : > { %v1471_v61 = vpop.permute.xlu1 %1470  ;;  %v1481_v32 = vpop.permute.xlu2 %1480 }
 0x10a   : > { %1551 = vst.msk [vmem:[#allocation3 + $0x70] sm:$0xf] %vm1522_vm15, %v1471_v61  ;;  %v2624_v61 = vsel %vm2397_vm2, %v7948_v59, 0  ;;  %v646_v59 = vld [vmem:[%s9048_s14 + $0x58] sm:$0xf] }
 0x10b   : > { %1556 = vst.msk [vmem:[#allocation3 + $0x84] sm:$0xf] %vm1522_vm15, %v1481_v32  ;;  %2633 = vmatpush.bf16.msra.mxu1 %v2624_v61  ;;  %8798 = vmatpush.bf16.msra.mxu3 %v2624_v61 }
 0x10f   : > { %1436 = vrot.lane.b32.xlu1 %v1353_v3, %s8925_s25  ;;  %v568_v3 = vld [vmem:[%s9085_s24 + $0x28] sm:$0xf] }
 0x110   : > { %602 = vst.msk [vmem:[#allocation2 + $0x64] sm:$0xf] %vm591_vm0, %v568_v3 }
 0x111   : > { %v1475_v51 = vpop.permute.xlu1 %1474  ;;  %v1425_v12 = vpop.permute.xlu2 %1424 }
 0x112   : > { %1553 = vst.msk [vmem:[#allocation3 + $0x78] sm:$0xf] %vm1522_vm15, %v1475_v51  ;;  %v642_v51 = vld [vmem:[%s9048_s14 + $0x48] sm:$0xf] }
 0x113   : > { %1528 = vst.msk [vmem:[#allocation3 + $0x14] sm:$0xf] %vm1522_vm15, %v1425_v12  ;;  %v3210_v12 = vld [vmem:[#allocation2 + $0x8] sm:$0xf] }
 0x114   : > { %v3277_v17 = vshrl.u32 %v3210_v12, 16  ;;  %v3280_v18 = vshll.u32 %v3210_v12, 16  ;;  %v574_v12 = vld [vmem:[%s9085_s24 + $0x40] sm:$0xf] }
 0x115   : > { %608 = vst.msk [vmem:[#allocation2 + $0x94] sm:$0xf] %vm591_vm0, %v574_v12 }
 0x116   : > { %v3279_v11 = vrot.slane %v3277_v17, 7 }
 0x117   : > { %v2105_v20 = vpop.permute.xlu0 %2104  ;;  %720 = vrot.lane.b32.xlu1 %v640_v16, %s8923_s15  ;;  %v570_v16 = vld [vmem:[%s9085_s24 + $0x30] sm:$0xf] }
 0x118   : > { %2185 = vst.msk [vmem:[#allocation3 + $0x70] sm:$0xf] %vm2156_vm3, %v2105_v20  ;;  %v3282_v26 = vor.u32 %v3280_v18, %v3279_v11 }
 0x119   : > { %v1479_v30 = vpop.permute.xlu1 %1478  ;;  %v1415_v31 = vpop.permute.xlu2 %1414  ;;  %604 = vst.msk [vmem:[#allocation2 + $0x74] sm:$0xf] %vm591_vm0, %v570_v16 }
 0x11a   : > { %1555 = vst.msk [vmem:[#allocation3 + $0x80] sm:$0xf] %vm1522_vm15, %v1479_v30 }
 0x11b   : > { %1523 = vst.msk [vmem:[#allocation3] sm:$0xf] %vm1522_vm15, %v1415_v31  ;;  %v3283_v31 = vsel %vm9190_vm14, %v3275_v24, %v3282_v26 }
 0x11f   : > { %v1417_v38 = vpop.permute.xlu0 %1416 }
 0x120   : > { %1524 = vst.msk [vmem:[#allocation3 + $0x4] sm:$0xf] %vm1522_vm15, %v1417_v38 }
 0x121   : > { %v2107_v39 = vpop.permute.xlu1 %2106  ;;  %v1421_v40 = vpop.permute.xlu2 %1420 }
 0x122   : > { %2186 = vst.msk [vmem:[#allocation3 + $0x74] sm:$0xf] %vm2156_vm3, %v2107_v39 }
 0x123   : > { %1526 = vst.msk [vmem:[#allocation3 + $0xc] sm:$0xf] %vm1522_vm15, %v1421_v40  ;;  %v575_v40 = vld [vmem:[%s9085_s24 + $0x44] sm:$0xf] }
 0x124   : > { %609 = vst.msk [vmem:[#allocation2 + $0x98] sm:$0xf] %vm591_vm0, %v575_v40 }
 0x127   : > { %v2109_v13 = vpop.permute.xlu0 %2108 }
 0x128   : > { %2187 = vst.msk [vmem:[#allocation3 + $0x78] sm:$0xf] %vm2156_vm3, %v2109_v13 }
 0x129   : > { %v1423_v42 = vpop.permute.xlu1 %1422  ;;  %v2053_v43 = vpop.permute.xlu2 %2052  ;;  %v8661_v44 = vld [vmem:[#allocation3 + $0x70] sm:$0xff] }
 0x12a   : > { %1527 = vst.msk [vmem:[#allocation3 + $0x10] sm:$0xf] %vm1522_vm15, %v1423_v42  ;;  %7878 = vmatmul.msk.bf16.vlgmr.msra.gmra.mxu2 %vm2348_vm4, %v8661_v44 }
 0x12f   : > { %v2049_v49 = vpop.permute.xlu0 %2048 }
 0x130   : > { %2157 = vst.msk [vmem:[#allocation3] sm:$0xf] %vm2156_vm3, %v2049_v49  ;;  %v1579_v49 = vld [vmem:[#allocation2 + $0x6c] sm:$0x1] }
 0x131   : > { %v2111_v53 = vpop.permute.xlu1 %2110  ;;  %v711_v54 = vpop.permute.xlu2 %710  ;;  %v1780_v35 = vshll.u32 %v1579_v49, 16 }
 0x132   : > { %2188 = vst.msk [vmem:[#allocation3 + $0x7c] sm:$0xf] %vm2156_vm3, %v2111_v53 }
 0x133   : > { %796 = vst.msk [vmem:[#allocation2 + $0x68] sm:$0xf] %vm784_vm1, %v711_v54 }
 0x137   : > { %v9465_v32 = vld [vmem:[#allocation3] sm:$0xf]  ;;  %v2113_v57 = vpop.permute.xlu0 %2112 }
 0x138   : > { %3694 = vst.msk [vmem:[#allocation3] sm:$0xf] %vm432_vm7, %v3274_v60 }
 0x139   : > { %2189 = vst.msk [vmem:[#allocation3 + $0x80] sm:$0xf] %vm2156_vm3, %v2113_v57  ;;  %v1419_v56 = vpop.permute.xlu1 %1418  ;;  %v8662_v5 = vld [vmem:[#allocation3 + $0x78] sm:$0xff]  ;;  %v2061_v6 = vpop.permute.xlu2 %2060 }
 0x13a   : > { %1525 = vst.msk [vmem:[#allocation3 + $0x8] sm:$0xf] %vm1522_vm15, %v1419_v56  ;;  %v1355_v34 = vld [vmem:[#allocation2 + $0x68] sm:$0xf]  ;;  %7879 = vmatmul.msk.bf16.gmra.mxu2 %vm2348_vm4, %v8662_v5  ;;  %v469_v5 = vsel %vm9110_vm8, 0, %v468_v55 }
 0x13b   : > { %2159 = vst.msk [vmem:[#allocation3 + $0x8] sm:$0xf] %vm2156_vm3, %v2053_v43  ;;  %1440 = vrot.lane.b32.xlu1 %v1355_v34, %s8925_s25  ;;  %v1578_v41 = vld [vmem:[#allocation2 + $0x68] sm:$0xf] }
 0x13c   : > { %v1770_v44 = vshll.u32 %v1578_v41, 16  ;;  %v1774_v45 = vshrl.u32 %v1578_v41, 16  ;;  %v837_v0 = vld [vmem:[#allocation2 + $0x68] sm:$0xf]  ;;  %470 = vst [vmem:[#allocation2 + $0x60] sm:$0x8] %v469_v5 }
 0x13d   : > { %v1020_v34 = vshrl.u32 %v837_v0, 16  ;;  %v1023_v18 = vshll.u32 %v837_v0, 16 }
 0x13e   : > { %v1772_v52 = vrot.slane %v1770_v44, 5  ;;  %v1776_v53 = vrot.slane %v1774_v45, 4 }
 0x13f   : > { %v2057_v10 = vpop.permute.xlu0 %2056  ;;  %v1022_v11 = vrot.slane %v1020_v34, 7 }
 0x140   : > { %2161 = vst.msk [vmem:[#allocation3 + $0x10] sm:$0xf] %vm2156_vm3, %v2057_v10 }
 0x141   : > { %v2115_v14 = vpop.permute.xlu1 %2114  ;;  %v715_v15 = vpop.permute.xlu2 %714 }
 0x142   : > { %2190 = vst.msk [vmem:[#allocation3 + $0x84] sm:$0xf] %vm2156_vm3, %v2115_v14 }
 0x143   : > { %724 = vrot.lane.b32.xlu1 %v642_v51, %s8923_s15  ;;  %798 = vst.msk [vmem:[#allocation2 + $0x78] sm:$0xf] %vm784_vm1, %v715_v15  ;;  %v1782_v51 = vrot.slane %v1780_v35, 5 }
 0x147   : > { %v2055_v4 = vpop.permute.xlu0 %2054 }
 0x148   : > { %2160 = vst.msk [vmem:[#allocation3 + $0xc] sm:$0xf] %vm2156_vm3, %v2055_v4 }
 0x149   : > { %v2051_v19 = vpop.permute.xlu1 %2050  ;;  %v8663_v20 = vld [vmem:[#allocation3 + $0x80] sm:$0xff]  ;;  %v2065_v21 = vpop.permute.xlu2 %2064 }
 0x14a   : > { %2158 = vst.msk [vmem:[#allocation3 + $0x4] sm:$0xf] %vm2156_vm3, %v2051_v19  ;;  %v1357_v22 = vld [vmem:[#allocation2 + $0x78] sm:$0xf]  ;;  %7880 = vmatmul.msk.bf16.gmra.mxu2 %vm2348_vm4, %v8663_v20 }
 0x14b   : > { %1444 = vrot.lane.b32.xlu1 %v1357_v22, %s8925_s25  ;;  %v1581_v17 = vld [vmem:[#allocation2 + $0x78] sm:$0xf] }
 0x14c   : > { %v1798_v22 = vshrl.u32 %v1581_v17, 16  ;;  %v840_v49 = vld [vmem:[#allocation2 + $0x78] sm:$0xf] }
 0x14e   : > { %v1800_v40 = vrot.slane %v1798_v22, 4 }
 0x14f   : > { %v1427_v29 = vpop.permute.xlu0 %1426  ;;  %v8648_v30 = vld [vmem:[#allocation3 + $0x8] sm:$0xff] }
 0x150   : > { %1529 = vst.msk [vmem:[#allocation3 + $0x18] sm:$0xf] %vm1522_vm15, %v1427_v29  ;;  %7865 = vmatmul.msk.bf16.vlgmr.msra.gmra.mxu0 %vm2348_vm4, %v8648_v30  ;;  %v8632_v1 = vld [vmem:[#allocation3 + $0x8] sm:$0xff] }
 0x151   : > { %2163 = vst.msk [vmem:[#allocation3 + $0x18] sm:$0xf] %vm2156_vm3, %v2061_v6  ;;  %v8631_v36 = vld [vmem:[#allocation3] sm:$0xf0]  ;;  %v2059_v37 = vpop.permute.xlu1 %2058  ;;  %v719_v38 = vpop.permute.xlu2 %718  ;;  %v528_v30 = vld [vmem:[#allocation2 + $0x8c] sm:$0x1] }
 0x152   : > { %3695 = vst.msk [vmem:[#allocation3 + $0x4] sm:$0xf] %vm432_vm7, %v3283_v31  ;;  %v7884_v39 = vor.u32 %v8631_v36, %v9465_v32  ;;  %v1777_v32 = vor.u32 %v1776_v53, %v1772_v52  ;;  %v529_v31 = vsel %vm9104_vm5, 0, %v528_v30  ;;  %v1025_v36 = vor.u32 %v1023_v18, %v1022_v11 }
 0x153   : > { %2162 = vst.msk [vmem:[#allocation3 + $0x14] sm:$0xf] %vm2156_vm3, %v2059_v37  ;;  %728 = vrot.lane.b32.xlu1 %v644_v33, %s8923_s15  ;;  %v835_v37 = vld [vmem:[#allocation2 + $0x60] sm:$0x8] }
 0x154   : > { %7949 = vmatmul.msk.bf16.vlgmr.msra.gmra.mxu1 %vm2348_vm4, %v7884_v39  ;;  %800 = vst.msk [vmem:[#allocation2 + $0x88] sm:$0xf] %vm784_vm1, %v719_v38  ;;  %v1778_v10 = vrot.slane %v1777_v32, 4  ;;  %v1006_v48 = vshrl.u32 %v835_v37, 16  ;;  %v531_v32 = vld [vmem:[#allocation2 + $0x9c] sm:$0x1] }
 0x155   : > { %530 = vst [vmem:[#allocation2 + $0x8c] sm:$0x1] %v529_v31  ;;  %v645_v31 = vld [vmem:[%s9048_s14 + $0x54] sm:$0xf] }
 0x156   : > { %v1783_v20 = vsel %vm9147_vm11, %v1778_v10, %v1782_v51  ;;  %v7783_v46 = vrot.slane %v1006_v48, 11  ;;  %v1045_v51 = vshll.u32 %v840_v49, 16 }
 0x157   : > { %v2063_v13 = vpop.permute.xlu0 %2062 }
 0x159   : > { %v709_v42 = vpop.permute.xlu1 %708  ;;  %v9514_v43 = vpop.permute.xlu2 %2068 }
 0x15a   : > { %795 = vst.msk [vmem:[#allocation2 + $0x64] sm:$0xf] %vm784_vm1, %v709_v42  ;;  %v8665_v47 = vld [vmem:[#allocation3 + $0x10] sm:$0xff]  ;;  %v643_v42 = vld [vmem:[%s9048_s14 + $0x4c] sm:$0xf] }
 0x15b   : > { %v1359_v63 = vld [vmem:[#allocation2 + $0x88] sm:$0xf]  ;;  %8035 = vmatmul.msk.bf16.vlgmr.msrb.gmra.mxu2 %vm2348_vm4, %v8665_v47  ;;  %v8649_v58 = vld [vmem:[#allocation3 + $0x10] sm:$0xff]  ;;  %v1804_v47 = vshll.u32 %v1582_v28, 16 }
 0x15c   : > { %1448 = vrot.lane.b32.xlu1 %v1359_v63, %s8925_s25  ;;  %v648_v63 = vld [vmem:[%s9048_s14 + $0x60] sm:$0xf]  ;;  %v8633_v35 = vld [vmem:[#allocation3 + $0x10] sm:$0xff]  ;;  %v1584_v5 = vld [vmem:[#allocation2 + $0x88] sm:$0xf] }
 0x15f   : > { %v1431_v54 = vpop.permute.xlu0 %1430 }
 0x160   : > { %1531 = vst.msk [vmem:[#allocation3 + $0x20] sm:$0xf] %vm1522_vm15, %v1431_v54  ;;  %7866 = vmatmul.msk.bf16.gmra.mxu0 %vm2348_vm4, %v8649_v58 }
 0x161   : > { %2165 = vst.msk [vmem:[#allocation3 + $0x20] sm:$0xf] %vm2156_vm3, %v2065_v21  ;;  %v1429_v60 = vpop.permute.xlu1 %1428  ;;  %v1354_v61 = vld [vmem:[#allocation2 + $0x64] sm:$0xf]  ;;  %v723_v62 = vpop.permute.xlu2 %722  ;;  %v1794_v21 = vshll.u32 %v1581_v17, 16  ;;  %v1822_v17 = vshrl.u32 %v1584_v5, 16 }
 0x162   : > { %v1577_v57 = vld [vmem:[#allocation2 + $0x64] sm:$0xf]  ;;  %1530 = vst.msk [vmem:[#allocation3 + $0x1c] sm:$0xf] %vm1522_vm15, %v1429_v60  ;;  %1438 = vrot.lane.b32.xlu0 %v1354_v61, %s8925_s25 }
 0x163   : > { %v1761_v3 = vshrl.u32 %v1577_v57, 16  ;;  %v1764_v56 = vshll.u32 %v1577_v57, 16  ;;  %2164 = vst.msk [vmem:[#allocation3 + $0x1c] sm:$0xf] %vm2156_vm3, %v2063_v13  ;;  %v836_v9 = vld [vmem:[#allocation2 + $0x64] sm:$0xf] }
 0x164   : > { %7950 = vmatmul.msk.bf16.gmra.mxu1 %vm2348_vm4, %v8632_v1  ;;  %802 = vst.msk [vmem:[#allocation2 + $0x98] sm:$0xf] %vm784_vm1, %v723_v62  ;;  %732 = vrot.lane.b32.xlu1 %v646_v59, %s8923_s15  ;;  %v1011_v16 = vshrl.u32 %v836_v9, 16  ;;  %v1014_v38 = vshll.u32 %v836_v9, 16  ;;  %v1796_v39 = vrot.slane %v1794_v21, 5  ;;  %v1042_v57 = vshrl.u32 %v840_v49, 16 }
 0x165   : > { %v1763_v6 = vrot.slane %v1761_v3, 4  ;;  %v1766_v8 = vrot.slane %v1764_v56, 5  ;;  %v472_v62 = vsel %vm9110_vm8, 0, %v471_v50  ;;  %v1806_v1 = vrot.slane %v1804_v47, 5 }
 0x166   : > { %v1013_v26 = vrot.slane %v1011_v16, 7  ;;  %v1801_v54 = vor.u32 %v1800_v40, %v1796_v39  ;;  %v532_v3 = vsel %vm9104_vm5, 0, %v531_v32  ;;  %473 = vst [vmem:[#allocation2 + $0x70] sm:$0x8] %v472_v62  ;;  %v1044_v10 = vrot.slane %v1042_v57, 7 }
 0x167   : > { %v2067_v14 = vpop.permute.xlu0 %2066  ;;  %v1767_v15 = vor.u32 %v1766_v8, %v1763_v6  ;;  %533 = vst [vmem:[#allocation2 + $0x9c] sm:$0x1] %v532_v3 }
 0x168   : > { %v1018_v33 = vrot.slane %v1013_v26, 4  ;;  %v1016_v45 = vor.u32 %v1014_v38, %v1013_v26  ;;  %v1802_v0 = vrot.slane %v1801_v54, 4  ;;  %v1047_v18 = vor.u32 %v1045_v51, %v1044_v10 }
 0x169   : > { %v1768_v4 = vrot.slane %v1767_v15, 4  ;;  %v713_v19 = vpop.permute.xlu1 %712  ;;  %v1818_v15 = vshll.u32 %v1584_v5, 16 }
 0x16a   : > { %797 = vst.msk [vmem:[#allocation2 + $0x74] sm:$0xf] %vm784_vm1, %v713_v19  ;;  %2074 = vrot.lane.b32.xlu0 %v1783_v20, %s8926_s30  ;;  %v8666_v24 = vld [vmem:[#allocation3 + $0x18] sm:$0xff]  ;;  %v1026_v44 = vsel %vm9190_vm14, %v1018_v33, %v1025_v36  ;;  %v1824_v20 = vrot.slane %v1822_v17, 4  ;;  %v843_v33 = vld [vmem:[#allocation2 + $0x88] sm:$0xf] }
 0x16b   : > { %v1773_v23 = vsel %vm9147_vm11, %v1768_v4, %v1772_v52  ;;  %v1361_v29 = vld [vmem:[#allocation2 + $0x98] sm:$0xf]  ;;  %8036 = vmatmul.msk.bf16.gmra.mxu2 %vm2348_vm4, %v8666_v24  ;;  %1319 = vst.msk [vmem:[#allocation3 + $0x34] sm:$0xf] %vm1305_vm13, %v1026_v44  ;;  %v1820_v19 = vrot.slane %v1818_v15, 5  ;;  %v1064_v49 = vshrl.u32 %v843_v33, 16 }
 0x16c   : > { %2072 = vrot.lane.b32.xlu2 %v1773_v23, %s8926_s30  ;;  %1452 = vrot.lane.b32.xlu1 %v1361_v29, %s8925_s25  ;;  %v8650_v41 = vld [vmem:[#allocation3 + $0x18] sm:$0xff]  ;;  %v1585_v23 = vld [vmem:[#allocation2 + $0x8c] sm:$0x1]  ;;  %v474_v36 = vld [vmem:[#allocation2 + $0x80] sm:$0x8] }
 0x16d   : > { %v838_v26 = vld [vmem:[#allocation2 + $0x70] sm:$0x8]  ;;  %v1828_v40 = vshll.u32 %v1585_v23, 16  ;;  %v1587_v54 = vld [vmem:[#allocation2 + $0x98] sm:$0xf] }
 0x16e   : > { %v1028_v28 = vshrl.u32 %v838_v26, 16  ;;  %v1842_v32 = vshll.u32 %v1587_v54, 16  ;;  %v1846_v57 = vshrl.u32 %v1587_v54, 16 }
 0x16f   : > { %v1435_v13 = vpop.permute.xlu0 %1434 }
 0x170   : > { %1533 = vst.msk [vmem:[#allocation3 + $0x28] sm:$0xf] %vm1522_vm15, %v1435_v13  ;;  %7867 = vmatmul.msk.bf16.gmra.mxu0 %vm2348_vm4, %v8650_v41  ;;  %v7784_v13 = vrot.slane %v1028_v28, 11  ;;  %v8634_v41 = vld [vmem:[#allocation3 + $0x18] sm:$0xff] }
 0x171   : > { %2167 = vst.msk [vmem:[#allocation3 + $0x28] sm:$0xf] %vm2156_vm3, %v9514_v43  ;;  %v1433_v52 = vpop.permute.xlu1 %1432  ;;  %v1356_v53 = vld [vmem:[#allocation2 + $0x74] sm:$0xf]  ;;  %v1017_v43 = vsel %vm9190_vm14, %v7783_v46, %v1016_v45  ;;  %v475_v45 = vsel %vm9110_vm8, 0, %v474_v36 }
 0x172   : > { %v1580_v58 = vld [vmem:[#allocation2 + $0x74] sm:$0xf]  ;;  %1532 = vst.msk [vmem:[#allocation3 + $0x24] sm:$0xf] %vm1522_vm15, %v1433_v52  ;;  %1442 = vrot.lane.b32.xlu0 %v1356_v53, %s8925_s25  ;;  %v1830_v52 = vrot.slane %v1828_v40, 5 }
 0x173   : > { %v1785_v59 = vshrl.u32 %v1580_v58, 16  ;;  %v1788_v55 = vshll.u32 %v1580_v58, 16  ;;  %2166 = vst.msk [vmem:[#allocation3 + $0x24] sm:$0xf] %vm2156_vm3, %v2067_v14  ;;  %v839_v6 = vld [vmem:[#allocation2 + $0x74] sm:$0xf]  ;;  %v1807_v14 = vsel %vm9147_vm11, %v1802_v0, %v1806_v1 }
 0x174   : > { %726 = vrot.lane.b32.xlu2 %v643_v42, %s8923_s15  ;;  %7951 = vmatmul.msk.bf16.gmra.mxu1 %vm2348_vm4, %v8633_v35  ;;  %1318 = vst.msk [vmem:[#allocation3 + $0x30] sm:$0xf] %vm1305_vm13, %v1017_v43  ;;  %v1033_v34 = vshrl.u32 %v839_v6, 16  ;;  %v1036_v21 = vshll.u32 %v839_v6, 16  ;;  %v1067_v43 = vshll.u32 %v843_v33, 16 }
 0x175   : > { %v1787_v60 = vrot.slane %v1785_v59, 4  ;;  %v1790_v61 = vrot.slane %v1788_v55, 5  ;;  %736 = vrot.lane.b32.xlu1 %v648_v63, %s8923_s15  ;;  %476 = vst [vmem:[#allocation2 + $0x80] sm:$0x8] %v475_v45  ;;  %v1066_v55 = vrot.slane %v1064_v49, 7 }
 0x176   : > { %v1035_v16 = vrot.slane %v1033_v34, 7  ;;  %v1848_v34 = vrot.slane %v1846_v57, 4 }
 0x177   : > { %v1791_v56 = vor.u32 %v1790_v61, %v1787_v60  ;;  %v2071_v30 = vpop.permute.xlu0 %2070  ;;  %v1069_v5 = vor.u32 %v1067_v43, %v1066_v55 }
 0x178   : > { %v1040_v11 = vrot.slane %v1035_v16, 4  ;;  %v1038_v29 = vor.u32 %v1036_v21, %v1035_v16  ;;  %v477_v16 = vld [vmem:[#allocation2 + $0x90] sm:$0x8] }
 0x179   : > { %v1792_v8 = vrot.slane %v1791_v56, 4  ;;  %v717_v12 = vpop.permute.xlu1 %716 }
 0x17a   : > { %799 = vst.msk [vmem:[#allocation2 + $0x84] sm:$0xf] %vm784_vm1, %v717_v12  ;;  %2078 = vrot.lane.b32.xlu0 %v1807_v14, %s8926_s30  ;;  %v8667_v4 = vld [vmem:[#allocation3 + $0x20] sm:$0xff]  ;;  %v1048_v24 = vsel %vm9190_vm14, %v1040_v11, %v1047_v18  ;;  %v1039_v47 = vsel %vm9190_vm14, %v7784_v13, %v1038_v29  ;;  %v1588_v14 = vld [vmem:[#allocation2 + $0x9c] sm:$0x1] }
 0x17b   : > { %v1797_v9 = vsel %vm9147_vm11, %v1792_v8, %v1796_v39  ;;  %8037 = vmatmul.msk.bf16.gmra.mxu2 %vm2348_vm4, %v8667_v4  ;;  %v8651_v22 = vld [vmem:[#allocation3 + $0x20] sm:$0xff]  ;;  %1321 = vst.msk [vmem:[#allocation3 + $0x3c] sm:$0xf] %vm1305_vm13, %v1048_v24  ;;  %v1825_v39 = vor.u32 %v1824_v20, %v1820_v19  ;;  %v1844_v8 = vrot.slane %v1842_v32, 5  ;;  %v846_v4 = vld [vmem:[#allocation2 + $0x98] sm:$0xf] }
 0x17c   : > { %2076 = vrot.lane.b32.xlu2 %v1797_v9, %s8926_s30  ;;  %1320 = vst.msk [vmem:[#allocation3 + $0x38] sm:$0xf] %vm1305_vm13, %v1039_v47  ;;  %v841_v6 = vld [vmem:[#allocation2 + $0x80] sm:$0x8]  ;;  %v647_v9 = vld [vmem:[%s9048_s14 + $0x5c] sm:$0xf] }
 0x17d   : > { %v1826_v50 = vrot.slane %v1825_v39, 4  ;;  %v1050_v10 = vshrl.u32 %v841_v6, 16  ;;  %v1849_v18 = vor.u32 %v1848_v34, %v1844_v8  ;;  %v8635_v23 = vld [vmem:[#allocation3 + $0x20] sm:$0xff]  ;;  %v1089_v13 = vshll.u32 %v846_v4, 16  ;;  %v578_v32 = vld [vmem:[%s9085_s24 + $0x50] sm:$0xf] }
 0x17e   : > { %612 = vst.msk [vmem:[#allocation2 + $0xb4] sm:$0xf] %vm591_vm0, %v578_v32  ;;  %v580_v34 = vld [vmem:[%s9085_s24 + $0x58] sm:$0xf]  ;;  %v9681_v32 = vld [vmem:[%s11137_s4] ss:$0 sm:$0xff] }
 0x17f   : > { %v1831_v61 = vsel %vm9147_vm11, %v1826_v50, %v1830_v52  ;;  %v7785_v17 = vrot.slane %v1050_v10, 11  ;;  %614 = vst.msk [vmem:[#allocation2 + $0xc4] sm:$0xf] %vm591_vm0, %v580_v34 }
 0x180   : > { %7868 = vmatmul.msk.bf16.gmra.mxu0 %vm2348_vm4, %v8651_v22  ;;  %v478_v22 = vsel %vm9110_vm8, 0, %v477_v16 }
 0x181   : > { %v1437_v37 = vpop.permute.xlu1 %1436  ;;  %v1358_v38 = vld [vmem:[#allocation2 + $0x84] sm:$0xf]  ;;  %479 = vst [vmem:[#allocation2 + $0x90] sm:$0x8] %v478_v22 }
 0x182   : > { %v1583_v48 = vld [vmem:[#allocation2 + $0x84] sm:$0xf]  ;;  %1534 = vst.msk [vmem:[#allocation3 + $0x2c] sm:$0xf] %vm1522_vm15, %v1437_v37  ;;  %1446 = vrot.lane.b32.xlu0 %v1358_v38, %s8925_s25  ;;  %v576_v37 = vld [vmem:[%s9085_s24 + $0x48] sm:$0xf] }
 0x183   : > { %v1809_v42 = vshrl.u32 %v1583_v48, 16  ;;  %v1812_v44 = vshll.u32 %v1583_v48, 16  ;;  %2168 = vst.msk [vmem:[#allocation3 + $0x2c] sm:$0xf] %vm2156_vm3, %v2071_v30  ;;  %v842_v58 = vld [vmem:[#allocation2 + $0x84] sm:$0xf] }
 0x184   : > { %730 = vrot.lane.b32.xlu2 %v645_v31, %s8923_s15  ;;  %7952 = vmatmul.msk.bf16.gmra.mxu1 %vm2348_vm4, %v8634_v41  ;;  %v1055_v59 = vshrl.u32 %v842_v58, 16  ;;  %v1058_v3 = vshll.u32 %v842_v58, 16  ;;  %v1086_v30 = vshrl.u32 %v846_v4, 16  ;;  %v1850_v31 = vrot.slane %v1849_v18, 4  ;;  %610 = vst.msk [vmem:[#allocation2 + $0xa4] sm:$0xf] %vm591_vm0, %v576_v37 }
 0x185   : > { %v1811_v63 = vrot.slane %v1809_v42, 4  ;;  %v1814_v46 = vrot.slane %v1812_v44, 5  ;;  %v649_v58 = vld [vmem:[%s9048_s14 + $0x64] sm:$0xf] }
 0x186   : > { %v1057_v1 = vrot.slane %v1055_v59, 7  ;;  %v1088_v48 = vrot.slane %v1086_v30, 7  ;;  %v577_v59 = vld [vmem:[%s9085_s24 + $0x4c] sm:$0xf] }
 0x187   : > { %v1815_v53 = vor.u32 %v1814_v46, %v1811_v63  ;;  %611 = vst.msk [vmem:[#allocation2 + $0xa8] sm:$0xf] %vm591_vm0, %v577_v59 }
 0x188   : > { %v1062_v56 = vrot.slane %v1057_v1, 4  ;;  %v1060_v51 = vor.u32 %v1058_v3, %v1057_v1  ;;  %v844_v45 = vld [vmem:[#allocation2 + $0x90] sm:$0x8]  ;;  %v1091_v49 = vor.u32 %v1089_v13, %v1088_v48 }
 0x189   : > { %v1816_v35 = vrot.slane %v1815_v53, 4  ;;  %v721_v60 = vpop.permute.xlu1 %720  ;;  %v1072_v63 = vshrl.u32 %v844_v45, 16 }
 0x18a   : > { %801 = vst.msk [vmem:[#allocation2 + $0x94] sm:$0xf] %vm784_vm1, %v721_v60  ;;  %2082 = vrot.lane.b32.xlu0 %v1831_v61, %s8926_s30  ;;  %v8668_v0 = vld [vmem:[#allocation3 + $0x28] sm:$0xff]  ;;  %v1070_v15 = vsel %vm9190_vm14, %v1062_v56, %v1069_v5  ;;  %v1061_v21 = vsel %vm9190_vm14, %v7785_v17, %v1060_v51 }
 0x18b   : > { %v1821_v62 = vsel %vm9147_vm11, %v1816_v35, %v1820_v19  ;;  %8038 = vmatmul.msk.bf16.gmra.mxu2 %vm2348_vm4, %v8668_v0  ;;  %v8652_v12 = vld [vmem:[#allocation3 + $0x28] sm:$0xff]  ;;  %1323 = vst.msk [vmem:[#allocation3 + $0x44] sm:$0xf] %vm1305_vm13, %v1070_v15  ;;  %v1852_v19 = vshll.u32 %v1588_v14, 16  ;;  %v7786_v52 = vrot.slane %v1072_v63, 11 }
 0x18c   : > { %2080 = vrot.lane.b32.xlu2 %v1821_v62, %s8926_s30  ;;  %1322 = vst.msk [vmem:[#allocation3 + $0x40] sm:$0xf] %vm1305_vm13, %v1061_v21  ;;  %v8636_v35 = vld [vmem:[#allocation3 + $0x28] sm:$0xff]  ;;  %v579_v0 = vld [vmem:[%s9085_s24 + $0x54] sm:$0xf] }
 0x18d   : > { %v1854_v33 = vrot.slane %v1852_v19, 5  ;;  %613 = vst.msk [vmem:[#allocation2 + $0xb8] sm:$0xf] %vm591_vm0, %v579_v0  ;;  %v581_v19 = vld [vmem:[%s9085_s24 + $0x5c] sm:$0xf] }
 0x18e   : > { %615 = vst.msk [vmem:[#allocation2 + $0xc8] sm:$0xf] %vm591_vm0, %v581_v19  ;;  %v540_v19 = vld [vmem:[#allocation2 + $0xcc] sm:$0x1] }
 0x18f   : > { %v1855_v41 = vsel %vm9147_vm11, %v1850_v31, %v1854_v33 }
 0x190   : > { %7869 = vmatmul.msk.bf16.gmra.mxu0 %vm2348_vm4, %v8652_v12 }
 0x191   : > { %v1360_v11 = vld [vmem:[#allocation2 + $0x94] sm:$0xf] }
 0x192   : > { %v1586_v20 = vld [vmem:[#allocation2 + $0x94] sm:$0xf]  ;;  %1450 = vrot.lane.b32.xlu0 %v1360_v11, %s8925_s25 }
 0x193   : > { %v1833_v24 = vshrl.u32 %v1586_v20, 16  ;;  %v1836_v26 = vshll.u32 %v1586_v20, 16  ;;  %v845_v38 = vld [vmem:[#allocation2 + $0x94] sm:$0xf]  ;;  %v537_v20 = vld [vmem:[#allocation2 + $0xbc] sm:$0x1] }
 0x194   : > { %734 = vrot.lane.b32.xlu2 %v647_v9, %s8923_s15  ;;  %7953 = vmatmul.msk.bf16.gmra.mxu1 %vm2348_vm4, %v8635_v23  ;;  %v1077_v40 = vshrl.u32 %v845_v38, 16  ;;  %v1080_v47 = vshll.u32 %v845_v38, 16  ;;  %v538_v23 = vsel %vm9104_vm5, 0, %v537_v20 }
 0x195   : > { %v1835_v28 = vrot.slane %v1833_v24, 4  ;;  %v1838_v29 = vrot.slane %v1836_v26, 5  ;;  %v480_v24 = vld [vmem:[#allocation2 + $0xa0] sm:$0x8]  ;;  %539 = vst [vmem:[#allocation2 + $0xbc] sm:$0x1] %v538_v23 }
 0x196   : > { %v1079_v44 = vrot.slane %v1077_v40, 7  ;;  %v481_v30 = vsel %vm9110_vm8, 0, %v480_v24 }
 0x197   : > { %v1839_v36 = vor.u32 %v1838_v29, %v1835_v28  ;;  %482 = vst [vmem:[#allocation2 + $0xa0] sm:$0x8] %v481_v30 }
 0x198   : > { %v1084_v46 = vrot.slane %v1079_v44, 4  ;;  %v1082_v50 = vor.u32 %v1080_v47, %v1079_v44 }
 0x199   : > { %v1840_v39 = vrot.slane %v1839_v36, 4 }
 0x19a   : > { %2086 = vrot.lane.b32.xlu0 %v1855_v41, %s8926_s30  ;;  %v1092_v53 = vsel %vm9190_vm14, %v1084_v46, %v1091_v49  ;;  %v1083_v54 = vsel %vm9190_vm14, %v7786_v52, %v1082_v50  ;;  %v582_v46 = vld [vmem:[%s9085_s24 + $0x60] sm:$0xf] }
 0x19b   : > { %v1845_v42 = vsel %vm9147_vm11, %v1840_v39, %v1844_v8  ;;  %1325 = vst.msk [vmem:[#allocation3 + $0x4c] sm:$0xf] %vm1305_vm13, %v1092_v53  ;;  %v534_v8 = vld [vmem:[#allocation2 + $0xac] sm:$0x1] }
 0x19c   : > { %2084 = vrot.lane.b32.xlu2 %v1845_v42, %s8926_s30  ;;  %1324 = vst.msk [vmem:[#allocation3 + $0x48] sm:$0xf] %vm1305_vm13, %v1083_v54  ;;  %v535_v12 = vsel %vm9104_vm5, 0, %v534_v8 }
 0x19d   : > { %536 = vst [vmem:[#allocation2 + $0xac] sm:$0x1] %v535_v12 }
 0x19e   : > { %616 = vst.msk [vmem:[#allocation2 + $0xd4] sm:$0xf] %vm591_vm0, %v582_v46 }
 0x1a4   : > { %738 = vrot.lane.b32.xlu2 %v649_v58, %s8923_s15  ;;  %7954 = vmatmul.msk.bf16.gmra.mxu1 %vm2348_vm4, %v8636_v35  ;;  %v1591_v22 = vld [vmem:[#allocation2 + $0xac] sm:$0x1] }
 0x1a5   : > { %v1876_v48 = vshll.u32 %v1591_v22, 16 }
 0x1a7   : > { %v1878_v53 = vrot.slane %v1876_v48, 5  ;;  %v541_v48 = vsel %vm9104_vm5, 0, %v540_v19 }
 0x1a8   : > { %542 = vst [vmem:[#allocation2 + $0xcc] sm:$0x1] %v541_v48  ;;  %v3947_v48 = vld [vmem:[#allocation2 + $0x4] sm:$0xf] }
 0x1ad   : > { %v1441_v55 = vpop.permute.xlu1 %1440  ;;  %v9631_v43 = vpop.f32.mrf.mxu2 }
 0x1ae   : > { %1536 = vst.msk [vmem:[#allocation3 + $0x34] sm:$0xf] %vm1522_vm15, %v1441_v55 }
 0x1b5   : > { %v725_v60 = vpop.permute.xlu1 %724  ;;  %v9634_v61 = vpop.f32.mrf.mxu2 }
 0x1b6   : > { %803 = vst.msk [vmem:[#allocation2 + $0xa4] sm:$0xf] %vm784_vm1, %v725_v60 }
 0x1bd   : > { %v1362_v57 = vld [vmem:[#allocation2 + $0xa4] sm:$0xf]  ;;  %v1445_v62 = vpop.permute.xlu1 %1444  ;;  %v9640_v1 = vpop.f32.mrf.mxu2 }
 0x1be   : > { %1454 = vrot.lane.b32.xlu0 %v1362_v57, %s8925_s25  ;;  %1538 = vst.msk [vmem:[#allocation3 + $0x3c] sm:$0xf] %vm1522_vm15, %v1445_v62  ;;  %v1589_v6 = vld [vmem:[#allocation2 + $0xa4] sm:$0xf] }
 0x1bf   : > { %v1857_v10 = vshrl.u32 %v1589_v6, 16  ;;  %v1860_v51 = vshll.u32 %v1589_v6, 16  ;;  %v848_v49 = vld [vmem:[#allocation2 + $0xa4] sm:$0xf]  ;;  %v1594_v6 = vld [vmem:[#allocation2 + $0xbc] sm:$0x1] }
 0x1c0   : > { %v1099_v54 = vshrl.u32 %v848_v49, 16  ;;  %v1900_v22 = vshll.u32 %v1594_v6, 16 }
 0x1c1   : > { %v1859_v17 = vrot.slane %v1857_v10, 4  ;;  %v1862_v9 = vrot.slane %v1860_v51, 5  ;;  %v847_v10 = vld [vmem:[#allocation2 + $0xa0] sm:$0x8]  ;;  %v1102_v51 = vshll.u32 %v848_v49, 16 }
 0x1c2   : > { %v1101_v8 = vrot.slane %v1099_v54, 7 }
 0x1c3   : > { %v1863_v21 = vor.u32 %v1862_v9, %v1859_v17  ;;  %v9692_v17 = vld [vmem:[%s11138_s5] ss:$0 sm:$0xff]  ;;  %v1094_v9 = vshrl.u32 %v847_v10, 16 }
 0x1c5   : > { %v729_v56 = vpop.permute.xlu1 %728  ;;  %v9645_v5 = vpop.f32.mrf.mxu2  ;;  %v1864_v38 = vrot.slane %v1863_v21, 4  ;;  %v7787_v24 = vrot.slane %v1094_v9, 11 }
 0x1c6   : > { %v2073_v3 = vpop.permute.xlu2 %2072  ;;  %805 = vst.msk [vmem:[#allocation2 + $0xb4] sm:$0xf] %vm784_vm1, %v729_v56 }
 0x1cd   : > { %v9653_v15 = vpop.f32.mrf.mxu2  ;;  %v2410_v16 = vpop.f32.mrf.mxu0  ;;  %v1592_v18 = vld [vmem:[#allocation2 + $0xb4] sm:$0xf] }
 0x1ce   : > { %v727_v14 = vpop.permute.xlu2 %726  ;;  %v1449_v4 = vpop.permute.xlu1 %1448  ;;  %v1881_v28 = vshrl.u32 %v1592_v18, 16  ;;  %v1884_v29 = vshll.u32 %v1592_v18, 16  ;;  %v1364_v58 = vld [vmem:[#allocation2 + $0xb4] sm:$0xf]  ;;  %v583_v18 = vld [vmem:[%s9085_s24 + $0x64] sm:$0xf] }
 0x1cf   : > { %804 = vst.msk [vmem:[#allocation2 + $0xa8] sm:$0xf] %vm784_vm1, %v727_v14  ;;  %s8927_s24 = smov 64  }
 0x1d0   : > { %1540 = vst.msk [vmem:[#allocation3 + $0x44] sm:$0xf] %vm1522_vm15, %v1449_v4  ;;  %v1883_v47 = vrot.slane %v1881_v28, 4  ;;  %v1886_v63 = vrot.slane %v1884_v29, 5  ;;  %v1106_v28 = vrot.slane %v1101_v8, 4 }
 0x1d1   : > { %v2635_v11 = vpop.f32.mrf.mxu1  ;;  %617 = vst.msk [vmem:[#allocation2 + $0xd8] sm:$0xf] %vm591_vm0, %v583_v18 }
 0x1d2   : > { %v2636_v62 = vadd.f32 %v2635_v11, %v2410_v16 }
 0x1d4   : > { %v1439_v26 = vpop.permute.xlu0 %1438 }
 0x1d5   : > { %1535 = vst.msk [vmem:[#allocation3 + $0x30] sm:$0xf] %vm1522_vm15, %v1439_v26  ;;  %v9667_v37 = vpop.f32.mrf.mxu2  ;;  %v9670_v44 = vpop.f32.mrf.mxu0  ;;  %v1104_v26 = vor.u32 %v1102_v51, %v1101_v8 }
 0x1d6   : > { %v9663_v31 = vpop.permute.xlu2 %2076  ;;  %v1363_v33 = vld [vmem:[#allocation2 + $0xa8] sm:$0xf]  ;;  %2169 = vst.msk [vmem:[#allocation3 + $0x30] sm:$0xf] %vm2156_vm3, %v2073_v3  ;;  %v733_v13 = vpop.permute.xlu1 %732  ;;  %v1887_v3 = vor.u32 %v1886_v63, %v1883_v47 }
 0x1d7   : > { %v1590_v36 = vld [vmem:[#allocation2 + $0xa8] sm:$0xf]  ;;  %1456 = vrot.lane.b32.xlu1 %v1363_v33, %s8925_s25  ;;  %807 = vst.msk [vmem:[#allocation2 + $0xc4] sm:$0xf] %vm784_vm1, %v733_v13 }
 0x1d8   : > { %v1866_v39 = vshll.u32 %v1590_v36, 16  ;;  %v1870_v40 = vshrl.u32 %v1590_v36, 16  ;;  %v849_v35 = vld [vmem:[#allocation2 + $0xa8] sm:$0xf]  ;;  %v1888_v21 = vrot.slane %v1887_v3, 4 }
 0x1d9   : > { %v2637_v45 = vpop.f32.mrf.mxu1  ;;  %v1108_v57 = vshrl.u32 %v849_v35, 16  ;;  %v1111_v4 = vshll.u32 %v849_v35, 16 }
 0x1da   : > { %v1868_v41 = vrot.slane %v1866_v39, 5  ;;  %v1872_v42 = vrot.slane %v1870_v40, 4  ;;  %v2638_v47 = vadd.f32 %v2637_v45, %v9670_v44 }
 0x1db   : > { %v1110_v12 = vrot.slane %v1108_v57, 7 }
 0x1dc   : > { %v1869_v50 = vsel %vm9147_vm11, %v1864_v38, %v1868_v41  ;;  %v1873_v52 = vor.u32 %v1872_v42, %v1868_v41  ;;  %v2075_v59 = vpop.permute.xlu0 %2074 }
 0x1dd   : > { %2088 = vrot.lane.b32.xlu2 %v1869_v50, %s8926_s30  ;;  %2170 = vst.msk [vmem:[#allocation3 + $0x34] sm:$0xf] %vm2156_vm3, %v2075_v59  ;;  %v9699_v23 = vpop.f32.mrf.mxu0  ;;  %v1113_v29 = vor.u32 %v1111_v4, %v1110_v12 }
 0x1de   : > { %v1874_v55 = vrot.slane %v1873_v52, 4  ;;  %v731_v60 = vpop.permute.xlu2 %730  ;;  %v1453_v56 = vpop.permute.xlu1 %1452  ;;  %v1595_v11 = vld [vmem:[#allocation2 + $0xc4] sm:$0xf]  ;;  %v483_v52 = vld [vmem:[#allocation2 + $0xb0] sm:$0x8] }
 0x1df   : > { %806 = vst.msk [vmem:[#allocation2 + $0xb8] sm:$0xf] %vm784_vm1, %v731_v60  ;;  %1458 = vrot.lane.b32.xlu1 %v1364_v58, %s8925_s25  ;;  %v2896_v34 = vpop.f32.mrf.mxu2  ;;  %v1905_v40 = vshrl.u32 %v1595_v11, 16  ;;  %v1908_v44 = vshll.u32 %v1595_v11, 16  ;;  %v1114_v59 = vsel %vm9190_vm14, %v1106_v28, %v1113_v29  ;;  %v9720_v60 = vld [vmem:[#allocation2 + $0xb4] sm:$0xf] }
 0x1e0   : > { %v1879_v0 = vsel %vm9147_vm11, %v1874_v55, %v1878_v53  ;;  %1542 = vst.msk [vmem:[#allocation3 + $0x4c] sm:$0xf] %vm1522_vm15, %v1453_v56  ;;  %v2976_v14 = vadd.f32 %v2896_v34, %v2636_v62  ;;  %v1902_v55 = vrot.slane %v1900_v22, 5  ;;  %v484_v57 = vsel %vm9110_vm8, 0, %v483_v52  ;;  %v1366_v56 = vld [vmem:[#allocation2 + $0xc4] sm:$0xf] }
 0x1e1   : > { %2090 = vrot.lane.b32.xlu0 %v1879_v0, %s8926_s30  ;;  %v9694_v16 = vpop.f32.mrf.mxu1  ;;  %v1907_v6 = vrot.slane %v1905_v40, 4  ;;  %v1910_v34 = vrot.slane %v1908_v44, 5  ;;  %v1121_v51 = vshrl.u32 %v9720_v60, 16  ;;  %1327 = vst.msk [vmem:[#allocation3 + $0x54] sm:$0xf] %vm1305_vm13, %v1114_v59 }
 0x1e2   : > { %v3012_v20 = vadd.f32 %v9681_v32, %v2976_v14  ;;  %485 = vst [vmem:[#allocation2 + $0xb0] sm:$0x8] %v484_v57  ;;  %v2641_v19 = vadd.f32 %v9694_v16, %v9699_v23 }
 0x1e3   : > { %v1911_v28 = vor.u32 %v1910_v34, %v1907_v6  ;;  %v4005_v6 = vshll.u32 %v3947_v48, 16 }
 0x1e4   : > { %vm3044_vm6 = vcmp.ge.f32.partialorder %v3012_v20, 0.0  ;;  %v3080_v30 = vmul.f32 %v9692_v17, %v3012_v20  ;;  %v1443_v33 = vpop.permute.xlu0 %1442  ;;  %v8653_v36 = vld [vmem:[#allocation3 + $0x30] sm:$0xff] }
 0x1e5   : > { %v8637_v38 = vld [vmem:[#allocation3 + $0x30] sm:$0xff]  ;;  %1537 = vst.msk [vmem:[#allocation3 + $0x38] sm:$0xf] %vm1522_vm15, %v1443_v33  ;;  %7870 = vmatmul.msk.bf16.gmra.mxu0 %vm2348_vm4, %v8653_v36  ;;  %v2417_v11 = vpop.f32.mrf.mxu0  ;;  %v1597_v36 = vld [vmem:[#allocation2 + $0xcc] sm:$0x1]  ;;  %v1912_v40 = vrot.slane %v1911_v28, 4 }
 0x1e6   : > { %v8669_v39 = vld [vmem:[#allocation3 + $0x30] sm:$0xff]  ;;  %v9705_v13 = vpop.permute.xlu2 %2080  ;;  %v1365_v41 = vld [vmem:[#allocation2 + $0xb8] sm:$0xf]  ;;  %v3112_v63 = vsel %vm3044_vm6, %v3012_v20, %v3080_v30  ;;  %2171 = vst.msk [vmem:[#allocation3 + $0x38] sm:$0xf] %vm2156_vm3, %v9663_v31  ;;  %7955 = vmatmul.msk.bf16.gmra.mxu1 %vm2348_vm4, %v8637_v38  ;;  %v1105_v31 = vsel %vm9190_vm14, %v7787_v24, %v1104_v26  ;;  %v9740_v30 = vrot.slane %v1121_v51, 7 }
 0x1e7   : > { %v1593_v42 = vld [vmem:[#allocation2 + $0xb8] sm:$0xf]  ;;  %1460 = vrot.lane.b32.xlu2 %v1365_v41, %s8925_s25  ;;  %v737_v50 = vpop.permute.xlu1 %736  ;;  %v3144_v53 = vpack.c.bf16 %v3112_v63, %v3112_v63  ;;  %v2898_v54 = vpop.f32.mrf.mxu2  ;;  %8039 = vmatmul.msk.bf16.gmra.mxu2 %vm2348_vm4, %v8669_v39  ;;  %1326 = vst.msk [vmem:[#allocation3 + $0x50] sm:$0xf] %vm1305_vm13, %v1105_v31  ;;  %v486_v51 = vld [vmem:[#allocation2 + $0xc0] sm:$0x8] }
 0x1e8   : > { %v1890_v46 = vshll.u32 %v1593_v42, 16  ;;  %v1894_v49 = vshrl.u32 %v1593_v42, 16  ;;  %809 = vst.msk [vmem:[#allocation2 + $0xd4] sm:$0xf] %vm784_vm1, %v737_v50  ;;  %v2977_v45 = vadd.f32 %v2898_v54, %v2638_v47  ;;  %v852_v10 = vld [vmem:[#allocation2 + $0xb8] sm:$0xf] }
 0x1e9   : > { %3176 = vst.msk [vmem:[#allocation2 + $0x14] sm:$0xf] %vm432_vm7, %v3144_v53  ;;  %v2642_v8 = vpop.f32.mrf.mxu1  ;;  %v1130_v4 = vshrl.u32 %v852_v10, 16  ;;  %v1133_v29 = vshll.u32 %v852_v10, 16  ;;  %v1128_v38 = vrot.slane %v9740_v30, 4 }
 0x1ea   : > { %v1892_v58 = vrot.slane %v1890_v46, 5  ;;  %v1896_v35 = vrot.slane %v1894_v49, 4  ;;  %v3013_v62 = vadd.f32 %v9681_v32, %v2977_v45  ;;  %v1924_v49 = vshll.u32 %v1597_v36, 16 }
 0x1eb   : > { %v1132_v22 = vrot.slane %v1130_v4, 7  ;;  %v2643_v45 = vadd.f32 %v2642_v8, %v2417_v11 }
 0x1ec   : > { %v1893_v0 = vsel %vm9147_vm11, %v1888_v21, %v1892_v58  ;;  %v1897_v3 = vor.u32 %v1896_v35, %v1892_v58  ;;  %vm3045_vm0 = vcmp.ge.f32.partialorder %v3013_v62, 0.0  ;;  %v3081_v12 = vmul.f32 %v9692_v17, %v3013_v62  ;;  %v2079_v14 = vpop.permute.xlu0 %2078 }
 0x1ed   : > { %2092 = vrot.lane.b32.xlu0 %v1893_v0, %s8926_s30  ;;  %2172 = vst.msk [vmem:[#allocation3 + $0x3c] sm:$0xf] %vm2156_vm3, %v2079_v14  ;;  %v1135_v23 = vor.u32 %v1133_v29, %v1132_v22  ;;  %v2420_v57 = vpop.f32.mrf.mxu0  ;;  %v1926_v11 = vrot.slane %v1924_v49, 5  ;;  %v4007_v22 = vrot.slane %v4005_v6, 5  ;;  %v487_v29 = vsel %vm9110_vm8, 0, %v486_v51 }
 0x1ee   : > { %v1898_v9 = vrot.slane %v1897_v3, 4  ;;  %v735_v18 = vpop.permute.xlu2 %734  ;;  %v3113_v20 = vsel %vm3045_vm0, %v3013_v62, %v3081_v12  ;;  %488 = vst [vmem:[#allocation2 + $0xc0] sm:$0x8] %v487_v29 }
 0x1ef   : > { %808 = vst.msk [vmem:[#allocation2 + $0xc8] sm:$0xf] %vm784_vm1, %v735_v18  ;;  %1462 = vrot.lane.b32.xlu2 %v1366_v56, %s8925_s25  ;;  %v3145_v24 = vpack.c.bf16 %v3113_v20, %v3113_v20  ;;  %v2901_v26 = vpop.f32.mrf.mxu2  ;;  %v1598_v16 = vld [vmem:[#allocation2 + $0xd4] sm:$0xf]  ;;  %v1136_v31 = vsel %vm9190_vm14, %v1128_v38, %v1135_v23  ;;  %v4002_v56 = vshrl.u32 %v3947_v48, 16 }
 0x1f0   : > { %v1903_v21 = vsel %vm9147_vm11, %v1898_v9, %v1902_v55  ;;  %v2978_v33 = vadd.f32 %v2901_v26, %v2641_v19  ;;  %v1929_v50 = vshrl.u32 %v1598_v16, 16  ;;  %v543_v55 = vld [vmem:[#allocation2 + $0xdc] sm:$0x1]  ;;  %v1932_v3 = vshll.u32 %v1598_v16, 16  ;;  %1329 = vst.msk [vmem:[#allocation3 + $0x5c] sm:$0xf] %vm1305_vm13, %v1136_v31 }
 0x1f1   : > { %2094 = vrot.lane.b32.xlu1 %v1903_v21, %s8926_s30  ;;  %3177 = vst.msk [vmem:[#allocation2 + $0x18] sm:$0xf] %vm432_vm7, %v3145_v24  ;;  %v2645_v52 = vpop.f32.mrf.mxu1  ;;  %v544_v10 = vsel %vm9104_vm5, 0, %v543_v55  ;;  %v1368_v9 = vld [vmem:[#allocation2 + $0xd4] sm:$0xf]  ;;  %v4004_v21 = vrot.slane %v4002_v56, 4 }
 0x1f2   : > { %v3014_v39 = vadd.f32 %v9681_v32, %v2978_v33  ;;  %545 = vst [vmem:[#allocation2 + $0xdc] sm:$0x1] %v544_v10  ;;  %v1931_v18 = vrot.slane %v1929_v50, 4  ;;  %v1934_v19 = vrot.slane %v1932_v3, 5  ;;  %v9765_v20 = vld [vmem:[#allocation2 + $0x8] sm:$0xf]  ;;  %v2646_v36 = vadd.f32 %v2645_v52, %v2420_v57 }
 0x1f3   : > { %v4011_v38 = vshll.u32 %v9765_v20, 16 }
 0x1f4   : > { %vm3046_vm9 = vcmp.ge.f32.partialorder %v3014_v39, 0.0  ;;  %v3082_v41 = vmul.f32 %v9692_v17, %v3014_v39  ;;  %v1447_v42 = vpop.permute.xlu0 %1446  ;;  %v8654_v47 = vld [vmem:[#allocation3 + $0x38] sm:$0xff] }
 0x1f5   : > { %v8638_v63 = vld [vmem:[#allocation3 + $0x38] sm:$0xff]  ;;  %1539 = vst.msk [vmem:[#allocation3 + $0x40] sm:$0xf] %vm1522_vm15, %v1447_v42  ;;  %7871 = vmatmul.msk.bf16.gmra.mxu0 %vm2348_vm4, %v8654_v47  ;;  %v1935_v42 = vor.u32 %v1934_v19, %v1931_v18  ;;  %v4008_v47 = vor.u32 %v4007_v22, %v4004_v21  ;;  %v2422_v49 = vpop.f32.mrf.mxu0  ;;  %v9781_v52 = vrot.slane %v4011_v38, 5 }
 0x1f6   : > { %v8670_v46 = vld [vmem:[#allocation3 + $0x38] sm:$0xff]  ;;  %v9747_v53 = vpop.permute.xlu2 %2084  ;;  %v1367_v54 = vld [vmem:[#allocation2 + $0xc8] sm:$0xf]  ;;  %v3114_v58 = vsel %vm3046_vm9, %v3014_v39, %v3082_v41  ;;  %2173 = vst.msk [vmem:[#allocation3 + $0x40] sm:$0xf] %vm2156_vm3, %v9705_v13  ;;  %7956 = vmatmul.msk.bf16.gmra.mxu1 %vm2348_vm4, %v8638_v63 }
 0x1f7   : > { %v1596_v44 = vld [vmem:[#allocation2 + $0xc8] sm:$0xf]  ;;  %1464 = vrot.lane.b32.xlu0 %v1367_v54, %s8925_s25  ;;  %v3146_v62 = vpack.c.bf16 %v3114_v58, %v3114_v58  ;;  %8040 = vmatmul.msk.bf16.gmra.mxu2 %vm2348_vm4, %v8670_v46  ;;  %v2903_v0 = vpop.f32.mrf.mxu2  ;;  %v9777_v63 = vld [vmem:[#allocation2 + $0x14] sm:$0xf]  ;;  %v854_v46 = vld [vmem:[#allocation2 + $0xc4] sm:$0xf] }
 0x1f8   : > { %v1914_v35 = vshll.u32 %v1596_v44, 16  ;;  %v1918_v59 = vshrl.u32 %v1596_v44, 16  ;;  %v2979_v8 = vadd.f32 %v2903_v0, %v2643_v45  ;;  %v4015_v54 = vshrl.u32 %v9765_v20, 16  ;;  %v3951_v6 = vld [vmem:[#allocation2 + $0x18] sm:$0xf] }
 0x1f9   : > { %3178 = vst.msk [vmem:[#allocation2 + $0x24] sm:$0xf] %vm432_vm7, %v3146_v62  ;;  %v1124_v44 = vshll.u32 %v9720_v60, 16  ;;  %v1600_v31 = vld [vmem:[#allocation2 + $0xdc] sm:$0x1]  ;;  %v4026_v45 = vshrl.u32 %v9777_v63, 16 }
 0x1fa   : > { %v1916_v34 = vrot.slane %v1914_v35, 5  ;;  %v1920_v13 = vrot.slane %v1918_v59, 4  ;;  %v3015_v12 = vadd.f32 %v9681_v32, %v2979_v8  ;;  %v1143_v58 = vshrl.u32 %v854_v46, 16  ;;  %v850_v35 = vld [vmem:[#allocation2 + $0xb0] sm:$0x8] }
 0x1fb   : > { %v1936_v3 = vrot.slane %v1935_v42, 4  ;;  %v4009_v56 = vrot.slane %v4008_v47, 4  ;;  %v1116_v18 = vshrl.u32 %v850_v35, 16  ;;  %v4029_v21 = vshll.u32 %v9777_v63, 16 }
 0x1fc   : > { %v1917_v14 = vsel %vm9147_vm11, %v1912_v40, %v1916_v34  ;;  %v1921_v4 = vor.u32 %v1920_v13, %v1916_v34  ;;  %vm3047_vm10 = vcmp.ge.f32.partialorder %v3015_v12, 0.0  ;;  %v3083_v24 = vmul.f32 %v9692_v17, %v3015_v12  ;;  %v2083_v26 = vpop.permute.xlu0 %2082  ;;  %v2647_v40 = vpop.f32.mrf.mxu1 }
 0x1fd   : > { %2096 = vrot.lane.b32.xlu1 %v1917_v14, %s8926_s30  ;;  %2174 = vst.msk [vmem:[#allocation3 + $0x44] sm:$0xf] %vm2156_vm3, %v2083_v26  ;;  %v2648_v8 = vadd.f32 %v2647_v40, %v2422_v49  ;;  %v4035_v26 = vshll.u32 %v3951_v6, 16  ;;  %v1126_v29 = vor.u32 %v1124_v44, %v9740_v30  ;;  %v2425_v40 = vpop.f32.mrf.mxu0  ;;  %v7788_v47 = vrot.slane %v1116_v18, 11 }
 0x1fe   : > { %v1922_v28 = vrot.slane %v1921_v4, 4  ;;  %v739_v33 = vpop.permute.xlu2 %738  ;;  %v3115_v16 = vsel %vm3047_vm10, %v3015_v12, %v3083_v24  ;;  %v1948_v12 = vshll.u32 %v1600_v31, 16  ;;  %v9794_v4 = vrot.slane %v1143_v58, 7 }
 0x1ff   : > { %810 = vst.msk [vmem:[#allocation2 + $0xd8] sm:$0xf] %vm784_vm1, %v739_v33  ;;  %1466 = vrot.lane.b32.xlu0 %v1368_v9, %s8925_s25  ;;  %v3147_v39 = vpack.c.bf16 %v3115_v16, %v3115_v16  ;;  %v2906_v48 = vpop.f32.mrf.mxu2  ;;  %v4014_v24 = vsel %vm9147_vm11, %v4009_v56, %v9781_v52  ;;  %v855_v33 = vld [vmem:[#allocation2 + $0xc8] sm:$0xf]  ;;  %v9809_v31 = vrot.slane %v4035_v26, 5  ;;  %vm4541_vm10 = vcmask 781824  }
 0x200   : > { %v1927_v23 = vsel %vm9147_vm11, %v1922_v28, %v1926_v11  ;;  %v2980_v41 = vadd.f32 %v2906_v48, %v2646_v36  ;;  %v1146_v11 = vshll.u32 %v854_v46, 16  ;;  %v4039_v28 = vshrl.u32 %v3951_v6, 16  ;;  %v3952_v6 = vld [vmem:[#allocation2 + $0x1c] sm:$0x1] }
 0x201   : > { %2098 = vrot.lane.b32.xlu2 %v1927_v23, %s8926_s30  ;;  %3179 = vst.msk [vmem:[#allocation2 + $0x28] sm:$0xf] %vm432_vm7, %v3147_v39  ;;  %v1950_v38 = vrot.slane %v1948_v12, 5  ;;  %v853_v39 = vld [vmem:[#allocation2 + $0xc0] sm:$0x8]  ;;  %v4017_v48 = vrot.slane %v4015_v54, 4  ;;  %v1127_v54 = vsel %vm9190_vm14, %v7788_v47, %v1126_v29 }
 0x202   : > { %v3016_v50 = vadd.f32 %v9681_v32, %v2980_v41  ;;  %v1138_v41 = vshrl.u32 %v853_v39, 16  ;;  %v1148_v42 = vor.u32 %v1146_v11, %v9794_v4  ;;  %v1152_v44 = vshrl.u32 %v855_v33, 16  ;;  %1328 = vst.msk [vmem:[#allocation3 + $0x58] sm:$0xf] %vm1305_vm13, %v1127_v54  ;;  %v9826_v11 = vld [vmem:[#allocation2 + $0xd4] sm:$0xf] }
 0x203   : > { %v4041_v58 = vrot.slane %v4039_v28, 4  ;;  %v1155_v12 = vshll.u32 %v855_v33, 16  ;;  %v4045_v18 = vshll.u32 %v3952_v6, 16  ;;  %v3212_v6 = vld [vmem:[#allocation2 + $0x14] sm:$0xf] }
 0x204   : > { %vm3048_vm1 = vcmp.ge.f32.partialorder %v3016_v50, 0.0  ;;  %v3084_v59 = vmul.f32 %v9692_v17, %v3016_v50  ;;  %v1451_v55 = vpop.permute.xlu0 %1450  ;;  %v8655_v57 = vld [vmem:[#allocation3 + $0x40] sm:$0xff]  ;;  %v2650_v22 = vpop.f32.mrf.mxu1  ;;  %v7789_v35 = vrot.slane %v1138_v41, 11 }
 0x205   : > { %v8639_v62 = vld [vmem:[#allocation3 + $0x40] sm:$0xff]  ;;  %1541 = vst.msk [vmem:[#allocation3 + $0x48] sm:$0xf] %vm1522_vm15, %v1451_v55  ;;  %7872 = vmatmul.msk.bf16.gmra.mxu0 %vm2348_vm4, %v8655_v57 }
 0x206   : > { %v8671_v0 = vld [vmem:[#allocation3 + $0x40] sm:$0xff]  ;;  %v1369_v34 = vld [vmem:[#allocation2 + $0xd8] sm:$0xf]  ;;  %v3116_v13 = vsel %vm3048_vm1, %v3016_v50, %v3084_v59  ;;  %2175 = vst.msk [vmem:[#allocation3 + $0x48] sm:$0xf] %vm2156_vm3, %v9747_v53  ;;  %7957 = vmatmul.msk.bf16.gmra.mxu1 %vm2348_vm4, %v8639_v62  ;;  %v2651_v59 = vadd.f32 %v2650_v22, %v2425_v40 }
 0x207   : > { %v1599_v60 = vld [vmem:[#allocation2 + $0xd8] sm:$0xf]  ;;  %1468 = vrot.lane.b32.xlu1 %v1369_v34, %s8925_s25  ;;  %v3148_v14 = vpack.c.bf16 %v3116_v13, %v3116_v13  ;;  %8041 = vmatmul.msk.bf16.gmra.mxu2 %vm2348_vm4, %v8671_v0  ;;  %v2908_v9 = vpop.f32.mrf.mxu2  ;;  %v3949_v50 = vld [vmem:[#allocation2 + $0xc] sm:$0x1]  ;;  %v489_v34 = vld [vmem:[#allocation2 + $0xd0] sm:$0x8] }
 0x208   : > { %v1938_v10 = vshll.u32 %v1599_v60, 16  ;;  %v1942_v51 = vshrl.u32 %v1599_v60, 16  ;;  %v2981_v19 = vadd.f32 %v2908_v9, %v2648_v8  ;;  %v4021_v56 = vshll.u32 %v3949_v50, 16  ;;  %v3730_v13 = vld [vmem:[#allocation2 + $0x4] sm:$0xf] }
 0x209   : > { %3180 = vst.msk [vmem:[#allocation2 + $0x34] sm:$0xf] %vm432_vm7, %v3148_v14  ;;  %v4028_v8 = vrot.slane %v4026_v45, 4  ;;  %v4042_v14 = vor.u32 %v4041_v58, %v9809_v31  ;;  %v4031_v9 = vrot.slane %v4029_v21, 5  ;;  %v3731_v45 = vld [vmem:[#allocation2 + $0x8] sm:$0xf] }
 0x20a   : > { %v1940_v20 = vrot.slane %v1938_v10, 5  ;;  %v1944_v53 = vrot.slane %v1942_v51, 4  ;;  %v3017_v36 = vadd.f32 %v9681_v32, %v2981_v19  ;;  %v1149_v10 = vsel %vm9190_vm14, %v7789_v35, %v1148_v42  ;;  %v3954_v41 = vld [vmem:[#allocation2 + $0x28] sm:$0xf]  ;;  %v447_v42 = vld [vmem:[#allocation2 + $0x11c] sm:$0x1] }
 0x20b   : > { %v1154_v51 = vrot.slane %v1152_v44, 7  ;;  %1330 = vst.msk [vmem:[#allocation3 + $0x60] sm:$0xf] %vm1305_vm13, %v1149_v10  ;;  %v4023_v21 = vrot.slane %v4021_v56, 5  ;;  %v448_v50 = vsel %vm9104_vm5, 0, %v447_v42  ;;  %v3293_v42 = vshll.u32 %v3212_v6, 16 }
 0x20c   : > { %v1941_v16 = vsel %vm9147_vm11, %v1936_v3, %v1940_v20  ;;  %v1945_v23 = vor.u32 %v1944_v53, %v1940_v20  ;;  %vm3049_vm12 = vcmp.ge.f32.partialorder %v3017_v36, 0.0  ;;  %v3085_v30 = vmul.f32 %v9692_v17, %v3017_v36  ;;  %v2087_v46 = vpop.permute.xlu0 %2086  ;;  %v2652_v53 = vpop.f32.mrf.mxu1  ;;  %v858_v44 = vld [vmem:[#allocation2 + $0xd8] sm:$0xf]  ;;  %449 = vst [vmem:[#allocation2 + $0x11c] sm:$0x1] %v448_v50 }
 0x20d   : > { %2100 = vrot.lane.b32.xlu2 %v1941_v16, %s8926_s30  ;;  %2176 = vst.msk [vmem:[#allocation3 + $0x4c] sm:$0xf] %vm2156_vm3, %v2087_v46  ;;  %v4018_v3 = vor.u32 %v4017_v48, %v9781_v52  ;;  %v1150_v52 = vrot.slane %v9794_v4, 4  ;;  %v1157_v19 = vor.u32 %v1155_v12, %v1154_v51  ;;  %v490_v20 = vsel %vm9110_vm8, 0, %v489_v34  ;;  %v2427_v16 = vpop.f32.mrf.mxu0  ;;  %v3735_v50 = vld [vmem:[#allocation2 + $0x28] sm:$0xf] }
 0x20e   : > { %v1946_v49 = vrot.slane %v1945_v23, 4  ;;  %v3117_v55 = vsel %vm3049_vm12, %v3017_v36, %v3085_v30  ;;  %491 = vst [vmem:[#allocation2 + $0xd0] sm:$0x8] %v490_v20  ;;  %v1165_v36 = vshrl.u32 %v9826_v11, 16  ;;  %v3732_v23 = vld [vmem:[#allocation2 + $0x14] sm:$0xf]  ;;  %v2653_v39 = vadd.f32 %v2652_v53, %v2427_v16 }
 0x20f   : > { %4433 = vrot.lane.b32.xlu1 %v4014_v24, %s8927_s24  ;;  %v3149_v62 = vpack.c.bf16 %v3117_v55, %v3117_v55  ;;  %v2911_v0 = vpop.f32.mrf.mxu2  ;;  %v4019_v22 = vrot.slane %v4018_v3, 4  ;;  %v3953_v24 = vld [vmem:[#allocation2 + $0x24] sm:$0xf]  ;;  %v1158_v33 = vsel %vm9190_vm14, %v1150_v52, %v1157_v19  ;;  %v4043_v48 = vrot.slane %v4042_v14, 4  ;;  %v1610_v53 = vld [vmem:[#allocation2 + $0x114] sm:$0xf] }
 0x210   : > { %v1951_v57 = vsel %vm9147_vm11, %v1946_v49, %v1950_v38  ;;  %v2982_v60 = vadd.f32 %v2911_v0, %v2651_v59  ;;  %v4032_v38 = vor.u32 %v4031_v9, %v4028_v8  ;;  %1331 = vst.msk [vmem:[#allocation3 + $0x64] sm:$0xf] %vm1305_vm13, %v1158_v33  ;;  %v4047_v46 = vrot.slane %v4045_v18, 5  ;;  %v3213_v18 = vld [vmem:[#allocation2 + $0x18] sm:$0xf] }
 0x211   : > { %2102 = vrot.lane.b32.xlu0 %v1951_v57, %s8926_s30  ;;  %3181 = vst.msk [vmem:[#allocation2 + $0x38] sm:$0xf] %vm432_vm7, %v3149_v62  ;;  %v4050_v49 = vshrl.u32 %v3953_v24, 16  ;;  %v4024_v35 = vsel %vm9147_vm11, %v4019_v22, %v4023_v21  ;;  %v1167_v54 = vrot.slane %v1165_v36, 7  ;;  %v1168_v59 = vshll.u32 %v9826_v11, 16 }
 0x212   : > { %v3018_v63 = vadd.f32 %v9681_v32, %v2982_v60  ;;  %v4033_v55 = vrot.slane %v4032_v38, 4  ;;  %v4059_v57 = vshll.u32 %v3954_v41, 16  ;;  %v4053_v62 = vshll.u32 %v3953_v24, 16  ;;  %v3733_v22 = vld [vmem:[#allocation2 + $0x18] sm:$0xf] }
 0x213   : > { %v1174_v56 = vshrl.u32 %v858_v44, 16  ;;  %v4048_v8 = vsel %vm9147_vm11, %v4043_v48, %v4047_v46  ;;  %v9856_v60 = vrot.slane %v4050_v49, 4  ;;  %v4063_v51 = vshrl.u32 %v3954_v41, 16  ;;  %v555_v20 = vld [vmem:[#allocation2 + $0x11c] sm:$0x1] }
 0x214   : > { %vm3050_vm2 = vcmp.ge.f32.partialorder %v3018_v63, 0.0  ;;  %v3086_v4 = vmul.f32 %v9692_v17, %v3018_v63  ;;  %v8672_v26 = vld [vmem:[#allocation3 + $0x48] sm:$0xff]  ;;  %v4038_v34 = vsel %vm9147_vm11, %v4033_v55, %v9809_v31  ;;  %v9859_v12 = vrot.slane %v4059_v57, 5  ;;  %v3218_v49 = vld [vmem:[#allocation2 + $0x34] sm:$0xf] }
 0x215   : > { %3802 = vrot.lane.b32.xlu2 %v3730_v13, %s8928_s16  ;;  %v8656_v28 = vld [vmem:[#allocation3 + $0x48] sm:$0xff]  ;;  %v856_v3 = vld [vmem:[#allocation2 + $0xd0] sm:$0x8]  ;;  %v9861_v14 = vrot.slane %v4053_v62, 5  ;;  %v3290_v52 = vshrl.u32 %v3212_v6, 16  ;;  %v1177_v31 = vshll.u32 %v858_v44, 16 }
 0x216   : > { %v8640_v29 = vld [vmem:[#allocation3 + $0x48] sm:$0xff]  ;;  %v3118_v40 = vsel %vm3050_vm2, %v3018_v63, %v3086_v4  ;;  %7873 = vmatmul.msk.bf16.gmra.mxu0 %vm2348_vm4, %v8656_v28  ;;  %v1160_v13 = vshrl.u32 %v856_v3, 16  ;;  %v1172_v63 = vrot.slane %v1167_v54, 4  ;;  %v4065_v21 = vrot.slane %v4063_v51, 4  ;;  %v3211_v28 = vld [vmem:[#allocation2 + $0x10] sm:$0x8] }
 0x217   : > { %3806 = vrot.lane.b32.xlu1 %v3732_v23, %s8928_s16  ;;  %v3150_v47 = vpack.c.bf16 %v3118_v40, %v3118_v40  ;;  %8042 = vmatmul.msk.bf16.gmra.mxu2 %vm2348_vm4, %v8672_v26  ;;  %v2913_v30 = vpop.f32.mrf.mxu2  ;;  %v556_v24 = vsel %vm9104_vm5, 0, %v555_v20  ;;  %v3292_v33 = vrot.slane %v3290_v52, 7  ;;  %v3299_v36 = vshrl.u32 %v3213_v18, 16  ;;  %v9872_v40 = vld [vmem:[#allocation2 + $0x24] sm:$0xf] }
 0x218   : > { %7958 = vmatmul.msk.bf16.gmra.mxu1 %vm2348_vm4, %v8640_v29  ;;  %v2983_v58 = vadd.f32 %v2913_v30, %v2653_v39  ;;  %v7790_v9 = vrot.slane %v1160_v13, 11  ;;  %v3955_v29 = vld [vmem:[#allocation2 + $0x2c] sm:$0x1]  ;;  %557 = vst [vmem:[#allocation2 + $0x11c] sm:$0x1] %v556_v24  ;;  %v2025_v38 = vshrl.u32 %v1610_v53, 16 }
 0x219   : > { %3804 = vrot.lane.b32.xlu0 %v3731_v45, %s8928_s16  ;;  %3182 = vst.msk [vmem:[#allocation2 + $0x44] sm:$0xf] %vm432_vm7, %v3150_v47  ;;  %v1176_v45 = vrot.slane %v1174_v56, 7  ;;  %v3301_v25 = vrot.slane %v3299_v36, 7  ;;  %v3302_v48 = vshll.u32 %v3213_v18, 16  ;;  %v3285_v41 = vshrl.u32 %v3211_v28, 16 }
 0x21a   : > { %v3019_v0 = vadd.f32 %v9681_v32, %v2983_v58  ;;  %v1170_v32 = vor.u32 %v1168_v59, %v1167_v54  ;;  %v4066_v47 = vor.u32 %v4065_v21, %v9859_v12  ;;  %v4069_v30 = vshll.u32 %v3955_v29, 16  ;;  %v3217_v59 = vld [vmem:[#allocation2 + $0x30] sm:$0x8]  ;;  %v3734_v55 = vld [vmem:[#allocation2 + $0x24] sm:$0xf] }
 0x21b   : > { %v1179_v26 = vor.u32 %v1177_v31, %v1176_v45  ;;  %v2028_v46 = vshll.u32 %v1610_v53, 16  ;;  %v3297_v44 = vrot.slane %v3292_v33, 4  ;;  %v3304_v58 = vor.u32 %v3302_v48, %v3301_v25  ;;  %v1377_v56 = vld [vmem:[#allocation2 + $0x118] sm:$0xf]  ;;  %v1376_v52 = vld [vmem:[#allocation2 + $0x114] sm:$0xf] }
 0x21c   : > { %vm3051_vm6 = vcmp.ge.f32.partialorder %v3019_v0, 0.0  ;;  %v3087_v10 = vmul.f32 %v9692_v17, %v3019_v0  ;;  %v1611_v17 = vld [vmem:[#allocation2 + $0x118] sm:$0xf]  ;;  %v1171_v4 = vsel %vm9190_vm14, %v7790_v9, %v1170_v32  ;;  %v3295_v54 = vor.u32 %v3293_v42, %v3292_v33  ;;  %v3216_v9 = vld [vmem:[#allocation2 + $0x28] sm:$0xf] }
 0x21d   : > { %4435 = vrot.lane.b32.xlu2 %v4024_v35, %s8927_s24  ;;  %v2034_v16 = vshll.u32 %v1611_v17, 16  ;;  %v2038_v23 = vshrl.u32 %v1611_v17, 16  ;;  %v1180_v39 = vsel %vm9190_vm14, %v1172_v63, %v1179_v26  ;;  %1332 = vst.msk [vmem:[#allocation3 + $0x68] sm:$0xf] %vm1305_vm13, %v1171_v4  ;;  %v8052_v35 = vrot.slane %v3285_v41, 11 }
 0x21e   : > { %v3119_v11 = vsel %vm3051_vm6, %v3019_v0, %v3087_v10  ;;  %1333 = vst.msk [vmem:[#allocation3 + $0x6c] sm:$0xf] %vm1305_vm13, %v1180_v39  ;;  %v3329_v0 = vshrl.u32 %v3217_v59, 16  ;;  %v3334_v3 = vshrl.u32 %v3218_v49, 16  ;;  %v2027_v6 = vrot.slane %v2025_v38, 4 }
 0x21f   : > { %4439 = vrot.lane.b32.xlu1 %v4048_v8, %s8927_s24  ;;  %v3151_v19 = vpack.c.bf16 %v3119_v11, %v3119_v11  ;;  %v9879_v57 = vrot.slane %v2034_v16, 5  ;;  %v2040_v62 = vrot.slane %v2038_v23, 4  ;;  %v3956_v8 = vld [vmem:[#allocation2 + $0x34] sm:$0xf]  ;;  %v3312_v13 = vshrl.u32 %v9872_v40, 16 }
 0x220   : > { %v2030_v10 = vrot.slane %v2028_v46, 5  ;;  %v3296_v51 = vsel %vm9190_vm14, %v8052_v35, %v3295_v54  ;;  %v9888_v32 = vrot.slane %v3334_v3, 7  ;;  %v4067_v11 = vrot.slane %v4066_v47, 4  ;;  %v1612_v31 = vld [vmem:[#allocation2 + $0x11c] sm:$0x1] }
 0x221   : > { %4437 = vrot.lane.b32.xlu0 %v4038_v34, %s8927_s24  ;;  %3183 = vst.msk [vmem:[#allocation2 + $0x48] sm:$0xf] %vm432_vm7, %v3151_v19  ;;  %v3305_v34 = vsel %vm9190_vm14, %v3297_v44, %v3304_v58  ;;  %v4071_v63 = vrot.slane %v4069_v30, 5  ;;  %v4056_v45 = vor.u32 %v9861_v14, %v9856_v60  ;;  %v2041_v18 = vor.u32 %v2040_v62, %v9879_v57  ;;  %v3214_v24 = vld [vmem:[#allocation2 + $0x20] sm:$0x8] }
 0x222   : > { %3697 = vst.msk [vmem:[#allocation3 + $0xc] sm:$0xf] %vm432_vm7, %v3305_v34  ;;  %v4074_v19 = vshrl.u32 %v3956_v8, 16  ;;  %v8054_v20 = vrot.slane %v3329_v0, 11  ;;  %v3337_v17 = vshll.u32 %v3218_v49, 16  ;;  %v2044_v53 = vshll.u32 %v1612_v31, 16 }
 0x223   : > { %3696 = vst.msk [vmem:[#allocation3 + $0x8] sm:$0xf] %vm432_vm7, %v3296_v51  ;;  %v3321_v21 = vshrl.u32 %v3216_v9, 16  ;;  %v2031_v4 = vor.u32 %v2030_v10, %v2027_v6  ;;  %v4077_v26 = vshll.u32 %v3956_v8, 16  ;;  %v4072_v60 = vsel %vm9147_vm11, %v4067_v11, %v4071_v63  ;;  %v3219_v36 = vld [vmem:[#allocation2 + $0x38] sm:$0xf] }
 0x224   : > { %v3339_v28 = vor.u32 %v3337_v17, %v9888_v32  ;;  %v4057_v14 = vrot.slane %v4056_v45, 4  ;;  %v3324_v33 = vshll.u32 %v3216_v9, 16  ;;  %v2042_v16 = vrot.slane %v2041_v18, 4  ;;  %v3957_v23 = vld [vmem:[#allocation2 + $0x38] sm:$0xf] }
 0x225   : > { %3808 = vrot.lane.b32.xlu2 %v3733_v22, %s8928_s16  ;;  %v3314_v22 = vrot.slane %v3312_v13, 7  ;;  %v3323_v29 = vrot.slane %v3321_v21, 7  ;;  %v4076_v38 = vrot.slane %v4074_v19, 4  ;;  %v3307_v25 = vshrl.u32 %v3214_v24, 16  ;;  %v3958_v9 = vld [vmem:[#allocation2 + $0x3c] sm:$0x1] }
 0x226   : > { %v3340_v39 = vsel %vm9190_vm14, %v8054_v20, %v3339_v28  ;;  %v2046_v48 = vrot.slane %v2044_v53, 5  ;;  %v3315_v47 = vshll.u32 %v9872_v40, 16  ;;  %v2032_v46 = vrot.slane %v2031_v4, 4  ;;  %v3220_v11 = vld [vmem:[#allocation2 + $0x40] sm:$0x8] }
 0x227   : > { %3812 = vrot.lane.b32.xlu1 %v3735_v50, %s8928_s16  ;;  %3700 = vst.msk [vmem:[#allocation3 + $0x18] sm:$0xf] %vm432_vm7, %v3340_v39  ;;  %v3319_v41 = vrot.slane %v3314_v22, 4  ;;  %v3326_v42 = vor.u32 %v3324_v33, %v3323_v29  ;;  %v4079_v49 = vrot.slane %v4077_v26, 5  ;;  %v8053_v50 = vrot.slane %v3307_v25, 11 }
 0x228   : > { %v3343_v44 = vshrl.u32 %v3219_v36, 16  ;;  %v4083_v58 = vshll.u32 %v3957_v23, 16  ;;  %v4087_v35 = vshrl.u32 %v3957_v23, 16  ;;  %v3317_v59 = vor.u32 %v3315_v47, %v3314_v22  ;;  %v3959_v17 = vld [vmem:[#allocation2 + $0x44] sm:$0xf] }
 0x229   : > { %3810 = vrot.lane.b32.xlu0 %v3734_v55, %s8928_s16  ;;  %v3327_v54 = vsel %vm9190_vm14, %v3319_v41, %v3326_v42  ;;  %v4062_v55 = vsel %vm9147_vm11, %v4057_v14, %v9859_v12  ;;  %v3346_v62 = vshll.u32 %v3219_v36, 16  ;;  %v2047_v0 = vsel %vm9147_vm11, %v2042_v16, %v2046_v48  ;;  %v3736_v53 = vld [vmem:[#allocation2 + $0x34] sm:$0xf]  ;;  %v3960_v24 = vld [vmem:[#allocation2 + $0x48] sm:$0xf] }
 0x22a   : > { %3699 = vst.msk [vmem:[#allocation3 + $0x14] sm:$0xf] %vm432_vm7, %v3327_v54  ;;  %v3345_v40 = vrot.slane %v3343_v44, 7  ;;  %v3318_v3 = vsel %vm9190_vm14, %v8053_v50, %v3317_v59  ;;  %v2037_v6 = vsel %vm9147_vm11, %v2032_v46, %v9879_v57  ;;  %v3341_v12 = vrot.slane %v9888_v32, 4  ;;  %v3222_v4 = vld [vmem:[#allocation2 + $0x48] sm:$0xf] }
 0x22b   : > { %3698 = vst.msk [vmem:[#allocation3 + $0x10] sm:$0xf] %vm432_vm7, %v3318_v3  ;;  %v4080_v10 = vor.u32 %v4079_v49, %v4076_v38  ;;  %v4085_v51 = vrot.slane %v4083_v58, 5  ;;  %v3351_v45 = vshrl.u32 %v3220_v11, 16  ;;  %v4093_v20 = vshll.u32 %v3958_v9, 16 }
 0x22c   : > { %v3348_v8 = vor.u32 %v3346_v62, %v3345_v40  ;;  %v4098_v26 = vshrl.u32 %v3959_v17, 16  ;;  %v4101_v28 = vshll.u32 %v3959_v17, 16  ;;  %v3737_v36 = vld [vmem:[#allocation2 + $0x38] sm:$0xf]  ;;  %v4107_v16 = vshll.u32 %v3960_v24, 16 }
 0x22d   : > { %1484 = vrot.lane.b32.xlu2 %v1377_v56, %s8925_s25  ;;  %v3221_v56 = vld [vmem:[#allocation2 + $0x44] sm:$0xf]  ;;  %v8055_v32 = vrot.slane %v3351_v45, 11  ;;  %v4081_v22 = vrot.slane %v4080_v10, 4  ;;  %v4095_v33 = vrot.slane %v4093_v20, 5  ;;  %v4111_v23 = vshrl.u32 %v3960_v24, 16  ;;  %v2655_v10 = vpop.f32.mrf.mxu1 }
 0x22e   : > { %v3356_v34 = vshrl.u32 %v3221_v56, 16  ;;  %v3349_v63 = vsel %vm9190_vm14, %v3341_v12, %v3348_v8  ;;  %v3359_v31 = vshll.u32 %v3221_v56, 16  ;;  %v3368_v39 = vshll.u32 %v3222_v4, 16  ;;  %v3961_v44 = vld [vmem:[#allocation2 + $0x4c] sm:$0x1] }
 0x22f   : > { %1482 = vrot.lane.b32.xlu1 %v1376_v52, %s8925_s25  ;;  %v4089_v52 = vrot.slane %v4087_v35, 4  ;;  %3701 = vst.msk [vmem:[#allocation3 + $0x1c] sm:$0xf] %vm432_vm7, %v3349_v63  ;;  %v4086_v14 = vsel %vm9147_vm11, %v4081_v22, %v4085_v51  ;;  %v4100_v48 = vrot.slane %v4098_v26, 4  ;;  %v4103_v41 = vrot.slane %v4101_v28, 5  ;;  %v8703_v26 = vld [vmem:[%s11139_s6 + $0x28] sm:$0xff] }
 0x230   : > { %v1455_v30 = vpop.permute.xlu0 %1454  ;;  %v3358_v57 = vrot.slane %v3356_v34, 7  ;;  %v4109_v46 = vrot.slane %v4107_v16, 5  ;;  %v4113_v49 = vrot.slane %v4111_v23, 4  ;;  %v3739_v35 = vld [vmem:[#allocation2 + $0x48] sm:$0xf]  ;;  %vm3910_vm5 = vcmask 519424   ;;  %5087 = vmatpush.bf16.msrb.mxu0 %v8703_v26 }
 0x231   : > { %4443 = vrot.lane.b32.xlu0 %v4072_v60, %s8927_s24  ;;  %1543 = vst.msk [vmem:[#allocation3 + $0x50] sm:$0xf] %vm1522_vm15, %v1455_v30  ;;  %v4090_v19 = vor.u32 %v4089_v52, %v4085_v51  ;;  %v3365_v60 = vshrl.u32 %v3222_v4, 16  ;;  %v4104_v58 = vor.u32 %v4103_v41, %v4100_v48  ;;  %v3738_v54 = vld [vmem:[#allocation2 + $0x44] sm:$0xf]  ;;  %s8796_s25 = sshll.u32 %s9011_s21, 2 }
 0x232   : > { %v3361_v18 = vor.u32 %v3359_v31, %v3358_v57  ;;  %v3363_v42 = vrot.slane %v3358_v57, 4  ;;  %v4114_v59 = vor.u32 %v4113_v49, %v4109_v46  ;;  %v9967_v28 = vld [vmem:[#allocation2 + $0x114] sm:$0xf]  ;;  %s7678_s0 = scalar_lea.hbm %s11144_s11, %s8796_s25 }
 0x233   : > { %v4091_v29 = vrot.slane %v4090_v19, 4  ;;  %v3367_v38 = vrot.slane %v3365_v60, 7  ;;  %v4105_v62 = vrot.slane %v4104_v58, 4  ;;  %v870_v60 = vld [vmem:[#allocation2 + $0x118] sm:$0xf]  ;;  %v1253_v16 = vshrl.u32 %v9967_v28, 16 }
 0x234   : > { %v3362_v21 = vsel %vm9190_vm14, %v8055_v32, %v3361_v18  ;;  %v4115_v56 = vrot.slane %v4114_v59, 4  ;;  %v1262_v23 = vshrl.u32 %v870_v60, 16  ;;  %s7682_s1 = sshll.u32 %s7678_s0, 4  ;;  %s7683_s1 = int_to_ptr.hbm [resolvable:$true] %s7682_s1 }
 0x235   : > { %4441 = vrot.lane.b32.xlu2 %v4062_v55, %s8927_s24  ;;  %3702 = vst.msk [vmem:[#allocation3 + $0x20] sm:$0xf] %vm432_vm7, %v3362_v21  ;;  %v3370_v47 = vor.u32 %v3368_v39, %v3367_v38  ;;  %v4096_v30 = vsel %vm9147_vm11, %v4091_v29, %v4095_v33  ;;  %v4117_v55 = vshll.u32 %v3961_v44, 16  ;;  %v4110_v3 = vsel %vm9147_vm11, %v4105_v62, %v4109_v46  ;;  %v2657_v31 = vpop.f32.mrf.mxu1  ;;  %v8702_v39 = vld [vmem:[%s11139_s6 + $0x20] sm:$0xff] }
 0x236   : > { %v1265_v38 = vshll.u32 %v870_v60, 16  ;;  %v9987_v41 = vrot.slane %v1253_v16, 7  ;;  %5088 = vmatpush.bf16.msrb.mxu0 %v8702_v39 }
 0x237   : > { %v2089_v13 = vpop.permute.xlu2 %2088  ;;  %2118 = vrot.lane.b32.xlu1 %v2047_v0, %s8926_s30  ;;  %v3371_v50 = vsel %vm9190_vm14, %v3363_v42, %v3370_v47  ;;  %v1264_v42 = vrot.slane %v1262_v23, 7 }
 0x238   : > { %2177 = vst.msk [vmem:[#allocation3 + $0x50] sm:$0xf] %vm2156_vm3, %v2089_v13  ;;  %v2430_v13 = vpop.f32.mrf.mxu0  ;;  %v1260_v49 = vrot.slane %v9987_v41, 4 }
 0x239   : > { %2116 = vrot.lane.b32.xlu0 %v2037_v6, %s8926_s30  ;;  %3703 = vst.msk [vmem:[#allocation3 + $0x24] sm:$0xf] %vm432_vm7, %v3371_v50  ;;  %v4119_v6 = vrot.slane %v4117_v55, 5  ;;  %v2656_v20 = vadd.f32 %v2655_v10, %v2430_v13  ;;  %v1267_v50 = vor.u32 %v1265_v38, %v1264_v42  ;;  %v8701_v55 = vld [vmem:[%s11139_s6 + $0x18] sm:$0xff]  ;;  %s8873_s30 = sshra.s32 %s7683_s1, 4  ;;  %s8874_s30 = int_to_ptr.hbm [resolvable:$true] %s8873_s30 }
 0x23a   : > { %5089 = vmatpush.bf16.msrb.mxu0 %v8701_v55  ;;  %s8875_s25 = scalar_lea.hbm %s8874_s30, 4  ;;  %p8880_p0 = scmp.lt.s32.totalorder %s8874_s30, %s11144_s11 }
 0x23b   : > { %v4120_v12 = vsel %vm9147_vm11, %v4115_v56, %v4119_v6  ;;  %v1268_v59 = vsel %vm9190_vm14, %v1260_v49, %v1267_v50  ;;  %v8700_v56 = vld [vmem:[%s11139_s6 + $0x10] sm:$0xff]  ;;  %p8876_p11 = scmp.ne.s32.totalorder %s8874_s30, %s8875_s25 }
 0x23c   : > { %1341 = vst.msk [vmem:[#allocation3 + $0x8c] sm:$0xf] %vm1305_vm13, %v1268_v59 }
 0x23d   : > { %3814 = vrot.lane.b32.xlu2 %v3736_v53, %s8928_s16  ;;  %v2660_v4 = vpop.f32.mrf.mxu1  ;;  %p8877_p12 = pnand %p8876_p11, %p9028_p5 }
 0x23e   : > { %5090 = vmatpush.bf16.msrb.mxu0 %v8700_v56 }
 0x23f   : > { %4445 = vrot.lane.b32.xlu1 %v4086_v14, %s8927_s24  ;;  %v9972_v14 = vld [vmem:[%s11137_s4] ss:$0 sm:$0xff]  ;;  %p8878_p13 = pneg %p8877_p12 }
 0x240   : > { %v2432_v57 = vpop.f32.mrf.mxu0 }
 0x241   : > { %3816 = vrot.lane.b32.xlu0 %v3737_v36, %s8928_s16  ;;  %v1461_v25 = vpop.permute.xlu2 %1460 }
 0x242   : > { %1546 = vst.msk [vmem:[#allocation3 + $0x5c] sm:$0xf] %vm1522_vm15, %v1461_v25  ;;  %v9983_v25 = vld [vmem:[%s11138_s5] ss:$0 sm:$0xff] }
 0x245   : > { %4447 = vrot.lane.b32.xlu2 %v4096_v30, %s8927_s24  ;;  %v2658_v30 = vadd.f32 %v2657_v31, %v2432_v57 }
 0x247   : > { %3820 = vrot.lane.b32.xlu1 %v3739_v35, %s8928_s16 }
 0x249   : > { %3818 = vrot.lane.b32.xlu0 %v3738_v54, %s8928_s16  ;;  %v1457_v40 = vpop.permute.xlu1 %1456  ;;  %v1463_v0 = vpop.permute.xlu2 %1462 }
 0x24a   : > { %1544 = vst.msk [vmem:[#allocation3 + $0x54] sm:$0xf] %vm1522_vm15, %v1457_v40 }
 0x24b   : > { %1547 = vst.msk [vmem:[#allocation3 + $0x60] sm:$0xf] %vm1522_vm15, %v1463_v0  ;;  %v2662_v0 = vpop.f32.mrf.mxu1 }
 0x24d   : > { %4449 = vrot.lane.b32.xlu2 %v4110_v3, %s8927_s24  ;;  %v5705_v3 = vld [vmem:[#allocation2 + $0x4] sm:$0xf] }
 0x251   : > { %4451 = vrot.lane.b32.xlu0 %v4120_v12, %s8927_s24  ;;  %v1459_v8 = vpop.permute.xlu1 %1458 }
 0x252   : > { %1545 = vst.msk [vmem:[#allocation3 + $0x58] sm:$0xf] %vm1522_vm15, %v1459_v8 }
 0x253   : > { %v2091_v34 = vpop.permute.xlu0 %2090 }
 0x254   : > { %2178 = vst.msk [vmem:[#allocation3 + $0x54] sm:$0xf] %vm2156_vm3, %v2091_v34 }
 0x25b   : > { %v8657_v51 = vld [vmem:[#allocation3 + $0x50] sm:$0xff]  ;;  %v2099_v11 = vpop.permute.xlu2 %2098 }
 0x25c   : > { %v8641_v9 = vld [vmem:[#allocation3 + $0x50] sm:$0xff]  ;;  %7874 = vmatmul.msk.bf16.gmra.mxu0 %vm2348_vm4, %v8657_v51  ;;  %v5764_v51 = vshrl.u32 %v5705_v3, 16 }
 0x25d   : > { %v8673_v52 = vld [vmem:[#allocation3 + $0x50] sm:$0xff]  ;;  %7959 = vmatmul.msk.bf16.gmra.mxu1 %vm2348_vm4, %v8641_v9 }
 0x25e   : > { %8043 = vmatmul.msk.bf16.gmra.mxu2 %vm2348_vm4, %v8673_v52 }
 0x25f   : > { %v2093_v63 = vpop.permute.xlu0 %2092 }
 0x260   : > { %2179 = vst.msk [vmem:[#allocation3 + $0x58] sm:$0xf] %vm2156_vm3, %v2093_v63  ;;  %v5704_v63 = vld [vmem:[#allocation2] sm:$0x8] }
 0x262   : > { %v2435_v18 = vpop.f32.mrf.mxu0 }
 0x263   : > { %v2095_v45 = vpop.permute.xlu1 %2094  ;;  %v2661_v8 = vadd.f32 %v2660_v4, %v2435_v18  ;;  %v5767_v4 = vshll.u32 %v5705_v3, 16  ;;  %v2665_v26 = vpop.f32.mrf.mxu1 }
 0x264   : > { %2180 = vst.msk [vmem:[#allocation3 + $0x5c] sm:$0xf] %vm2156_vm3, %v2095_v45 }
 0x267   : > { %v2101_v32 = vpop.permute.xlu2 %2100 }
 0x269   : > { %v1465_v19 = vpop.permute.xlu0 %1464 }
 0x26a   : > { %1548 = vst.msk [vmem:[#allocation3 + $0x64] sm:$0xf] %vm1522_vm15, %v1465_v19  ;;  %v2916_v21 = vpop.f32.mrf.mxu2  ;;  %v2437_v58 = vpop.f32.mrf.mxu0 }
 0x26b   : > { %v8658_v17 = vld [vmem:[#allocation3 + $0x58] sm:$0xff]  ;;  %2182 = vst.msk [vmem:[#allocation3 + $0x64] sm:$0xf] %vm2156_vm3, %v2099_v11  ;;  %v2984_v24 = vadd.f32 %v2916_v21, %v2656_v20  ;;  %v8699_v20 = vld [vmem:[%s11139_s6 + $0x8] sm:$0xff]  ;;  %v5759_v21 = vshrl.u32 %v5704_v63, 16  ;;  %v2663_v38 = vadd.f32 %v2662_v0, %v2437_v58 }
 0x26c   : > { %v8642_v53 = vld [vmem:[#allocation3 + $0x58] sm:$0xff]  ;;  %7875 = vmatmul.msk.bf16.gmra.mxu0 %vm2348_vm4, %v8658_v17  ;;  %v8747_v17 = vld [vmem:[%s11139_s6 + $0x88] sm:$0xff] }
 0x26d   : > { %v8674_v22 = vld [vmem:[#allocation3 + $0x58] sm:$0xff]  ;;  %7960 = vmatmul.msk.bf16.gmra.mxu1 %vm2348_vm4, %v8642_v53  ;;  %v3020_v29 = vadd.f32 %v9972_v14, %v2984_v24  ;;  %v10021_v24 = vrot.slane %v5764_v51, 7  ;;  %5091 = vmatpush.bf16.msrb.mxu0 %v8699_v20  ;;  %v8744_v51 = vld [vmem:[%s11139_s6 + $0x70] sm:$0xff] }
 0x26e   : > { %8044 = vmatmul.msk.bf16.gmra.mxu2 %vm2348_vm4, %v8674_v22  ;;  %5385 = vmatpush.bf16.msrb.mxu1 %v8747_v17 }
 0x26f   : > { %v3803_v33 = vpop.permute.xlu2 %3802  ;;  %v2097_v36 = vpop.permute.xlu1 %2096  ;;  %vm3052_vm0 = vcmp.ge.f32.partialorder %v3020_v29, 0.0  ;;  %v3088_v48 = vmul.f32 %v9983_v25, %v3020_v29  ;;  %v5769_v49 = vor.u32 %v5767_v4, %v10021_v24 }
 0x270   : > { %3911 = vst.msk [vmem:[#allocation3] sm:$0xf] %vm3910_vm5, %v3803_v33  ;;  %v8698_v33 = vld [vmem:[%s11139_s6] sm:$0xff] }
 0x271   : > { %2181 = vst.msk [vmem:[#allocation3 + $0x60] sm:$0xf] %vm2156_vm3, %v2097_v36  ;;  %v1467_v47 = vpop.permute.xlu0 %1466  ;;  %v3120_v46 = vsel %vm3052_vm0, %v3020_v29, %v3088_v48  ;;  %v8746_v36 = vld [vmem:[%s11139_s6 + $0x80] sm:$0xff]  ;;  %5092 = vmatpush.bf16.msrb.mxu0 %v8698_v33 }
 0x272   : > { %1549 = vst.msk [vmem:[#allocation3 + $0x68] sm:$0xf] %vm1522_vm15, %v1467_v47  ;;  %v3152_v44 = vpack.c.bf16 %v3120_v46, %v3120_v46  ;;  %v2918_v35 = vpop.f32.mrf.mxu2  ;;  %v3964_v47 = vld [vmem:[#allocation2 + $0x5c] sm:$0x1]  ;;  %v8405_v46 = vrot.slane %v5759_v21, 11  ;;  %5386 = vmatpush.bf16.msrb.mxu1 %v8746_v36 }
 0x273   : > { %2183 = vst.msk [vmem:[#allocation3 + $0x68] sm:$0xf] %vm2156_vm3, %v2101_v32  ;;  %v2985_v54 = vadd.f32 %v2918_v35, %v2658_v30  ;;  %v10010_v32 = vpop.f32.mrf.mxu0  ;;  %v4141_v55 = vshll.u32 %v3964_v47, 16 }
 0x274   : > { %3184 = vst.msk [vmem:[#allocation2 + $0x54] sm:$0xf] %vm432_vm7, %v3152_v44 }
 0x275   : > { %v3021_v40 = vadd.f32 %v9972_v14, %v2985_v54 }
 0x277   : > { %v9999_v62 = vpop.permute.xlu2 %4435  ;;  %vm3053_vm9 = vcmp.ge.f32.partialorder %v3021_v40, 0.0  ;;  %v3089_v6 = vmul.f32 %v9983_v25, %v3021_v40 }
 0x278   : > { %v8659_v13 = vld [vmem:[#allocation3 + $0x60] sm:$0xff] }
 0x279   : > { %v1469_v12 = vpop.permute.xlu1 %1468  ;;  %v3121_v34 = vsel %vm3053_vm9, %v3021_v40, %v3089_v6  ;;  %v8643_v10 = vld [vmem:[#allocation3 + $0x60] sm:$0xff]  ;;  %v8745_v40 = vld [vmem:[%s11139_s6 + $0x78] sm:$0xff]  ;;  %v442_v6 = vld [vmem:[#allocation2 + $0x110] sm:$0x8] }
 0x27a   : > { %1550 = vst.msk [vmem:[#allocation3 + $0x6c] sm:$0xf] %vm1522_vm15, %v1469_v12  ;;  %v3153_v9 = vpack.c.bf16 %v3121_v34, %v3121_v34  ;;  %v2921_v52 = vpop.f32.mrf.mxu2  ;;  %v8675_v11 = vld [vmem:[#allocation3 + $0x60] sm:$0xff]  ;;  %5387 = vmatpush.bf16.msrb.mxu1 %v8745_v40  ;;  %v8724_v40 = vld [vmem:[%s11139_s6 + $0x50] sm:$0xff] }
 0x27b   : > { %v2986_v57 = vadd.f32 %v2921_v52, %v2661_v8  ;;  %v3740_v45 = vld [vmem:[#allocation2 + $0x54] sm:$0xf]  ;;  %v2442_v12 = vpop.f32.mrf.mxu0  ;;  %v5770_v8 = vsel %vm9190_vm14, %v8405_v46, %v5769_v49  ;;  %v2667_v52 = vpop.f32.mrf.mxu1  ;;  %v3967_v49 = vld [vmem:[#allocation2 + $0x6c] sm:$0x1] }
 0x27c   : > { %7876 = vmatmul.msk.bf16.gmra.mxu0 %vm2348_vm4, %v8659_v13  ;;  %v3962_v31 = vld [vmem:[#allocation2 + $0x54] sm:$0xf]  ;;  %3185 = vst.msk [vmem:[#allocation2 + $0x58] sm:$0xf] %vm432_vm7, %v3153_v9  ;;  %3822 = vrot.lane.b32.xlu1 %v3740_v45, %s8928_s16 }
 0x27d   : > { %7961 = vmatmul.msk.bf16.gmra.mxu1 %vm2348_vm4, %v8643_v10  ;;  %v4122_v18 = vshrl.u32 %v3962_v31, 16  ;;  %v4125_v19 = vshll.u32 %v3962_v31, 16  ;;  %v3022_v53 = vadd.f32 %v9972_v14, %v2986_v57  ;;  %v443_v10 = vsel %vm9110_vm8, 0, %v442_v6 }
 0x27e   : > { %8045 = vmatmul.msk.bf16.gmra.mxu2 %vm2348_vm4, %v8675_v11  ;;  %444 = vst [vmem:[#allocation2 + $0x110] sm:$0x8] %v443_v10  ;;  %v4143_v31 = vrot.slane %v4141_v55, 5  ;;  %5388 = vmatpush.bf16.msrb.mxu1 %v8744_v51  ;;  %v1256_v55 = vshll.u32 %v9967_v28, 16  ;;  %v8723_v28 = vld [vmem:[%s11139_s6 + $0x48] sm:$0xff] }
 0x27f   : > { %v3809_v22 = vpop.permute.xlu2 %3808  ;;  %v4124_v60 = vrot.slane %v4122_v18, 4  ;;  %v4127_v29 = vrot.slane %v4125_v19, 5  ;;  %vm3054_vm1 = vcmp.ge.f32.partialorder %v3022_v53, 0.0  ;;  %v3090_v16 = vmul.f32 %v9983_v25, %v3022_v53 }
 0x280   : > { %3914 = vst.msk [vmem:[#allocation3 + $0xc] sm:$0xf] %vm3910_vm5, %v3809_v22  ;;  %v2666_v18 = vadd.f32 %v2665_v26, %v10010_v32 }
 0x281   : > { %v4434_v23 = vpop.permute.xlu1 %4433  ;;  %v3122_v39 = vsel %vm3054_vm1, %v3022_v53, %v3090_v16  ;;  %v4128_v42 = vor.u32 %v4127_v29, %v4124_v60 }
 0x282   : > { %4542 = vst.msk [vmem:[#allocation3] sm:$0xf] %vm4541_vm10, %v4434_v23  ;;  %v3154_v30 = vpack.c.bf16 %v3122_v39, %v3122_v39  ;;  %v2923_v50 = vpop.f32.mrf.mxu2  ;;  %v8725_v23 = vld [vmem:[%s11139_s6 + $0x58] sm:$0xff] }
 0x283   : > { %v2103_v48 = vpop.permute.xlu0 %2102  ;;  %v2987_v44 = vadd.f32 %v2923_v50, %v2663_v38  ;;  %v3741_v35 = vld [vmem:[#allocation2 + $0x58] sm:$0xf]  ;;  %v4129_v56 = vrot.slane %v4128_v42, 4  ;;  %v8743_v38 = vld [vmem:[%s11139_s6 + $0x68] sm:$0xff]  ;;  %4834 = vmatpush.bf16.msrb.mxu3 %v8725_v23 }
 0x284   : > { %2184 = vst.msk [vmem:[#allocation3 + $0x6c] sm:$0xf] %vm2156_vm3, %v2103_v48  ;;  %v3963_v54 = vld [vmem:[#allocation2 + $0x58] sm:$0xf]  ;;  %3824 = vrot.lane.b32.xlu2 %v3741_v35, %s8928_s16  ;;  %5389 = vmatpush.bf16.msrb.mxu1 %v8743_v38  ;;  %v10080_v35 = vld [vmem:[#allocation2 + $0x54] sm:$0xf] }
 0x285   : > { %3186 = vst.msk [vmem:[#allocation2 + $0x64] sm:$0xf] %vm432_vm7, %v3154_v30  ;;  %v4131_v58 = vshll.u32 %v3963_v54, 16  ;;  %v4135_v59 = vshrl.u32 %v3963_v54, 16  ;;  %v3023_v0 = vadd.f32 %v9972_v14, %v2987_v44  ;;  %v501_v30 = vld [vmem:[#allocation2 + $0x110] sm:$0x8]  ;;  %v2445_v44 = vpop.f32.mrf.mxu0  ;;  %v2668_v54 = vadd.f32 %v2667_v52, %v2442_v12 }
 0x286   : > { %v502_v50 = vsel %vm9110_vm8, 0, %v501_v30  ;;  %v4165_v12 = vshll.u32 %v3967_v49, 16  ;;  %v3378_v10 = vshrl.u32 %v10080_v35, 16  ;;  %vm4783_vm8 = vcmask 785408   ;;  %v10108_v38 = vld [vmem:[#allocation2 + $0x118] sm:$0xf] }
 0x287   : > { %v1485_v3 = vpop.permute.xlu2 %1484  ;;  %v4133_v34 = vrot.slane %v4131_v58, 5  ;;  %v4137_v13 = vrot.slane %v4135_v59, 4  ;;  %vm3055_vm12 = vcmp.ge.f32.partialorder %v3023_v0, 0.0  ;;  %v3091_v9 = vmul.f32 %v9983_v25, %v3023_v0  ;;  %503 = vst [vmem:[#allocation2 + $0x110] sm:$0x8] %v502_v50  ;;  %4835 = vmatpush.bf16.msrb.mxu3 %v8724_v40  ;;  %v8677_v50 = vld [vmem:[#allocation3 + $0x70] sm:$0xff] }
 0x288   : > { %1558 = vst.msk [vmem:[#allocation3 + $0x8c] sm:$0xf] %vm1522_vm15, %v1485_v3  ;;  %5390 = vmatpush.bf16.msrb.mxu1 %v8742_v27 }
 0x289   : > { %v10049_v11 = vld [vmem:[#allocation3] sm:$0xf]  ;;  %v3807_v63 = vpop.permute.xlu1 %3806  ;;  %v4134_v57 = vsel %vm9147_vm11, %v4129_v56, %v4133_v34  ;;  %v4138_v45 = vor.u32 %v4137_v13, %v4133_v34  ;;  %v3123_v19 = vsel %vm3055_vm12, %v3023_v0, %v3091_v9  ;;  %v2670_v0 = vpop.f32.mrf.mxu1 }
 0x28a   : > { %6190 = vst.msk [vmem:[#allocation3] sm:$0xf] %vm432_vm7, %v5770_v8  ;;  %4453 = vrot.lane.b32.xlu0 %v4134_v57, %s8927_s24  ;;  %v3155_v21 = vpack.c.bf16 %v3123_v19, %v3123_v19  ;;  %v2926_v4 = vpop.f32.mrf.mxu2 }
 0x28b   : > { %v3805_v20 = vpop.permute.xlu0 %3804  ;;  %v8660_v17 = vld [vmem:[#allocation3 + $0x68] sm:$0xff]  ;;  %3913 = vst.msk [vmem:[#allocation3 + $0x8] sm:$0xf] %vm3910_vm5, %v3807_v63  ;;  %v4139_v60 = vrot.slane %v4138_v45, 4  ;;  %v2988_v29 = vadd.f32 %v2926_v4, %v2666_v18  ;;  %v1258_v45 = vor.u32 %v1256_v55, %v9987_v41  ;;  %4836 = vmatpush.bf16.msrb.mxu3 %v8723_v28 }
 0x28c   : > { %v8644_v53 = vld [vmem:[#allocation3 + $0x68] sm:$0xff]  ;;  %3912 = vst.msk [vmem:[#allocation3 + $0x4] sm:$0xf] %vm3910_vm5, %v3805_v20  ;;  %7877 = vmatmul.msk.bf16.gmra.mxu0 %vm2348_vm4, %v8660_v17  ;;  %v3742_v32 = vld [vmem:[#allocation2 + $0x64] sm:$0xf] }
 0x28d   : > { %v8676_v22 = vld [vmem:[#allocation3 + $0x68] sm:$0xff]  ;;  %7962 = vmatmul.msk.bf16.vlgmr.msra.gmra.mxu3 %vm2348_vm4, %v8644_v53  ;;  %v3965_v26 = vld [vmem:[#allocation2 + $0x64] sm:$0xf]  ;;  %3187 = vst.msk [vmem:[#allocation2 + $0x68] sm:$0xf] %vm432_vm7, %v3155_v21  ;;  %3826 = vrot.lane.b32.xlu2 %v3742_v32, %s8928_s16  ;;  %v4144_v33 = vsel %vm9147_vm11, %v4139_v60, %v4143_v31  ;;  %v3024_v39 = vadd.f32 %v9972_v14, %v2988_v29  ;;  %v4167_v21 = vrot.slane %v4165_v12, 5  ;;  %v2447_v30 = vpop.f32.mrf.mxu0 }
 0x28e   : > { %8046 = vmatmul.msk.bf16.gmra.mxu2 %vm2348_vm4, %v8676_v22  ;;  %v4146_v36 = vshrl.u32 %v3965_v26, 16  ;;  %v4149_v16 = vshll.u32 %v3965_v26, 16  ;;  %4543 = vst.msk [vmem:[#allocation3 + $0x4] sm:$0xf] %vm4541_vm10, %v9999_v62  ;;  %4455 = vrot.lane.b32.xlu1 %v4144_v33, %s8927_s24  ;;  %v3225_v31 = vld [vmem:[#allocation2 + $0x58] sm:$0xf] }
 0x28f   : > { %v10075_v48 = vpop.permute.xlu2 %4441  ;;  %vm3056_vm2 = vcmp.ge.f32.partialorder %v3024_v39, 0.0  ;;  %v3092_v46 = vmul.f32 %v9983_v25, %v3024_v39  ;;  %v3387_v17 = vshrl.u32 %v3225_v31, 16  ;;  %v868_v4 = vld [vmem:[#allocation2 + $0x110] sm:$0x8]  ;;  %v10102_v60 = vld [vmem:[#allocation2 + $0x114] sm:$0xf] }
 0x290   : > { %v4148_v42 = vrot.slane %v4146_v36, 4  ;;  %v4151_v47 = vrot.slane %v4149_v16, 5  ;;  %v1248_v26 = vshrl.u32 %v868_v4, 16  ;;  %v3380_v33 = vrot.slane %v3378_v10, 7  ;;  %v3227_v28 = vld [vmem:[#allocation2 + $0x64] sm:$0xf] }
 0x291   : > { %v4440_v62 = vpop.permute.xlu1 %4439  ;;  %v3124_v58 = vsel %vm3056_vm2, %v3024_v39, %v3092_v46  ;;  %v2671_v36 = vadd.f32 %v2670_v0, %v2445_v44  ;;  %v8722_v39 = vld [vmem:[%s11139_s6 + $0x40] sm:$0xff]  ;;  %v2672_v27 = vpop.f32.mrf.mxu1  ;;  %v3651_v10 = vshrl.u32 %v10108_v38, 16 }
 0x292   : > { %4545 = vst.msk [vmem:[#allocation3 + $0xc] sm:$0xf] %vm4541_vm10, %v4440_v62  ;;  %v3156_v3 = vpack.c.bf16 %v3124_v58, %v3124_v58  ;;  %v2928_v56 = vpop.f32.mrf.mxu2  ;;  %v4152_v6 = vor.u32 %v4151_v47, %v4148_v42  ;;  %v3389_v42 = vrot.slane %v3387_v17, 7  ;;  %v3390_v47 = vshll.u32 %v3225_v31, 16  ;;  %4837 = vmatpush.bf16.msrb.mxu3 %v8722_v39 }
 0x293   : > { %v4438_v59 = vpop.permute.xlu0 %4437  ;;  %v2989_v8 = vadd.f32 %v2928_v56, %v2668_v54  ;;  %v7794_v62 = vrot.slane %v1248_v26, 11  ;;  %v3642_v54 = vshrl.u32 %v10102_v60, 16  ;;  %v3385_v56 = vrot.slane %v3380_v33, 4 }
 0x294   : > { %4544 = vst.msk [vmem:[#allocation3 + $0x8] sm:$0xf] %vm4541_vm10, %v4438_v59  ;;  %v3743_v34 = vld [vmem:[#allocation2 + $0x68] sm:$0xf]  ;;  %v4153_v18 = vrot.slane %v4152_v6, 4  ;;  %v3392_v40 = vor.u32 %v3390_v47, %v3389_v42  ;;  %v2673_v12 = vadd.f32 %v2672_v27, %v2447_v30  ;;  %v3403_v17 = vshll.u32 %v3227_v28, 16 }
 0x295   : > { %v3966_v13 = vld [vmem:[#allocation2 + $0x68] sm:$0xf]  ;;  %3188 = vst.msk [vmem:[#allocation2 + $0x74] sm:$0xf] %vm432_vm7, %v3156_v3  ;;  %3828 = vrot.lane.b32.xlu0 %v3743_v34, %s8928_s16  ;;  %v8682_v9 = vld [vmem:[#allocation3] sm:$0xf0]  ;;  %v3025_v63 = vadd.f32 %v9972_v14, %v2989_v8 }
 0x296   : > { %v4155_v51 = vshll.u32 %v3966_v13, 16  ;;  %v4159_v52 = vshrl.u32 %v3966_v13, 16  ;;  %v8188_v22 = vor.u32 %v8682_v9, %v10049_v11  ;;  %v8645_v11 = vld [vmem:[#allocation3 + $0x70] sm:$0xff]  ;;  %v8721_v3 = vld [vmem:[%s11139_s6 + $0x38] sm:$0xff]  ;;  %v3393_v9 = vsel %vm9190_vm14, %v3385_v56, %v3392_v40 }
 0x297   : > { %v3815_v57 = vpop.permute.xlu2 %3814  ;;  %vm3057_vm6 = vcmp.ge.f32.partialorder %v3025_v63, 0.0  ;;  %v3093_v53 = vmul.f32 %v9983_v25, %v3025_v63  ;;  %v3223_v6 = vld [vmem:[#allocation2 + $0x50] sm:$0x8]  ;;  %3705 = vst.msk [vmem:[#allocation3 + $0x2c] sm:$0xf] %vm432_vm7, %v3393_v9  ;;  %4838 = vmatpush.bf16.msrb.mxu3 %v8721_v3  ;;  %v8646_v9 = vld [vmem:[#allocation3 + $0x78] sm:$0xff] }
 0x298   : > { %3917 = vst.msk [vmem:[#allocation3 + $0x18] sm:$0xf] %vm3910_vm5, %v3815_v57  ;;  %v4157_v19 = vrot.slane %v4155_v51, 5  ;;  %v4161_v20 = vrot.slane %v4159_v52, 4  ;;  %v3970_v51 = vld [vmem:[#allocation2 + $0x7c] sm:$0x1] }
 0x299   : > { %v3813_v29 = vpop.permute.xlu1 %3812  ;;  %v3125_v16 = vsel %vm3057_vm6, %v3025_v63, %v3093_v53  ;;  %v3400_v52 = vshrl.u32 %v3227_v28, 16  ;;  %v3381_v63 = vshll.u32 %v10080_v35, 16  ;;  %v3373_v53 = vshrl.u32 %v3223_v6, 16 }
 0x29a   : > { %v4158_v41 = vsel %vm9147_vm11, %v4153_v18, %v4157_v19  ;;  %v4162_v32 = vor.u32 %v4161_v20, %v4157_v19  ;;  %3916 = vst.msk [vmem:[#allocation3 + $0x14] sm:$0xf] %vm3910_vm5, %v3813_v29  ;;  %v3157_v46 = vpack.c.bf16 %v3125_v16, %v3125_v16  ;;  %v2931_v49 = vpop.f32.mrf.mxu2  ;;  %v3226_v19 = vld [vmem:[#allocation2 + $0x60] sm:$0x8]  ;;  %v10141_v29 = vrot.slane %v3642_v54, 7 }
 0x29b   : > { %4457 = vrot.lane.b32.xlu1 %v4158_v41, %s8927_s24  ;;  %v3811_v23 = vpop.permute.xlu0 %3810  ;;  %v2990_v58 = vadd.f32 %v2931_v49, %v2671_v36  ;;  %v10138_v20 = vrot.slane %v3400_v52, 7  ;;  %v3654_v35 = vshll.u32 %v10108_v38, 16  ;;  %v8720_v41 = vld [vmem:[%s11139_s6 + $0x30] sm:$0xff]  ;;  %v4189_v47 = vshll.u32 %v3970_v51, 16  ;;  %v8683_v52 = vld [vmem:[#allocation3 + $0x8] sm:$0xff] }
 0x29c   : > { %3915 = vst.msk [vmem:[#allocation3 + $0x10] sm:$0xf] %vm3910_vm5, %v3811_v23  ;;  %v4163_v44 = vrot.slane %v4162_v32, 4  ;;  %8273 = vmatmul.msk.bf16.vlgmr.msrb.gmra.mxu0 %vm4783_vm8, %v8188_v22  ;;  %v3744_v59 = vld [vmem:[#allocation2 + $0x74] sm:$0xf]  ;;  %v3383_v22 = vor.u32 %v3381_v63, %v3380_v33  ;;  %v3395_v32 = vshrl.u32 %v3226_v19, 16  ;;  %4839 = vmatpush.bf16.msrb.mxu3 %v8720_v41 }
 0x29d   : > { %4546 = vst.msk [vmem:[#allocation3 + $0x10] sm:$0xf] %vm4541_vm10, %v10075_v48  ;;  %7963 = vmatmul.msk.bf16.gmra.mxu3 %vm2348_vm4, %v8645_v11  ;;  %v3968_v55 = vld [vmem:[#allocation2 + $0x74] sm:$0xf]  ;;  %3830 = vrot.lane.b32.xlu0 %v3744_v59, %s8928_s16  ;;  %v1259_v48 = vsel %vm9190_vm14, %v7794_v62, %v1258_v45  ;;  %v3026_v8 = vadd.f32 %v9972_v14, %v2990_v58  ;;  %v8056_v23 = vrot.slane %v3373_v53, 11  ;;  %v3653_v62 = vrot.slane %v3651_v10, 7 }
 0x29e   : > { %3189 = vst.msk [vmem:[#allocation2 + $0x78] sm:$0xf] %vm432_vm7, %v3157_v46  ;;  %8047 = vmatmul.msk.bf16.gmra.mxu2 %vm2348_vm4, %v8677_v50  ;;  %v4168_v0 = vsel %vm9147_vm11, %v4163_v44, %v4167_v21  ;;  %v4170_v34 = vshrl.u32 %v3968_v55, 16  ;;  %v4173_v13 = vshll.u32 %v3968_v55, 16  ;;  %v3405_v33 = vor.u32 %v3403_v17, %v10138_v20  ;;  %v3259_v46 = vld [vmem:[#allocation2 + $0x110] sm:$0x8] }
 0x29f   : > { %4459 = vrot.lane.b32.xlu2 %v4168_v0, %s8927_s24  ;;  %1340 = vst.msk [vmem:[#allocation3 + $0x88] sm:$0xf] %vm1305_vm13, %v1259_v48  ;;  %vm3058_vm0 = vcmp.ge.f32.partialorder %v3026_v8, 0.0  ;;  %v3094_v57 = vmul.f32 %v9983_v25, %v3026_v8  ;;  %v8057_v30 = vrot.slane %v3395_v32, 11  ;;  %v3384_v50 = vsel %vm9190_vm14, %v8056_v23, %v3383_v22  ;;  %v3228_v59 = vld [vmem:[#allocation2 + $0x68] sm:$0xf] }
 0x2a0   : > { %v4172_v45 = vrot.slane %v4170_v34, 4  ;;  %v4175_v31 = vrot.slane %v4173_v13, 5  ;;  %v3645_v54 = vshll.u32 %v10102_v60, 16  ;;  %3704 = vst.msk [vmem:[#allocation3 + $0x28] sm:$0xf] %vm432_vm7, %v3384_v50  ;;  %v3409_v0 = vshrl.u32 %v3228_v59, 16 }
 0x2a1   : > { %v1483_v18 = vpop.permute.xlu1 %1482  ;;  %v3126_v21 = vsel %vm3058_vm0, %v3026_v8, %v3094_v57  ;;  %v3406_v58 = vsel %vm9190_vm14, %v8057_v30, %v3405_v33  ;;  %v3637_v3 = vshrl.u32 %v3259_v46, 16  ;;  %v4191_v56 = vrot.slane %v4189_v47, 5  ;;  %v3230_v41 = vld [vmem:[#allocation2 + $0x74] sm:$0xf]  ;;  %v3973_v23 = vld [vmem:[#allocation2 + $0x8c] sm:$0x1] }
 0x2a2   : > { %1557 = vst.msk [vmem:[#allocation3 + $0x88] sm:$0xf] %vm1522_vm15, %v1483_v18  ;;  %v3158_v26 = vpack.c.bf16 %v3126_v21, %v3126_v21  ;;  %v2933_v36 = vpop.f32.mrf.mxu2  ;;  %v4176_v16 = vor.u32 %v4175_v31, %v4172_v45  ;;  %v3411_v8 = vrot.slane %v3409_v0, 7  ;;  %v3412_v34 = vshll.u32 %v3228_v59, 16  ;;  %v8678_v45 = vld [vmem:[#allocation3 + $0x78] sm:$0xff] }
 0x2a3   : > { %v4444_v4 = vpop.permute.xlu0 %4443  ;;  %v2991_v11 = vadd.f32 %v2933_v36, %v2673_v12  ;;  %3706 = vst.msk [vmem:[#allocation3 + $0x30] sm:$0xf] %vm432_vm7, %v3406_v58  ;;  %v3649_v28 = vrot.slane %v10141_v29, 4  ;;  %v3656_v10 = vor.u32 %v3654_v35, %v3653_v62  ;;  %v3407_v18 = vrot.slane %v10138_v20, 4 }
 0x2a4   : > { %4547 = vst.msk [vmem:[#allocation3 + $0x14] sm:$0xf] %vm4541_vm10, %v4444_v4  ;;  %v4177_v55 = vrot.slane %v4176_v16, 4  ;;  %v3414_v19 = vor.u32 %v3412_v34, %v3411_v8  ;;  %v8068_v17 = vrot.slane %v3637_v3, 11  ;;  %v3647_v53 = vor.u32 %v3645_v54, %v10141_v29 }
 0x2a5   : > { %v3745_v39 = vld [vmem:[#allocation2 + $0x78] sm:$0xf]  ;;  %3190 = vst.msk [vmem:[#allocation2 + $0x84] sm:$0xf] %vm432_vm7, %v3158_v26  ;;  %v3027_v44 = vadd.f32 %v9972_v14, %v2991_v11  ;;  %v3657_v32 = vsel %vm9190_vm14, %v3649_v28, %v3656_v10  ;;  %v3422_v16 = vshrl.u32 %v3230_v41, 16  ;;  %v3425_v46 = vshll.u32 %v3230_v41, 16 }
 0x2a6   : > { %v3969_v42 = vld [vmem:[#allocation2 + $0x78] sm:$0xf]  ;;  %3832 = vrot.lane.b32.xlu1 %v3745_v39, %s8928_s16  ;;  %v3415_v29 = vsel %vm9190_vm14, %v3407_v18, %v3414_v19  ;;  %v3648_v33 = vsel %vm9190_vm14, %v8068_v17, %v3647_v53  ;;  %v3229_v11 = vld [vmem:[#allocation2 + $0x70] sm:$0x8]  ;;  %v4448_v39 = vpop.permute.xlu2 %4447  ;;  %v4213_v62 = vshll.u32 %v3973_v23, 16 }
 0x2a7   : > { %v4179_v38 = vshll.u32 %v3969_v42, 16  ;;  %v4183_v49 = vshrl.u32 %v3969_v42, 16  ;;  %vm3059_vm13 = vcmp.ge.f32.partialorder %v3027_v44, 0.0  ;;  %v3095_v48 = vmul.f32 %v9983_v25, %v3027_v44  ;;  %3707 = vst.msk [vmem:[#allocation3 + $0x34] sm:$0xf] %vm432_vm7, %v3415_v29 }
 0x2a8   : > { %v3417_v30 = vshrl.u32 %v3229_v11, 16 }
 0x2a9   : > { %v4181_v40 = vrot.slane %v4179_v38, 5  ;;  %v4185_v27 = vrot.slane %v4183_v49, 4  ;;  %v2119_v6 = vpop.permute.xlu1 %2118  ;;  %v3127_v13 = vsel %vm3059_vm13, %v3027_v44, %v3095_v48  ;;  %v3424_v38 = vrot.slane %v3422_v16, 7  ;;  %v3231_v48 = vld [vmem:[#allocation2 + $0x78] sm:$0xf] }
 0x2aa   : > { %2192 = vst.msk [vmem:[#allocation3 + $0x8c] sm:$0xf] %vm2156_vm3, %v2119_v6  ;;  %v3159_v57 = vpack.c.bf16 %v3127_v13, %v3127_v13  ;;  %v8058_v54 = vrot.slane %v3417_v30, 11  ;;  %v3434_v10 = vshll.u32 %v3231_v48, 16 }
 0x2ab   : > { %v4182_v60 = vsel %vm9147_vm11, %v4177_v55, %v4181_v40  ;;  %v4186_v12 = vor.u32 %v4185_v27, %v4181_v40  ;;  %v2117_v51 = vpop.permute.xlu0 %2116  ;;  %v8726_v63 = vld [vmem:[#allocation3 + $0x10] sm:$0xff]  ;;  %v3427_v58 = vor.u32 %v3425_v46, %v3424_v38 }
 0x2ac   : > { %4461 = vrot.lane.b32.xlu2 %v4182_v60, %s8927_s24  ;;  %2191 = vst.msk [vmem:[#allocation3 + $0x88] sm:$0xf] %vm2156_vm3, %v2117_v51  ;;  %8274 = vmatmul.msk.bf16.gmra.mxu0 %vm4783_vm8, %v8683_v52  ;;  %v3746_v22 = vld [vmem:[#allocation2 + $0x84] sm:$0xf]  ;;  %v3431_v60 = vshrl.u32 %v3231_v48, 16  ;;  %v8684_v52 = vld [vmem:[#allocation3 + $0x10] sm:$0xff] }
 0x2ad   : > { %v4187_v31 = vrot.slane %v4186_v12, 4  ;;  %7964 = vmatmul.msk.bf16.gmra.mxu3 %vm2348_vm4, %v8646_v9  ;;  %v3971_v21 = vld [vmem:[#allocation2 + $0x84] sm:$0xf]  ;;  %3191 = vst.msk [vmem:[#allocation2 + $0x88] sm:$0xf] %vm432_vm7, %v3159_v57  ;;  %8389 = vmatmul.msk.bf16.vlgmr.msrb.gmra.mxu1 %vm4783_vm8, %v8726_v63  ;;  %v3428_v0 = vsel %vm9190_vm14, %v8058_v54, %v3427_v58  ;;  %v4215_v12 = vrot.slane %v4213_v62, 5  ;;  %v2675_v54 = vpop.f32.mrf.mxu1 }
 0x2ae   : > { %8048 = vmatmul.msk.bf16.gmra.mxu2 %vm2348_vm4, %v8678_v45  ;;  %3834 = vrot.lane.b32.xlu1 %v3746_v22, %s8928_s16  ;;  %v4194_v20 = vshrl.u32 %v3971_v21, 16  ;;  %v4197_v35 = vshll.u32 %v3971_v21, 16  ;;  %3708 = vst.msk [vmem:[#allocation3 + $0x38] sm:$0xf] %vm432_vm7, %v3428_v0  ;;  %v3433_v28 = vrot.slane %v3431_v60, 7  ;;  %v8704_v9 = vld [vmem:[#allocation3 + $0x8] sm:$0xff]  ;;  %v4450_v63 = vpop.permute.xlu2 %4449 }
 0x2af   : > { %v4192_v4 = vsel %vm9147_vm11, %v4187_v31, %v4191_v56  ;;  %v8679_v57 = vld [vmem:[#allocation3 + $0x80] sm:$0xff]  ;;  %v3429_v31 = vrot.slane %v3424_v38, 4  ;;  %v8705_v30 = vld [vmem:[#allocation3 + $0x10] sm:$0xff] }
 0x2b0   : > { %4463 = vrot.lane.b32.xlu0 %v4192_v4, %s8927_s24  ;;  %v4196_v26 = vrot.slane %v4194_v20, 4  ;;  %v4199_v36 = vrot.slane %v4197_v35, 5  ;;  %v3436_v18 = vor.u32 %v3434_v10, %v3433_v28  ;;  %v3233_v22 = vld [vmem:[#allocation2 + $0x84] sm:$0xf]  ;;  %v3232_v4 = vld [vmem:[#allocation2 + $0x80] sm:$0x8] }
 0x2b1   : > { %v10184_v42 = vld [vmem:[#allocation3 + $0x88] sm:$0xf0]  ;;  %v4446_v47 = vpop.permute.xlu1 %4445  ;;  %v3444_v21 = vshrl.u32 %v3233_v22, 16  ;;  %v3439_v35 = vshrl.u32 %v3232_v4, 16  ;;  %v3447_v29 = vshll.u32 %v3233_v22, 16 }
 0x2b2   : > { %3729 = vst.msk [vmem:[#allocation3 + $0x8c] sm:$0xf] %vm432_vm7, %v3657_v32  ;;  %v4200_v44 = vor.u32 %v4199_v36, %v4196_v26  ;;  %v3437_v53 = vsel %vm9190_vm14, %v3429_v31, %v3436_v18 }
 0x2b3   : > { %v10187_v49 = vld [vmem:[#allocation3 + $0x88] sm:$0xf]  ;;  %v3817_v50 = vpop.permute.xlu0 %3816  ;;  %4548 = vst.msk [vmem:[#allocation3 + $0x18] sm:$0xf] %vm4541_vm10, %v4446_v47  ;;  %v3446_v20 = vrot.slane %v3444_v21, 7  ;;  %v8059_v32 = vrot.slane %v3439_v35, 11  ;;  %v2450_v47 = vpop.f32.mrf.mxu0 }
 0x2b4   : > { %3728 = vst.msk [vmem:[#allocation3 + $0x88] sm:$0xf] %vm432_vm7, %v3648_v33  ;;  %v3747_v59 = vld [vmem:[#allocation2 + $0x88] sm:$0xf]  ;;  %v4201_v3 = vrot.slane %v4200_v44, 4  ;;  %v8030_v23 = vor.u32 %v10184_v42, %v10187_v49 }
 0x2b5   : > { %v3972_v55 = vld [vmem:[#allocation2 + $0x88] sm:$0xf]  ;;  %3918 = vst.msk [vmem:[#allocation3 + $0x1c] sm:$0xf] %vm3910_vm5, %v3817_v50  ;;  %3836 = vrot.lane.b32.xlu2 %v3747_v59, %s8928_s16  ;;  %v3449_v26 = vor.u32 %v3447_v29, %v3446_v20  ;;  %v3451_v50 = vrot.slane %v3446_v20, 4  ;;  %v2677_v49 = vpop.f32.mrf.mxu1 }
 0x2b6   : > { %v4203_v40 = vshll.u32 %v3972_v55, 16  ;;  %v4207_v27 = vshrl.u32 %v3972_v55, 16  ;;  %4549 = vst.msk [vmem:[#allocation3 + $0x1c] sm:$0xf] %vm4541_vm10, %v4448_v39  ;;  %v3234_v16 = vld [vmem:[#allocation2 + $0x88] sm:$0xf] }
 0x2b7   : > { %3709 = vst.msk [vmem:[#allocation3 + $0x3c] sm:$0xf] %vm432_vm7, %v3437_v53  ;;  %v3450_v36 = vsel %vm9190_vm14, %v8059_v32, %v3449_v26  ;;  %v3453_v33 = vshrl.u32 %v3234_v16, 16  ;;  %v3456_v39 = vshll.u32 %v3234_v16, 16 }
 0x2b8   : > { %v4205_v56 = vrot.slane %v4203_v40, 5  ;;  %v4209_v6 = vrot.slane %v4207_v27, 4  ;;  %3710 = vst.msk [vmem:[#allocation3 + $0x40] sm:$0xf] %vm432_vm7, %v3450_v36  ;;  %v2676_v40 = vadd.f32 %v2675_v54, %v2450_v47 }
 0x2b9   : > { %v3821_v8 = vpop.permute.xlu1 %3820  ;;  %v3455_v11 = vrot.slane %v3453_v33, 7  ;;  %v3976_v33 = vld [vmem:[#allocation2 + $0x9c] sm:$0x1] }
 0x2ba   : > { %v4206_v34 = vsel %vm9147_vm11, %v4201_v3, %v4205_v56  ;;  %v4210_v13 = vor.u32 %v4209_v6, %v4205_v56  ;;  %3920 = vst.msk [vmem:[#allocation3 + $0x24] sm:$0xf] %vm3910_vm5, %v3821_v8 }
 0x2bb   : > { %4465 = vrot.lane.b32.xlu0 %v4206_v34, %s8927_s24  ;;  %v3819_v51 = vpop.permute.xlu0 %3818  ;;  %v3458_v44 = vor.u32 %v3456_v39, %v3455_v11  ;;  %v2452_v42 = vpop.f32.mrf.mxu0 }
 0x2bc   : > { %3919 = vst.msk [vmem:[#allocation3 + $0x20] sm:$0xf] %vm3910_vm5, %v3819_v51  ;;  %v4211_v45 = vrot.slane %v4210_v13, 4  ;;  %8275 = vmatmul.msk.bf16.gmra.mxu0 %vm4783_vm8, %v8684_v52 }
 0x2bd   : > { %4550 = vst.msk [vmem:[#allocation3 + $0x20] sm:$0xf] %vm4541_vm10, %v4450_v63  ;;  %8169 = vmatmul.msk.bf16.vlgmr.msrb.gmra.mxu3 %vm4783_vm8, %v8704_v9  ;;  %v8727_v17 = vld [vmem:[#allocation3 + $0x18] sm:$0xff]  ;;  %v3459_v62 = vsel %vm9190_vm14, %v3451_v50, %v3458_v44  ;;  %v2680_v3 = vpop.f32.mrf.mxu1 }
 0x2be   : > { %8049 = vmatmul.msk.bf16.gmra.mxu2 %vm2348_vm4, %v8679_v57  ;;  %v4216_v19 = vsel %vm9147_vm11, %v4211_v45, %v4215_v12  ;;  %8390 = vmatmul.msk.bf16.gmra.mxu1 %vm4783_vm8, %v8727_v17  ;;  %v8685_v38 = vld [vmem:[#allocation3 + $0x18] sm:$0xff]  ;;  %3711 = vst.msk [vmem:[#allocation3 + $0x44] sm:$0xf] %vm432_vm7, %v3459_v62  ;;  %v2678_v12 = vadd.f32 %v2677_v49, %v2452_v42  ;;  %v4237_v62 = vshll.u32 %v3976_v33, 16 }
 0x2bf   : > { %4467 = vrot.lane.b32.xlu1 %v4216_v19, %s8927_s24  ;;  %v8706_v58 = vld [vmem:[#allocation3 + $0x18] sm:$0xff] }
 0x2c3   : > { %v4452_v41 = vpop.permute.xlu0 %4451 }
 0x2c4   : > { %4551 = vst.msk [vmem:[#allocation3 + $0x24] sm:$0xf] %vm4541_vm10, %v4452_v41 }
 0x2c5   : > { %v2682_v52 = vpop.f32.mrf.mxu1 }
 0x2cb   : > { %v8728_v46 = vld [vmem:[#allocation3 + $0x20] sm:$0xff] }
 0x2cc   : > { %8276 = vmatmul.msk.bf16.gmra.mxu0 %vm4783_vm8, %v8685_v38  ;;  %v8686_v59 = vld [vmem:[#allocation3 + $0x20] sm:$0xff] }
 0x2cd   : > { %8170 = vmatmul.msk.bf16.gmra.mxu3 %vm4783_vm8, %v8705_v30  ;;  %v8707_v51 = vld [vmem:[#allocation3 + $0x20] sm:$0xff] }
 0x2ce   : > { %8050 = vmatmul.msk.bf16.gmra.mxu2 %vm2348_vm4, %v8030_v23  ;;  %8391 = vmatmul.msk.bf16.gmra.mxu1 %vm4783_vm8, %v8728_v46 }
 0x2d9   : > { %v2455_v55 = vpop.f32.mrf.mxu0 }
 0x2da   : > { %v2681_v57 = vadd.f32 %v2680_v3, %v2455_v55  ;;  %v2685_v29 = vpop.f32.mrf.mxu1 }
 0x2dc   : > { %8277 = vmatmul.msk.bf16.gmra.mxu0 %vm4783_vm8, %v8686_v59 }
 0x2dd   : > { %8171 = vmatmul.msk.bf16.gmra.mxu3 %vm4783_vm8, %v8706_v58 }
 0x2de   : > { %v3825_v27 = vpop.permute.xlu2 %3824 }
 0x2df   : > { %3922 = vst.msk [vmem:[#allocation3 + $0x2c] sm:$0xf] %vm3910_vm5, %v3825_v27 }
 0x2e1   : > { %v2936_v0 = vpop.f32.mrf.mxu2  ;;  %v2457_v60 = vpop.f32.mrf.mxu0 }
 0x2e2   : > { %v2992_v48 = vadd.f32 %v2936_v0, %v2676_v40  ;;  %v2683_v36 = vadd.f32 %v2682_v52, %v2457_v60  ;;  %v2687_v40 = vpop.f32.mrf.mxu1 }
 0x2e4   : > { %v3028_v56 = vadd.f32 %v9972_v14, %v2992_v48  ;;  %v4239_v48 = vrot.slane %v4237_v62, 5 }
 0x2e6   : > { %vm3060_vm15 = vcmp.ge.f32.partialorder %v3028_v56, 0.0  ;;  %v3096_v6 = vmul.f32 %v9983_v25, %v3028_v56 }
 0x2e7   : > { %v3827_v34 = vpop.permute.xlu2 %3826 }
 0x2e8   : > { %v3128_v8 = vsel %vm3060_vm15, %v3028_v56, %v3096_v6  ;;  %3923 = vst.msk [vmem:[#allocation3 + $0x30] sm:$0xf] %vm3910_vm5, %v3827_v34 }
 0x2e9   : > { %v3160_v13 = vpack.c.bf16 %v3128_v8, %v3128_v8  ;;  %v2938_v28 = vpop.f32.mrf.mxu2  ;;  %v2460_v19 = vpop.f32.mrf.mxu0 }
 0x2ea   : > { %v2993_v10 = vadd.f32 %v2938_v28, %v2678_v12  ;;  %v2686_v3 = vadd.f32 %v2685_v29, %v2460_v19  ;;  %v10264_v19 = vld [vmem:[%s11138_s5] ss:$0 sm:$0xff] }
 0x2eb   : > { %3192 = vst.msk [vmem:[#allocation2 + $0x94] sm:$0xf] %vm432_vm7, %v3160_v13 }
 0x2ec   : > { %v3029_v9 = vadd.f32 %v9972_v14, %v2993_v10 }
 0x2ed   : > { %8172 = vmatmul.msk.bf16.gmra.mxu3 %vm4783_vm8, %v8707_v51 }
 0x2ee   : > { %vm3061_vm3 = vcmp.ge.f32.partialorder %v3029_v9, 0.0  ;;  %v3097_v63 = vmul.f32 %v9983_v25, %v3029_v9  ;;  %v3823_v31 = vpop.permute.xlu1 %3822 }
 0x2ef   : > { %3921 = vst.msk [vmem:[#allocation3 + $0x28] sm:$0xf] %vm3910_vm5, %v3823_v31 }
 0x2f0   : > { %v3129_v45 = vsel %vm3061_vm3, %v3029_v9, %v3097_v63  ;;  %v10257_v9 = vld [vmem:[%s11137_s4] ss:$0 sm:$0xff] }
 0x2f1   : > { %v3161_v18 = vpack.c.bf16 %v3129_v45, %v3129_v45  ;;  %v2941_v17 = vpop.f32.mrf.mxu2  ;;  %v2462_v46 = vpop.f32.mrf.mxu0 }
 0x2f2   : > { %v2994_v53 = vadd.f32 %v2941_v17, %v2681_v57  ;;  %v3748_v22 = vld [vmem:[#allocation2 + $0x94] sm:$0xf] }
 0x2f3   : > { %v3974_v21 = vld [vmem:[#allocation2 + $0x94] sm:$0xf]  ;;  %3193 = vst.msk [vmem:[#allocation2 + $0x98] sm:$0xf] %vm432_vm7, %v3161_v18  ;;  %3838 = vrot.lane.b32.xlu2 %v3748_v22, %s8928_s16  ;;  %v3235_v22 = vld [vmem:[#allocation2 + $0x90] sm:$0x8] }
 0x2f4   : > { %v4218_v4 = vshrl.u32 %v3974_v21, 16  ;;  %v4221_v20 = vshll.u32 %v3974_v21, 16  ;;  %v3030_v35 = vadd.f32 %v9972_v14, %v2994_v53  ;;  %v3236_v63 = vld [vmem:[#allocation2 + $0x94] sm:$0xf]  ;;  %v3979_v53 = vld [vmem:[#allocation2 + $0xac] sm:$0x1] }
 0x2f5   : > { %v3466_v18 = vshrl.u32 %v3236_v63, 16 }
 0x2f6   : > { %v4220_v41 = vrot.slane %v4218_v4, 4  ;;  %v4223_v32 = vrot.slane %v4221_v20, 5  ;;  %vm3062_vm4 = vcmp.ge.f32.partialorder %v3030_v35, 0.0  ;;  %v3098_v26 = vmul.f32 %v9983_v25, %v3030_v35 }
 0x2f7   : > { %v10267_v21 = vrot.slane %v3466_v18, 7  ;;  %v2688_v4 = vadd.f32 %v2687_v40, %v2462_v46 }
 0x2f8   : > { %v3130_v16 = vsel %vm3062_vm4, %v3030_v35, %v3098_v26  ;;  %v4224_v39 = vor.u32 %v4223_v32, %v4220_v41  ;;  %v3461_v41 = vshrl.u32 %v3235_v22, 16  ;;  %v3469_v32 = vshll.u32 %v3236_v63, 16  ;;  %v2690_v26 = vpop.f32.mrf.mxu1 }
 0x2f9   : > { %v3162_v23 = vpack.c.bf16 %v3130_v16, %v3130_v16  ;;  %v2943_v11 = vpop.f32.mrf.mxu2  ;;  %v4460_v6 = vpop.permute.xlu2 %4459  ;;  %v3473_v63 = vrot.slane %v10267_v21, 4 }
 0x2fa   : > { %v2995_v47 = vadd.f32 %v2943_v11, %v2683_v36  ;;  %v3749_v30 = vld [vmem:[#allocation2 + $0x98] sm:$0xf]  ;;  %v4225_v49 = vrot.slane %v4224_v39, 4  ;;  %v2465_v57 = vpop.f32.mrf.mxu0 }
 0x2fb   : > { %v3975_v38 = vld [vmem:[#allocation2 + $0x98] sm:$0xf]  ;;  %3194 = vst.msk [vmem:[#allocation2 + $0xa4] sm:$0xf] %vm432_vm7, %v3162_v23  ;;  %3840 = vrot.lane.b32.xlu0 %v3749_v30, %s8928_s16 }
 0x2fc   : > { %v4227_v50 = vshll.u32 %v3975_v38, 16  ;;  %v4231_v44 = vshrl.u32 %v3975_v38, 16  ;;  %v3031_v54 = vadd.f32 %v9972_v14, %v2995_v47  ;;  %v4454_v42 = vpop.permute.xlu0 %4453  ;;  %v4261_v47 = vshll.u32 %v3979_v53, 16 }
 0x2fd   : > { %4552 = vst.msk [vmem:[#allocation3 + $0x28] sm:$0xf] %vm4541_vm10, %v4454_v42  ;;  %v8060_v42 = vrot.slane %v3461_v41, 11 }
 0x2fe   : > { %v4229_v58 = vrot.slane %v4227_v50, 5  ;;  %v4233_v59 = vrot.slane %v4231_v44, 4  ;;  %vm3063_vm9 = vcmp.ge.f32.partialorder %v3031_v54, 0.0  ;;  %v3099_v55 = vmul.f32 %v9983_v25, %v3031_v54 }
 0x2ff   : > { %v3471_v50 = vor.u32 %v3469_v32, %v10267_v21 }
 0x300   : > { %v4230_v27 = vsel %vm9147_vm11, %v4225_v49, %v4229_v58  ;;  %v4234_v0 = vor.u32 %v4233_v59, %v4229_v58  ;;  %v3131_v56 = vsel %vm3063_vm9, %v3031_v54, %v3099_v55  ;;  %v4456_v12 = vpop.permute.xlu1 %4455  ;;  %v3237_v49 = vld [vmem:[#allocation2 + $0x98] sm:$0xf] }
 0x301   : > { %4469 = vrot.lane.b32.xlu1 %v4230_v27, %s8927_s24  ;;  %v3163_v14 = vpack.c.bf16 %v3131_v56, %v3131_v56  ;;  %v2946_v60 = vpop.f32.mrf.mxu2  ;;  %4553 = vst.msk [vmem:[#allocation3 + $0x2c] sm:$0xf] %vm4541_vm10, %v4456_v12  ;;  %v3475_v27 = vshrl.u32 %v3237_v49, 16  ;;  %v3478_v12 = vshll.u32 %v3237_v49, 16 }
 0x302   : > { %v4235_v8 = vrot.slane %v4234_v0, 4  ;;  %v2996_v34 = vadd.f32 %v2946_v60, %v2686_v3  ;;  %v3750_v25 = vld [vmem:[#allocation2 + $0xa4] sm:$0xf]  ;;  %v3472_v3 = vsel %vm9190_vm14, %v8060_v42, %v3471_v50  ;;  %v2467_v56 = vpop.f32.mrf.mxu0 }
 0x303   : > { %v3977_v13 = vld [vmem:[#allocation2 + $0xa4] sm:$0xf]  ;;  %3195 = vst.msk [vmem:[#allocation2 + $0xa8] sm:$0xf] %vm432_vm7, %v3163_v14  ;;  %3842 = vrot.lane.b32.xlu0 %v3750_v25, %s8928_s16  ;;  %v3477_v60 = vrot.slane %v3475_v27, 7 }
 0x304   : > { %v4240_v28 = vsel %vm9147_vm11, %v4235_v8, %v4239_v48  ;;  %v4242_v10 = vshrl.u32 %v3977_v13, 16  ;;  %v4245_v51 = vshll.u32 %v3977_v13, 16  ;;  %v3032_v52 = vadd.f32 %v10257_v9, %v2996_v34  ;;  %3712 = vst.msk [vmem:[#allocation3 + $0x48] sm:$0xf] %vm432_vm7, %v3472_v3 }
 0x305   : > { %4471 = vrot.lane.b32.xlu2 %v4240_v28, %s8927_s24  ;;  %v4263_v48 = vrot.slane %v4261_v47, 5  ;;  %v2691_v8 = vadd.f32 %v2690_v26, %v2465_v57 }
 0x306   : > { %v4244_v45 = vrot.slane %v4242_v10, 4  ;;  %v4247_v31 = vrot.slane %v4245_v51, 5  ;;  %vm3064_vm1 = vcmp.ge.f32.partialorder %v3032_v52, 0.0  ;;  %v3100_v17 = vmul.f32 %v10264_v19, %v3032_v52  ;;  %v10269_v35 = vpop.permute.xlu2 %4461 }
 0x307   : > { %v3829_v29 = vpop.permute.xlu0 %3828 }
 0x308   : > { %v3132_v20 = vsel %vm3064_vm1, %v3032_v52, %v3100_v17  ;;  %3924 = vst.msk [vmem:[#allocation3 + $0x34] sm:$0xf] %vm3910_vm5, %v3829_v29  ;;  %v8708_v33 = vld [vmem:[#allocation3 + $0x28] sm:$0xff]  ;;  %v4248_v39 = vor.u32 %v4247_v31, %v4244_v45  ;;  %v3480_v45 = vor.u32 %v3478_v12, %v3477_v60  ;;  %v2692_v17 = vpop.f32.mrf.mxu1  ;;  %v3239_v29 = vld [vmem:[#allocation2 + $0xa4] sm:$0xf] }
 0x309   : > { %v3164_v36 = vpack.c.bf16 %v3132_v20, %v3132_v20  ;;  %v2948_v16 = vpop.f32.mrf.mxu2  ;;  %v8687_v23 = vld [vmem:[#allocation3 + $0x28] sm:$0xff]  ;;  %4555 = vst.msk [vmem:[#allocation3 + $0x34] sm:$0xf] %vm4541_vm10, %v4460_v6  ;;  %8173 = vmatmul.msk.bf16.gmra.mxu3 %vm4783_vm8, %v8708_v33  ;;  %v3488_v26 = vshrl.u32 %v3239_v29, 16  ;;  %v3982_v33 = vld [vmem:[#allocation2 + $0xbc] sm:$0x1] }
 0x30a   : > { %v8729_v11 = vld [vmem:[#allocation3 + $0x28] sm:$0xff]  ;;  %v2997_v30 = vadd.f32 %v2948_v16, %v2688_v4  ;;  %8278 = vmatmul.msk.bf16.gmra.mxu0 %vm4783_vm8, %v8687_v23  ;;  %v4249_v59 = vrot.slane %v4248_v39, 4  ;;  %v3481_v20 = vsel %vm9190_vm14, %v3473_v63, %v3480_v45  ;;  %v3238_v16 = vld [vmem:[#allocation2 + $0xa0] sm:$0x8]  ;;  %v2693_v39 = vadd.f32 %v2692_v17, %v2467_v56 }
 0x30b   : > { %v3751_v38 = vld [vmem:[#allocation2 + $0xa8] sm:$0xf]  ;;  %3196 = vst.msk [vmem:[#allocation2 + $0xb4] sm:$0xf] %vm432_vm7, %v3164_v36  ;;  %8392 = vmatmul.msk.bf16.gmra.mxu1 %vm4783_vm8, %v8729_v11  ;;  %v3483_v23 = vshrl.u32 %v3238_v16, 16  ;;  %v3491_v11 = vshll.u32 %v3239_v29, 16 }
 0x30c   : > { %v3978_v46 = vld [vmem:[#allocation2 + $0xa8] sm:$0xf]  ;;  %3844 = vrot.lane.b32.xlu1 %v3751_v38, %s8928_s16  ;;  %v3033_v54 = vadd.f32 %v10257_v9, %v2997_v30  ;;  %3713 = vst.msk [vmem:[#allocation3 + $0x4c] sm:$0xf] %vm432_vm7, %v3481_v20  ;;  %v4285_v27 = vshll.u32 %v3982_v33, 16 }
 0x30d   : > { %v4251_v44 = vshll.u32 %v3978_v46, 16  ;;  %v4255_v62 = vshrl.u32 %v3978_v46, 16  ;;  %v4458_v58 = vpop.permute.xlu1 %4457  ;;  %v8061_v42 = vrot.slane %v3483_v23, 11 }
 0x30e   : > { %vm3065_vm12 = vcmp.ge.f32.partialorder %v3033_v54, 0.0  ;;  %v3101_v0 = vmul.f32 %v10264_v19, %v3033_v54  ;;  %4554 = vst.msk [vmem:[#allocation3 + $0x30] sm:$0xf] %vm4541_vm10, %v4458_v58 }
 0x30f   : > { %v4253_v55 = vrot.slane %v4251_v44, 5  ;;  %v4257_v40 = vrot.slane %v4255_v62, 4  ;;  %v3837_v25 = vpop.permute.xlu2 %3836  ;;  %v3831_v13 = vpop.permute.xlu0 %3830 }
 0x310   : > { %v3133_v34 = vsel %vm3065_vm12, %v3033_v54, %v3101_v0  ;;  %3928 = vst.msk [vmem:[#allocation3 + $0x44] sm:$0xf] %vm3910_vm5, %v3837_v25  ;;  %v10289_v10 = vpop.f32.mrf.mxu3  ;;  %v2470_v0 = vpop.f32.mrf.mxu0 }
 0x311   : > { %v4254_v6 = vsel %vm9147_vm11, %v4249_v59, %v4253_v55  ;;  %v4258_v14 = vor.u32 %v4257_v40, %v4253_v55  ;;  %v3165_v28 = vpack.c.bf16 %v3133_v34, %v3133_v34  ;;  %v2951_v51 = vpop.f32.mrf.mxu2  ;;  %3925 = vst.msk [vmem:[#allocation3 + $0x38] sm:$0xf] %vm3910_vm5, %v3831_v13  ;;  %v2695_v60 = vpop.f32.mrf.mxu1 }
 0x312   : > { %4473 = vrot.lane.b32.xlu2 %v4254_v6, %s8927_s24  ;;  %v2998_v31 = vadd.f32 %v2951_v51, %v2691_v8  ;;  %v3752_v18 = vld [vmem:[#allocation2 + $0xb4] sm:$0xf]  ;;  %4556 = vst.msk [vmem:[#allocation3 + $0x38] sm:$0xf] %vm4541_vm10, %v10269_v35  ;;  %v10305_v35 = vrot.slane %v3488_v26, 7 }
 0x313   : > { %v4259_v52 = vrot.slane %v4258_v14, 4  ;;  %v3980_v57 = vld [vmem:[#allocation2 + $0xb4] sm:$0xf]  ;;  %3197 = vst.msk [vmem:[#allocation2 + $0xb8] sm:$0xf] %vm432_vm7, %v3165_v28  ;;  %v4287_v28 = vrot.slane %v4285_v27, 5 }
 0x314   : > { %3846 = vrot.lane.b32.xlu1 %v3752_v18, %s8928_s16  ;;  %v4266_v22 = vshrl.u32 %v3980_v57, 16  ;;  %v4269_v4 = vshll.u32 %v3980_v57, 16  ;;  %v3034_v21 = vadd.f32 %v10257_v9, %v2998_v31  ;;  %v3493_v49 = vor.u32 %v3491_v11, %v10305_v35  ;;  %v3240_v14 = vld [vmem:[#allocation2 + $0xa8] sm:$0xf] }
 0x315   : > { %v4264_v53 = vsel %vm9147_vm11, %v4259_v52, %v4263_v48  ;;  %v8709_v44 = vld [vmem:[#allocation3 + $0x30] sm:$0xff]  ;;  %v3497_v25 = vshrl.u32 %v3240_v14, 16  ;;  %v3500_v45 = vshll.u32 %v3240_v14, 16  ;;  %v2696_v31 = vadd.f32 %v2695_v60, %v2470_v0 }
 0x316   : > { %4475 = vrot.lane.b32.xlu0 %v4264_v53, %s8927_s24  ;;  %v4268_v41 = vrot.slane %v4266_v22, 4  ;;  %v4271_v32 = vrot.slane %v4269_v4, 5  ;;  %vm3066_vm2 = vcmp.ge.f32.partialorder %v3034_v21, 0.0  ;;  %v3102_v36 = vmul.f32 %v10264_v19, %v3034_v21  ;;  %v8688_v62 = vld [vmem:[#allocation3 + $0x30] sm:$0xff] }
 0x317   : > { %v8730_v55 = vld [vmem:[#allocation3 + $0x30] sm:$0xff]  ;;  %v3494_v56 = vsel %vm9190_vm14, %v8061_v42, %v3493_v49  ;;  %v3499_v63 = vrot.slane %v3497_v25, 7 }
 0x318   : > { %v3134_v47 = vsel %vm3066_vm2, %v3034_v21, %v3102_v36  ;;  %v3833_v30 = vpop.permute.xlu1 %3832  ;;  %v10308_v46 = vpop.f32.mrf.mxu3  ;;  %v4272_v54 = vor.u32 %v4271_v32, %v4268_v41  ;;  %3714 = vst.msk [vmem:[#allocation3 + $0x50] sm:$0xf] %vm432_vm7, %v3494_v56  ;;  %v3495_v21 = vrot.slane %v10305_v35, 4  ;;  %v3242_v35 = vld [vmem:[#allocation2 + $0xb4] sm:$0xf] }
 0x319   : > { %v3166_v38 = vpack.c.bf16 %v3134_v47, %v3134_v47  ;;  %3926 = vst.msk [vmem:[#allocation3 + $0x3c] sm:$0xf] %vm3910_vm5, %v3833_v30  ;;  %v2953_v50 = vpop.f32.mrf.mxu2  ;;  %8174 = vmatmul.msk.bf16.gmra.mxu3 %vm4783_vm8, %v8709_v44  ;;  %v3502_v20 = vor.u32 %v3500_v45, %v3499_v63  ;;  %v3241_v44 = vld [vmem:[#allocation2 + $0xb0] sm:$0x8] }
 0x31a   : > { %v2999_v58 = vadd.f32 %v2953_v50, %v2693_v39  ;;  %v3753_v59 = vld [vmem:[#allocation2 + $0xb8] sm:$0xf]  ;;  %8279 = vmatmul.msk.bf16.gmra.mxu0 %vm4783_vm8, %v8688_v62  ;;  %v4273_v12 = vrot.slane %v4272_v54, 4  ;;  %v2472_v39 = vpop.f32.mrf.mxu0  ;;  %v2697_v62 = vpop.f32.mrf.mxu1  ;;  %v3505_v42 = vshrl.u32 %v3241_v44, 16 }
 0x31b   : > { %v3981_v40 = vld [vmem:[#allocation2 + $0xb8] sm:$0xf]  ;;  %3198 = vst.msk [vmem:[#allocation2 + $0xc4] sm:$0xf] %vm432_vm7, %v3166_v38  ;;  %3848 = vrot.lane.b32.xlu2 %v3753_v59, %s8928_s16  ;;  %8393 = vmatmul.msk.bf16.gmra.mxu1 %vm4783_vm8, %v8730_v55  ;;  %v3503_v23 = vsel %vm9190_vm14, %v3495_v21, %v3502_v20  ;;  %v3510_v38 = vshrl.u32 %v3242_v35, 16  ;;  %v2698_v49 = vadd.f32 %v2697_v62, %v2472_v39  ;;  %v3513_v59 = vshll.u32 %v3242_v35, 16 }
 0x31c   : > { %v4275_v48 = vshll.u32 %v3981_v40, 16  ;;  %v4279_v3 = vshrl.u32 %v3981_v40, 16  ;;  %v3035_v6 = vadd.f32 %v10257_v9, %v2999_v58  ;;  %3715 = vst.msk [vmem:[#allocation3 + $0x54] sm:$0xf] %vm432_vm7, %v3503_v23  ;;  %v2701_v21 = vadd.f32 %v10289_v10, %v9631_v43 }
 0x31d   : > { %v10339_v54 = vrot.slane %v3510_v38, 7 }
 0x31e   : > { %v4277_v8 = vrot.slane %v4275_v48, 5  ;;  %v4281_v34 = vrot.slane %v4279_v3, 4  ;;  %vm3067_vm6 = vcmp.ge.f32.partialorder %v3035_v6, 0.0  ;;  %v3103_v13 = vmul.f32 %v10264_v19, %v3035_v6  ;;  %v3985_v48 = vld [vmem:[#allocation2 + $0xcc] sm:$0x1] }
 0x31f   : > { %v8062_v3 = vrot.slane %v3505_v42, 11  ;;  %v3515_v60 = vor.u32 %v3513_v59, %v10339_v54 }
 0x320   : > { %v4278_v51 = vsel %vm9147_vm11, %v4273_v12, %v4277_v8  ;;  %v4282_v52 = vor.u32 %v4281_v34, %v4277_v8  ;;  %v3135_v18 = vsel %vm3067_vm6, %v3035_v6, %v3103_v13  ;;  %v3835_v57 = vpop.permute.xlu1 %3834  ;;  %v10325_v53 = vpop.f32.mrf.mxu3 }
 0x321   : > { %4477 = vrot.lane.b32.xlu0 %v4278_v51, %s8927_s24  ;;  %v3167_v17 = vpack.c.bf16 %v3135_v18, %v3135_v18  ;;  %3927 = vst.msk [vmem:[#allocation3 + $0x40] sm:$0xf] %vm3910_vm5, %v3835_v57  ;;  %v2956_v22 = vpop.f32.mrf.mxu2  ;;  %v4309_v51 = vshll.u32 %v3985_v48, 16  ;;  %v3243_v18 = vld [vmem:[#allocation2 + $0xb8] sm:$0xf] }
 0x322   : > { %v4283_v4 = vrot.slane %v4282_v52, 4  ;;  %v3000_v29 = vadd.f32 %v2956_v22, %v2696_v31  ;;  %v4464_v41 = vpop.permute.xlu0 %4463  ;;  %v3754_v32 = vld [vmem:[#allocation2 + $0xc4] sm:$0xf]  ;;  %v3516_v52 = vsel %vm9190_vm14, %v8062_v3, %v3515_v60 }
 0x323   : > { %v3983_v26 = vld [vmem:[#allocation2 + $0xc4] sm:$0xf]  ;;  %3199 = vst.msk [vmem:[#allocation2 + $0xc8] sm:$0xf] %vm432_vm7, %v3167_v17  ;;  %3850 = vrot.lane.b32.xlu2 %v3754_v32, %s8928_s16 }
 0x324   : > { %v4288_v36 = vsel %vm9147_vm11, %v4283_v4, %v4287_v28  ;;  %v4290_v16 = vshrl.u32 %v3983_v26, 16  ;;  %v4293_v33 = vshll.u32 %v3983_v26, 16  ;;  %v3036_v11 = vadd.f32 %v10257_v9, %v3000_v29  ;;  %4557 = vst.msk [vmem:[#allocation3 + $0x3c] sm:$0xf] %vm4541_vm10, %v4464_v41  ;;  %v3245_v62 = vld [vmem:[#allocation2 + $0xc4] sm:$0xf] }
 0x325   : > { %4479 = vrot.lane.b32.xlu1 %v4288_v36, %s8927_s24  ;;  %v3519_v4 = vshrl.u32 %v3243_v18, 16  ;;  %3716 = vst.msk [vmem:[#allocation3 + $0x58] sm:$0xf] %vm432_vm7, %v3516_v52  ;;  %v4311_v41 = vrot.slane %v4309_v51, 5  ;;  %v3532_v59 = vshrl.u32 %v3245_v62, 16  ;;  %v3535_v3 = vshll.u32 %v3245_v62, 16 }
 0x326   : > { %v4292_v47 = vrot.slane %v4290_v16, 4  ;;  %v4295_v30 = vrot.slane %v4293_v33, 5  ;;  %vm3068_vm0 = vcmp.ge.f32.partialorder %v3036_v11, 0.0  ;;  %v3104_v50 = vmul.f32 %v10264_v19, %v3036_v11 }
 0x327   : > { %v3521_v16 = vrot.slane %v3519_v4, 7  ;;  %v3522_v33 = vshll.u32 %v3243_v18, 16  ;;  %v10374_v48 = vrot.slane %v3532_v59, 7 }
 0x328   : > { %v3136_v58 = vsel %vm3068_vm0, %v3036_v11, %v3104_v50  ;;  %v10341_v40 = vpop.f32.mrf.mxu3  ;;  %v4296_v0 = vor.u32 %v4295_v30, %v4292_v47  ;;  %v3517_v30 = vrot.slane %v10339_v54, 4 }
 0x329   : > { %v3168_v55 = vpack.c.bf16 %v3136_v58, %v3136_v58  ;;  %v2958_v27 = vpop.f32.mrf.mxu2  ;;  %v3524_v38 = vor.u32 %v3522_v33, %v3521_v16 }
 0x32a   : > { %v3001_v56 = vadd.f32 %v2958_v27, %v2698_v49  ;;  %v3755_v6 = vld [vmem:[#allocation2 + $0xc8] sm:$0xf]  ;;  %v4297_v45 = vrot.slane %v4296_v0, 4  ;;  %v3244_v27 = vld [vmem:[#allocation2 + $0xc0] sm:$0x8] }
 0x32b   : > { %v3984_v14 = vld [vmem:[#allocation2 + $0xc8] sm:$0xf]  ;;  %3200 = vst.msk [vmem:[#allocation2 + $0xd4] sm:$0xf] %vm432_vm7, %v3168_v55  ;;  %3852 = vrot.lane.b32.xlu0 %v3755_v6, %s8928_s16  ;;  %v8710_v12 = vld [vmem:[#allocation3 + $0x38] sm:$0xff]  ;;  %v3525_v58 = vsel %vm9190_vm14, %v3517_v30, %v3524_v38  ;;  %v5094_v55 = vpop.f32.mrf.mxu0  ;;  %v3527_v0 = vshrl.u32 %v3244_v27, 16  ;;  %v5392_v6 = vpop.f32.mrf.mxu1 }
 0x32c   : > { %v8689_v8 = vld [vmem:[#allocation3 + $0x38] sm:$0xff]  ;;  %v4299_v25 = vshll.u32 %v3984_v14, 16  ;;  %v3037_v13 = vadd.f32 %v10257_v9, %v3001_v56  ;;  %v4303_v28 = vshrl.u32 %v3984_v14, 16  ;;  %8175 = vmatmul.msk.bf16.gmra.mxu3 %vm4783_vm8, %v8710_v12  ;;  %3717 = vst.msk [vmem:[#allocation3 + $0x5c] sm:$0xf] %vm432_vm7, %v3525_v58  ;;  %v2703_v56 = vadd.f32 %v10308_v46, %v9634_v61 }
 0x32d   : > { %v8731_v34 = vld [vmem:[#allocation3 + $0x38] sm:$0xff]  ;;  %8280 = vmatmul.msk.bf16.gmra.mxu0 %vm4783_vm8, %v8689_v8  ;;  %v4466_v63 = vpop.permute.xlu0 %4465  ;;  %v3246_v4 = vld [vmem:[#allocation2 + $0xc8] sm:$0xf]  ;;  %v10399_v38 = vld [vmem:[%s11140_s7] ss:$0 sm:$0xff] }
 0x32e   : > { %v4301_v31 = vrot.slane %v4299_v25, 5  ;;  %vm3069_vm13 = vcmp.ge.f32.partialorder %v3037_v13, 0.0  ;;  %v3105_v57 = vmul.f32 %v10264_v19, %v3037_v13  ;;  %8394 = vmatmul.msk.bf16.gmra.mxu1 %vm4783_vm8, %v8731_v34  ;;  %4558 = vst.msk [vmem:[#allocation3 + $0x40] sm:$0xf] %vm4541_vm10, %v4466_v63  ;;  %v4305_v17 = vrot.slane %v4303_v28, 4 }
 0x32f   : > { %v3988_v25 = vld [vmem:[#allocation2 + $0xdc] sm:$0x1]  ;;  %v3537_v28 = vor.u32 %v3535_v3, %v10374_v48  ;;  %v3544_v33 = vshll.u32 %v3246_v4, 16 }
 0x330   : > { %v4302_v22 = vsel %vm9147_vm11, %v4297_v45, %v4301_v31  ;;  %v3137_v20 = vsel %vm3069_vm13, %v3037_v13, %v3105_v57  ;;  %v4306_v29 = vor.u32 %v4305_v17, %v4301_v31  ;;  %v10360_v26 = vpop.f32.mrf.mxu3  ;;  %v8063_v13 = vrot.slane %v3527_v0, 11 }
 0x331   : > { %4481 = vrot.lane.b32.xlu1 %v4302_v22, %s8927_s24  ;;  %v3169_v32 = vpack.c.bf16 %v3137_v20, %v3137_v20  ;;  %v2961_v36 = vpop.f32.mrf.mxu2  ;;  %v4468_v11 = vpop.permute.xlu1 %4467  ;;  %v4333_v22 = vshll.u32 %v3988_v25, 16  ;;  %v3247_v25 = vld [vmem:[#allocation2 + $0xd0] sm:$0x8] }
 0x332   : > { %v3002_v23 = vadd.f32 %v2961_v36, %v2701_v21  ;;  %v3756_v35 = vld [vmem:[#allocation2 + $0xd4] sm:$0xf]  ;;  %v4307_v39 = vrot.slane %v4306_v29, 4  ;;  %4559 = vst.msk [vmem:[#allocation3 + $0x44] sm:$0xf] %vm4541_vm10, %v4468_v11  ;;  %v3538_v18 = vsel %vm9190_vm14, %v8063_v13, %v3537_v28  ;;  %v3541_v29 = vshrl.u32 %v3246_v4, 16 }
 0x333   : > { %v3986_v47 = vld [vmem:[#allocation2 + $0xd4] sm:$0xf]  ;;  %3201 = vst.msk [vmem:[#allocation2 + $0xd8] sm:$0xf] %vm432_vm7, %v3169_v32  ;;  %3854 = vrot.lane.b32.xlu0 %v3756_v35, %s8928_s16  ;;  %v5096_v11 = vpop.f32.mrf.mxu0  ;;  %v5394_v58 = vpop.f32.mrf.mxu1  ;;  %v3991_v13 = vld [vmem:[#allocation2 + $0xec] sm:$0x1] }
 0x334   : > { %v4314_v43 = vshrl.u32 %v3986_v47, 16  ;;  %v4317_v10 = vshll.u32 %v3986_v47, 16  ;;  %v3038_v50 = vadd.f32 %v10257_v9, %v3002_v23  ;;  %v4312_v44 = vsel %vm9147_vm11, %v4307_v39, %v4311_v41  ;;  %3718 = vst.msk [vmem:[#allocation3 + $0x60] sm:$0xf] %vm432_vm7, %v3538_v18 }
 0x335   : > { %4483 = vrot.lane.b32.xlu2 %v4312_v44, %s8927_s24  ;;  %v3543_v16 = vrot.slane %v3541_v29, 7  ;;  %v2706_v23 = vadd.f32 %v10325_v53, %v9640_v1  ;;  %v4335_v47 = vrot.slane %v4333_v22, 5  ;;  %v3549_v28 = vshrl.u32 %v3247_v25, 16 }
 0x336   : > { %v4316_v42 = vrot.slane %v4314_v43, 4  ;;  %v4319_v49 = vrot.slane %v4317_v10, 5  ;;  %vm3070_vm15 = vcmp.ge.f32.partialorder %v3038_v50, 0.0  ;;  %v3106_v54 = vmul.f32 %v10264_v19, %v3038_v50 }
 0x337   : > { %v3546_v44 = vor.u32 %v3544_v33, %v3543_v16 }
 0x338   : > { %v3138_v14 = vsel %vm3070_vm15, %v3038_v50, %v3106_v54  ;;  %v10378_v12 = vpop.f32.mrf.mxu3  ;;  %v4320_v34 = vor.u32 %v4319_v49, %v4316_v42  ;;  %v3539_v50 = vrot.slane %v10374_v48, 4 }
 0x339   : > { %v3170_v60 = vpack.c.bf16 %v3138_v14, %v3138_v14  ;;  %v2963_v8 = vpop.f32.mrf.mxu2  ;;  %v8711_v45 = vld [vmem:[#allocation3 + $0x40] sm:$0xff] }
 0x33a   : > { %v3003_v51 = vadd.f32 %v2963_v8, %v2703_v56  ;;  %v3757_v52 = vld [vmem:[#allocation2 + $0xd8] sm:$0xf]  ;;  %v8690_v61 = vld [vmem:[#allocation3 + $0x40] sm:$0xff]  ;;  %v4321_v21 = vrot.slane %v4320_v34, 4  ;;  %v3547_v27 = vsel %vm9190_vm14, %v3539_v50, %v3546_v44  ;;  %v3248_v56 = vld [vmem:[#allocation2 + $0xd4] sm:$0xf] }
 0x33b   : > { %v3987_v63 = vld [vmem:[#allocation2 + $0xd8] sm:$0xf]  ;;  %3202 = vst.msk [vmem:[#allocation2 + $0xe4] sm:$0xf] %vm432_vm7, %v3170_v60  ;;  %3856 = vrot.lane.b32.xlu1 %v3757_v52, %s8928_s16  ;;  %v8732_v46 = vld [vmem:[#allocation3 + $0x40] sm:$0xff]  ;;  %v3554_v8 = vshrl.u32 %v3248_v56, 16 }
 0x33c   : > { %v4323_v31 = vshll.u32 %v3987_v63, 16  ;;  %v3039_v57 = vadd.f32 %v10257_v9, %v3003_v51  ;;  %v4327_v17 = vshrl.u32 %v3987_v63, 16  ;;  %8176 = vmatmul.msk.bf16.gmra.mxu3 %vm4783_vm8, %v8711_v45  ;;  %3719 = vst.msk [vmem:[#allocation3 + $0x64] sm:$0xf] %vm432_vm7, %v3547_v27  ;;  %v3557_v52 = vshll.u32 %v3248_v56, 16 }
 0x33d   : > { %8281 = vmatmul.msk.bf16.gmra.mxu0 %vm4783_vm8, %v8690_v61  ;;  %v10418_v51 = vrot.slane %v3554_v8, 7  ;;  %v2708_v63 = vadd.f32 %v10341_v40, %v9645_v5 }
 0x33e   : > { %v4325_v20 = vrot.slane %v4323_v31, 5  ;;  %vm3071_vm3 = vcmp.ge.f32.partialorder %v3039_v57, 0.0  ;;  %v3107_v41 = vmul.f32 %v10264_v19, %v3039_v57  ;;  %8395 = vmatmul.msk.bf16.gmra.mxu1 %vm4783_vm8, %v8732_v46  ;;  %v4329_v32 = vrot.slane %v4327_v17, 4 }
 0x33f   : > { %v8064_v17 = vrot.slane %v3549_v28, 11  ;;  %v3559_v22 = vor.u32 %v3557_v52, %v10418_v51 }
 0x340   : > { %v4326_v36 = vsel %vm9147_vm11, %v4321_v21, %v4325_v20  ;;  %v3139_v35 = vsel %vm3071_vm3, %v3039_v57, %v3107_v41  ;;  %v4330_v39 = vor.u32 %v4329_v32, %v4325_v20  ;;  %v4841_v30 = vpop.f32.mrf.mxu3  ;;  %v4357_v32 = vshll.u32 %v3991_v13, 16 }
 0x341   : > { %4485 = vrot.lane.b32.xlu2 %v4326_v36, %s8927_s24  ;;  %v3171_v43 = vpack.c.bf16 %v3139_v35, %v3139_v35  ;;  %v2966_v10 = vpop.f32.mrf.mxu2  ;;  %v5095_v42 = vadd.f32 %v5094_v55, %v4841_v30  ;;  %v10410_v55 = vld [vmem:[%s11141_s8] ss:$0 sm:$0xff]  ;;  %v5099_v36 = vpop.f32.mrf.mxu0  ;;  %v3560_v33 = vsel %vm9190_vm14, %v8064_v17, %v3559_v22 }
 0x342   : > { %v3004_v62 = vadd.f32 %v2966_v10, %v2706_v23  ;;  %v3758_v1 = vld [vmem:[#allocation2 + $0xe4] sm:$0xf]  ;;  %v4331_v53 = vrot.slane %v4330_v39, 4  ;;  %3720 = vst.msk [vmem:[#allocation3 + $0x68] sm:$0xf] %vm432_vm7, %v3560_v33  ;;  %v5397_v39 = vpop.f32.mrf.mxu1 }
 0x343   : > { %v3989_v49 = vld [vmem:[#allocation2 + $0xe4] sm:$0xf]  ;;  %3203 = vst.msk [vmem:[#allocation2 + $0xe8] sm:$0xf] %vm432_vm7, %v3171_v43  ;;  %3858 = vrot.lane.b32.xlu1 %v3758_v1, %s8928_s16  ;;  %v5472_v3 = vadd.f32 %v5392_v6, %v5095_v42  ;;  %v4359_v1 = vrot.slane %v4357_v32, 5 }
 0x344   : > { %v4338_v59 = vshrl.u32 %v3989_v49, 16  ;;  %v4341_v54 = vshll.u32 %v3989_v49, 16  ;;  %v3040_v0 = vadd.f32 %v10257_v9, %v3004_v62  ;;  %v4336_v48 = vsel %vm9147_vm11, %v4331_v53, %v4335_v47 }
 0x345   : > { %4487 = vrot.lane.b32.xlu0 %v4336_v48, %s8927_s24  ;;  %v5508_v6 = vadd.f32 %v10399_v38, %v5472_v3  ;;  %v2711_v49 = vadd.f32 %v10360_v26, %v9653_v15 }
 0x346   : > { %v4340_v14 = vrot.slane %v4338_v59, 4  ;;  %v4343_v60 = vrot.slane %v4341_v54, 5  ;;  %vm3072_vm4 = vcmp.ge.f32.partialorder %v3040_v0, 0.0  ;;  %v3108_v34 = vmul.f32 %v10264_v19, %v3040_v0 }
 0x347   : > { %vm5540_vm9 = vcmp.ge.f32.partialorder %v5508_v6, 0.0  ;;  %v5576_v61 = vmul.f32 %v10410_v55, %v5508_v6 }
 0x348   : > { %v3140_v45 = vsel %vm3072_vm4, %v3040_v0, %v3108_v34  ;;  %v4843_v18 = vpop.f32.mrf.mxu3  ;;  %v4344_v57 = vor.u32 %v4343_v60, %v4340_v14 }
 0x349   : > { %v3172_v46 = vpack.c.bf16 %v3140_v45, %v3140_v45  ;;  %v2968_v31 = vpop.f32.mrf.mxu2  ;;  %v5608_v4 = vsel %vm5540_vm9, %v5508_v6, %v5576_v61  ;;  %v5097_v20 = vadd.f32 %v5096_v11, %v4843_v18  ;;  %v3249_v11 = vld [vmem:[#allocation2 + $0xd8] sm:$0xf]  ;;  %v5101_v45 = vpop.f32.mrf.mxu0 }
 0x34a   : > { %v3005_v21 = vadd.f32 %v2968_v31, %v2708_v63  ;;  %v3759_v29 = vld [vmem:[#allocation2 + $0xe8] sm:$0xf]  ;;  %v5640_v5 = vpack.c.bf16 %v5608_v4, %v5608_v4  ;;  %v4345_v43 = vrot.slane %v4344_v57, 4  ;;  %v3563_v53 = vshrl.u32 %v3249_v11, 16  ;;  %v5399_v17 = vpop.f32.mrf.mxu1 }
 0x34b   : > { %v3990_v41 = vld [vmem:[#allocation2 + $0xe8] sm:$0xf]  ;;  %3204 = vst.msk [vmem:[#allocation2 + $0xf4] sm:$0xf] %vm432_vm7, %v3172_v46  ;;  %3860 = vrot.lane.b32.xlu2 %v3759_v29, %s8928_s16  ;;  %v5473_v35 = vadd.f32 %v5394_v58, %v5097_v20  ;;  %v3566_v6 = vshll.u32 %v3249_v11, 16  ;;  %v3561_v31 = vrot.slane %v10418_v51, 4  ;;  %v2713_v4 = vadd.f32 %v10378_v12, %v9667_v37 }
 0x34c   : > { %v4347_v40 = vshll.u32 %v3990_v41, 16  ;;  %v4351_v16 = vshrl.u32 %v3990_v41, 16  ;;  %v3041_v23 = vadd.f32 %v10257_v9, %v3005_v21  ;;  %5672 = vst.msk [vmem:[#allocation2 + $0x14] sm:$0xf] %vm432_vm7, %v5640_v5  ;;  %v3565_v48 = vrot.slane %v3563_v53, 7 }
 0x34d   : > { %v3839_v47 = vpop.permute.xlu2 %3838  ;;  %v5509_v44 = vadd.f32 %v10399_v38, %v5473_v35  ;;  %v3994_v29 = vld [vmem:[#allocation2 + $0xfc] sm:$0x1]  ;;  %v3997_v5 = vld [vmem:[#allocation2 + $0x10c] sm:$0x1]  ;;  %v10456_v11 = vld [vmem:[#allocation2 + $0xe4] sm:$0xf] }
 0x34e   : > { %v4349_v10 = vrot.slane %v4347_v40, 5  ;;  %v4353_v30 = vrot.slane %v4351_v16, 4  ;;  %vm3073_vm1 = vcmp.ge.f32.partialorder %v3041_v23, 0.0  ;;  %v3109_v50 = vmul.f32 %v10264_v19, %v3041_v23  ;;  %3929 = vst.msk [vmem:[#allocation3 + $0x48] sm:$0xf] %vm3910_vm5, %v3839_v47 }
 0x34f   : > { %vm5541_vm12 = vcmp.ge.f32.partialorder %v5509_v44, 0.0  ;;  %v5577_v59 = vmul.f32 %v10410_v55, %v5509_v44  ;;  %v3568_v63 = vor.u32 %v3566_v6, %v3565_v48  ;;  %v4381_v47 = vshll.u32 %v3994_v29, 16 }
 0x350   : > { %v4350_v62 = vsel %vm9147_vm11, %v4345_v43, %v4349_v10  ;;  %v4354_v42 = vor.u32 %v4353_v30, %v4349_v10  ;;  %v3141_v58 = vsel %vm3073_vm1, %v3041_v23, %v3109_v50  ;;  %v4846_v0 = vpop.f32.mrf.mxu3  ;;  %v4405_v30 = vshll.u32 %v3997_v5, 16  ;;  %v3250_v50 = vld [vmem:[#allocation2 + $0xe0] sm:$0x8] }
 0x351   : > { %4489 = vrot.lane.b32.xlu0 %v4350_v62, %s8927_s24  ;;  %v3173_v54 = vpack.c.bf16 %v3141_v58, %v3141_v58  ;;  %v2971_v27 = vpop.f32.mrf.mxu2  ;;  %v5609_v56 = vsel %vm5541_vm12, %v5509_v44, %v5577_v59  ;;  %v5100_v60 = vadd.f32 %v5099_v36, %v4846_v0  ;;  %v3569_v22 = vsel %vm9190_vm14, %v3561_v31, %v3568_v63  ;;  %v3252_v58 = vld [vmem:[#allocation2 + $0xe8] sm:$0xf]  ;;  %v5104_v59 = vpop.f32.mrf.mxu0  ;;  %v3999_v31 = vld [vmem:[#allocation2 + $0x118] sm:$0xf] }
 0x352   : > { %v4355_v3 = vrot.slane %v4354_v42, 4  ;;  %v3006_v14 = vadd.f32 %v2971_v27, %v2711_v49  ;;  %v3760_v8 = vld [vmem:[#allocation2 + $0xf4] sm:$0xf]  ;;  %v5641_v15 = vpack.c.bf16 %v5609_v56, %v5609_v56  ;;  %3721 = vst.msk [vmem:[#allocation3 + $0x6c] sm:$0xf] %vm432_vm7, %v3569_v22  ;;  %v4383_v27 = vrot.slane %v4381_v47, 5 }
 0x353   : > { %v3992_v34 = vld [vmem:[#allocation2 + $0xf4] sm:$0xf]  ;;  %3205 = vst.msk [vmem:[#allocation2 + $0xf8] sm:$0xf] %vm432_vm7, %v3173_v54  ;;  %3862 = vrot.lane.b32.xlu2 %v3760_v8, %s8928_s16  ;;  %v5474_v52 = vadd.f32 %v5397_v39, %v5100_v60  ;;  %v3571_v0 = vshrl.u32 %v3250_v50, 16  ;;  %v10469_v56 = vrot.slane %v4405_v30, 5 }
 0x354   : > { %v4360_v26 = vsel %vm9147_vm11, %v4355_v3, %v4359_v1  ;;  %v4362_v25 = vshrl.u32 %v3992_v34, 16  ;;  %v4365_v13 = vshll.u32 %v3992_v34, 16  ;;  %v3042_v28 = vadd.f32 %v10257_v9, %v3006_v14  ;;  %5673 = vst.msk [vmem:[#allocation2 + $0x18] sm:$0xf] %vm432_vm7, %v5641_v15  ;;  %v5402_v14 = vpop.f32.mrf.mxu1 }
 0x355   : > { %4491 = vrot.lane.b32.xlu1 %v4360_v26, %s8927_s24  ;;  %v5510_v57 = vadd.f32 %v10399_v38, %v5474_v52  ;;  %v3576_v1 = vshrl.u32 %v10456_v11, 16  ;;  %v3585_v6 = vshrl.u32 %v3252_v58, 16  ;;  %v3579_v5 = vshll.u32 %v10456_v11, 16 }
 0x356   : > { %v4364_v61 = vrot.slane %v4362_v25, 4  ;;  %v4367_v46 = vrot.slane %v4365_v13, 5  ;;  %vm3074_vm2 = vcmp.ge.f32.partialorder %v3042_v28, 0.0  ;;  %v3110_v18 = vmul.f32 %v10264_v19, %v3042_v28 }
 0x357   : > { %vm5542_vm6 = vcmp.ge.f32.partialorder %v5510_v57, 0.0  ;;  %v5578_v20 = vmul.f32 %v10410_v55, %v5510_v57  ;;  %v3578_v34 = vrot.slane %v3576_v1, 7  ;;  %v3587_v29 = vrot.slane %v3585_v6, 7 }
 0x358   : > { %v3142_v21 = vsel %vm3074_vm2, %v3042_v28, %v3110_v18  ;;  %v4848_v32 = vpop.f32.mrf.mxu3  ;;  %v4368_v36 = vor.u32 %v4367_v46, %v4364_v61  ;;  %v10471_v28 = vld [vmem:[#allocation2 + $0x114] sm:$0xf]  ;;  %v3588_v18 = vshll.u32 %v3252_v58, 16 }
 0x359   : > { %v3174_v51 = vpack.c.bf16 %v3142_v21, %v3142_v21  ;;  %v2973_v41 = vpop.f32.mrf.mxu2  ;;  %v5610_v40 = vsel %vm5542_vm6, %v5510_v57, %v5578_v20  ;;  %v5102_v33 = vadd.f32 %v5101_v45, %v4848_v32  ;;  %v3254_v57 = vld [vmem:[#allocation2 + $0xf4] sm:$0xf]  ;;  %v4410_v20 = vshrl.u32 %v10471_v28, 16  ;;  %v3253_v32 = vld [vmem:[#allocation2 + $0xf0] sm:$0x8] }
 0x35a   : > { %v3007_v16 = vadd.f32 %v2973_v41, %v2713_v4  ;;  %v3761_v23 = vld [vmem:[#allocation2 + $0xf8] sm:$0xf]  ;;  %v5642_v37 = vpack.c.bf16 %v5610_v40, %v5610_v40  ;;  %v4369_v44 = vrot.slane %v4368_v36, 4  ;;  %v3583_v41 = vrot.slane %v3578_v34, 4 }
 0x35b   : > { %v3993_v35 = vld [vmem:[#allocation2 + $0xf8] sm:$0xf]  ;;  %3206 = vst.msk [vmem:[#allocation2 + $0x104] sm:$0xf] %vm432_vm7, %v3174_v51  ;;  %3864 = vrot.lane.b32.xlu0 %v3761_v23, %s8928_s16  ;;  %v5475_v10 = vadd.f32 %v5399_v17, %v5102_v33  ;;  %v10478_v17 = vrot.slane %v3571_v0, 11  ;;  %v3598_v36 = vshrl.u32 %v3254_v57, 16  ;;  %v3590_v33 = vor.u32 %v3588_v18, %v3587_v29 }
 0x35c   : > { %v4371_v12 = vshll.u32 %v3993_v35, 16  ;;  %v4375_v39 = vshrl.u32 %v3993_v35, 16  ;;  %v3043_v43 = vadd.f32 %v10257_v9, %v3007_v16  ;;  %5674 = vst.msk [vmem:[#allocation2 + $0x24] sm:$0xf] %vm432_vm7, %v5642_v37  ;;  %v4413_v40 = vshll.u32 %v10471_v28, 16 }
 0x35d   : > { %v5511_v49 = vadd.f32 %v10399_v38, %v5475_v10  ;;  %v4419_v16 = vshll.u32 %v3999_v31, 16  ;;  %v3593_v23 = vshrl.u32 %v3253_v32, 16  ;;  %v3591_v10 = vsel %vm9190_vm14, %v3583_v41, %v3590_v33 }
 0x35e   : > { %v4373_v62 = vrot.slane %v4371_v12, 5  ;;  %v4377_v42 = vrot.slane %v4375_v39, 4  ;;  %vm3075_vm0 = vcmp.ge.f32.partialorder %v3043_v43, 0.0  ;;  %v3111_v53 = vmul.f32 %v10264_v19, %v3043_v43  ;;  %v5106_v39 = vpop.f32.mrf.mxu0  ;;  %3723 = vst.msk [vmem:[#allocation3 + $0x74] sm:$0xf] %vm432_vm7, %v3591_v10 }
 0x35f   : > { %vm5543_vm13 = vcmp.ge.f32.partialorder %v5511_v49, 0.0  ;;  %v5579_v48 = vmul.f32 %v10410_v55, %v5511_v49  ;;  %v4472_v22 = vpop.permute.xlu2 %4471  ;;  %v4423_v12 = vshrl.u32 %v3999_v31, 16  ;;  %v8066_v30 = vrot.slane %v3593_v23, 11  ;;  %v3764_v31 = vld [vmem:[#allocation2 + $0x114] sm:$0xf] }
 0x360   : > { %v4374_v9 = vsel %vm9147_vm11, %v4369_v44, %v4373_v62  ;;  %v4378_v54 = vor.u32 %v4377_v42, %v4373_v62  ;;  %v3143_v3 = vsel %vm3075_vm0, %v3043_v43, %v3111_v53  ;;  %v4851_v60 = vpop.f32.mrf.mxu3  ;;  %v10486_v43 = vrot.slane %v4410_v20, 4  ;;  %v5404_v53 = vpop.f32.mrf.mxu1  ;;  %v5708_v10 = vld [vmem:[#allocation2 + $0x14] sm:$0xf] }
 0x361   : > { %4493 = vrot.lane.b32.xlu1 %v4374_v9, %s8927_s24  ;;  %v3175_v19 = vpack.c.bf16 %v3143_v3, %v3143_v3  ;;  %v5611_v15 = vsel %vm5543_vm13, %v5511_v49, %v5579_v48  ;;  %v5105_v26 = vadd.f32 %v5104_v59, %v4851_v60  ;;  %v3600_v50 = vrot.slane %v3598_v36, 7  ;;  %v4000_v9 = vld [vmem:[#allocation2 + $0x11c] sm:$0x1] }
 0x362   : > { %v4379_v8 = vrot.slane %v4378_v54, 4  ;;  %v3762_v25 = vld [vmem:[#allocation2 + $0x104] sm:$0xf]  ;;  %v5643_v52 = vpack.c.bf16 %v5611_v15, %v5611_v15  ;;  %v3581_v1 = vor.u32 %v3579_v5, %v3578_v34  ;;  %v3601_v54 = vshll.u32 %v3254_v57, 16 }
 0x363   : > { %v3995_v13 = vld [vmem:[#allocation2 + $0x104] sm:$0xf]  ;;  %3207 = vst.msk [vmem:[#allocation2 + $0x108] sm:$0xf] %vm432_vm7, %v3175_v19  ;;  %3866 = vrot.lane.b32.xlu0 %v3762_v25, %s8928_s16  ;;  %v5476_v46 = vadd.f32 %v5402_v14, %v5105_v26  ;;  %v10492_v3 = vrot.slane %v4419_v16, 5  ;;  %v4425_v48 = vrot.slane %v4423_v12, 4 }
 0x364   : > { %v4384_v63 = vsel %vm9147_vm11, %v4379_v8, %v4383_v27  ;;  %v4386_v45 = vshrl.u32 %v3995_v13, 16  ;;  %v4389_v61 = vshll.u32 %v3995_v13, 16  ;;  %5675 = vst.msk [vmem:[#allocation2 + $0x28] sm:$0xf] %vm432_vm7, %v5643_v52  ;;  %v3255_v14 = vld [vmem:[#allocation2 + $0xf8] sm:$0xf]  ;;  %v3603_v6 = vor.u32 %v3601_v54, %v3600_v50 }
 0x365   : > { %4495 = vrot.lane.b32.xlu2 %v4384_v63, %s8927_s24  ;;  %v5512_v51 = vadd.f32 %v10399_v38, %v5476_v46  ;;  %v3607_v15 = vshrl.u32 %v3255_v14, 16  ;;  %v4415_v25 = vrot.slane %v4413_v40, 5  ;;  %v3582_v13 = vsel %vm9190_vm14, %v10478_v17, %v3581_v1  ;;  %v3257_v40 = vld [vmem:[#allocation2 + $0x104] sm:$0xf] }
 0x366   : > { %v4388_v4 = vrot.slane %v4386_v45, 4  ;;  %v4391_v21 = vrot.slane %v4389_v61, 5  ;;  %v3610_v28 = vshll.u32 %v3255_v14, 16  ;;  %v3604_v45 = vsel %vm9190_vm14, %v8066_v30, %v3603_v6  ;;  %3722 = vst.msk [vmem:[#allocation3 + $0x70] sm:$0xf] %vm432_vm7, %v3582_v13 }
 0x367   : > { %vm5544_vm15 = vcmp.ge.f32.partialorder %v5512_v51, 0.0  ;;  %v5580_v35 = vmul.f32 %v10410_v55, %v5512_v51  ;;  %v3609_v61 = vrot.slane %v3607_v15, 7  ;;  %v4426_v18 = vor.u32 %v4425_v48, %v10492_v3  ;;  %3724 = vst.msk [vmem:[#allocation3 + $0x78] sm:$0xf] %vm432_vm7, %v3604_v45 }
 0x368   : > { %v4392_v37 = vor.u32 %v4391_v21, %v4388_v4  ;;  %v4853_v47 = vpop.f32.mrf.mxu3  ;;  %v4429_v57 = vshll.u32 %v4000_v9, 16  ;;  %v4416_v29 = vor.u32 %v4415_v25, %v10486_v43  ;;  %v3620_v23 = vshrl.u32 %v3257_v40, 16  ;;  %v5711_v43 = vld [vmem:[#allocation2 + $0x24] sm:$0xf] }
 0x369   : > { %v5612_v11 = vsel %vm5544_vm15, %v5512_v51, %v5580_v35  ;;  %v5107_v44 = vadd.f32 %v5106_v39, %v4853_v47  ;;  %v3612_v4 = vor.u32 %v3610_v28, %v3609_v61  ;;  %v4427_v36 = vrot.slane %v4426_v18, 4  ;;  %v3256_v35 = vld [vmem:[#allocation2 + $0x100] sm:$0x8] }
 0x36a   : > { %v3763_v62 = vld [vmem:[#allocation2 + $0x108] sm:$0xf]  ;;  %v5644_v49 = vpack.c.bf16 %v5612_v11, %v5612_v11  ;;  %v4393_v0 = vrot.slane %v4392_v37, 4  ;;  %v4431_v5 = vrot.slane %v4429_v57, 5  ;;  %v3615_v37 = vshrl.u32 %v3256_v35, 16 }
 0x36b   : > { %v3996_v42 = vld [vmem:[#allocation2 + $0x108] sm:$0xf]  ;;  %3868 = vrot.lane.b32.xlu1 %v3763_v62, %s8928_s16  ;;  %v5477_v27 = vadd.f32 %v5404_v53, %v5107_v44  ;;  %v3622_v12 = vrot.slane %v3620_v23, 7  ;;  %v3623_v39 = vshll.u32 %v3257_v40, 16  ;;  %v5710_v11 = vld [vmem:[#allocation2 + $0x20] sm:$0x8] }
 0x36c   : > { %v4395_v58 = vshll.u32 %v3996_v42, 16  ;;  %v4399_v59 = vshrl.u32 %v3996_v42, 16  ;;  %5676 = vst.msk [vmem:[#allocation2 + $0x34] sm:$0xf] %vm432_vm7, %v5644_v49  ;;  %v4474_v19 = vpop.permute.xlu2 %4473  ;;  %v4432_v47 = vsel %vm9147_vm11, %v4427_v36, %v4431_v5  ;;  %v8067_v30 = vrot.slane %v3615_v37, 11  ;;  %v5109_v49 = vpop.f32.mrf.mxu0 }
 0x36d   : > { %v3841_v60 = vpop.permute.xlu0 %3840  ;;  %v5513_v26 = vadd.f32 %v10399_v38, %v5477_v27  ;;  %v5707_v44 = vld [vmem:[#allocation2 + $0x10] sm:$0x8]  ;;  %v5803_v9 = vshrl.u32 %v5710_v11, 16  ;;  %v5808_v54 = vshrl.u32 %v5711_v43, 16  ;;  %v5786_v27 = vshrl.u32 %v5708_v10, 16 }
 0x36e   : > { %v4397_v8 = vrot.slane %v4395_v58, 5  ;;  %v4401_v34 = vrot.slane %v4399_v59, 4  ;;  %3930 = vst.msk [vmem:[#allocation3 + $0x4c] sm:$0xf] %vm3910_vm5, %v3841_v60  ;;  %v3765_v58 = vld [vmem:[#allocation2 + $0x118] sm:$0xf] }
 0x36f   : > { %4561 = vst.msk [vmem:[#allocation3 + $0x4c] sm:$0xf] %vm4541_vm10, %v4472_v22  ;;  %vm5545_vm3 = vcmp.ge.f32.partialorder %v5513_v26, 0.0  ;;  %v5581_v46 = vmul.f32 %v10410_v55, %v5513_v26  ;;  %v3605_v22 = vrot.slane %v3600_v50, 4  ;;  %v3625_v50 = vor.u32 %v3623_v39, %v3622_v12  ;;  %v3258_v48 = vld [vmem:[#allocation2 + $0x108] sm:$0xf] }
 0x370   : > { %v4398_v52 = vsel %vm9147_vm11, %v4393_v0, %v4397_v8  ;;  %v4402_v63 = vor.u32 %v4401_v34, %v4397_v8  ;;  %v4856_v0 = vpop.f32.mrf.mxu3  ;;  %v5781_v14 = vshrl.u32 %v5707_v44, 16  ;;  %v3629_v60 = vshrl.u32 %v3258_v48, 16  ;;  %v5712_v15 = vld [vmem:[#allocation2 + $0x28] sm:$0xf]  ;;  %v5709_v57 = vld [vmem:[#allocation2 + $0x18] sm:$0xf] }
 0x371   : > { %4497 = vrot.lane.b32.xlu2 %v4398_v52, %s8927_s24  ;;  %v5613_v21 = vsel %vm5545_vm3, %v5513_v26, %v5581_v46  ;;  %v3613_v32 = vsel %vm9190_vm14, %v3605_v22, %v3612_v4  ;;  %v3626_v59 = vsel %vm9190_vm14, %v8067_v30, %v3625_v50  ;;  %v8407_v8 = vrot.slane %v5803_v9, 11 }
 0x372   : > { %v4403_v17 = vrot.slane %v4402_v63, 4  ;;  %v5645_v51 = vpack.c.bf16 %v5613_v21, %v5613_v21  ;;  %3725 = vst.msk [vmem:[#allocation3 + $0x7c] sm:$0xf] %vm432_vm7, %v3613_v32  ;;  %v5810_v34 = vrot.slane %v5808_v54, 7  ;;  %v5811_v6 = vshll.u32 %v5711_v43, 16 }
 0x373   : > { %v4470_v20 = vpop.permute.xlu1 %4469  ;;  %3870 = vrot.lane.b32.xlu1 %v3764_v31, %s8928_s16  ;;  %3726 = vst.msk [vmem:[#allocation3 + $0x80] sm:$0xf] %vm432_vm7, %v3626_v59  ;;  %v3631_v26 = vrot.slane %v3629_v60, 7  ;;  %v3632_v25 = vshll.u32 %v3258_v48, 16  ;;  %v5788_v28 = vrot.slane %v5786_v27, 7  ;;  %v8406_v52 = vrot.slane %v5781_v14, 11 }
 0x374   : > { %4560 = vst.msk [vmem:[#allocation3 + $0x48] sm:$0xf] %vm4541_vm10, %v4470_v20  ;;  %v4408_v41 = vsel %vm9147_vm11, %v4403_v17, %v10469_v56  ;;  %v4417_v56 = vrot.slane %v4416_v29, 4  ;;  %v5813_v13 = vor.u32 %v5811_v6, %v5810_v34  ;;  %v5789_v63 = vshll.u32 %v5708_v10, 16  ;;  %v5111_v20 = vpop.f32.mrf.mxu0  ;;  %v5714_v40 = vld [vmem:[#allocation2 + $0x34] sm:$0xf] }
 0x375   : > { %4499 = vrot.lane.b32.xlu0 %v4408_v41, %s8927_s24  ;;  %5677 = vst.msk [vmem:[#allocation2 + $0x38] sm:$0xf] %vm432_vm7, %v5645_v51  ;;  %v3849_v16 = vpop.permute.xlu2 %3848  ;;  %v3843_v33 = vpop.permute.xlu0 %3842  ;;  %v3627_v45 = vrot.slane %v3622_v12, 4  ;;  %v3634_v61 = vor.u32 %v3632_v25, %v3631_v26  ;;  %v5817_v31 = vshrl.u32 %v5712_v15, 16  ;;  %v5820_v4 = vshll.u32 %v5712_v15, 16 }
 0x376   : > { %3934 = vst.msk [vmem:[#allocation3 + $0x5c] sm:$0xf] %vm3910_vm5, %v3849_v16  ;;  %v4422_v53 = vsel %vm9147_vm11, %v4417_v56, %v10492_v3  ;;  %v5814_v46 = vsel %vm9190_vm14, %v8407_v8, %v5813_v13  ;;  %v5791_v18 = vor.u32 %v5789_v63, %v5788_v28  ;;  %v5815_v51 = vrot.slane %v5810_v34, 4  ;;  %v5713_v56 = vld [vmem:[#allocation2 + $0x30] sm:$0x8] }
 0x377   : > { %3931 = vst.msk [vmem:[#allocation3 + $0x50] sm:$0xf] %vm3910_vm5, %v3843_v33  ;;  %v3635_v17 = vsel %vm9190_vm14, %v3627_v45, %v3634_v61  ;;  %v5819_v22 = vrot.slane %v5817_v31, 7  ;;  %v5795_v32 = vshrl.u32 %v5709_v57, 16  ;;  %v5830_v16 = vshrl.u32 %v5714_v40, 16 }
 0x378   : > { %4562 = vst.msk [vmem:[#allocation3 + $0x50] sm:$0xf] %vm4541_vm10, %v4474_v19  ;;  %v5792_v21 = vsel %vm9190_vm14, %v8406_v52, %v5791_v18  ;;  %v4858_v36 = vpop.f32.mrf.mxu3  ;;  %v5110_v23 = vadd.f32 %v5109_v49, %v4856_v0  ;;  %v5798_v37 = vshll.u32 %v5709_v57, 16  ;;  %v5833_v43 = vshll.u32 %v5714_v40, 16 }
 0x379   : > { %3872 = vrot.lane.b32.xlu2 %v3765_v58, %s8928_s16  ;;  %6194 = vst.msk [vmem:[#allocation3 + $0x10] sm:$0xf] %vm432_vm7, %v5814_v46  ;;  %v5822_v41 = vor.u32 %v5820_v4, %v5819_v22  ;;  %v5797_v35 = vrot.slane %v5795_v32, 7  ;;  %v5832_v39 = vrot.slane %v5830_v16, 7  ;;  %v5793_v30 = vrot.slane %v5788_v28, 4 }
 0x37a   : > { %3727 = vst.msk [vmem:[#allocation3 + $0x84] sm:$0xf] %vm432_vm7, %v3635_v17  ;;  %v5112_v0 = vadd.f32 %v5111_v20, %v4858_v36 }
 0x37b   : > { %v8712_v62 = vld [vmem:[#allocation3 + $0x48] sm:$0xff]  ;;  %4503 = vrot.lane.b32.xlu1 %v4432_v47, %s8927_s24  ;;  %6192 = vst.msk [vmem:[#allocation3 + $0x8] sm:$0xf] %vm432_vm7, %v5792_v21  ;;  %v5823_v33 = vsel %vm9190_vm14, %v5815_v51, %v5822_v41  ;;  %v5825_v47 = vshrl.u32 %v5713_v56, 16  ;;  %v5800_v50 = vor.u32 %v5798_v37, %v5797_v35  ;;  %v5835_v44 = vor.u32 %v5833_v43, %v5832_v39 }
 0x37c   : > { %v8691_v42 = vld [vmem:[#allocation3 + $0x48] sm:$0xff]  ;;  %8177 = vmatmul.msk.bf16.gmra.mxu3 %vm4783_vm8, %v8712_v62  ;;  %6195 = vst.msk [vmem:[#allocation3 + $0x14] sm:$0xf] %vm432_vm7, %v5823_v33  ;;  %v5715_v54 = vld [vmem:[#allocation2 + $0x38] sm:$0xf]  ;;  %v5114_v27 = vpop.f32.mrf.mxu0  ;;  %v5837_v13 = vrot.slane %v5832_v39, 4 }
 0x37d   : > { %v8733_v1 = vld [vmem:[#allocation3 + $0x48] sm:$0xff]  ;;  %8282 = vmatmul.msk.bf16.gmra.mxu0 %vm4783_vm8, %v8691_v42  ;;  %v3851_v19 = vpop.permute.xlu2 %3850  ;;  %4501 = vrot.lane.b32.xlu0 %v4422_v53, %s8927_s24  ;;  %v8408_v11 = vrot.slane %v5825_v47, 11  ;;  %v5801_v42 = vsel %vm9190_vm14, %v5793_v30, %v5800_v50  ;;  %v5839_v14 = vshrl.u32 %v5715_v54, 16  ;;  %v5842_v6 = vshll.u32 %v5715_v54, 16 }
 0x37e   : > { %v3845_v3 = vpop.permute.xlu1 %3844  ;;  %8396 = vmatmul.msk.bf16.gmra.mxu1 %vm4783_vm8, %v8733_v1  ;;  %3935 = vst.msk [vmem:[#allocation3 + $0x60] sm:$0xf] %vm3910_vm5, %v3851_v19  ;;  %v6456_v35 = vld [vmem:[#allocation2 + $0x4c] sm:$0x1] }
 0x37f   : > { %3932 = vst.msk [vmem:[#allocation3 + $0x54] sm:$0xf] %vm3910_vm5, %v3845_v3  ;;  %v5836_v1 = vsel %vm9190_vm14, %v8408_v11, %v5835_v44  ;;  %v5841_v34 = vrot.slane %v5839_v14, 7 }
 0x380   : > { %6193 = vst.msk [vmem:[#allocation3 + $0xc] sm:$0xf] %vm432_vm7, %v5801_v42  ;;  %v6612_v42 = vshll.u32 %v6456_v35, 16 }
 0x381   : > { %6196 = vst.msk [vmem:[#allocation3 + $0x18] sm:$0xf] %vm432_vm7, %v5836_v1  ;;  %v5844_v26 = vor.u32 %v5842_v6, %v5841_v34 }
 0x383   : > { %v5845_v45 = vsel %vm9190_vm14, %v5837_v13, %v5844_v26 }
 0x384   : > { %6197 = vst.msk [vmem:[#allocation3 + $0x1c] sm:$0xf] %vm432_vm7, %v5845_v45  ;;  %v5116_v57 = vpop.f32.mrf.mxu0 }
 0x386   : > { %v3847_v29 = vpop.permute.xlu1 %3846 }
 0x387   : > { %3933 = vst.msk [vmem:[#allocation3 + $0x58] sm:$0xf] %vm3910_vm5, %v3847_v29 }
 0x388   : > { %v4476_v5 = vpop.permute.xlu0 %4475  ;;  %v5407_v12 = vpop.f32.mrf.mxu1 }
 0x389   : > { %4563 = vst.msk [vmem:[#allocation3 + $0x54] sm:$0xf] %vm4541_vm10, %v4476_v5  ;;  %v5478_v10 = vadd.f32 %v5407_v12, %v5110_v23 }
 0x38b   : > { %v5514_v62 = vadd.f32 %v10399_v38, %v5478_v10 }
 0x38c   : > { %v4861_v49 = vpop.f32.mrf.mxu3  ;;  %v5119_v43 = vpop.f32.mrf.mxu0 }
 0x38d   : > { %vm5546_vm4 = vcmp.ge.f32.partialorder %v5514_v62, 0.0  ;;  %v5582_v53 = vmul.f32 %v10410_v55, %v5514_v62  ;;  %v5115_v61 = vadd.f32 %v5114_v27, %v4861_v49 }
 0x38f   : > { %v5614_v48 = vsel %vm5546_vm4, %v5514_v62, %v5582_v53  ;;  %v4484_v25 = vpop.permute.xlu2 %4483 }
 0x390   : > { %v8713_v58 = vld [vmem:[#allocation3 + $0x50] sm:$0xff]  ;;  %v5646_v3 = vpack.c.bf16 %v5614_v48, %v5614_v48  ;;  %v5409_v19 = vpop.f32.mrf.mxu1  ;;  %v6614_v48 = vrot.slane %v6612_v42, 5 }
 0x391   : > { %v8692_v59 = vld [vmem:[#allocation3 + $0x50] sm:$0xff]  ;;  %8178 = vmatmul.msk.bf16.gmra.mxu3 %vm4783_vm8, %v8713_v58  ;;  %v5479_v60 = vadd.f32 %v5409_v19, %v5112_v0 }
 0x392   : > { %v8734_v9 = vld [vmem:[#allocation3 + $0x50] sm:$0xff]  ;;  %8283 = vmatmul.msk.bf16.gmra.mxu0 %vm4783_vm8, %v8692_v59  ;;  %5678 = vst.msk [vmem:[#allocation2 + $0x44] sm:$0xf] %vm432_vm7, %v5646_v3 }
 0x393   : > { %8397 = vmatmul.msk.bf16.gmra.mxu1 %vm4783_vm8, %v8734_v9  ;;  %v4478_v8 = vpop.permute.xlu0 %4477  ;;  %v5515_v15 = vadd.f32 %v10399_v38, %v5479_v60 }
 0x394   : > { %4564 = vst.msk [vmem:[#allocation3 + $0x58] sm:$0xf] %vm4541_vm10, %v4478_v8  ;;  %v4863_v63 = vpop.f32.mrf.mxu3 }
 0x395   : > { %vm5547_vm9 = vcmp.ge.f32.partialorder %v5515_v15, 0.0  ;;  %v5583_v28 = vmul.f32 %v10410_v55, %v5515_v15  ;;  %v5117_v23 = vadd.f32 %v5116_v57, %v4863_v63 }
 0x397   : > { %v4480_v52 = vpop.permute.xlu1 %4479  ;;  %v5615_v46 = vsel %vm5547_vm9, %v5515_v15, %v5583_v28  ;;  %v5121_v28 = vpop.f32.mrf.mxu0 }
 0x398   : > { %4565 = vst.msk [vmem:[#allocation3 + $0x5c] sm:$0xf] %vm4541_vm10, %v4480_v52  ;;  %v5647_v31 = vpack.c.bf16 %v5615_v46, %v5615_v46  ;;  %v5412_v18 = vpop.f32.mrf.mxu1 }
 0x399   : > { %v5480_v17 = vadd.f32 %v5412_v18, %v5115_v61  ;;  %v6234_v22 = vld [vmem:[#allocation2 + $0x44] sm:$0xf]  ;;  %v5716_v18 = vld [vmem:[#allocation2 + $0x40] sm:$0x8] }
 0x39a   : > { %v6454_v4 = vld [vmem:[#allocation2 + $0x44] sm:$0xf]  ;;  %5679 = vst.msk [vmem:[#allocation2 + $0x48] sm:$0xf] %vm432_vm7, %v5647_v31  ;;  %6314 = vrot.lane.b32.xlu2 %v6234_v22, %s8928_s16 }
 0x39b   : > { %v6593_v21 = vshrl.u32 %v6454_v4, 16  ;;  %v6596_v20 = vshll.u32 %v6454_v4, 16  ;;  %v5516_v29 = vadd.f32 %v10399_v38, %v5480_v17  ;;  %v4486_v51 = vpop.permute.xlu2 %4485  ;;  %v5717_v3 = vld [vmem:[#allocation2 + $0x44] sm:$0xf] }
 0x39c   : > { %v4866_v12 = vpop.f32.mrf.mxu3  ;;  %v5852_v45 = vshrl.u32 %v5717_v3, 16 }
 0x39d   : > { %v3853_v41 = vpop.permute.xlu0 %3852  ;;  %v6595_v32 = vrot.slane %v6593_v21, 4  ;;  %v6598_v36 = vrot.slane %v6596_v20, 5  ;;  %vm5548_vm1 = vcmp.ge.f32.partialorder %v5516_v29, 0.0  ;;  %v5584_v5 = vmul.f32 %v10410_v55, %v5516_v29 }
 0x39e   : > { %3936 = vst.msk [vmem:[#allocation3 + $0x64] sm:$0xf] %vm3910_vm5, %v3853_v41  ;;  %v5120_v8 = vadd.f32 %v5119_v43, %v4866_v12  ;;  %v5847_v21 = vshrl.u32 %v5716_v18, 16 }
 0x39f   : > { %v8714_v40 = vld [vmem:[#allocation3 + $0x58] sm:$0xff]  ;;  %4567 = vst.msk [vmem:[#allocation3 + $0x64] sm:$0xf] %vm4541_vm10, %v4484_v25  ;;  %v5616_v56 = vsel %vm5548_vm1, %v5516_v29, %v5584_v5  ;;  %v6599_v47 = vor.u32 %v6598_v36, %v6595_v32  ;;  %v5854_v29 = vrot.slane %v5852_v45, 7 }
 0x3a0   : > { %v8693_v16 = vld [vmem:[#allocation3 + $0x58] sm:$0xff]  ;;  %v5648_v37 = vpack.c.bf16 %v5616_v56, %v5616_v56  ;;  %v5414_v39 = vpop.f32.mrf.mxu1  ;;  %v8409_v5 = vrot.slane %v5847_v21, 11 }
 0x3a1   : > { %v8735_v33 = vld [vmem:[#allocation3 + $0x58] sm:$0xff]  ;;  %8179 = vmatmul.msk.bf16.gmra.mxu3 %vm4783_vm8, %v8714_v40  ;;  %v5481_v10 = vadd.f32 %v5414_v39, %v5117_v23  ;;  %v6235_v50 = vld [vmem:[#allocation2 + $0x48] sm:$0xf]  ;;  %v6600_v58 = vrot.slane %v6599_v47, 4 }
 0x3a2   : > { %8284 = vmatmul.msk.bf16.gmra.mxu0 %vm4783_vm8, %v8693_v16  ;;  %v6455_v11 = vld [vmem:[#allocation2 + $0x48] sm:$0xf]  ;;  %5680 = vst.msk [vmem:[#allocation2 + $0x54] sm:$0xf] %vm432_vm7, %v5648_v37  ;;  %6316 = vrot.lane.b32.xlu0 %v6235_v50, %s8928_s16  ;;  %v6459_v32 = vld [vmem:[#allocation2 + $0x5c] sm:$0x1] }
 0x3a3   : > { %8398 = vmatmul.msk.bf16.gmra.mxu1 %vm4783_vm8, %v8735_v33  ;;  %v4482_v30 = vpop.permute.xlu1 %4481  ;;  %v6602_v44 = vshll.u32 %v6455_v11, 16  ;;  %v6606_v62 = vshrl.u32 %v6455_v11, 16  ;;  %v5517_v1 = vadd.f32 %v10399_v38, %v5481_v10  ;;  %v6636_v47 = vshll.u32 %v6459_v32, 16 }
 0x3a4   : > { %4566 = vst.msk [vmem:[#allocation3 + $0x60] sm:$0xf] %vm4541_vm10, %v4482_v30  ;;  %v4868_v15 = vpop.f32.mrf.mxu3 }
 0x3a5   : > { %v3861_v53 = vpop.permute.xlu2 %3860  ;;  %v3855_v49 = vpop.permute.xlu0 %3854  ;;  %v6604_v59 = vrot.slane %v6602_v44, 5  ;;  %v6608_v9 = vrot.slane %v6606_v62, 4  ;;  %vm5549_vm12 = vcmp.ge.f32.partialorder %v5517_v1, 0.0  ;;  %v5585_v54 = vmul.f32 %v10410_v55, %v5517_v1 }
 0x3a6   : > { %3940 = vst.msk [vmem:[#allocation3 + $0x74] sm:$0xf] %vm3910_vm5, %v3861_v53  ;;  %v5122_v16 = vadd.f32 %v5121_v28, %v4868_v15 }
 0x3a7   : > { %3937 = vst.msk [vmem:[#allocation3 + $0x68] sm:$0xf] %vm3910_vm5, %v3855_v49  ;;  %v6605_v27 = vsel %vm9147_vm11, %v6600_v58, %v6604_v59  ;;  %v6609_v0 = vor.u32 %v6608_v9, %v6604_v59  ;;  %v5617_v14 = vsel %vm5549_vm12, %v5517_v1, %v5585_v54  ;;  %v10612_v1 = vld [vmem:[%s11140_s7] ss:$0 sm:$0xff]  ;;  %v5124_v59 = vpop.f32.mrf.mxu0 }
 0x3a8   : > { %4568 = vst.msk [vmem:[#allocation3 + $0x68] sm:$0xf] %vm4541_vm10, %v4486_v51  ;;  %6944 = vrot.lane.b32.xlu1 %v6605_v27, %s8927_s24  ;;  %v5649_v19 = vpack.c.bf16 %v5617_v14, %v5617_v14  ;;  %v5855_v51 = vshll.u32 %v5717_v3, 16  ;;  %v5859_v14 = vrot.slane %v5854_v29, 4 }
 0x3a9   : > { %v6610_v60 = vrot.slane %v6609_v0, 4  ;;  %v6236_v34 = vld [vmem:[#allocation2 + $0x54] sm:$0xf]  ;;  %v6638_v0 = vrot.slane %v6636_v47, 5 }
 0x3aa   : > { %v6457_v6 = vld [vmem:[#allocation2 + $0x54] sm:$0xf]  ;;  %5681 = vst.msk [vmem:[#allocation2 + $0x58] sm:$0xf] %vm432_vm7, %v5649_v19  ;;  %6318 = vrot.lane.b32.xlu0 %v6236_v34, %s8928_s16  ;;  %v5857_v40 = vor.u32 %v5855_v51, %v5854_v29 }
 0x3ab   : > { %v5417_v26 = vpop.f32.mrf.mxu1  ;;  %v6615_v25 = vsel %vm9147_vm11, %v6610_v60, %v6614_v48  ;;  %v6617_v13 = vshrl.u32 %v6457_v6, 16  ;;  %v6620_v63 = vshll.u32 %v6457_v6, 16  ;;  %v8715_v17 = vld [vmem:[#allocation3 + $0x60] sm:$0xff]  ;;  %v5720_v60 = vld [vmem:[#allocation2 + $0x54] sm:$0xf] }
 0x3ac   : > { %v5482_v52 = vadd.f32 %v5417_v26, %v5120_v8  ;;  %6946 = vrot.lane.b32.xlu2 %v6615_v25, %s8927_s24  ;;  %v8694_v22 = vld [vmem:[#allocation3 + $0x60] sm:$0xff]  ;;  %v5858_v10 = vsel %vm9190_vm14, %v8409_v5, %v5857_v40  ;;  %v5874_v45 = vshrl.u32 %v5720_v60, 16 }
 0x3ad   : > { %v3857_v61 = vpop.permute.xlu1 %3856  ;;  %v3863_v46 = vpop.permute.xlu2 %3862  ;;  %v6619_v31 = vrot.slane %v6617_v13, 4  ;;  %v6622_v4 = vrot.slane %v6620_v63, 5  ;;  %v8736_v20 = vld [vmem:[#allocation3 + $0x60] sm:$0xff]  ;;  %6198 = vst.msk [vmem:[#allocation3 + $0x20] sm:$0xf] %vm432_vm7, %v5858_v10 }
 0x3ae   : > { %v5518_v57 = vadd.f32 %v10399_v38, %v5482_v52  ;;  %3938 = vst.msk [vmem:[#allocation3 + $0x6c] sm:$0xf] %vm3910_vm5, %v3857_v61  ;;  %v5718_v38 = vld [vmem:[#allocation2 + $0x48] sm:$0xf]  ;;  %v5876_v51 = vrot.slane %v5874_v45, 7 }
 0x3af   : > { %3941 = vst.msk [vmem:[#allocation3 + $0x78] sm:$0xf] %vm3910_vm5, %v3863_v46  ;;  %v6623_v36 = vor.u32 %v6622_v4, %v6619_v31  ;;  %v5861_v30 = vshrl.u32 %v5718_v38, 16  ;;  %v4871_v50 = vpop.f32.mrf.mxu3  ;;  %v5864_v58 = vshll.u32 %v5718_v38, 16  ;;  %v5719_v46 = vld [vmem:[#allocation2 + $0x50] sm:$0x8]  ;;  %v5126_v32 = vpop.f32.mrf.mxu0 }
 0x3b0   : > { %vm5550_vm2 = vcmp.ge.f32.partialorder %v5518_v57, 0.0  ;;  %v5586_v41 = vmul.f32 %v10410_v55, %v5518_v57  ;;  %v5125_v8 = vadd.f32 %v5124_v59, %v4871_v50  ;;  %v5869_v21 = vshrl.u32 %v5719_v46, 16 }
 0x3b1   : > { %8180 = vmatmul.msk.bf16.gmra.mxu3 %vm4783_vm8, %v8715_v17  ;;  %v6237_v23 = vld [vmem:[#allocation2 + $0x58] sm:$0xf]  ;;  %v6624_v44 = vrot.slane %v6623_v36, 4  ;;  %v5863_v49 = vrot.slane %v5861_v30, 7 }
 0x3b2   : > { %8285 = vmatmul.msk.bf16.gmra.mxu0 %vm4783_vm8, %v8694_v22  ;;  %v5618_v33 = vsel %vm5550_vm2, %v5518_v57, %v5586_v41  ;;  %v6458_v56 = vld [vmem:[#allocation2 + $0x58] sm:$0xf]  ;;  %6320 = vrot.lane.b32.xlu1 %v6237_v23, %s8928_s16  ;;  %v5877_v41 = vshll.u32 %v5720_v60, 16  ;;  %v8410_v38 = vrot.slane %v5869_v21, 11  ;;  %v6462_v23 = vld [vmem:[#allocation2 + $0x6c] sm:$0x1] }
 0x3b3   : > { %8399 = vmatmul.msk.bf16.gmra.mxu1 %vm4783_vm8, %v8736_v20  ;;  %v5650_v35 = vpack.c.bf16 %v5618_v33, %v5618_v33  ;;  %v5419_v37 = vpop.f32.mrf.mxu1  ;;  %v6626_v12 = vshll.u32 %v6458_v56, 16  ;;  %v6630_v39 = vshrl.u32 %v6458_v56, 16  ;;  %v5866_v3 = vor.u32 %v5864_v58, %v5863_v49  ;;  %v10634_v20 = vld [vmem:[%s11141_s8] ss:$0 sm:$0xff]  ;;  %v5721_v36 = vld [vmem:[#allocation2 + $0x58] sm:$0xf] }
 0x3b4   : > { %v5483_v43 = vadd.f32 %v5419_v37, %v5122_v16  ;;  %v5879_v56 = vor.u32 %v5877_v41, %v5876_v51  ;;  %v6660_v50 = vshll.u32 %v6462_v23, 16  ;;  %v5886_v59 = vshll.u32 %v5721_v36, 16 }
 0x3b5   : > { %5682 = vst.msk [vmem:[#allocation2 + $0x64] sm:$0xf] %vm432_vm7, %v5650_v35  ;;  %v3859_v11 = vpop.permute.xlu1 %3858  ;;  %v6628_v62 = vrot.slane %v6626_v12, 5  ;;  %v6632_v42 = vrot.slane %v6630_v39, 4  ;;  %v5867_v6 = vsel %vm9190_vm14, %v5859_v14, %v5866_v3  ;;  %v5881_v60 = vrot.slane %v5876_v51, 4 }
 0x3b6   : > { %v5519_v53 = vadd.f32 %v10612_v1, %v5483_v43  ;;  %3939 = vst.msk [vmem:[#allocation3 + $0x70] sm:$0xf] %vm3910_vm5, %v3859_v11  ;;  %v5880_v43 = vsel %vm9190_vm14, %v8410_v38, %v5879_v56  ;;  %v5883_v11 = vshrl.u32 %v5721_v36, 16  ;;  %v6465_v51 = vld [vmem:[#allocation2 + $0x7c] sm:$0x1] }
 0x3b7   : > { %v4488_v9 = vpop.permute.xlu0 %4487  ;;  %v6629_v54 = vsel %vm9147_vm11, %v6624_v44, %v6628_v62  ;;  %v6633_v27 = vor.u32 %v6632_v42, %v6628_v62  ;;  %6199 = vst.msk [vmem:[#allocation3 + $0x24] sm:$0xf] %vm432_vm7, %v5867_v6  ;;  %v4873_v31 = vpop.f32.mrf.mxu3  ;;  %v6684_v23 = vshll.u32 %v6465_v51, 16 }
 0x3b8   : > { %vm5551_vm6 = vcmp.ge.f32.partialorder %v5519_v53, 0.0  ;;  %v5587_v48 = vmul.f32 %v10410_v55, %v5519_v53  ;;  %4569 = vst.msk [vmem:[#allocation3 + $0x6c] sm:$0xf] %vm4541_vm10, %v4488_v9  ;;  %6948 = vrot.lane.b32.xlu2 %v6629_v54, %s8927_s24  ;;  %v5127_v5 = vadd.f32 %v5126_v32, %v4873_v31  ;;  %v5885_v58 = vrot.slane %v5883_v11, 7 }
 0x3b9   : > { %v6634_v19 = vrot.slane %v6633_v27, 4  ;;  %6200 = vst.msk [vmem:[#allocation3 + $0x28] sm:$0xf] %vm432_vm7, %v5880_v43 }
 0x3ba   : > { %v5619_v34 = vsel %vm5551_vm6, %v5519_v53, %v5587_v48  ;;  %v6662_v48 = vrot.slane %v6660_v50, 5  ;;  %v5888_v14 = vor.u32 %v5886_v59, %v5885_v58 }
 0x3bb   : > { %v5651_v15 = vpack.c.bf16 %v5619_v34, %v5619_v34  ;;  %v5422_v26 = vpop.f32.mrf.mxu1  ;;  %v6639_v25 = vsel %vm9147_vm11, %v6634_v19, %v6638_v0 }
 0x3bc   : > { %v5484_v55 = vadd.f32 %v5422_v26, %v5125_v8  ;;  %v6238_v13 = vld [vmem:[#allocation2 + $0x64] sm:$0xf]  ;;  %6950 = vrot.lane.b32.xlu0 %v6639_v25, %s8927_s24  ;;  %v5889_v26 = vsel %vm9190_vm14, %v5881_v60, %v5888_v14  ;;  %v5129_v14 = vpop.f32.mrf.mxu0 }
 0x3bd   : > { %v6460_v28 = vld [vmem:[#allocation2 + $0x64] sm:$0xf]  ;;  %5683 = vst.msk [vmem:[#allocation2 + $0x68] sm:$0xf] %vm432_vm7, %v5651_v15  ;;  %6322 = vrot.lane.b32.xlu1 %v6238_v13, %s8928_s16 }
 0x3be   : > { %v6641_v52 = vshrl.u32 %v6460_v28, 16  ;;  %v6644_v63 = vshll.u32 %v6460_v28, 16  ;;  %v5520_v61 = vadd.f32 %v10612_v1, %v5484_v55  ;;  %v5723_v3 = vld [vmem:[#allocation2 + $0x64] sm:$0xf]  ;;  %6201 = vst.msk [vmem:[#allocation3 + $0x2c] sm:$0xf] %vm432_vm7, %v5889_v26 }
 0x3bf   : > { %v8716_v18 = vld [vmem:[#allocation3 + $0x68] sm:$0xff]  ;;  %v4496_v9 = vpop.permute.xlu2 %4495 }
 0x3c0   : > { %v8695_v57 = vld [vmem:[#allocation3 + $0x68] sm:$0xff]  ;;  %v6643_v22 = vrot.slane %v6641_v52, 4  ;;  %v6646_v4 = vrot.slane %v6644_v63, 5  ;;  %vm5552_vm0 = vcmp.ge.f32.partialorder %v5520_v61, 0.0  ;;  %v5588_v29 = vmul.f32 %v10634_v20, %v5520_v61 }
 0x3c1   : > { %v8737_v17 = vld [vmem:[#allocation3 + $0x68] sm:$0xff]  ;;  %8181 = vmatmul.msk.bf16.gmra.mxu3 %vm4783_vm8, %v8716_v18  ;;  %v5896_v52 = vshrl.u32 %v5723_v3, 16 }
 0x3c2   : > { %8286 = vmatmul.msk.bf16.gmra.mxu0 %vm4783_vm8, %v8695_v57  ;;  %v5620_v40 = vsel %vm5552_vm0, %v5520_v61, %v5588_v29  ;;  %v6647_v33 = vor.u32 %v6646_v4, %v6643_v22  ;;  %v5899_v4 = vshll.u32 %v5723_v3, 16 }
 0x3c3   : > { %8400 = vmatmul.msk.bf16.gmra.mxu1 %vm4783_vm8, %v8737_v17  ;;  %v4490_v16 = vpop.permute.xlu0 %4489  ;;  %v5652_v35 = vpack.c.bf16 %v5620_v40, %v5620_v40  ;;  %v5424_v37 = vpop.f32.mrf.mxu1  ;;  %v5898_v18 = vrot.slane %v5896_v52, 7  ;;  %v5722_v17 = vld [vmem:[#allocation2 + $0x60] sm:$0x8] }
 0x3c4   : > { %4570 = vst.msk [vmem:[#allocation3 + $0x70] sm:$0xf] %vm4541_vm10, %v4490_v16  ;;  %v5485_v12 = vadd.f32 %v5424_v37, %v5127_v5  ;;  %v6239_v39 = vld [vmem:[#allocation2 + $0x68] sm:$0xf]  ;;  %v6648_v42 = vrot.slane %v6647_v33, 4  ;;  %v5891_v22 = vshrl.u32 %v5722_v17, 16 }
 0x3c5   : > { %v6461_v47 = vld [vmem:[#allocation2 + $0x68] sm:$0xf]  ;;  %5684 = vst.msk [vmem:[#allocation2 + $0x74] sm:$0xf] %vm432_vm7, %v5652_v35  ;;  %6324 = vrot.lane.b32.xlu2 %v6239_v39, %s8928_s16  ;;  %v5901_v38 = vor.u32 %v5899_v4, %v5898_v18 }
 0x3c6   : > { %v6650_v10 = vshll.u32 %v6461_v47, 16  ;;  %v6654_v30 = vshrl.u32 %v6461_v47, 16  ;;  %v5521_v44 = vadd.f32 %v10612_v1, %v5485_v12  ;;  %v5724_v21 = vld [vmem:[#allocation2 + $0x68] sm:$0xf]  ;;  %v8411_v32 = vrot.slane %v5891_v22, 11 }
 0x3c7   : > { %v4492_v62 = vpop.permute.xlu1 %4491  ;;  %v5905_v56 = vshrl.u32 %v5724_v21, 16 }
 0x3c8   : > { %4571 = vst.msk [vmem:[#allocation3 + $0x74] sm:$0xf] %vm4541_vm10, %v4492_v62  ;;  %v6652_v53 = vrot.slane %v6650_v10, 5  ;;  %v6656_v49 = vrot.slane %v6654_v30, 4  ;;  %vm5553_vm13 = vcmp.ge.f32.partialorder %v5521_v44, 0.0  ;;  %v5589_v54 = vmul.f32 %v10634_v20, %v5521_v44 }
 0x3c9   : > { %v5902_v39 = vsel %vm9190_vm14, %v8411_v32, %v5901_v38  ;;  %v5907_v43 = vrot.slane %v5905_v56, 7  ;;  %v5908_v10 = vshll.u32 %v5724_v21, 16  ;;  %v5903_v62 = vrot.slane %v5898_v18, 4  ;;  %v5131_v18 = vpop.f32.mrf.mxu0 }
 0x3ca   : > { %v6653_v27 = vsel %vm9147_vm11, %v6648_v42, %v6652_v53  ;;  %v6657_v0 = vor.u32 %v6656_v49, %v6652_v53  ;;  %v5621_v19 = vsel %vm5553_vm13, %v5521_v44, %v5589_v54  ;;  %v6686_v44 = vrot.slane %v6684_v23, 5  ;;  %6202 = vst.msk [vmem:[#allocation3 + $0x30] sm:$0xf] %vm432_vm7, %v5902_v39  ;;  %v5725_v54 = vld [vmem:[#allocation2 + $0x70] sm:$0x8] }
 0x3cb   : > { %6952 = vrot.lane.b32.xlu0 %v6653_v27, %s8927_s24  ;;  %v5653_v8 = vpack.c.bf16 %v5621_v19, %v5621_v19  ;;  %v4498_v57 = vpop.permute.xlu2 %4497  ;;  %v5910_v42 = vor.u32 %v5908_v10, %v5907_v43  ;;  %v5913_v27 = vshrl.u32 %v5725_v54, 16 }
 0x3cc   : > { %v6658_v34 = vrot.slane %v6657_v0, 4  ;;  %v6240_v6 = vld [vmem:[#allocation2 + $0x74] sm:$0xf] }
 0x3cd   : > { %v6463_v15 = vld [vmem:[#allocation2 + $0x74] sm:$0xf]  ;;  %5685 = vst.msk [vmem:[#allocation2 + $0x78] sm:$0xf] %vm432_vm7, %v5653_v8  ;;  %6326 = vrot.lane.b32.xlu2 %v6240_v6, %s8928_s16  ;;  %v3865_v55 = vpop.permute.xlu0 %3864  ;;  %v5911_v49 = vsel %vm9190_vm14, %v5903_v62, %v5910_v42  ;;  %v8412_v8 = vrot.slane %v5913_v27, 11 }
 0x3ce   : > { %v6663_v25 = vsel %vm9147_vm11, %v6658_v34, %v6662_v48  ;;  %v6665_v13 = vshrl.u32 %v6463_v15, 16  ;;  %v6668_v28 = vshll.u32 %v6463_v15, 16  ;;  %3942 = vst.msk [vmem:[#allocation3 + $0x7c] sm:$0xf] %vm3910_vm5, %v3865_v55  ;;  %v5726_v30 = vld [vmem:[#allocation2 + $0x74] sm:$0xf] }
 0x3cf   : > { %6954 = vrot.lane.b32.xlu1 %v6663_v25, %s8927_s24  ;;  %v8717_v63 = vld [vmem:[#allocation3 + $0x70] sm:$0xff]  ;;  %4573 = vst.msk [vmem:[#allocation3 + $0x7c] sm:$0xf] %vm4541_vm10, %v4496_v9  ;;  %v5918_v58 = vshrl.u32 %v5726_v30, 16  ;;  %v5921_v48 = vshll.u32 %v5726_v30, 16 }
 0x3d0   : > { %v8696_v45 = vld [vmem:[#allocation3 + $0x70] sm:$0xff]  ;;  %v6667_v46 = vrot.slane %v6665_v13, 4  ;;  %v6670_v31 = vrot.slane %v6668_v28, 5  ;;  %6203 = vst.msk [vmem:[#allocation3 + $0x34] sm:$0xf] %vm432_vm7, %v5911_v49 }
 0x3d1   : > { %v8738_v61 = vld [vmem:[#allocation3 + $0x70] sm:$0xff]  ;;  %8182 = vmatmul.msk.bf16.gmra.mxu3 %vm4783_vm8, %v8717_v63  ;;  %v5920_v0 = vrot.slane %v5918_v58, 7  ;;  %v5757_v13 = vld [vmem:[#allocation2 + $0x118] sm:$0xf]  ;;  %v5134_v56 = vpop.f32.mrf.mxu0 }
 0x3d2   : > { %8287 = vmatmul.msk.bf16.gmra.mxu0 %vm4783_vm8, %v8696_v45  ;;  %v6671_v41 = vor.u32 %v6670_v31, %v6667_v46  ;;  %v5756_v55 = vld [vmem:[#allocation2 + $0x114] sm:$0xf]  ;;  %v6150_v21 = vshll.u32 %v5757_v13, 16 }
 0x3d3   : > { %8401 = vmatmul.msk.bf16.gmra.mxu1 %vm4783_vm8, %v8738_v61  ;;  %v4494_v29 = vpop.permute.xlu1 %4493  ;;  %v3873_v47 = vpop.permute.xlu2 %3872  ;;  %v5923_v34 = vor.u32 %v5921_v48, %v5920_v0  ;;  %v6138_v45 = vshrl.u32 %v5756_v55, 16  ;;  %v6147_v61 = vshrl.u32 %v5757_v13, 16  ;;  %v5925_v46 = vrot.slane %v5920_v0, 4 }
 0x3d4   : > { %4572 = vst.msk [vmem:[#allocation3 + $0x78] sm:$0xf] %vm4541_vm10, %v4494_v29  ;;  %v6241_v36 = vld [vmem:[#allocation2 + $0x78] sm:$0xf]  ;;  %v6672_v35 = vrot.slane %v6671_v41, 4  ;;  %v6141_v41 = vshll.u32 %v5756_v55, 16 }
 0x3d5   : > { %v6464_v5 = vld [vmem:[#allocation2 + $0x78] sm:$0xf]  ;;  %6328 = vrot.lane.b32.xlu0 %v6241_v36, %s8928_s16  ;;  %v3867_v40 = vpop.permute.xlu0 %3866  ;;  %3946 = vst.msk [vmem:[#allocation3 + $0x8c] sm:$0xf] %vm3910_vm5, %v3873_v47  ;;  %v5924_v15 = vsel %vm9190_vm14, %v8412_v8, %v5923_v34  ;;  %v6140_v22 = vrot.slane %v6138_v45, 7  ;;  %v6149_v4 = vrot.slane %v6147_v61, 7  ;;  %v4876_v36 = vpop.f32.mrf.mxu3 }
 0x3d6   : > { %v6674_v16 = vshll.u32 %v6464_v5, 16  ;;  %v6678_v33 = vshrl.u32 %v6464_v5, 16  ;;  %3943 = vst.msk [vmem:[#allocation3 + $0x80] sm:$0xf] %vm3910_vm5, %v3867_v40  ;;  %v5727_v6 = vld [vmem:[#allocation2 + $0x78] sm:$0xf]  ;;  %v5130_v43 = vadd.f32 %v5129_v14, %v4876_v36 }
 0x3d7   : > { %4574 = vst.msk [vmem:[#allocation3 + $0x80] sm:$0xf] %vm4541_vm10, %v4498_v57  ;;  %v5927_v26 = vshrl.u32 %v5727_v6, 16  ;;  %v5930_v63 = vshll.u32 %v5727_v6, 16  ;;  %v5755_v57 = vld [vmem:[#allocation2 + $0x110] sm:$0x8]  ;;  %v6143_v23 = vor.u32 %v6141_v41, %v6140_v22 }
 0x3d8   : > { %v6676_v37 = vrot.slane %v6674_v16, 5  ;;  %v6680_v12 = vrot.slane %v6678_v33, 4  ;;  %6204 = vst.msk [vmem:[#allocation3 + $0x38] sm:$0xf] %vm432_vm7, %v5924_v15  ;;  %v6133_v51 = vshrl.u32 %v5755_v57, 16  ;;  %v6145_v40 = vrot.slane %v6140_v22, 4 }
 0x3d9   : > { %v5929_v52 = vrot.slane %v5927_v26, 7  ;;  %v6152_v16 = vor.u32 %v6150_v21, %v6149_v4  ;;  %v6468_v45 = vld [vmem:[#allocation2 + $0x8c] sm:$0x1] }
 0x3da   : > { %v6677_v50 = vsel %vm9147_vm11, %v6672_v35, %v6676_v37  ;;  %v6681_v11 = vor.u32 %v6680_v12, %v6676_v37  ;;  %v8422_v33 = vrot.slane %v6133_v51, 11 }
 0x3db   : > { %6956 = vrot.lane.b32.xlu1 %v6677_v50, %s8927_s24  ;;  %v8718_v3 = vld [vmem:[#allocation3 + $0x78] sm:$0xff]  ;;  %v5932_v31 = vor.u32 %v5930_v63, %v5929_v52  ;;  %v6153_v35 = vsel %vm9190_vm14, %v6145_v40, %v6152_v16 }
 0x3dc   : > { %v6682_v53 = vrot.slane %v6681_v11, 4  ;;  %v8697_v19 = vld [vmem:[#allocation3 + $0x78] sm:$0xff]  ;;  %v6144_v12 = vsel %vm9190_vm14, %v8422_v33, %v6143_v23  ;;  %v5136_v11 = vpop.f32.mrf.mxu0 }
 0x3dd   : > { %v3869_v9 = vpop.permute.xlu1 %3868  ;;  %v8739_v60 = vld [vmem:[#allocation3 + $0x78] sm:$0xff]  ;;  %v5933_v17 = vsel %vm9190_vm14, %v5925_v46, %v5932_v31  ;;  %v4878_v10 = vpop.f32.mrf.mxu3 }
 0x3de   : > { %v6687_v59 = vsel %vm9147_vm11, %v6682_v53, %v6686_v44  ;;  %3944 = vst.msk [vmem:[#allocation3 + $0x84] sm:$0xf] %vm3910_vm5, %v3869_v9  ;;  %v5132_v53 = vadd.f32 %v5131_v18, %v4878_v10 }
 0x3df   : > { %6958 = vrot.lane.b32.xlu2 %v6687_v59, %s8927_s24  ;;  %6205 = vst.msk [vmem:[#allocation3 + $0x3c] sm:$0xf] %vm432_vm7, %v5933_v17  ;;  %v6708_v17 = vshll.u32 %v6468_v45, 16 }
 0x3e1   : > { %8183 = vmatmul.msk.bf16.gmra.mxu3 %vm4783_vm8, %v8718_v3 }
 0x3e2   : > { %8288 = vmatmul.msk.bf16.gmra.mxu0 %vm4783_vm8, %v8697_v19 }
 0x3e3   : > { %8402 = vmatmul.msk.bf16.gmra.mxu1 %vm4783_vm8, %v8739_v60 }
 0x3e5   : > { %v3871_v25 = vpop.permute.xlu1 %3870 }
 0x3e6   : > { %3945 = vst.msk [vmem:[#allocation3 + $0x88] sm:$0xf] %vm3910_vm5, %v3871_v25 }
 0x3e7   : > { %v4500_v28 = vpop.permute.xlu0 %4499 }
 0x3e8   : > { %4575 = vst.msk [vmem:[#allocation3 + $0x84] sm:$0xf] %vm4541_vm10, %v4500_v28 }
 0x3ed   : > { %v4504_v29 = vpop.permute.xlu1 %4503 }
 0x3ee   : > { %4577 = vst.msk [vmem:[#allocation3 + $0x8c] sm:$0xf] %vm4541_vm10, %v4504_v29 }
 0x3ef   : > { %v8719_v32 = vld [vmem:[#allocation3 + $0x80] sm:$0xff]  ;;  %v4502_v5 = vpop.permute.xlu0 %4501 }
 0x3f0   : > { %v8740_v38 = vld [vmem:[#allocation3 + $0x80] sm:$0xff]  ;;  %4576 = vst.msk [vmem:[#allocation3 + $0x88] sm:$0xf] %vm4541_vm10, %v4502_v5 }
 0x3f1   : > { %8184 = vmatmul.msk.bf16.gmra.mxu3 %vm4783_vm8, %v8719_v32 }
 0x3f3   : > { %8403 = vmatmul.msk.bf16.gmra.mxu1 %vm4783_vm8, %v8740_v38 }
 0x3f4   : > { %v6315_v37 = vpop.permute.xlu2 %6314 }
 0x3f5   : > { %6414 = vst.msk [vmem:[#allocation3 + $0x20] sm:$0xf] %vm3910_vm5, %v6315_v37  ;;  %v8741_v39 = vld [vmem:[#allocation3 + $0x88] sm:$0xf0]  ;;  %v6710_v37 = vrot.slane %v6708_v17, 5 }
 0x3f6   : > { %6225 = vst.msk [vmem:[#allocation3 + $0x8c] sm:$0xf] %vm432_vm7, %v6153_v35 }
 0x3f7   : > { %v8363_v47 = vld [vmem:[#allocation3 + $0x88] sm:$0xf] }
 0x3f8   : > { %6224 = vst.msk [vmem:[#allocation3 + $0x88] sm:$0xf] %vm432_vm7, %v6144_v12  ;;  %v8364_v62 = vor.u32 %v8741_v39, %v8363_v47 }
 0x3fa   : > { %v5139_v27 = vpop.f32.mrf.mxu0 }
 0x3fb   : > { %v5427_v30 = vpop.f32.mrf.mxu1 }
 0x3fc   : > { %v5486_v50 = vadd.f32 %v5427_v30, %v5130_v43 }
 0x3fe   : > { %v5522_v44 = vadd.f32 %v10612_v1, %v5486_v50 }
 0x3ff   : > { %v4881_v58 = vpop.f32.mrf.mxu3 }
 0x400   : > { %vm5554_vm15 = vcmp.ge.f32.partialorder %v5522_v44, 0.0  ;;  %v5590_v42 = vmul.f32 %v10634_v20, %v5522_v44  ;;  %v5135_v15 = vadd.f32 %v5134_v56, %v4881_v58 }
 0x402   : > { %v5622_v49 = vsel %vm5554_vm15, %v5522_v44, %v5590_v42  ;;  %v10713_v25 = vpop.f32.mrf.mxu0 }
 0x403   : > { %v5654_v59 = vpack.c.bf16 %v5622_v49, %v5622_v49  ;;  %8404 = vmatmul.msk.bf16.gmra.mxu1 %vm4783_vm8, %v8364_v62  ;;  %v5429_v9 = vpop.f32.mrf.mxu1  ;;  %v5728_v49 = vld [vmem:[#allocation2 + $0x80] sm:$0x8] }
 0x404   : > { %v5487_v54 = vadd.f32 %v5429_v9, %v5132_v53  ;;  %v5935_v9 = vshrl.u32 %v5728_v49, 16 }
 0x405   : > { %5686 = vst.msk [vmem:[#allocation2 + $0x84] sm:$0xf] %vm432_vm7, %v5654_v59 }
 0x406   : > { %v5523_v0 = vadd.f32 %v10612_v1, %v5487_v54  ;;  %v6947_v55 = vpop.permute.xlu2 %6946 }
 0x407   : > { %v4883_v19 = vpop.f32.mrf.mxu3 }
 0x408   : > { %vm5555_vm3 = vcmp.ge.f32.partialorder %v5523_v0, 0.0  ;;  %v5591_v48 = vmul.f32 %v10634_v20, %v5523_v0  ;;  %v5137_v22 = vadd.f32 %v5136_v11, %v4883_v19 }
 0x40a   : > { %v5623_v14 = vsel %vm5555_vm3, %v5523_v0, %v5591_v48 }
 0x40b   : > { %v5655_v3 = vpack.c.bf16 %v5623_v14, %v5623_v14  ;;  %v8413_v14 = vrot.slane %v5935_v9, 11 }
 0x40c   : > { %v6242_v60 = vld [vmem:[#allocation2 + $0x84] sm:$0xf] }
 0x40d   : > { %v6466_v8 = vld [vmem:[#allocation2 + $0x84] sm:$0xf]  ;;  %5687 = vst.msk [vmem:[#allocation2 + $0x88] sm:$0xf] %vm432_vm7, %v5655_v3  ;;  %6330 = vrot.lane.b32.xlu0 %v6242_v60, %s8928_s16 }
 0x40e   : > { %v6689_v34 = vshrl.u32 %v6466_v8, 16  ;;  %v6692_v6 = vshll.u32 %v6466_v8, 16  ;;  %v5729_v12 = vld [vmem:[#allocation2 + $0x84] sm:$0xf] }
 0x40f   : > { %v10719_v38 = vpop.f32.mrf.mxu0  ;;  %v5940_v62 = vshrl.u32 %v5729_v12, 16 }
 0x410   : > { %v5432_v26 = vpop.f32.mrf.mxu1  ;;  %v6691_v28 = vrot.slane %v6689_v34, 4  ;;  %v6694_v52 = vrot.slane %v6692_v6, 5 }
 0x411   : > { %v5488_v13 = vadd.f32 %v5432_v26, %v5135_v15  ;;  %v5942_v54 = vrot.slane %v5940_v62, 7 }
 0x412   : > { %v6695_v18 = vor.u32 %v6694_v52, %v6691_v28  ;;  %v6949_v36 = vpop.permute.xlu2 %6948 }
 0x413   : > { %v5524_v63 = vadd.f32 %v10612_v1, %v5488_v13 }
 0x414   : > { %v4886_v46 = vpop.f32.mrf.mxu3  ;;  %v6243_v31 = vld [vmem:[#allocation2 + $0x88] sm:$0xf]  ;;  %v6317_v21 = vpop.permute.xlu0 %6316  ;;  %v6696_v40 = vrot.slane %v6695_v18, 4 }
 0x415   : > { %vm5556_vm4 = vcmp.ge.f32.partialorder %v5524_v63, 0.0  ;;  %v5592_v61 = vmul.f32 %v10634_v20, %v5524_v63  ;;  %6332 = vrot.lane.b32.xlu1 %v6243_v31, %s8928_s16  ;;  %v6467_v57 = vld [vmem:[#allocation2 + $0x88] sm:$0xf]  ;;  %6415 = vst.msk [vmem:[#allocation3 + $0x24] sm:$0xf] %vm3910_vm5, %v6317_v21  ;;  %v5140_v30 = vadd.f32 %v5139_v27, %v4886_v46  ;;  %v5943_v27 = vshll.u32 %v5729_v12, 16 }
 0x416   : > { %v6698_v29 = vshll.u32 %v6467_v57, 16  ;;  %v6702_v51 = vshrl.u32 %v6467_v57, 16  ;;  %7045 = vst.msk [vmem:[#allocation3 + $0x24] sm:$0xf] %vm4541_vm10, %v6947_v55  ;;  %v5730_v19 = vld [vmem:[#allocation2 + $0x88] sm:$0xf] }
 0x417   : > { %v5624_v4 = vsel %vm5556_vm4, %v5524_v63, %v5592_v61  ;;  %v5146_v0 = vpop.f32.mrf.mxu0  ;;  %v5945_v3 = vor.u32 %v5943_v27, %v5942_v54  ;;  %v5949_v55 = vshrl.u32 %v5730_v19, 16  ;;  %v5952_v61 = vshll.u32 %v5730_v19, 16 }
 0x418   : > { %v5656_v41 = vpack.c.bf16 %v5624_v4, %v5624_v4  ;;  %v5434_v32 = vpop.f32.mrf.mxu1  ;;  %v6700_v16 = vrot.slane %v6698_v29, 5  ;;  %v6704_v33 = vrot.slane %v6702_v51, 4  ;;  %v5947_v31 = vrot.slane %v5942_v54, 4 }
 0x419   : > { %v5489_v5 = vadd.f32 %v5434_v32, %v5137_v22  ;;  %v5946_v34 = vsel %vm9190_vm14, %v8413_v14, %v5945_v3  ;;  %v5951_v45 = vrot.slane %v5949_v55, 7 }
 0x41a   : > { %5688 = vst.msk [vmem:[#allocation2 + $0x94] sm:$0xf] %vm432_vm7, %v5656_v41  ;;  %v6701_v56 = vsel %vm9147_vm11, %v6696_v40, %v6700_v16  ;;  %v6705_v35 = vor.u32 %v6704_v33, %v6700_v16  ;;  %v6945_v39 = vpop.permute.xlu1 %6944  ;;  %v5731_v33 = vld [vmem:[#allocation2 + $0x90] sm:$0x8] }
 0x41b   : > { %v5525_v23 = vadd.f32 %v10612_v1, %v5489_v5  ;;  %6960 = vrot.lane.b32.xlu2 %v6701_v56, %s8927_s24  ;;  %7044 = vst.msk [vmem:[#allocation3 + $0x20] sm:$0xf] %vm4541_vm10, %v6945_v39  ;;  %v5954_v18 = vor.u32 %v5952_v61, %v5951_v45 }
 0x41c   : > { %v4888_v43 = vpop.f32.mrf.mxu3  ;;  %v6706_v10 = vrot.slane %v6705_v35, 4  ;;  %v6319_v44 = vpop.permute.xlu0 %6318  ;;  %6206 = vst.msk [vmem:[#allocation3 + $0x40] sm:$0xf] %vm432_vm7, %v5946_v34  ;;  %v5957_v35 = vshrl.u32 %v5731_v33, 16 }
 0x41d   : > { %vm5557_vm9 = vcmp.ge.f32.partialorder %v5525_v23, 0.0  ;;  %v5593_v47 = vmul.f32 %v10634_v20, %v5525_v23  ;;  %6416 = vst.msk [vmem:[#allocation3 + $0x28] sm:$0xf] %vm3910_vm5, %v6319_v44  ;;  %v5142_v6 = vadd.f32 %v10713_v25, %v4888_v43  ;;  %v5955_v22 = vsel %vm9190_vm14, %v5947_v31, %v5954_v18  ;;  %v5734_v31 = vld [vmem:[#allocation2 + $0xa0] sm:$0x8] }
 0x41e   : > { %v6711_v11 = vsel %vm9147_vm11, %v6706_v10, %v6710_v37  ;;  %7046 = vst.msk [vmem:[#allocation3 + $0x28] sm:$0xf] %vm4541_vm10, %v6949_v36  ;;  %v8414_v43 = vrot.slane %v5957_v35, 11 }
 0x41f   : > { %v5625_v50 = vsel %vm5557_vm9, %v5525_v23, %v5593_v47  ;;  %6962 = vrot.lane.b32.xlu0 %v6711_v11, %s8927_s24  ;;  %v6325_v58 = vpop.permute.xlu2 %6324  ;;  %v5149_v25 = vpop.f32.mrf.mxu0  ;;  %6207 = vst.msk [vmem:[#allocation3 + $0x44] sm:$0xf] %vm432_vm7, %v5955_v22 }
 0x420   : > { %v5657_v42 = vpack.c.bf16 %v5625_v50, %v5625_v50  ;;  %v5437_v53 = vpop.f32.mrf.mxu1  ;;  %6419 = vst.msk [vmem:[#allocation3 + $0x34] sm:$0xf] %vm3910_vm5, %v6325_v58 }
 0x421   : > { %v5490_v59 = vadd.f32 %v5437_v53, %v5140_v30  ;;  %v5732_v5 = vld [vmem:[#allocation2 + $0x94] sm:$0xf] }
 0x422   : > { %5689 = vst.msk [vmem:[#allocation2 + $0x98] sm:$0xf] %vm432_vm7, %v5657_v42  ;;  %v5962_v16 = vshrl.u32 %v5732_v5, 16  ;;  %v5965_v37 = vshll.u32 %v5732_v5, 16 }
 0x423   : > { %v5526_v48 = vadd.f32 %v10612_v1, %v5490_v59 }
 0x424   : > { %v4891_v8 = vpop.f32.mrf.mxu3  ;;  %v6321_v26 = vpop.permute.xlu1 %6320  ;;  %v5964_v56 = vrot.slane %v5962_v16, 7 }
 0x425   : > { %vm5558_vm1 = vcmp.ge.f32.partialorder %v5526_v48, 0.0  ;;  %v5594_v60 = vmul.f32 %v10634_v20, %v5526_v48  ;;  %6417 = vst.msk [vmem:[#allocation3 + $0x2c] sm:$0xf] %vm3910_vm5, %v6321_v26  ;;  %v5145_v4 = vadd.f32 %v10719_v38, %v4891_v8 }
 0x426   : > { %v5967_v50 = vor.u32 %v5965_v37, %v5964_v56  ;;  %v5969_v14 = vrot.slane %v5964_v56, 4 }
 0x427   : > { %v5626_v15 = vsel %vm5558_vm1, %v5526_v48, %v5594_v60  ;;  %v6327_v52 = vpop.permute.xlu2 %6326  ;;  %v5151_v12 = vpop.f32.mrf.mxu0 }
 0x428   : > { %v5658_v13 = vpack.c.bf16 %v5626_v15, %v5626_v15  ;;  %v5439_v28 = vpop.f32.mrf.mxu1  ;;  %6420 = vst.msk [vmem:[#allocation3 + $0x38] sm:$0xf] %vm3910_vm5, %v6327_v52  ;;  %v5968_v44 = vsel %vm9190_vm14, %v8414_v43, %v5967_v50 }
 0x429   : > { %v5491_v63 = vadd.f32 %v5439_v28, %v5142_v6  ;;  %v5733_v42 = vld [vmem:[#allocation2 + $0x98] sm:$0xf]  ;;  %6208 = vst.msk [vmem:[#allocation3 + $0x48] sm:$0xf] %vm432_vm7, %v5968_v44 }
 0x42a   : > { %5690 = vst.msk [vmem:[#allocation2 + $0xa4] sm:$0xf] %vm432_vm7, %v5658_v13  ;;  %v5971_v53 = vshrl.u32 %v5733_v42, 16  ;;  %v5974_v54 = vshll.u32 %v5733_v42, 16 }
 0x42b   : > { %v5527_v46 = vadd.f32 %v10612_v1, %v5491_v63 }
 0x42c   : > { %v4893_v17 = vpop.f32.mrf.mxu3  ;;  %v5973_v9 = vrot.slane %v5971_v53, 7 }
 0x42d   : > { %vm5559_vm12 = vcmp.ge.f32.partialorder %v5527_v46, 0.0  ;;  %v5595_v57 = vmul.f32 %v10634_v20, %v5527_v46  ;;  %v5147_v39 = vadd.f32 %v5146_v0, %v4893_v17 }
 0x42e   : > { %v6951_v41 = vpop.permute.xlu0 %6950  ;;  %v5976_v3 = vor.u32 %v5974_v54, %v5973_v9 }
 0x42f   : > { %v5627_v21 = vsel %vm5559_vm12, %v5527_v46, %v5595_v57  ;;  %v6323_v32 = vpop.permute.xlu1 %6322  ;;  %7047 = vst.msk [vmem:[#allocation3 + $0x2c] sm:$0xf] %vm4541_vm10, %v6951_v41  ;;  %v5154_v19 = vpop.f32.mrf.mxu0 }
 0x430   : > { %v5659_v29 = vpack.c.bf16 %v5627_v21, %v5627_v21  ;;  %v5442_v51 = vpop.f32.mrf.mxu1  ;;  %6418 = vst.msk [vmem:[#allocation3 + $0x30] sm:$0xf] %vm3910_vm5, %v6323_v32  ;;  %v5977_v13 = vsel %vm9190_vm14, %v5969_v14, %v5976_v3  ;;  %v5737_v14 = vld [vmem:[#allocation2 + $0xb0] sm:$0x8] }
 0x431   : > { %v5492_v36 = vadd.f32 %v5442_v51, %v5145_v4  ;;  %6209 = vst.msk [vmem:[#allocation3 + $0x4c] sm:$0xf] %vm432_vm7, %v5977_v13  ;;  %v5735_v46 = vld [vmem:[#allocation2 + $0xa4] sm:$0xf]  ;;  %v5979_v51 = vshrl.u32 %v5734_v31, 16 }
 0x432   : > { %5691 = vst.msk [vmem:[#allocation2 + $0xa8] sm:$0xf] %vm432_vm7, %v5659_v29  ;;  %v5984_v41 = vshrl.u32 %v5735_v46, 16  ;;  %v5987_v37 = vshll.u32 %v5735_v46, 16  ;;  %v6480_v46 = vld [vmem:[#allocation2 + $0xcc] sm:$0x1] }
 0x433   : > { %v5528_v40 = vadd.f32 %v10612_v1, %v5492_v36  ;;  %v8415_v56 = vrot.slane %v5979_v51, 11 }
 0x434   : > { %v4896_v23 = vpop.f32.mrf.mxu3  ;;  %v5986_v35 = vrot.slane %v5984_v41, 7 }
 0x435   : > { %vm5560_vm2 = vcmp.ge.f32.partialorder %v5528_v40, 0.0  ;;  %v5596_v38 = vmul.f32 %v10634_v20, %v5528_v40  ;;  %v5150_v0 = vadd.f32 %v5149_v25, %v4896_v23 }
 0x436   : > { %v5989_v44 = vor.u32 %v5987_v37, %v5986_v35  ;;  %v5991_v13 = vrot.slane %v5986_v35, 4 }
 0x437   : > { %v5628_v47 = vsel %vm5560_vm2, %v5528_v40, %v5596_v38  ;;  %v5156_v5 = vpop.f32.mrf.mxu0 }
 0x438   : > { %v5660_v10 = vpack.c.bf16 %v5628_v47, %v5628_v47  ;;  %v5444_v30 = vpop.f32.mrf.mxu1 }
 0x439   : > { %v5493_v11 = vadd.f32 %v5444_v30, %v5147_v39  ;;  %v6959_v40 = vpop.permute.xlu2 %6958  ;;  %v5736_v16 = vld [vmem:[#allocation2 + $0xa8] sm:$0xf] }
 0x43a   : > { %5692 = vst.msk [vmem:[#allocation2 + $0xb4] sm:$0xf] %vm432_vm7, %v5660_v10  ;;  %v5993_v10 = vshrl.u32 %v5736_v16, 16 }
 0x43b   : > { %v5529_v62 = vadd.f32 %v10612_v1, %v5493_v11 }
 0x43c   : > { %v4898_v58 = vpop.f32.mrf.mxu3  ;;  %v5995_v9 = vrot.slane %v5993_v10, 7 }
 0x43d   : > { %vm5561_vm6 = vcmp.ge.f32.partialorder %v5529_v62, 0.0  ;;  %v5597_v49 = vmul.f32 %v10634_v20, %v5529_v62  ;;  %v6953_v59 = vpop.permute.xlu0 %6952  ;;  %v5152_v18 = vadd.f32 %v5151_v12, %v4898_v58 }
 0x43e   : > { %7048 = vst.msk [vmem:[#allocation3 + $0x30] sm:$0xf] %vm4541_vm10, %v6953_v59  ;;  %v5990_v59 = vsel %vm9190_vm14, %v8415_v56, %v5989_v44 }
 0x43f   : > { %v5629_v27 = vsel %vm5561_vm6, %v5529_v62, %v5597_v49  ;;  %6210 = vst.msk [vmem:[#allocation3 + $0x50] sm:$0xf] %vm432_vm7, %v5990_v59 }
 0x440   : > { %v5661_v48 = vpack.c.bf16 %v5629_v27, %v5629_v27  ;;  %v5447_v60 = vpop.f32.mrf.mxu1 }
 0x441   : > { %v6248_v8 = vld [vmem:[#allocation2 + $0xb4] sm:$0xf]  ;;  %v5494_v6 = vadd.f32 %v5447_v60, %v5150_v0  ;;  %v6955_v15 = vpop.permute.xlu1 %6954  ;;  %v5159_v60 = vpop.f32.mrf.mxu0 }
 0x442   : > { %v6475_v34 = vld [vmem:[#allocation2 + $0xb4] sm:$0xf]  ;;  %5693 = vst.msk [vmem:[#allocation2 + $0xb8] sm:$0xf] %vm432_vm7, %v5661_v48  ;;  %6342 = vrot.lane.b32.xlu0 %v6248_v8, %s8928_s16 }
 0x443   : > { %v6761_v26 = vshrl.u32 %v6475_v34, 16  ;;  %v6764_v55 = vshll.u32 %v6475_v34, 16  ;;  %7049 = vst.msk [vmem:[#allocation3 + $0x34] sm:$0xf] %vm4541_vm10, %v6955_v15  ;;  %v5530_v28 = vadd.f32 %v10612_v1, %v5494_v6  ;;  %v5738_v30 = vld [vmem:[#allocation2 + $0xb4] sm:$0xf] }
 0x444   : > { %v4901_v61 = vpop.f32.mrf.mxu3  ;;  %v6006_v0 = vshrl.u32 %v5738_v30, 16  ;;  %v6009_v3 = vshll.u32 %v5738_v30, 16  ;;  %v6001_v6 = vshrl.u32 %v5737_v14, 16 }
 0x445   : > { %v6763_v52 = vrot.slane %v6761_v26, 4  ;;  %v6766_v63 = vrot.slane %v6764_v55, 5  ;;  %vm5562_vm0 = vcmp.ge.f32.partialorder %v5530_v28, 0.0  ;;  %v5598_v45 = vmul.f32 %v10634_v20, %v5530_v28 }
 0x446   : > { %v5155_v50 = vadd.f32 %v5154_v19, %v4901_v61  ;;  %v5996_v19 = vshll.u32 %v5736_v16, 16  ;;  %v6008_v15 = vrot.slane %v6006_v0, 7 }
 0x447   : > { %v5630_v25 = vsel %vm5562_vm0, %v5530_v28, %v5598_v45  ;;  %v6767_v57 = vor.u32 %v6766_v63, %v6763_v52  ;;  %v6329_v22 = vpop.permute.xlu0 %6328  ;;  %v8416_v52 = vrot.slane %v6001_v6, 11 }
 0x448   : > { %v5662_v17 = vpack.c.bf16 %v5630_v25, %v5630_v25  ;;  %v5449_v4 = vpop.f32.mrf.mxu1  ;;  %6421 = vst.msk [vmem:[#allocation3 + $0x3c] sm:$0xf] %vm3910_vm5, %v6329_v22  ;;  %v5998_v28 = vor.u32 %v5996_v19, %v5995_v9  ;;  %v6011_v63 = vor.u32 %v6009_v3, %v6008_v15  ;;  %v6013_v44 = vrot.slane %v6008_v15, 4  ;;  %v10821_v3 = vld [vmem:[%s11140_s7] ss:$0 sm:$0xff] }
 0x449   : > { %v6249_v21 = vld [vmem:[#allocation2 + $0xb8] sm:$0xf]  ;;  %v5495_v32 = vadd.f32 %v5449_v4, %v5152_v18  ;;  %7051 = vst.msk [vmem:[#allocation3 + $0x3c] sm:$0xf] %vm4541_vm10, %v6959_v40  ;;  %v6768_v38 = vrot.slane %v6767_v57, 4 }
 0x44a   : > { %v10771_v29 = vld [vmem:[#allocation2 + $0xb8] sm:$0xf]  ;;  %6344 = vrot.lane.b32.xlu1 %v6249_v21, %s8928_s16  ;;  %5694 = vst.msk [vmem:[#allocation2 + $0xc4] sm:$0xf] %vm432_vm7, %v5662_v17  ;;  %v5999_v31 = vsel %vm9190_vm14, %v5991_v13, %v5998_v28  ;;  %v6012_v4 = vsel %vm9190_vm14, %v8416_v52, %v6011_v63 }
 0x44b   : > { %v6770_v36 = vshll.u32 %v10771_v29, 16  ;;  %v5531_v33 = vadd.f32 %v10612_v1, %v5495_v32  ;;  %v5739_v18 = vld [vmem:[#allocation2 + $0xb8] sm:$0xf]  ;;  %v6774_v25 = vshrl.u32 %v10771_v29, 16  ;;  %6211 = vst.msk [vmem:[#allocation3 + $0x54] sm:$0xf] %vm432_vm7, %v5999_v31 }
 0x44c   : > { %v4903_v47 = vpop.f32.mrf.mxu3  ;;  %6212 = vst.msk [vmem:[#allocation3 + $0x58] sm:$0xf] %vm432_vm7, %v6012_v4  ;;  %v6015_v40 = vshrl.u32 %v5739_v18, 16 }
 0x44d   : > { %v10779_v23 = vrot.slane %v6770_v36, 5  ;;  %vm5563_vm13 = vcmp.ge.f32.partialorder %v5531_v33, 0.0  ;;  %v5599_v12 = vmul.f32 %v10634_v20, %v5531_v33  ;;  %v6957_v39 = vpop.permute.xlu1 %6956  ;;  %v5157_v45 = vadd.f32 %v5156_v5, %v4903_v47  ;;  %v5161_v47 = vpop.f32.mrf.mxu0 }
 0x44e   : > { %7050 = vst.msk [vmem:[#allocation3 + $0x38] sm:$0xf] %vm4541_vm10, %v6957_v39  ;;  %v6804_v5 = vshll.u32 %v6480_v46, 16  ;;  %v10804_v56 = vrot.slane %v6774_v25, 4  ;;  %v6018_v39 = vshll.u32 %v5739_v18, 16 }
 0x44f   : > { %v6773_v43 = vsel %vm9147_vm11, %v6768_v38, %v10779_v23  ;;  %v5631_v11 = vsel %vm5563_vm13, %v5531_v33, %v5599_v12  ;;  %v6017_v12 = vrot.slane %v6015_v40, 7 }
 0x450   : > { %6972 = vrot.lane.b32.xlu2 %v6773_v43, %s8927_s24  ;;  %v5663_v62 = vpack.c.bf16 %v5631_v11, %v5631_v11  ;;  %v5452_v42 = vpop.f32.mrf.mxu1  ;;  %v6777_v30 = vor.u32 %v10804_v56, %v10779_v23 }
 0x451   : > { %v5496_v53 = vadd.f32 %v5452_v42, %v5155_v50  ;;  %v6250_v49 = vld [vmem:[#allocation2 + $0xc4] sm:$0xf] }
 0x452   : > { %v6478_v58 = vld [vmem:[#allocation2 + $0xc4] sm:$0xf]  ;;  %5695 = vst.msk [vmem:[#allocation2 + $0xc8] sm:$0xf] %vm432_vm7, %v5663_v62  ;;  %6346 = vrot.lane.b32.xlu1 %v6250_v49, %s8928_s16  ;;  %v6020_v62 = vor.u32 %v6018_v39, %v6017_v12 }
 0x453   : > { %v6785_v54 = vshrl.u32 %v6478_v58, 16  ;;  %v6788_v27 = vshll.u32 %v6478_v58, 16  ;;  %v5532_v48 = vadd.f32 %v10612_v1, %v5496_v53  ;;  %v5741_v42 = vld [vmem:[#allocation2 + $0xc4] sm:$0xf] }
 0x454   : > { %v4906_v55 = vpop.f32.mrf.mxu3  ;;  %v6031_v13 = vshll.u32 %v5741_v42, 16 }
 0x455   : > { %v6787_v8 = vrot.slane %v6785_v54, 4  ;;  %v6790_v34 = vrot.slane %v6788_v27, 5  ;;  %vm5564_vm15 = vcmp.ge.f32.partialorder %v5532_v48, 0.0  ;;  %v5600_v26 = vmul.f32 %v10634_v20, %v5532_v48  ;;  %v5164_v31 = vpop.f32.mrf.mxu0 }
 0x456   : > { %v5160_v50 = vadd.f32 %v5159_v60, %v4906_v55  ;;  %v6021_v27 = vsel %vm9190_vm14, %v6013_v44, %v6020_v62  ;;  %v6028_v60 = vshrl.u32 %v5741_v42, 16 }
 0x457   : > { %v5632_v61 = vsel %vm5564_vm15, %v5532_v48, %v5600_v26  ;;  %v6791_v22 = vor.u32 %v6790_v34, %v6787_v8  ;;  %6213 = vst.msk [vmem:[#allocation3 + $0x5c] sm:$0xf] %vm432_vm7, %v6021_v27  ;;  %v5740_v8 = vld [vmem:[#allocation2 + $0xc0] sm:$0x8] }
 0x458   : > { %v5664_v57 = vpack.c.bf16 %v5632_v61, %v5632_v61  ;;  %v5454_v17 = vpop.f32.mrf.mxu1  ;;  %v6023_v15 = vshrl.u32 %v5740_v8, 16  ;;  %v6030_v55 = vrot.slane %v6028_v60, 7  ;;  %v6483_v61 = vld [vmem:[#allocation2 + $0xdc] sm:$0x1]  ;;  %v5743_v60 = vld [vmem:[#allocation2 + $0xd0] sm:$0x8] }
 0x459   : > { %v5497_v21 = vadd.f32 %v5454_v17, %v5157_v45  ;;  %v6251_v51 = vld [vmem:[#allocation2 + $0xc8] sm:$0xf]  ;;  %v6792_v16 = vrot.slane %v6791_v22, 4 }
 0x45a   : > { %v6479_v41 = vld [vmem:[#allocation2 + $0xc8] sm:$0xf]  ;;  %5696 = vst.msk [vmem:[#allocation2 + $0xd4] sm:$0xf] %vm432_vm7, %v5664_v57  ;;  %6348 = vrot.lane.b32.xlu2 %v6251_v51, %s8928_s16  ;;  %v8417_v52 = vrot.slane %v6023_v15, 11  ;;  %v6033_v46 = vor.u32 %v6031_v13, %v6030_v55 }
 0x45b   : > { %v6794_v32 = vshll.u32 %v6479_v41, 16  ;;  %v6798_v36 = vshrl.u32 %v6479_v41, 16  ;;  %v5533_v29 = vadd.f32 %v10612_v1, %v5497_v21  ;;  %v6806_v1 = vrot.slane %v6804_v5, 5  ;;  %v5742_v18 = vld [vmem:[#allocation2 + $0xc8] sm:$0xf] }
 0x45c   : > { %v4908_v37 = vpop.f32.mrf.mxu3  ;;  %v6034_v51 = vsel %vm9190_vm14, %v8417_v52, %v6033_v46  ;;  %v6037_v5 = vshrl.u32 %v5742_v18, 16  ;;  %v6486_v13 = vld [vmem:[#allocation2 + $0xec] sm:$0x1] }
 0x45d   : > { %v6796_v33 = vrot.slane %v6794_v32, 5  ;;  %v6800_v38 = vrot.slane %v6798_v36, 4  ;;  %vm5565_vm3 = vcmp.ge.f32.partialorder %v5533_v29, 0.0  ;;  %v5601_v35 = vmul.f32 %v10634_v20, %v5533_v29  ;;  %6214 = vst.msk [vmem:[#allocation3 + $0x60] sm:$0xf] %vm432_vm7, %v6034_v51 }
 0x45e   : > { %v5162_v63 = vadd.f32 %v5161_v47, %v4908_v37  ;;  %v6828_v32 = vshll.u32 %v6483_v61, 16  ;;  %v6040_v37 = vshll.u32 %v5742_v18, 16 }
 0x45f   : > { %v6797_v43 = vsel %vm9147_vm11, %v6792_v16, %v6796_v33  ;;  %v6801_v10 = vor.u32 %v6800_v38, %v6796_v33  ;;  %v5633_v11 = vsel %vm5565_vm3, %v5533_v29, %v5601_v35  ;;  %v10836_v33 = vld [vmem:[%s11141_s8] ss:$0 sm:$0xff]  ;;  %v6039_v35 = vrot.slane %v6037_v5, 7 }
 0x460   : > { %6976 = vrot.lane.b32.xlu0 %v6797_v43, %s8927_s24  ;;  %v5665_v53 = vpack.c.bf16 %v5633_v11, %v5633_v11  ;;  %v5457_v49 = vpop.f32.mrf.mxu1  ;;  %v6830_v47 = vrot.slane %v6828_v32, 5 }
 0x461   : > { %v6802_v58 = vrot.slane %v6801_v10, 4  ;;  %v5498_v59 = vadd.f32 %v5457_v49, %v5160_v50  ;;  %v6252_v9 = vld [vmem:[#allocation2 + $0xd4] sm:$0xf]  ;;  %v6035_v50 = vrot.slane %v6030_v55, 4  ;;  %v6042_v11 = vor.u32 %v6040_v37, %v6039_v35 }
 0x462   : > { %v6481_v54 = vld [vmem:[#allocation2 + $0xd4] sm:$0xf]  ;;  %5697 = vst.msk [vmem:[#allocation2 + $0xd8] sm:$0xf] %vm432_vm7, %v5665_v53  ;;  %6350 = vrot.lane.b32.xlu2 %v6252_v9, %s8928_s16 }
 0x463   : > { %v6807_v0 = vsel %vm9147_vm11, %v6802_v58, %v6806_v1  ;;  %v6809_v48 = vshrl.u32 %v6481_v54, 16  ;;  %v6812_v14 = vshll.u32 %v6481_v54, 16  ;;  %v5534_v19 = vadd.f32 %v10821_v3, %v5498_v59  ;;  %v5744_v43 = vld [vmem:[#allocation2 + $0xd4] sm:$0xf]  ;;  %v5166_v54 = vpop.f32.mrf.mxu0 }
 0x464   : > { %6978 = vrot.lane.b32.xlu1 %v6807_v0, %s8927_s24  ;;  %v4911_v28 = vpop.f32.mrf.mxu3  ;;  %v6043_v9 = vsel %vm9190_vm14, %v6035_v50, %v6042_v11  ;;  %v6053_v55 = vshll.u32 %v5744_v43, 16 }
 0x465   : > { %v6811_v34 = vrot.slane %v6809_v48, 4  ;;  %v6814_v6 = vrot.slane %v6812_v14, 5  ;;  %vm5566_vm4 = vcmp.ge.f32.partialorder %v5534_v19, 0.0  ;;  %v5602_v26 = vmul.f32 %v10634_v20, %v5534_v19  ;;  %6215 = vst.msk [vmem:[#allocation3 + $0x64] sm:$0xf] %vm432_vm7, %v6043_v9 }
 0x466   : > { %v5165_v10 = vadd.f32 %v5164_v31, %v4911_v28  ;;  %v6050_v14 = vshrl.u32 %v5744_v43, 16 }
 0x467   : > { %v5634_v45 = vsel %vm5566_vm4, %v5534_v19, %v5602_v26  ;;  %v6815_v17 = vor.u32 %v6814_v6, %v6811_v34  ;;  %v6045_v6 = vshrl.u32 %v5743_v60, 16 }
 0x468   : > { %v5666_v25 = vpack.c.bf16 %v5634_v45, %v5634_v45  ;;  %v5459_v57 = vpop.f32.mrf.mxu1  ;;  %v6052_v26 = vrot.slane %v6050_v14, 7 }
 0x469   : > { %v5499_v22 = vadd.f32 %v5459_v57, %v5162_v63  ;;  %v6253_v4 = vld [vmem:[#allocation2 + $0xd8] sm:$0xf]  ;;  %v6816_v29 = vrot.slane %v6815_v17, 4  ;;  %v8418_v28 = vrot.slane %v6045_v6, 11 }
 0x46a   : > { %v6482_v21 = vld [vmem:[#allocation2 + $0xd8] sm:$0xf]  ;;  %5698 = vst.msk [vmem:[#allocation2 + $0xe4] sm:$0xf] %vm432_vm7, %v5666_v25  ;;  %6352 = vrot.lane.b32.xlu0 %v6253_v4, %s8928_s16  ;;  %v6055_v46 = vor.u32 %v6053_v55, %v6052_v26 }
 0x46b   : > { %v6818_v20 = vshll.u32 %v6482_v21, 16  ;;  %v6822_v41 = vshrl.u32 %v6482_v21, 16  ;;  %v5535_v36 = vadd.f32 %v10821_v3, %v5499_v22  ;;  %v5745_v52 = vld [vmem:[#allocation2 + $0xd8] sm:$0xf]  ;;  %v6852_v22 = vshll.u32 %v6486_v13, 16  ;;  %v5169_v5 = vpop.f32.mrf.mxu0 }
 0x46c   : > { %v4913_v62 = vpop.f32.mrf.mxu3  ;;  %v6056_v4 = vsel %vm9190_vm14, %v8418_v28, %v6055_v46 }
 0x46d   : > { %v6820_v40 = vrot.slane %v6818_v20, 5  ;;  %v6824_v16 = vrot.slane %v6822_v41, 4  ;;  %vm5567_vm9 = vcmp.ge.f32.partialorder %v5535_v36, 0.0  ;;  %v5603_v38 = vmul.f32 %v10836_v33, %v5535_v36  ;;  %6216 = vst.msk [vmem:[#allocation3 + $0x68] sm:$0xf] %vm432_vm7, %v6056_v4 }
 0x46e   : > { %v5167_v63 = vadd.f32 %v5166_v54, %v4913_v62  ;;  %v6059_v41 = vshrl.u32 %v5745_v52, 16  ;;  %v6854_v37 = vrot.slane %v6852_v22, 5 }
 0x46f   : > { %v6821_v12 = vsel %vm9147_vm11, %v6816_v29, %v6820_v40  ;;  %v6825_v39 = vor.u32 %v6824_v16, %v6820_v40  ;;  %v5635_v1 = vsel %vm5567_vm9, %v5535_v36, %v5603_v38  ;;  %v6062_v38 = vshll.u32 %v5745_v52, 16 }
 0x470   : > { %6980 = vrot.lane.b32.xlu1 %v6821_v12, %s8927_s24  ;;  %v5667_v44 = vpack.c.bf16 %v5635_v1, %v5635_v1  ;;  %v5462_v42 = vpop.f32.mrf.mxu1  ;;  %v6061_v16 = vrot.slane %v6059_v41, 7 }
 0x471   : > { %v6826_v53 = vrot.slane %v6825_v39, 4  ;;  %v5500_v49 = vadd.f32 %v5462_v42, %v5165_v10  ;;  %v6254_v58 = vld [vmem:[#allocation2 + $0xe4] sm:$0xf] }
 0x472   : > { %v6484_v59 = vld [vmem:[#allocation2 + $0xe4] sm:$0xf]  ;;  %5699 = vst.msk [vmem:[#allocation2 + $0xe8] sm:$0xf] %vm432_vm7, %v5667_v44  ;;  %6354 = vrot.lane.b32.xlu0 %v6254_v58, %s8928_s16  ;;  %v6064_v43 = vor.u32 %v6062_v38, %v6061_v16 }
 0x473   : > { %v6831_v27 = vsel %vm9147_vm11, %v6826_v53, %v6830_v47  ;;  %v6833_v0 = vshrl.u32 %v6484_v59, 16  ;;  %v6836_v48 = vshll.u32 %v6484_v59, 16  ;;  %v5536_v19 = vadd.f32 %v10821_v3, %v5500_v49  ;;  %v5747_v49 = vld [vmem:[#allocation2 + $0xe4] sm:$0xf] }
 0x474   : > { %6982 = vrot.lane.b32.xlu2 %v6831_v27, %s8927_s24  ;;  %v4916_v21 = vpop.f32.mrf.mxu3  ;;  %v6057_v47 = vrot.slane %v6052_v26, 4  ;;  %v6072_v60 = vshrl.u32 %v5747_v49, 16  ;;  %v6075_v13 = vshll.u32 %v5747_v49, 16 }
 0x475   : > { %v6835_v8 = vrot.slane %v6833_v0, 4  ;;  %v6838_v34 = vrot.slane %v6836_v48, 5  ;;  %vm5568_vm1 = vcmp.ge.f32.partialorder %v5536_v19, 0.0  ;;  %v5604_v15 = vmul.f32 %v10836_v33, %v5536_v19  ;;  %v6961_v11 = vpop.permute.xlu2 %6960 }
 0x476   : > { %v5170_v10 = vadd.f32 %v5169_v5, %v4916_v21  ;;  %v6065_v53 = vsel %vm9190_vm14, %v6057_v47, %v6064_v43  ;;  %v6074_v55 = vrot.slane %v6072_v60, 7 }
 0x477   : > { %v5636_v45 = vsel %vm5568_vm1, %v5536_v19, %v5604_v15  ;;  %v6839_v61 = vor.u32 %v6838_v34, %v6835_v8  ;;  %6217 = vst.msk [vmem:[#allocation3 + $0x6c] sm:$0xf] %vm432_vm7, %v6065_v53  ;;  %v5746_v19 = vld [vmem:[#allocation2 + $0xe0] sm:$0x8]  ;;  %v5171_v15 = vpop.f32.mrf.mxu0 }
 0x478   : > { %v5668_v31 = vpack.c.bf16 %v5636_v45, %v5636_v45  ;;  %v5464_v18 = vpop.f32.mrf.mxu1  ;;  %v6067_v26 = vshrl.u32 %v5746_v19, 16  ;;  %v6489_v45 = vld [vmem:[#allocation2 + $0xfc] sm:$0x1]  ;;  %v6492_v19 = vld [vmem:[#allocation2 + $0x10c] sm:$0x1] }
 0x479   : > { %v5501_v25 = vadd.f32 %v5464_v18, %v5167_v63  ;;  %v6255_v57 = vld [vmem:[#allocation2 + $0xe8] sm:$0xf]  ;;  %v6840_v36 = vrot.slane %v6839_v61, 4 }
 0x47a   : > { %v6485_v17 = vld [vmem:[#allocation2 + $0xe8] sm:$0xf]  ;;  %5700 = vst.msk [vmem:[#allocation2 + $0xf4] sm:$0xf] %vm432_vm7, %v5668_v31  ;;  %6356 = vrot.lane.b32.xlu1 %v6255_v57, %s8928_s16  ;;  %v6077_v57 = vor.u32 %v6075_v13, %v6074_v55  ;;  %v6452_v13 = vld [vmem:[#allocation2 + $0x38] sm:$0xf] }
 0x47b   : > { %v6842_v51 = vshll.u32 %v6485_v17, 16  ;;  %v6846_v20 = vshrl.u32 %v6485_v17, 16  ;;  %v5537_v32 = vadd.f32 %v10821_v3, %v5501_v25  ;;  %v5748_v61 = vld [vmem:[#allocation2 + $0xe8] sm:$0xf]  ;;  %v8419_v25 = vrot.slane %v6067_v26, 11 }
 0x47c   : > { %v4918_v14 = vpop.f32.mrf.mxu3 }
 0x47d   : > { %v6844_v29 = vrot.slane %v6842_v51, 5  ;;  %v6848_v40 = vrot.slane %v6846_v20, 4  ;;  %vm5569_vm12 = vcmp.ge.f32.partialorder %v5537_v32, 0.0  ;;  %v5605_v35 = vmul.f32 %v10836_v33, %v5537_v32 }
 0x47e   : > { %v5172_v28 = vadd.f32 %v5171_v15, %v4918_v14  ;;  %v6876_v20 = vshll.u32 %v6489_v45, 16  ;;  %v6078_v41 = vsel %vm9190_vm14, %v8419_v25, %v6077_v57  ;;  %v6477_v14 = vld [vmem:[#allocation2 + $0xbc] sm:$0x1]  ;;  %v6451_v15 = vld [vmem:[#allocation2 + $0x34] sm:$0xf] }
 0x47f   : > { %v6845_v12 = vsel %vm9147_vm11, %v6840_v36, %v6844_v29  ;;  %v6849_v39 = vor.u32 %v6848_v40, %v6844_v29  ;;  %v5637_v1 = vsel %vm5569_vm12, %v5537_v32, %v5605_v35  ;;  %v6331_v50 = vpop.permute.xlu0 %6330  ;;  %6218 = vst.msk [vmem:[#allocation3 + $0x70] sm:$0xf] %vm432_vm7, %v6078_v41  ;;  %v6081_v36 = vshrl.u32 %v5748_v61, 16 }
 0x480   : > { %6984 = vrot.lane.b32.xlu2 %v6845_v12, %s8927_s24  ;;  %v5669_v44 = vpack.c.bf16 %v5637_v1, %v5637_v1  ;;  %v5467_v62 = vpop.f32.mrf.mxu1  ;;  %6422 = vst.msk [vmem:[#allocation3 + $0x40] sm:$0xf] %vm3910_vm5, %v6331_v50  ;;  %v6084_v35 = vshll.u32 %v5748_v61, 16  ;;  %v6780_v26 = vshll.u32 %v6477_v14, 16  ;;  %v6572_v57 = vshll.u32 %v6451_v15, 16  ;;  %v8769_v14 = vld [vmem:[#allocation3 + $0x30] sm:$0xff] }
 0x481   : > { %v6850_v42 = vrot.slane %v6849_v39, 4  ;;  %v5502_v58 = vadd.f32 %v5467_v62, %v5170_v10  ;;  %7052 = vst.msk [vmem:[#allocation3 + $0x40] sm:$0xf] %vm4541_vm10, %v6961_v11  ;;  %v6256_v59 = vld [vmem:[#allocation2 + $0xf4] sm:$0xf]  ;;  %v6083_v38 = vrot.slane %v6081_v36, 7 }
 0x482   : > { %5701 = vst.msk [vmem:[#allocation2 + $0xf8] sm:$0xf] %vm432_vm7, %v5669_v44  ;;  %6358 = vrot.lane.b32.xlu1 %v6256_v59, %s8928_s16  ;;  %v6487_v54 = vld [vmem:[#allocation2 + $0xf4] sm:$0xf]  ;;  %v6878_v39 = vrot.slane %v6876_v20, 5  ;;  %v6778_v41 = vrot.slane %v6777_v30, 4 }
 0x483   : > { %v6855_v9 = vsel %vm9147_vm11, %v6850_v42, %v6854_v37  ;;  %v5538_v27 = vadd.f32 %v10821_v3, %v5502_v58  ;;  %v6857_v0 = vshrl.u32 %v6487_v54, 16  ;;  %v6860_v48 = vshll.u32 %v6487_v54, 16  ;;  %v5750_v47 = vld [vmem:[#allocation2 + $0xf4] sm:$0xf]  ;;  %v5749_v59 = vld [vmem:[#allocation2 + $0xf0] sm:$0x8] }
 0x484   : > { %6986 = vrot.lane.b32.xlu0 %v6855_v9, %s8927_s24  ;;  %v6086_v10 = vor.u32 %v6084_v35, %v6083_v38  ;;  %v6094_v58 = vshrl.u32 %v5750_v47, 16  ;;  %v6097_v9 = vshll.u32 %v5750_v47, 16 }
 0x485   : > { %vm5570_vm2 = vcmp.ge.f32.partialorder %v5538_v27, 0.0  ;;  %v5606_v8 = vmul.f32 %v10836_v33, %v5538_v27  ;;  %v6859_v34 = vrot.slane %v6857_v0, 4  ;;  %v6862_v6 = vrot.slane %v6860_v48, 5 }
 0x486   : > { %v6096_v0 = vrot.slane %v6094_v58, 7  ;;  %v6089_v48 = vshrl.u32 %v5749_v59, 16  ;;  %v6232_v59 = vld [vmem:[#allocation2 + $0x34] sm:$0xf] }
 0x487   : > { %v5638_v52 = vsel %vm5570_vm2, %v5538_v27, %v5606_v8  ;;  %v6333_v63 = vpop.permute.xlu1 %6332  ;;  %v6863_v18 = vor.u32 %v6862_v6, %v6859_v34 }
 0x488   : > { %v5670_v46 = vpack.c.bf16 %v5638_v52, %v5638_v52  ;;  %v5469_v31 = vpop.f32.mrf.mxu1  ;;  %6423 = vst.msk [vmem:[#allocation3 + $0x44] sm:$0xf] %vm3910_vm5, %v6333_v63  ;;  %v8420_v60 = vrot.slane %v6089_v48, 11  ;;  %v6099_v8 = vor.u32 %v6097_v9, %v6096_v0 }
 0x489   : > { %v5503_v17 = vadd.f32 %v5469_v31, %v5172_v28  ;;  %v6257_v22 = vld [vmem:[#allocation2 + $0xf8] sm:$0xf]  ;;  %v6864_v5 = vrot.slane %v6863_v18, 4  ;;  %v6569_v31 = vshrl.u32 %v6451_v15, 16 }
 0x48a   : > { %v6488_v4 = vld [vmem:[#allocation2 + $0xf8] sm:$0xf]  ;;  %5702 = vst.msk [vmem:[#allocation2 + $0x104] sm:$0xf] %vm432_vm7, %v5670_v46  ;;  %6360 = vrot.lane.b32.xlu2 %v6257_v22, %s8928_s16  ;;  %v6100_v28 = vsel %vm9190_vm14, %v8420_v60, %v6099_v8 }
 0x48b   : > { %v6866_v21 = vshll.u32 %v6488_v4, 16  ;;  %v6870_v51 = vshrl.u32 %v6488_v4, 16  ;;  %v5539_v32 = vadd.f32 %v10821_v3, %v5503_v17  ;;  %v6079_v3 = vrot.slane %v6074_v55, 4  ;;  %v5751_v34 = vld [vmem:[#allocation2 + $0xf8] sm:$0xf] }
 0x48c   : > { %v6900_v55 = vshll.u32 %v6492_v19, 16  ;;  %6220 = vst.msk [vmem:[#allocation3 + $0x78] sm:$0xf] %vm432_vm7, %v6100_v28  ;;  %v6103_v18 = vshrl.u32 %v5751_v34, 16  ;;  %v6578_v17 = vshll.u32 %v6452_v13, 16  ;;  %v6106_v22 = vshll.u32 %v5751_v34, 16 }
 0x48d   : > { %v6868_v29 = vrot.slane %v6866_v21, 5  ;;  %v6872_v40 = vrot.slane %v6870_v51, 4  ;;  %vm5571_vm6 = vcmp.ge.f32.partialorder %v5539_v32, 0.0  ;;  %v5607_v16 = vmul.f32 %v10836_v33, %v5539_v32 }
 0x48e   : > { %v6087_v33 = vsel %vm9190_vm14, %v6079_v3, %v6086_v10  ;;  %v6105_v20 = vrot.slane %v6103_v18, 7  ;;  %v6902_v36 = vrot.slane %v6900_v55, 5  ;;  %v6571_v35 = vrot.slane %v6569_v31, 4  ;;  %v6453_v10 = vld [vmem:[#allocation2 + $0x3c] sm:$0x1] }
 0x48f   : > { %v6869_v37 = vsel %vm9147_vm11, %v6864_v5, %v6868_v29  ;;  %v6873_v12 = vor.u32 %v6872_v40, %v6868_v29  ;;  %v5639_v43 = vsel %vm5571_vm6, %v5539_v32, %v5607_v16  ;;  %6219 = vst.msk [vmem:[#allocation3 + $0x74] sm:$0xf] %vm432_vm7, %v6087_v33  ;;  %v6782_v32 = vrot.slane %v6780_v26, 5  ;;  %v6233_v26 = vld [vmem:[#allocation2 + $0x38] sm:$0xf] }
 0x490   : > { %6988 = vrot.lane.b32.xlu0 %v6869_v37, %s8927_s24  ;;  %v5671_v1 = vpack.c.bf16 %v5639_v43, %v5639_v43  ;;  %v6582_v5 = vshrl.u32 %v6452_v13, 16  ;;  %v6101_v16 = vrot.slane %v6096_v0, 4  ;;  %v6108_v38 = vor.u32 %v6106_v22, %v6105_v20  ;;  %v6473_v0 = vld [vmem:[#allocation2 + $0xa8] sm:$0xf] }
 0x491   : > { %v6874_v50 = vrot.slane %v6873_v12, 4  ;;  %v6963_v11 = vpop.permute.xlu0 %6962  ;;  %v6258_v44 = vld [vmem:[#allocation2 + $0x104] sm:$0xf]  ;;  %v6574_v37 = vrot.slane %v6572_v57, 5  ;;  %v6783_v23 = vsel %vm9147_vm11, %v6778_v41, %v6782_v32  ;;  %v6580_v56 = vrot.slane %v6578_v17, 5 }
 0x492   : > { %v6490_v62 = vld [vmem:[#allocation2 + $0x104] sm:$0xf]  ;;  %5703 = vst.msk [vmem:[#allocation2 + $0x108] sm:$0xf] %vm432_vm7, %v5671_v1  ;;  %6362 = vrot.lane.b32.xlu2 %v6258_v44, %s8928_s16  ;;  %v6109_v47 = vsel %vm9190_vm14, %v6101_v16, %v6108_v38  ;;  %v6584_v30 = vrot.slane %v6582_v5, 4  ;;  %v6588_v58 = vshll.u32 %v6453_v10, 16 }
 0x493   : > { %v6879_v42 = vsel %vm9147_vm11, %v6874_v50, %v6878_v39  ;;  %v6881_v53 = vshrl.u32 %v6490_v62, 16  ;;  %v6884_v49 = vshll.u32 %v6490_v62, 16  ;;  %7053 = vst.msk [vmem:[#allocation3 + $0x44] sm:$0xf] %vm4541_vm10, %v6963_v11  ;;  %v8770_v39 = vld [vmem:[#allocation3 + $0x38] sm:$0xff]  ;;  %v6575_v50 = vor.u32 %v6574_v37, %v6571_v35 }
 0x494   : > { %6990 = vrot.lane.b32.xlu1 %v6879_v42, %s8927_s24  ;;  %6221 = vst.msk [vmem:[#allocation3 + $0x7c] sm:$0xf] %vm432_vm7, %v6109_v47  ;;  %v5753_v43 = vld [vmem:[#allocation2 + $0x104] sm:$0xf]  ;;  %v5752_v11 = vld [vmem:[#allocation2 + $0x100] sm:$0x8] }
 0x495   : > { %v6883_v54 = vrot.slane %v6881_v53, 4  ;;  %v6886_v27 = vrot.slane %v6884_v49, 5  ;;  %v6116_v1 = vshrl.u32 %v5753_v43, 16  ;;  %v7241_v44 = vsel %vm4783_vm8, %v8770_v39, 0  ;;  %v6472_v62 = vld [vmem:[#allocation2 + $0xa4] sm:$0xf] }
 0x496   : > { %v6111_v33 = vshrl.u32 %v5752_v11, 16  ;;  %v6119_v53 = vshll.u32 %v5753_v43, 16  ;;  %v6585_v49 = vor.u32 %v6584_v30, %v6580_v56  ;;  %v6737_v48 = vshrl.u32 %v6472_v62, 16  ;;  %v6449_v17 = vld [vmem:[#allocation2 + $0x28] sm:$0xf] }
 0x497   : > { %v6887_v6 = vor.u32 %v6886_v27, %v6883_v54  ;;  %v6118_v42 = vrot.slane %v6116_v1, 7  ;;  %v6576_v27 = vrot.slane %v6575_v50, 4  ;;  %v6740_v19 = vshll.u32 %v6472_v62, 16  ;;  %v6448_v41 = vld [vmem:[#allocation2 + $0x24] sm:$0xf] }
 0x498   : > { %v8421_v9 = vrot.slane %v6111_v33, 11  ;;  %v6586_v34 = vrot.slane %v6585_v49, 4  ;;  %v6746_v55 = vshll.u32 %v6473_v0, 16  ;;  %v6750_v13 = vshrl.u32 %v6473_v0, 16  ;;  %v6450_v1 = vld [vmem:[#allocation2 + $0x2c] sm:$0x1] }
 0x499   : > { %v6259_v52 = vld [vmem:[#allocation2 + $0x108] sm:$0xf]  ;;  %v6888_v25 = vrot.slane %v6887_v6, 4  ;;  %v6121_v54 = vor.u32 %v6119_v53, %v6118_v42  ;;  %v6581_v8 = vsel %vm9147_vm11, %v6576_v27, %v6580_v56  ;;  %v6590_v6 = vrot.slane %v6588_v58, 5  ;;  %v8767_v50 = vld [vmem:[#allocation3 + $0x20] sm:$0xff] }
 0x49a   : > { %v6491_v63 = vld [vmem:[#allocation2 + $0x108] sm:$0xf]  ;;  %6364 = vrot.lane.b32.xlu0 %v6259_v52, %s8928_s16  ;;  %v8771_v45 = vld [vmem:[#allocation3 + $0x40] sm:$0xff]  ;;  %v6739_v52 = vrot.slane %v6737_v48, 4  ;;  %v6752_v57 = vrot.slane %v6750_v13, 4  ;;  %v6123_v22 = vrot.slane %v6118_v42, 4 }
 0x49b   : > { %v6890_v61 = vshll.u32 %v6491_v63, 16  ;;  %v6894_v46 = vshrl.u32 %v6491_v63, 16  ;;  %v7244_v4 = vsel %vm4783_vm8, %v8771_v45, 0  ;;  %v6122_v60 = vsel %vm9190_vm14, %v8421_v9, %v6121_v54  ;;  %v5754_v15 = vld [vmem:[#allocation2 + $0x108] sm:$0xf] }
 0x49c   : > { %7270 = vmatpush.bf16.xpose.msra.mxu2 %v7244_v4  ;;  %6222 = vst.msk [vmem:[#allocation3 + $0x80] sm:$0xf] %vm432_vm7, %v6122_v60  ;;  %v6125_v28 = vshrl.u32 %v5754_v15, 16  ;;  %v7238_v45 = vsel %vm4783_vm8, %v8769_v14, 0  ;;  %v6128_v31 = vshll.u32 %v5754_v15, 16  ;;  %v6591_v18 = vsel %vm9147_vm11, %v6586_v34, %v6590_v6 }
 0x49d   : > { %v6892_v21 = vrot.slane %v6890_v61, 5  ;;  %v6896_v51 = vrot.slane %v6894_v46, 4  ;;  %v6742_v61 = vrot.slane %v6740_v19, 5  ;;  %v6554_v5 = vshll.u32 %v6449_v17, 16  ;;  %v6469_v62 = vld [vmem:[#allocation2 + $0x94] sm:$0xf] }
 0x49e   : > { %v6127_v46 = vrot.slane %v6125_v28, 7  ;;  %v6545_v47 = vshrl.u32 %v6448_v41, 16  ;;  %v6230_v33 = vld [vmem:[#allocation2 + $0x24] sm:$0xf]  ;;  %v6564_v53 = vshll.u32 %v6450_v1, 16  ;;  %v6713_v9 = vshrl.u32 %v6469_v62, 16 }
 0x49f   : > { %v6893_v29 = vsel %vm9147_vm11, %v6888_v25, %v6892_v21  ;;  %v6897_v40 = vor.u32 %v6896_v51, %v6892_v21  ;;  %v6748_v25 = vrot.slane %v6746_v55, 5  ;;  %v6474_v21 = vld [vmem:[#allocation2 + $0xac] sm:$0x1]  ;;  %v6743_v20 = vor.u32 %v6742_v61, %v6739_v52  ;;  %v6231_v60 = vld [vmem:[#allocation2 + $0x28] sm:$0xf] }
 0x4a0   : > { %6992 = vrot.lane.b32.xlu1 %v6893_v29, %s8927_s24  ;;  %v6130_v4 = vor.u32 %v6128_v31, %v6127_v46  ;;  %v8768_v51 = vld [vmem:[#allocation3 + $0x28] sm:$0xff]  ;;  %v6558_v29 = vshrl.u32 %v6449_v17, 16  ;;  %v6756_v38 = vshll.u32 %v6474_v21, 16  ;;  %v6556_v56 = vrot.slane %v6554_v5, 5  ;;  %v6445_v46 = vld [vmem:[#allocation2 + $0x14] sm:$0xf] }
 0x4a1   : > { %v6898_v12 = vrot.slane %v6897_v40, 4  ;;  %v6246_v40 = vld [vmem:[#allocation2 + $0xa4] sm:$0xf]  ;;  %v6753_v16 = vor.u32 %v6752_v57, %v6748_v25  ;;  %v6744_v39 = vrot.slane %v6743_v20, 4  ;;  %v6547_v11 = vrot.slane %v6545_v47, 4 }
 0x4a2   : > { %6974 = vrot.lane.b32.xlu0 %v6783_v23, %s8927_s24  ;;  %v6131_v32 = vsel %vm9190_vm14, %v6123_v22, %v6130_v4  ;;  %v6548_v23 = vshll.u32 %v6448_v41, 16  ;;  %v6560_v30 = vrot.slane %v6558_v29, 4  ;;  %v6758_v10 = vrot.slane %v6756_v38, 5  ;;  %v6244_v31 = vld [vmem:[#allocation2 + $0x94] sm:$0xf] }
 0x4a3   : > { %v6903_v3 = vsel %vm9147_vm11, %v6898_v12, %v6902_v36  ;;  %v6247_v36 = vld [vmem:[#allocation2 + $0xa8] sm:$0xf]  ;;  %6223 = vst.msk [vmem:[#allocation3 + $0x84] sm:$0xf] %vm432_vm7, %v6131_v32  ;;  %v7235_v12 = vsel %vm4783_vm8, %v8768_v51, 0  ;;  %v6749_v43 = vsel %vm9147_vm11, %v6744_v39, %v6748_v25  ;;  %v6716_v54 = vshll.u32 %v6469_v62, 16 }
 0x4a4   : > { %6994 = vrot.lane.b32.xlu2 %v6903_v3, %s8927_s24  ;;  %7271 = vmatpush.bf16.xpose.msra.mxu2 %v7241_v44  ;;  %v6754_v3 = vrot.slane %v6753_v16, 4  ;;  %v6550_v44 = vrot.slane %v6548_v23, 5  ;;  %v6561_v42 = vor.u32 %v6560_v30, %v6556_v56  ;;  %v7232_v0 = vsel %vm4783_vm8, %v8767_v50, 0  ;;  %v6446_v17 = vld [vmem:[#allocation2 + $0x18] sm:$0xf] }
 0x4a5   : > { %v6566_v19 = vrot.slane %v6564_v53, 5  ;;  %v6715_v6 = vrot.slane %v6713_v9, 4  ;;  %v6718_v15 = vrot.slane %v6716_v54, 5  ;;  %v6521_v22 = vshrl.u32 %v6445_v46, 16  ;;  %v6245_v51 = vld [vmem:[#allocation2 + $0x98] sm:$0xf] }
 0x4a6   : > { %v6759_v49 = vsel %vm9147_vm11, %v6754_v3, %v6758_v10  ;;  %v6551_v48 = vor.u32 %v6550_v44, %v6547_v11  ;;  %v6562_v14 = vrot.slane %v6561_v42, 4  ;;  %v6524_v4 = vshll.u32 %v6445_v46, 16  ;;  %v6229_v39 = vld [vmem:[#allocation2 + $0x18] sm:$0xf]  ;;  %v6228_v47 = vld [vmem:[#allocation2 + $0x14] sm:$0xf] }
 0x4a7   : > { %v6530_v32 = vshll.u32 %v6446_v17, 16  ;;  %v6523_v5 = vrot.slane %v6521_v22, 4  ;;  %v6261_v42 = vld [vmem:[#allocation2 + $0x118] sm:$0xf]  ;;  %v6495_v9 = vld [vmem:[#allocation2 + $0x11c] sm:$0x1] }
 0x4a8   : > { %6310 = vrot.lane.b32.xlu1 %v6232_v59, %s8928_s16  ;;  %v6470_v59 = vld [vmem:[#allocation2 + $0x98] sm:$0xf]  ;;  %v6567_v55 = vsel %vm9147_vm11, %v6562_v14, %v6566_v19  ;;  %v6526_v29 = vrot.slane %v6524_v4, 5 }
 0x4a9   : > { %v6726_v34 = vshrl.u32 %v6470_v59, 16  ;;  %v6532_v16 = vrot.slane %v6530_v32, 5 }
 0x4aa   : > { %6940 = vrot.lane.b32.xlu0 %v6581_v8, %s8927_s24  ;;  %v6973_v63 = vpop.permute.xlu2 %6972  ;;  %v6722_v8 = vshll.u32 %v6470_v59, 16  ;;  %v6494_v59 = vld [vmem:[#allocation2 + $0x118] sm:$0xf] }
 0x4ab   : > { %v6728_v52 = vrot.slane %v6726_v34, 4  ;;  %v6914_v54 = vshll.u32 %v6494_v59, 16 }
 0x4ac   : > { %6312 = vrot.lane.b32.xlu2 %v6233_v26, %s8928_s16  ;;  %7272 = vmatpush.bf16.xpose.msra.mxu2 %v7238_v45  ;;  %v6552_v26 = vrot.slane %v6551_v48, 4  ;;  %v6724_v28 = vrot.slane %v6722_v8, 5  ;;  %v6471_v45 = vld [vmem:[#allocation2 + $0x9c] sm:$0x1]  ;;  %v6226_v48 = vld [vmem:[#allocation2 + $0x4] sm:$0xf] }
 0x4ad   : > { %v6732_v25 = vshll.u32 %v6471_v45, 16  ;;  %v6916_v14 = vrot.slane %v6914_v54, 5 }
 0x4ae   : > { %v6557_v13 = vsel %vm9147_vm11, %v6552_v26, %v6556_v56  ;;  %v6442_v26 = vld [vmem:[#allocation2 + $0x4] sm:$0xf] }
 0x4af   : > { %v6734_v41 = vrot.slane %v6732_v25, 5 }
 0x4b0   : > { %6942 = vrot.lane.b32.xlu1 %v6591_v18, %s8927_s24  ;;  %v6729_v18 = vor.u32 %v6728_v52, %v6724_v28  ;;  %v6497_v52 = vshrl.u32 %v6442_v26, 16 }
 0x4b2   : > { %6340 = vrot.lane.b32.xlu0 %v6247_v36, %s8928_s16  ;;  %v6730_v20 = vrot.slane %v6729_v18, 4  ;;  %v6534_v36 = vshrl.u32 %v6446_v17, 16 }
 0x4b4   : > { %6338 = vrot.lane.b32.xlu2 %v6246_v40, %s8928_s16  ;;  %v6343_v35 = vpop.permute.xlu0 %6342  ;;  %v6349_v37 = vpop.permute.xlu2 %6348  ;;  %7273 = vmatpush.bf16.xpose.msra.mxu2 %v7235_v12  ;;  %v6735_v40 = vsel %vm9147_vm11, %v6730_v20, %v6734_v41  ;;  %v6536_v38 = vrot.slane %v6534_v36, 4 }
 0x4b5   : > { %6428 = vst.msk [vmem:[#allocation3 + $0x58] sm:$0xf] %vm3910_vm5, %v6343_v35  ;;  %v6447_v35 = vld [vmem:[#allocation2 + $0x1c] sm:$0x1] }
 0x4b6   : > { %7058 = vst.msk [vmem:[#allocation3 + $0x58] sm:$0xf] %vm4541_vm10, %v6973_v63  ;;  %v6719_v63 = vor.u32 %v6718_v15, %v6715_v6  ;;  %v6537_v23 = vor.u32 %v6536_v38, %v6532_v16  ;;  %v6540_v56 = vshll.u32 %v6447_v35, 16 }
 0x4b7   : > { %6431 = vst.msk [vmem:[#allocation3 + $0x64] sm:$0xf] %vm3910_vm5, %v6349_v37  ;;  %v6527_v37 = vor.u32 %v6526_v29, %v6523_v5  ;;  %v6493_v29 = vld [vmem:[#allocation2 + $0x114] sm:$0xf] }
 0x4b8   : > { %6968 = vrot.lane.b32.xlu1 %v6749_v43, %s8927_s24  ;;  %v6720_v57 = vrot.slane %v6719_v63, 4  ;;  %v6538_v1 = vrot.slane %v6537_v23, 4  ;;  %v6542_v50 = vrot.slane %v6540_v56, 5  ;;  %v6500_v63 = vshll.u32 %v6442_v26, 16 }
 0x4b9   : > { %v6528_v43 = vrot.slane %v6527_v37, 4 }
 0x4ba   : > { %6306 = vrot.lane.b32.xlu0 %v6230_v33, %s8928_s16  ;;  %v6725_v21 = vsel %vm9147_vm11, %v6720_v57, %v6724_v28  ;;  %v6543_v11 = vsel %vm9147_vm11, %v6538_v1, %v6542_v50  ;;  %v6260_v33 = vld [vmem:[#allocation2 + $0x114] sm:$0xf]  ;;  %v6502_v18 = vrot.slane %v6500_v63, 5 }
 0x4bb   : > { %v6533_v10 = vsel %vm9147_vm11, %v6528_v43, %v6532_v16  ;;  %v6908_v16 = vshll.u32 %v6493_v29, 16  ;;  %v6227_v43 = vld [vmem:[#allocation2 + $0x8] sm:$0xf] }
 0x4bc   : > { %6970 = vrot.lane.b32.xlu2 %v6759_v49, %s8927_s24  ;;  %v6345_v58 = vpop.permute.xlu1 %6344  ;;  %v6351_v27 = vpop.permute.xlu2 %6350  ;;  %7274 = vmatpush.bf16.xpose.msra.mxu2 %v7232_v0  ;;  %v6924_v0 = vshll.u32 %v6495_v9, 16 }
 0x4bd   : > { %6429 = vst.msk [vmem:[#allocation3 + $0x5c] sm:$0xf] %vm3910_vm5, %v6345_v58  ;;  %v6910_v35 = vrot.slane %v6908_v16, 5 }
 0x4be   : > { %6432 = vst.msk [vmem:[#allocation3 + $0x68] sm:$0xf] %vm3910_vm5, %v6351_v27  ;;  %v6918_v27 = vshrl.u32 %v6494_v59, 16  ;;  %v6926_v6 = vrot.slane %v6924_v0, 5 }
 0x4c0   : > { %6308 = vrot.lane.b32.xlu1 %v6231_v60, %s8928_s16  ;;  %v6920_v19 = vrot.slane %v6918_v27, 4 }
 0x4c2   : > { %6938 = vrot.lane.b32.xlu0 %v6567_v55, %s8927_s24  ;;  %v6921_v34 = vor.u32 %v6920_v19, %v6916_v14  ;;  %v6443_v55 = vld [vmem:[#allocation2 + $0x8] sm:$0xf] }
 0x4c3   : > { %v6506_v45 = vshll.u32 %v6443_v55, 16 }
 0x4c4   : > { %6936 = vrot.lane.b32.xlu2 %v6557_v13, %s8927_s24  ;;  %v6347_v61 = vpop.permute.xlu1 %6346  ;;  %v6922_v15 = vrot.slane %v6921_v34, 4  ;;  %v6444_v13 = vld [vmem:[#allocation2 + $0xc] sm:$0x1] }
 0x4c5   : > { %6430 = vst.msk [vmem:[#allocation3 + $0x60] sm:$0xf] %vm3910_vm5, %v6347_v61  ;;  %v6510_v61 = vshrl.u32 %v6443_v55, 16  ;;  %v6516_v46 = vshll.u32 %v6444_v13, 16  ;;  %v6508_v25 = vrot.slane %v6506_v45, 5 }
 0x4c6   : > { %v6927_v28 = vsel %vm9147_vm11, %v6922_v15, %v6926_v6 }
 0x4c7   : > { %v6512_v57 = vrot.slane %v6510_v61, 4 }
 0x4c8   : > { %6334 = vrot.lane.b32.xlu1 %v6244_v31, %s8928_s16  ;;  %v6499_v31 = vrot.slane %v6497_v52, 4 }
 0x4ca   : > { %6964 = vrot.lane.b32.xlu0 %v6725_v21, %s8927_s24  ;;  %v6503_v22 = vor.u32 %v6502_v18, %v6499_v31  ;;  %v6513_v21 = vor.u32 %v6512_v57, %v6508_v25 }
 0x4cc   : > { %6336 = vrot.lane.b32.xlu2 %v6245_v51, %s8928_s16  ;;  %v6518_v51 = vrot.slane %v6516_v46, 5  ;;  %v6504_v20 = vrot.slane %v6503_v22, 4  ;;  %v6514_v41 = vrot.slane %v6513_v21, 4  ;;  %v8755_v22 = vld [vmem:[#allocation3 + $0x38] sm:$0xff] }
 0x4ce   : > { %v6983_v30 = vpop.permute.xlu2 %6982  ;;  %v6509_v32 = vsel %vm9147_vm11, %v6504_v20, %v6508_v25  ;;  %v6519_v36 = vsel %vm9147_vm11, %v6514_v41, %v6518_v51 }
 0x4d0   : > { %6966 = vrot.lane.b32.xlu1 %v6735_v40, %s8927_s24  ;;  %v6905_v40 = vshrl.u32 %v6493_v29, 16  ;;  %v8754_v29 = vld [vmem:[#allocation3 + $0x30] sm:$0xff] }
 0x4d2   : > { %v6977_v12 = vpop.permute.xlu0 %6976  ;;  %6304 = vrot.lane.b32.xlu0 %v6229_v39, %s8928_s16  ;;  %v6907_v38 = vrot.slane %v6905_v40, 4 }
 0x4d3   : > { %7060 = vst.msk [vmem:[#allocation3 + $0x60] sm:$0xf] %vm4541_vm10, %v6977_v12 }
 0x4d4   : > { %6302 = vrot.lane.b32.xlu2 %v6228_v47, %s8928_s16  ;;  %v6911_v12 = vor.u32 %v6910_v35, %v6907_v38  ;;  %v7398_v38 = vsel %vm4783_vm8, %v8754_v29, 0  ;;  %v8782_v29 = vld [vmem:[#allocation3 + $0x20] sm:$0xff] }
 0x4d6   : > { %v6979_v3 = vpop.permute.xlu1 %6978  ;;  %v6912_v39 = vrot.slane %v6911_v12, 4 }
 0x4d7   : > { %7061 = vst.msk [vmem:[#allocation3 + $0x64] sm:$0xf] %vm4541_vm10, %v6979_v3 }
 0x4d8   : > { %6932 = vrot.lane.b32.xlu1 %v6533_v10, %s8927_s24  ;;  %v6917_v56 = vsel %vm9147_vm11, %v6912_v39, %v6916_v14 }
 0x4da   : > { %v6985_v44 = vpop.permute.xlu2 %6984  ;;  %6366 = vrot.lane.b32.xlu0 %v6260_v33, %s8928_s16 }
 0x4dc   : > { %6934 = vrot.lane.b32.xlu2 %v6543_v11, %s8927_s24  ;;  %v6353_v62 = vpop.permute.xlu0 %6352 }
 0x4dd   : > { %6433 = vst.msk [vmem:[#allocation3 + $0x6c] sm:$0xf] %vm3910_vm5, %v6353_v62 }
 0x4de   : > { %7063 = vst.msk [vmem:[#allocation3 + $0x6c] sm:$0xf] %vm4541_vm10, %v6983_v30  ;;  %v8775_v15 = vld [vmem:[#allocation3 + $0x60] sm:$0xff] }
 0x4df   : > { %v7256_v55 = vsel %vm4783_vm8, %v8775_v15, 0 }
 0x4e0   : > { %6368 = vrot.lane.b32.xlu1 %v6261_v42, %s8928_s16 }
 0x4e2   : > { %v6981_v53 = vpop.permute.xlu1 %6980  ;;  %6998 = vrot.lane.b32.xlu0 %v6927_v28, %s8927_s24 }
 0x4e3   : > { %7062 = vst.msk [vmem:[#allocation3 + $0x68] sm:$0xf] %vm4541_vm10, %v6981_v53 }
 0x4e4   : > { %v6355_v49 = vpop.permute.xlu0 %6354  ;;  %v6361_v58 = vpop.permute.xlu2 %6360  ;;  %6996 = vrot.lane.b32.xlu2 %v6917_v56, %s8927_s24  ;;  %v5771_v56 = vrot.slane %v10021_v24, 4  ;;  %v8752_v24 = vld [vmem:[#allocation3 + $0x20] sm:$0xff] }
 0x4e5   : > { %6434 = vst.msk [vmem:[#allocation3 + $0x70] sm:$0xf] %vm3910_vm5, %v6355_v49 }
 0x4e6   : > { %7064 = vst.msk [vmem:[#allocation3 + $0x70] sm:$0xf] %vm4541_vm10, %v6985_v44 }
 0x4e7   : > { %6437 = vst.msk [vmem:[#allocation3 + $0x7c] sm:$0xf] %vm3910_vm5, %v6361_v58 }
 0x4e8   : > { %6298 = vrot.lane.b32.xlu1 %v6226_v48, %s8928_s16 }
 0x4ea   : > { %6928 = vrot.lane.b32.xlu0 %v6509_v32, %s8927_s24 }
 0x4ec   : > { %v6357_v60 = vpop.permute.xlu1 %6356  ;;  %v6363_v8 = vpop.permute.xlu2 %6362  ;;  %6300 = vrot.lane.b32.xlu2 %v6227_v43, %s8928_s16  ;;  %s7770_s16 = sshll.u32 %s407_s13, 2 }
 0x4ed   : > { %6435 = vst.msk [vmem:[#allocation3 + $0x74] sm:$0xf] %vm3910_vm5, %v6357_v60  ;;  %v8776_v60 = vld [vmem:[#allocation3 + $0x68] sm:$0xff]  ;;  %s409_s21 = scalar_lea.vmem [#allocation4], %s7770_s16  ;;  %s8879_s16 = scalar_lea.hbm %s11144_s11, 8 }
 0x4ee   : > { %6438 = vst.msk [vmem:[#allocation3 + $0x80] sm:$0xf] %vm3910_vm5, %v6363_v8  ;;  %v7259_v34 = vsel %vm4783_vm8, %v8776_v60, 0  ;;  %p8881_p1 = scmp.lt.s32.totalorder %s8879_s16, %s8875_s25 }
 0x4f0   : > { %6930 = vrot.lane.b32.xlu1 %v6519_v36, %s8927_s24  ;;  %v7401_v36 = vsel %vm4783_vm8, %v8755_v22, 0  ;;  %s8630_s24 = sshll.u32 %s9040_s29, 2  ;;  %s7680_s29 = sshll.u32 %s409_s21, 4  ;;  %s7681_s29 = int_to_ptr.vmem [resolvable:$true] %s7680_s29 }
 0x4f1   : > { %s424_s14 = scalar_lea.vmem %s11135_s2, %s8630_s24  ;;  %s7667_s24 = scalar_lea.sflag [#allocation5], %s407_s13 }
 0x4f2   : > { %p8882_p2 = por %p8881_p1, %p8880_p0 }
 0x4f4   : > { %v6359_v17 = vpop.permute.xlu1 %6358  ;;  %p8883_p3 = pnand %p8882_p2, %p8878_p13 }
 0x4f5   : > { %6436 = vst.msk [vmem:[#allocation3 + $0x78] sm:$0xf] %vm3910_vm5, %v6359_v17 }
 0x4f6   : > { %v6987_v4 = vpop.permute.xlu0 %6986 }
 0x4f7   : > { %7065 = vst.msk [vmem:[#allocation3 + $0x74] sm:$0xf] %vm4541_vm10, %v6987_v4 }
 0x4fe   : > { %v6995_v5 = vpop.permute.xlu2 %6994  ;;  %v8777_v9 = vld [vmem:[#allocation3 + $0x70] sm:$0xff] }
 0x4ff   : > { %v7262_v0 = vsel %vm4783_vm8, %v8777_v9, 0  ;;  %v8762_v40 = vld [vmem:[#allocation3 + $0x70] sm:$0xff] }
 0x500   : > { %v7422_v35 = vsel %vm4783_vm8, %v8762_v40, 0  ;;  %v8792_v22 = vld [vmem:[#allocation3 + $0x70] sm:$0xff]  ;;  %v8790_v40 = vld [vmem:[#allocation3 + $0x60] sm:$0xff] }
 0x502   : > { %v6989_v37 = vpop.permute.xlu0 %6988 }
 0x503   : > { %7066 = vst.msk [vmem:[#allocation3 + $0x78] sm:$0xf] %vm4541_vm10, %v6989_v37  ;;  %v5706_v37 = vld [vmem:[#allocation2 + $0x8] sm:$0xf] }
 0x504   : > { %v5773_v12 = vshrl.u32 %v5706_v37, 16  ;;  %v5776_v39 = vshll.u32 %v5706_v37, 16 }
 0x506   : > { %v6991_v47 = vpop.permute.xlu1 %6990  ;;  %v6313_v23 = vpop.permute.xlu2 %6312 }
 0x507   : > { %7067 = vst.msk [vmem:[#allocation3 + $0x7c] sm:$0xf] %vm4541_vm10, %v6991_v47  ;;  %v8753_v47 = vld [vmem:[#allocation3 + $0x28] sm:$0xff] }
 0x508   : > { %6413 = vst.msk [vmem:[#allocation3 + $0x1c] sm:$0xf] %vm3910_vm5, %v6313_v23  ;;  %v8761_v23 = vld [vmem:[#allocation3 + $0x68] sm:$0xff] }
 0x50c   : > { %v6365_v30 = vpop.permute.xlu0 %6364 }
 0x50d   : > { %6439 = vst.msk [vmem:[#allocation3 + $0x84] sm:$0xf] %vm3910_vm5, %v6365_v30  ;;  %v5775_v30 = vrot.slane %v5773_v12, 7 }
 0x50e   : > { %v6339_v3 = vpop.permute.xlu2 %6338  ;;  %7069 = vst.msk [vmem:[#allocation3 + $0x84] sm:$0xf] %vm4541_vm10, %v6995_v5  ;;  %v8778_v42 = vld [vmem:[#allocation3 + $0x78] sm:$0xff] }
 0x50f   : > { %6426 = vst.msk [vmem:[#allocation3 + $0x50] sm:$0xf] %vm3910_vm5, %v6339_v3  ;;  %v7265_v49 = vsel %vm4783_vm8, %v8778_v42, 0  ;;  %v8763_v4 = vld [vmem:[#allocation3 + $0x78] sm:$0xff]  ;;  %v5778_v3 = vor.u32 %v5776_v39, %v5775_v30 }
 0x510   : > { %v7425_v5 = vsel %vm4783_vm8, %v8763_v4, 0  ;;  %v7104_v4 = vld [vmem:[%s11142_s9] sm:$0x1] }
 0x512   : > { %v6993_v10 = vpop.permute.xlu1 %6992 }
 0x513   : > { %7068 = vst.msk [vmem:[#allocation3 + $0x80] sm:$0xf] %vm4541_vm10, %v6993_v10 }
 0x514   : > { %v6975_v7 = vpop.permute.xlu0 %6974 }
 0x515   : > { %7059 = vst.msk [vmem:[#allocation3 + $0x5c] sm:$0xf] %vm4541_vm10, %v6975_v7  ;;  %v7395_v7 = vsel %vm4783_vm8, %v8753_v47, 0 }
 0x516   : > { %v6971_v1 = vpop.permute.xlu2 %6970 }
 0x51a   : > { %v6311_v50 = vpop.permute.xlu1 %6310  ;;  %v8779_v11 = vld [vmem:[#allocation3 + $0x80] sm:$0xff] }
 0x51b   : > { %6412 = vst.msk [vmem:[#allocation3 + $0x18] sm:$0xf] %vm3910_vm5, %v6311_v50  ;;  %v7268_v44 = vsel %vm4783_vm8, %v8779_v11, 0  ;;  %v5779_v50 = vsel %vm9190_vm14, %v5771_v56, %v5778_v3  ;;  %v8760_v11 = vld [vmem:[#allocation3 + $0x60] sm:$0xff] }
 0x51c   : > { %v6941_v62 = vpop.permute.xlu0 %6940  ;;  %7283 = vmatpush.bf16.xpose.msra.mxu3 %v7268_v44  ;;  %v8774_v63 = vld [vmem:[#allocation3 + $0x58] sm:$0xff]  ;;  %6191 = vst.msk [vmem:[#allocation3 + $0x4] sm:$0xf] %vm432_vm7, %v5779_v50  ;;  %v7416_v42 = vsel %vm4783_vm8, %v8760_v11, 0  ;;  %vm7650_vm7 = vcmask 1041408  }
 0x51d   : > { %7042 = vst.msk [vmem:[#allocation3 + $0x18] sm:$0xf] %vm4541_vm10, %v6941_v62  ;;  %v7253_v61 = vsel %vm4783_vm8, %v8774_v63, 0  ;;  %v8786_v63 = vld [vmem:[#allocation3 + $0x40] sm:$0xff]  ;;  %v8789_v37 = vld [vmem:[#allocation3 + $0x58] sm:$0xff] }
 0x51e   : > { %v6937_v33 = vpop.permute.xlu2 %6936  ;;  %v7598_v39 = vsel %vm4783_vm8, %v8789_v37, 0 }
 0x522   : > { %v6943_v53 = vpop.permute.xlu1 %6942 }
 0x523   : > { %7043 = vst.msk [vmem:[#allocation3 + $0x1c] sm:$0xf] %vm4541_vm10, %v6943_v53 }
 0x524   : > { %v6341_v58 = vpop.permute.xlu0 %6340  ;;  %7284 = vmatpush.bf16.xpose.msra.mxu3 %v7265_v49 }
 0x525   : > { %6427 = vst.msk [vmem:[#allocation3 + $0x54] sm:$0xf] %vm3910_vm5, %v6341_v58  ;;  %v8759_v58 = vld [vmem:[#allocation3 + $0x58] sm:$0xff] }
 0x526   : > { %v6337_v59 = vpop.permute.xlu2 %6336  ;;  %7057 = vst.msk [vmem:[#allocation3 + $0x54] sm:$0xf] %vm4541_vm10, %v6971_v1  ;;  %v7419_v1 = vsel %vm4783_vm8, %v8761_v23, 0  ;;  %v7413_v9 = vsel %vm4783_vm8, %v8759_v58, 0 }
 0x527   : > { %6425 = vst.msk [vmem:[#allocation3 + $0x4c] sm:$0xf] %vm3910_vm5, %v6337_v59 }
 0x52a   : > { %v6969_v54 = vpop.permute.xlu1 %6968  ;;  %v8766_v27 = vld [vmem:[#allocation3 + $0x18] sm:$0xff] }
 0x52b   : > { %7056 = vst.msk [vmem:[#allocation3 + $0x50] sm:$0xf] %vm4541_vm10, %v6969_v54  ;;  %v7229_v48 = vsel %vm4783_vm8, %v8766_v27, 0  ;;  %v8751_v49 = vld [vmem:[#allocation3 + $0x18] sm:$0xff] }
 0x52c   : > { %v6307_v14 = vpop.permute.xlu0 %6306  ;;  %7285 = vmatpush.bf16.xpose.msra.mxu3 %v7262_v0  ;;  %7275 = vmatpush.bf16.xpose.msra.mxu2 %v7229_v48  ;;  %v7389_v59 = vsel %vm4783_vm8, %v8751_v49, 0 }
 0x52d   : > { %6410 = vst.msk [vmem:[#allocation3 + $0x10] sm:$0xf] %vm3910_vm5, %v6307_v14 }
 0x52e   : > { %v6303_v19 = vpop.permute.xlu2 %6302  ;;  %7040 = vst.msk [vmem:[#allocation3 + $0x10] sm:$0xf] %vm4541_vm10, %v6937_v33  ;;  %v7392_v33 = vsel %vm4783_vm8, %v8752_v24, 0 }
 0x52f   : > { %6408 = vst.msk [vmem:[#allocation3 + $0x8] sm:$0xf] %vm3910_vm5, %v6303_v19 }
 0x532   : > { %v6309_v8 = vpop.permute.xlu1 %6308  ;;  %v8773_v18 = vld [vmem:[#allocation3 + $0x50] sm:$0xff] }
 0x533   : > { %6411 = vst.msk [vmem:[#allocation3 + $0x14] sm:$0xf] %vm3910_vm5, %v6309_v8  ;;  %v7250_v57 = vsel %vm4783_vm8, %v8773_v18, 0  ;;  %v8758_v27 = vld [vmem:[#allocation3 + $0x50] sm:$0xff]  ;;  %v8793_v18 = vld [vmem:[#allocation3 + $0x78] sm:$0xff] }
 0x534   : > { %v6939_v6 = vpop.permute.xlu0 %6938  ;;  %7286 = vmatpush.bf16.xpose.msra.mxu3 %v7259_v34  ;;  %v7410_v48 = vsel %vm4783_vm8, %v8758_v27, 0  ;;  %v8788_v23 = vld [vmem:[#allocation3 + $0x50] sm:$0xff] }
 0x535   : > { %7041 = vst.msk [vmem:[#allocation3 + $0x14] sm:$0xf] %vm4541_vm10, %v6939_v6  ;;  %v8756_v6 = vld [vmem:[#allocation3 + $0x40] sm:$0xff]  ;;  %v7595_v30 = vsel %vm4783_vm8, %v8788_v23, 0 }
 0x536   : > { %v6935_v31 = vpop.permute.xlu2 %6934 }
 0x53a   : > { %v6335_v26 = vpop.permute.xlu1 %6334 }
 0x53b   : > { %6424 = vst.msk [vmem:[#allocation3 + $0x48] sm:$0xf] %vm3910_vm5, %v6335_v26 }
 0x53c   : > { %v6965_v13 = vpop.permute.xlu0 %6964  ;;  %7287 = vmatpush.bf16.xpose.msra.mxu3 %v7256_v55  ;;  %v8765_v28 = vld [vmem:[#allocation3 + $0x10] sm:$0xff] }
 0x53d   : > { %7054 = vst.msk [vmem:[#allocation3 + $0x48] sm:$0xf] %vm4541_vm10, %v6965_v13  ;;  %v7226_v52 = vsel %vm4783_vm8, %v8765_v28, 0  ;;  %v8750_v54 = vld [vmem:[#allocation3 + $0x10] sm:$0xff]  ;;  %v7404_v13 = vsel %vm4783_vm8, %v8756_v6, 0 }
 0x53e   : > { %7276 = vmatpush.bf16.xpose.msra.mxu2 %v7226_v52  ;;  %v6997_v43 = vpop.permute.xlu2 %6996  ;;  %v7386_v0 = vsel %vm4783_vm8, %v8750_v54, 0  ;;  %v8780_v47 = vld [vmem:[#allocation3 + $0x10] sm:$0xff] }
 0x53f   : > { %v7571_v56 = vsel %vm4783_vm8, %v8780_v47, 0 }
 0x542   : > { %v6967_v45 = vpop.permute.xlu1 %6966 }
 0x543   : > { %7055 = vst.msk [vmem:[#allocation3 + $0x4c] sm:$0xf] %vm4541_vm10, %v6967_v45  ;;  %v8794_v45 = vld [vmem:[#allocation3 + $0x80] sm:$0xff] }
 0x544   : > { %v6305_v46 = vpop.permute.xlu0 %6304  ;;  %7288 = vmatpush.bf16.xpose.msra.mxu3 %v7253_v61  ;;  %v7589_v61 = vsel %vm4783_vm8, %v8786_v63, 0 }
 0x545   : > { %6409 = vst.msk [vmem:[#allocation3 + $0xc] sm:$0xf] %vm3910_vm5, %v6305_v46  ;;  %v7613_v46 = vsel %vm4783_vm8, %v8794_v45, 0 }
 0x546   : > { %7039 = vst.msk [vmem:[#allocation3 + $0xc] sm:$0xf] %vm4541_vm10, %v6935_v31  ;;  %v6301_v44 = vpop.permute.xlu2 %6300  ;;  %v8785_v31 = vld [vmem:[#allocation3 + $0x38] sm:$0xff] }
 0x547   : > { %6407 = vst.msk [vmem:[#allocation3 + $0x4] sm:$0xf] %vm3910_vm5, %v6301_v44 }
 0x54a   : > { %v6933_v25 = vpop.permute.xlu1 %6932  ;;  %v8772_v17 = vld [vmem:[#allocation3 + $0x48] sm:$0xff] }
 0x54b   : > { %7038 = vst.msk [vmem:[#allocation3 + $0x8] sm:$0xf] %vm4541_vm10, %v6933_v25  ;;  %v7247_v32 = vsel %vm4783_vm8, %v8772_v17, 0  ;;  %v8757_v19 = vld [vmem:[#allocation3 + $0x48] sm:$0xff]  ;;  %v7586_v25 = vsel %vm4783_vm8, %v8785_v31, 0  ;;  %v8784_v17 = vld [vmem:[#allocation3 + $0x30] sm:$0xff] }
 0x54c   : > { %7289 = vmatpush.bf16.xpose.msra.mxu3 %v7250_v57  ;;  %v6367_v21 = vpop.permute.xlu0 %6366  ;;  %v7407_v8 = vsel %vm4783_vm8, %v8757_v19, 0  ;;  %v8787_v15 = vld [vmem:[#allocation3 + $0x48] sm:$0xff]  ;;  %v7610_v57 = vsel %vm4783_vm8, %v8793_v18, 0 }
 0x54d   : > { %6440 = vst.msk [vmem:[#allocation3 + $0x88] sm:$0xf] %vm3910_vm5, %v6367_v21  ;;  %v7592_v28 = vsel %vm4783_vm8, %v8787_v15, 0  ;;  %v7583_v21 = vsel %vm4783_vm8, %v8784_v17, 0 }
 0x54e   : > { %7070 = vst.msk [vmem:[#allocation3 + $0x88] sm:$0xf] %vm4541_vm10, %v6997_v43  ;;  %v8556_v43 = vld [vmem:[%s11142_s9 + $0x2] sm:$0x1] }
 0x552   : > { %v8764_v51 = vld [vmem:[#allocation3 + $0x8] sm:$0xff]  ;;  %v6369_v20 = vpop.permute.xlu1 %6368 }
 0x553   : > { %6441 = vst.msk [vmem:[#allocation3 + $0x8c] sm:$0xf] %vm3910_vm5, %v6369_v20  ;;  %v7223_v41 = vsel %vm4783_vm8, %v8764_v51, 0  ;;  %v8749_v14 = vld [vmem:[#allocation3 + $0x8] sm:$0xff]  ;;  %v7607_v51 = vsel %vm4783_vm8, %v8792_v22, 0 }
 0x554   : > { %7277 = vmatpush.bf16.xpose.msra.mxu2 %v7223_v41  ;;  %7290 = vmatpush.bf16.xpose.msra.mxu3 %v7247_v32  ;;  %v6999_v10 = vpop.permute.xlu0 %6998  ;;  %v7383_v60 = vsel %vm4783_vm8, %v8749_v14, 0  ;;  %v8783_v20 = vld [vmem:[#allocation3 + $0x28] sm:$0xff] }
 0x555   : > { %7071 = vst.msk [vmem:[#allocation3 + $0x8c] sm:$0xf] %vm4541_vm10, %v6999_v10  ;;  %v8791_v41 = vld [vmem:[#allocation3 + $0x68] sm:$0xff]  ;;  %v7580_v32 = vsel %vm4783_vm8, %v8783_v20, 0 }
 0x55a   : > { %v6299_v16 = vpop.permute.xlu1 %6298 }
 0x55b   : > { %6406 = vst.msk [vmem:[#allocation3] sm:$0xf] %vm3910_vm5, %v6299_v16  ;;  %8488 = vmatmul.msk.bf16.vlgmr.msra.gmra.mxu2 %vm4783_vm8, %v8423_v2  ;;  %8489 = vmatmul.msk.bf16.vlgmr.msra.gmra.mxu3 %vm4783_vm8, %v8423_v2  ;;  %v7577_v16 = vsel %vm4783_vm8, %v8782_v29, 0 }
 0x55c   : > { %7427 = vmatpush.bf16.xpose.msrb.mxu2 %v7401_v36  ;;  %7440 = vmatpush.bf16.xpose.msrb.mxu3 %v7425_v5  ;;  %v6929_v62 = vpop.permute.xlu0 %6928  ;;  %v8795_v26 = vld [vmem:[#allocation3 + $0x88] sm:$0xff]  ;;  %v7604_v36 = vsel %vm4783_vm8, %v8791_v41, 0  ;;  %v7654_v5 = vld [vmem:[%s11143_s10] sm:$0x3] }
 0x55d   : > { %7036 = vst.msk [vmem:[#allocation3] sm:$0xf] %vm4541_vm10, %v6929_v62  ;;  %v7616_v52 = vsel %vm4783_vm8, %v8795_v26, 0  ;;  %7657 = vperm.xlu2 %8845, %v7654_v5   ;;  %v8929_v62 = vmov 269488144  }
 0x562   : > { %v6931_v53 = vpop.permute.xlu1 %6930 }
 0x563   : > { %7037 = vst.msk [vmem:[#allocation3 + $0x4] sm:$0xf] %vm4541_vm10, %v6931_v53 }
 0x564   : > { %7428 = vmatpush.bf16.xpose.msrb.mxu2 %v7398_v38  ;;  %7441 = vmatpush.bf16.xpose.msrb.mxu3 %v7422_v35  ;;  %v7601_v38 = vsel %vm4783_vm8, %v8790_v40, 0  ;;  %v8781_v35 = vld [vmem:[#allocation3 + $0x18] sm:$0xff] }
 0x565   : > { %v7574_v12 = vsel %vm4783_vm8, %v8781_v35, 0 }
 0x56a   : > { %v8748_v34 = vld [vmem:[#allocation3] sm:$0xff] }
 0x56b   : > { %v7380_v55 = vsel %vm4783_vm8, %v8748_v34, 0 }
 0x56c   : > { %7429 = vmatpush.bf16.xpose.msrb.mxu2 %v7395_v7  ;;  %7442 = vmatpush.bf16.xpose.msrb.mxu3 %v7419_v1 }
 0x574   : > { %7430 = vmatpush.bf16.xpose.msrb.mxu2 %v7392_v33  ;;  %7443 = vmatpush.bf16.xpose.msrb.mxu3 %v7416_v42  ;;  %v7660_v33 = vunpack.c.l.s4 %v8929_v62 }
 0x576   : > { %v7661_v49 = vunpack.c.0.s8 %v7660_v33 }
 0x57c   : > { %7431 = vmatpush.bf16.xpose.msrb.mxu2 %v7389_v59  ;;  %7444 = vmatpush.bf16.xpose.msrb.mxu3 %v7413_v9 }
 0x584   : > { %7432 = vmatpush.bf16.xpose.msrb.mxu2 %v7386_v0  ;;  %7445 = vmatpush.bf16.xpose.msrb.mxu3 %v7410_v48  ;;  %v7646_v0 = vld [vmem:[%s424_s14] sm:$0xf] }
 0x58c   : > { %7433 = vmatpush.bf16.xpose.msrb.mxu2 %v7383_v60  ;;  %7446 = vmatpush.bf16.xpose.msrb.mxu3 %v7407_v8 }
 0x594   : > { %7434 = vmatpush.bf16.xpose.msrb.mxu2 %v7380_v55  ;;  %7447 = vmatpush.bf16.xpose.msrb.mxu3 %v7404_v13 }
 0x59b   : > { %8555 = vmatmul.msk.bf16.vlgmr.msrb.gmra.mxu3 %vm4783_vm8, %v7104_v4  ;;  %8554 = vmatmul.msk.bf16.vlgmr.msrb.gmra.mxu2 %vm4783_vm8, %v7104_v4 }
 0x59c   : > { %7618 = vmatpush.bf16.xpose.msra.mxu2 %v7592_v28  ;;  %7631 = vmatpush.bf16.xpose.msra.mxu3 %v7616_v52 }
 0x5a4   : > { %7619 = vmatpush.bf16.xpose.msra.mxu2 %v7589_v61  ;;  %7632 = vmatpush.bf16.xpose.msra.mxu3 %v7613_v46 }
 0x5ac   : > { %7620 = vmatpush.bf16.xpose.msra.mxu2 %v7586_v25  ;;  %7633 = vmatpush.bf16.xpose.msra.mxu3 %v7610_v57 }
 0x5b4   : > { %7621 = vmatpush.bf16.xpose.msra.mxu2 %v7583_v21  ;;  %7634 = vmatpush.bf16.xpose.msra.mxu3 %v7607_v51 }
 0x5b7   : > { %v7658_v9 = vpop.permute.xlu2 %7657 }
 0x5b8   : > { %v7662_v48 = vperm.slane %v7658_v9, %v7661_v49 }
 0x5bc   : > { %7622 = vmatpush.bf16.xpose.msra.mxu2 %v7580_v32  ;;  %7635 = vmatpush.bf16.xpose.msra.mxu3 %v7604_v36 }
 0x5c4   : > { %7623 = vmatpush.bf16.xpose.msra.mxu2 %v7577_v16  ;;  %7636 = vmatpush.bf16.xpose.msra.mxu3 %v7601_v38 }
 0x5cc   : > { %7624 = vmatpush.bf16.xpose.msra.mxu2 %v7574_v12  ;;  %7637 = vmatpush.bf16.xpose.msra.mxu3 %v7598_v39 }
 0x5d4   : > { %7625 = vmatpush.bf16.xpose.msra.mxu2 %v7571_v56  ;;  %7638 = vmatpush.bf16.xpose.msra.mxu3 %v7595_v30 }
 0x5db   : > { %8622 = vmatmul.msk.bf16.vlgmr.msra.gmra.mxu3 %vm4783_vm8, %v8556_v43  ;;  %8621 = vmatmul.msk.bf16.vlgmr.msra.gmra.mxu2 %vm4783_vm8, %v8556_v43 }
 0x5de   : > { %v7292_v3 = vpop.f32.mrf.mxu3  ;;  %v7279_v10 = vpop.f32.mrf.mxu2 }
 0x5e6   : > { %v7294_v7 = vpop.f32.mrf.mxu3  ;;  %v7281_v1 = vpop.f32.mrf.mxu2 }
 0x61e   : > { %v7449_v50 = vpop.f32.mrf.mxu3  ;;  %v7436_v24 = vpop.f32.mrf.mxu2 }
 0x61f   : > { %v7450_v42 = vadd.f32 %v7449_v50, %v7292_v3  ;;  %v7437_v58 = vadd.f32 %v7436_v24, %v7279_v10 }
 0x626   : > { %v7451_v11 = vpop.f32.mrf.mxu3  ;;  %v7438_v44 = vpop.f32.mrf.mxu2 }
 0x65e   : > { %v7640_v53 = vpop.f32.mrf.mxu3  ;;  %v7627_v2 = vpop.f32.mrf.mxu2 }
 0x65f   : > { %v7645_v59 = vadd.f32 %v7640_v53, %v7450_v42  ;;  %v7644_v27 = vadd.f32 %v7627_v2, %v7437_v58 }
 0x661   : > { %v7649_v54 = vrot.slane %v7645_v59, 6 }
 0x663   : > { %v7651_v14 = vsel %vm7650_vm7, %v7644_v27, %v7649_v54 }
 0x664   : > { %v7653_v19 = vadd.f32 %v7651_v14, %v7646_v0 }
 0x666   : > { %v7664_v60 = vadd.f32 %v7662_v48, %v7653_v19  ;;  %v7642_v8 = vpop.f32.mrf.mxu3  ;;  %v7629_v34 = vpop.f32.mrf.mxu2 }
 0x668   : > { %7665 = vst [vmem:[%s409_s21] sm:$0xf] %v7664_v60 }
 0x669   : > { %8886 = shalt.err (!%p8883_p3)
}
 0x66a   : > { %8799 = dma.vmem_to_hbm [thread:$0]  (%p9028_p5), %s7681_s29, 64, %s7683_s1, %s7667_s24  }
 0x66b PF: > { %p8805_p4 = scmp.ge.s32.totalorder %s8921_s20, 2  ;;  %s7694_s13 = sand.u32 1, %s8909_s17  }
 0x66c   : > { %s7695_s12 = scalar_lea.sflag [#allocation5], %s7694_s13 }
 0x66d   : > { %p8802_p7 = pnand %p8805_p4, %p9032_p6 }
 0x66f   : > { %p8803_p8 = pneg %p8802_p7 }
 0x671   : > { %8904 = dma.done.wait (%p8803_p8), %s7695_s12, 64  }
 0x672   : > { %8906 = vsyncadd (%p8803_p8), %s7695_s12, 4294967232  ;;  %p21_p9 = scmp.ge.s32.totalorder %s9015_s23, 4   ;;  %s11159_s17 = smov %s8913_s18 }
 0x673   : > { %s11160_s18 = smov %s8917_s19  ;;  %s11161_s19 = smov %s9026_s26 }
 0x674   : > { %s11162_s20 = smov %s9015_s23  ;;  %23 = sbr.rel (!%p21_p9) target bundleno = 6 (0x6), region = 115 }
 0x679   :  { %7701 = vsyncpa [#allocation5], 1 }
 0x67a   :  { %7703 = vsyncpa [#allocation5 + $0x1], 1 }

</bundles_post_ra>
